<compile_context>
chip_gen: v7x
topology: tpu7x:2x2x1
jax: 0.10.0
libtpu: 0.0.40
codegen_flags: <defaults>
</compile_context>

<pallas_src>
import functools

import jax
import jax.numpy as jnp
from jax import lax
from jax.experimental import pallas as pl
from jax.experimental.pallas import tpu as pltpu


def _round_up(x, m):
    return ((x + m - 1) // m) * m


def _cparams(dims):
    return pltpu.CompilerParams(
        dimension_semantics=dims, vmem_limit_bytes=32 * 1024 * 1024)


# ----------------------------------------------------------------------------
# Fused tiled matmul:  out = epi( prologue(A) @ B )
#   prologue(A) = relu?(A * pro_scale + pro_shift)   (per input channel  = K)
#   epi(Y)      = relu?(Y * epi_scale + epi_shift)   (per output channel = N)
# ----------------------------------------------------------------------------

def _mm_kernel(a_ref, b_ref, psc_ref, psh_ref, esc_ref, esh_ref, o_ref,
               acc_ref, *, pro, pro_relu, epi_relu):
    k = pl.program_id(2)

    @pl.when(k == 0)
    def _():
        acc_ref[...] = jnp.zeros_like(acc_ref)

    a = a_ref[...]
    if pro:  # BN(+ReLU) of the input channels, hidden under the MXU
        a = a.astype(jnp.float32) * psc_ref[...] + psh_ref[...]
        if pro_relu:
            a = jnp.maximum(a, 0.0)
        a = a.astype(b_ref.dtype)
    acc_ref[...] += jnp.dot(a, b_ref[...], preferred_element_type=jnp.float32)

    @pl.when(k == pl.num_programs(2) - 1)
    def _():
        y = acc_ref[...] * esc_ref[...] + esh_ref[...]
        if epi_relu:
            y = jnp.maximum(y, 0.0)
        o_ref[...] = y.astype(o_ref.dtype)


def fused_matmul(a, b, *, pro_scale=None, pro_shift=None, pro_relu=False,
                 epi_scale=None, epi_shift=None, epi_relu=False,
                 out_dtype=jnp.bfloat16, tm=256, tn=256, tk=512):
    """a: (M, K), b: (K, N).  bf16 MXU path with f32 accumulation."""
    M, K = a.shape
    Kb, N = b.shape
    assert K == Kb
    pro = (pro_scale is not None) or (pro_shift is not None)

    tm = min(tm, _round_up(M, 8))
    tn = min(tn, _round_up(N, 128))
    tk = min(tk, _round_up(K, 128))
    Mp, Np, Kp = _round_up(M, tm), _round_up(N, tn), _round_up(K, tk)

    a = jnp.pad(a.astype(jnp.bfloat16), ((0, Mp - M), (0, Kp - K)))
    b = jnp.pad(b.astype(jnp.bfloat16), ((0, Kp - K), (0, Np - N)))

    def _vec(v, n, n_pad, default):
        if v is None:
            v = jnp.full((n,), default, jnp.float32)
        v = jnp.asarray(v, jnp.float32).reshape(1, n)
        return jnp.pad(v, ((0, 0), (0, n_pad - n)))

    psc = _vec(pro_scale, K, Kp, 1.0)
    psh = _vec(pro_shift, K, Kp, 0.0)
    esc = _vec(epi_scale, N, Np, 1.0)
    esh = _vec(epi_shift, N, Np, 0.0)

    out = pl.pallas_call(
        functools.partial(_mm_kernel, pro=pro, pro_relu=pro_relu,
                          epi_relu=epi_relu),
        out_shape=jax.ShapeDtypeStruct((Mp, Np), out_dtype),
        grid=(Mp // tm, Np // tn, Kp // tk),
        in_specs=[
            pl.BlockSpec((tm, tk), lambda i, j, k: (i, k)),
            pl.BlockSpec((tk, tn), lambda i, j, k: (k, j)),
            pl.BlockSpec((1, tk), lambda i, j, k: (0, k)),
            pl.BlockSpec((1, tk), lambda i, j, k: (0, k)),
            pl.BlockSpec((1, tn), lambda i, j, k: (0, j)),
            pl.BlockSpec((1, tn), lambda i, j, k: (0, j)),
        ],
        out_specs=pl.BlockSpec((tm, tn), lambda i, j, k: (i, j)),
        scratch_shapes=[pltpu.VMEM((tm, tn), jnp.float32)],
        compiler_params=_cparams(("parallel", "parallel", "arbitrary")),
    )(a, b, psc, psh, esc, esh)
    return out[:M, :N]


# ----------------------------------------------------------------------------
# Direct 3x3 stride-1 pad-1 convolution: one image per grid step, 9 shifted
# tap matmuls accumulated from the VMEM-resident padded image (no im2col).
# ----------------------------------------------------------------------------

def _conv3x3_kernel(x_ref, w_ref, esc_ref, esh_ref, o_ref, *, epi_relu):
    Ho, Cout = o_ref.shape[1] // 1, o_ref.shape[2]
    HW = o_ref.shape[1]
    Cin = x_ref.shape[3]
    Hp, Wp = x_ref.shape[1], x_ref.shape[2]
    H, W = Hp - 2, Wp - 2
    acc = jnp.zeros((HW, Cout), jnp.float32)
    for t in range(9):
        dy, dx = divmod(t, 3)
        xs = x_ref[0, dy:dy + H, dx:dx + W, :].reshape(H * W, Cin)
        acc = acc + jnp.dot(xs, w_ref[t], preferred_element_type=jnp.float32)
    y = acc * esc_ref[...] + esh_ref[...]
    if epi_relu:
        y = jnp.maximum(y, 0.0)
    o_ref[0] = y.astype(o_ref.dtype)


def conv3x3(x, w_taps, *, epi_scale=None, epi_shift=None, epi_relu=False,
            out_dtype=jnp.bfloat16):
    """x: (B,H,W,Cin) already BN+ReLU'd.  w_taps: (9, Cin, Cout) bf16."""
    B, H, W, Cin = x.shape
    Cout = w_taps.shape[2]
    xp = jnp.pad(x.astype(jnp.bfloat16), ((0, 0), (1, 1), (1, 1), (0, 0)))
    esc = jnp.ones((1, Cout), jnp.float32) if epi_scale is None \
        else jnp.asarray(epi_scale, jnp.float32).reshape(1, Cout)
    esh = jnp.zeros((1, Cout), jnp.float32) if epi_shift is None \
        else jnp.asarray(epi_shift, jnp.float32).reshape(1, Cout)
    out = pl.pallas_call(
        functools.partial(_conv3x3_kernel, epi_relu=epi_relu),
        out_shape=jax.ShapeDtypeStruct((B, H * W, Cout), out_dtype),
        grid=(B,),
        in_specs=[
            pl.BlockSpec((1, H + 2, W + 2, Cin), lambda b: (b, 0, 0, 0)),
            pl.BlockSpec((9, Cin, Cout), lambda b: (0, 0, 0)),
            pl.BlockSpec((1, Cout), lambda b: (0, 0)),
            pl.BlockSpec((1, Cout), lambda b: (0, 0)),
        ],
        out_specs=pl.BlockSpec((1, H * W, Cout), lambda b: (b, 0, 0)),
        compiler_params=_cparams(("parallel",)),
    )(xp, w_taps, esc, esh)
    return out.reshape(B, H, W, Cout)


# ----------------------------------------------------------------------------
# Pooling kernels (row-wise, fed by zero-copy reshaped views).
# ----------------------------------------------------------------------------

def _maxpool_kernel(xm_ref, x0_ref, x1_ref, o_ref):
    i = pl.program_id(1)
    rm = xm_ref[0, 0].astype(jnp.float32)          # row 2i-1 (clamped)
    r0 = x0_ref[0, 0].astype(jnp.float32)          # row 2i
    r1 = x1_ref[0, 0].astype(jnp.float32)          # row 2i+1
    rm = jnp.where(i == 0, -jnp.inf, rm)
    h3 = jnp.maximum(jnp.maximum(rm, r0), r1)      # (Wo, 2, C)
    pair = jnp.max(h3, axis=1)                     # max(col 2j, col 2j+1)
    par = lax.broadcasted_iota(jnp.int32, h3.shape, 1)
    odd = jnp.max(jnp.where(par == 1, h3, -jnp.inf), axis=1)   # col 2j+1
    prev = pltpu.roll(odd, shift=1, axis=0)                    # col 2j-1
    row = lax.broadcasted_iota(jnp.int32, prev.shape, 0)
    prev = jnp.where(row == 0, -jnp.inf, prev)
    o_ref[0, 0] = jnp.maximum(pair, prev).astype(o_ref.dtype)


def maxpool_3x3_s2_p1(x):
    B, H, W, C = x.shape
    Ho, Wo = H // 2, W // 2
    xr = x.reshape(B, H, Wo, 2, C)                 # zero-copy view
    spec = lambda f: pl.BlockSpec((1, 1, Wo, 2, C), f)
    return pl.pallas_call(
        _maxpool_kernel,
        out_shape=jax.ShapeDtypeStruct((B, Ho, Wo, C), x.dtype),
        grid=(B, Ho),
        in_specs=[
            spec(lambda b, i: (b, jnp.maximum(2 * i - 1, 0), 0, 0, 0)),
            spec(lambda b, i: (b, 2 * i, 0, 0, 0)),
            spec(lambda b, i: (b, 2 * i + 1, 0, 0, 0)),
        ],
        out_specs=pl.BlockSpec((1, 1, Wo, C), lambda b, i: (b, i, 0, 0)),
        compiler_params=_cparams(("parallel", "parallel")),
    )(xr, xr, xr)


def _avgpool_kernel(x0_ref, x1_ref, o_ref):
    s = x0_ref[0, 0].astype(jnp.float32) + x1_ref[0, 0].astype(jnp.float32)
    o_ref[0, 0] = (0.25 * jnp.sum(s, axis=1)).astype(o_ref.dtype)


def avgpool_2x2_s2(x):
    B, H, W, C = x.shape
    Ho, Wo = H // 2, W // 2
    xr = x.reshape(B, H, Wo, 2, C)                 # zero-copy view
    spec = lambda f: pl.BlockSpec((1, 1, Wo, 2, C), f)
    return pl.pallas_call(
        _avgpool_kernel,
        out_shape=jax.ShapeDtypeStruct((B, Ho, Wo, C), x.dtype),
        grid=(B, Ho),
        in_specs=[spec(lambda b, i: (b, 2 * i, 0, 0, 0)),
                  spec(lambda b, i: (b, 2 * i + 1, 0, 0, 0))],
        out_specs=pl.BlockSpec((1, 1, Wo, C), lambda b, i: (b, i, 0, 0)),
        compiler_params=_cparams(("parallel", "parallel")),
    )(xr, xr)


def _gap_kernel(x_ref, sc_ref, sh_ref, o_ref):
    x = x_ref[0].astype(jnp.float32)               # (H*W, C)
    y = jnp.maximum(x * sc_ref[...] + sh_ref[...], 0.0)   # norm5 + ReLU fused
    o_ref[0] = jnp.mean(y, axis=0, keepdims=True)


def global_avgpool_bn_relu(x, scale, shift):
    B, H, W, C = x.shape
    xr = x.reshape(B, H * W, C)
    out = pl.pallas_call(
        _gap_kernel,
        out_shape=jax.ShapeDtypeStruct((B, 1, C), jnp.float32),
        grid=(B,),
        in_specs=[pl.BlockSpec((1, H * W, C), lambda b: (b, 0, 0)),
                  pl.BlockSpec((1, C), lambda b: (0, 0)),
                  pl.BlockSpec((1, C), lambda b: (0, 0))],
        out_specs=pl.BlockSpec((1, 1, C), lambda b: (b, 0, 0)),
        compiler_params=_cparams(("parallel",)),
    )(xr, scale, shift)
    return out[:, 0, :]


# ----------------------------------------------------------------------------
# Bidirectional GRU: both directions in one kernel (feature-stacked state of
# width 2H, block-diagonal recurrent weight), outputs flushed in T-chunks.
# PyTorch gate order [r, z, n], h0 = 0.
# ----------------------------------------------------------------------------

def _bigru_kernel(xg_ref, whh_ref, bhh_ref, o_ref, h_ref, *, hidden, t_chunk):
    Hd = hidden

    @pl.when(pl.program_id(0) == 0)
    def _():
        h_ref[...] = jnp.zeros_like(h_ref)

    def step(i, carry):
        h = h_ref[...]                                        # (Bp, 2H)
        xg = xg_ref[i]                                        # (Bp, 6H)
        hg = jnp.dot(h, whh_ref[...],
                     preferred_element_type=jnp.float32) + bhh_ref[...]

        def gates(xg3, hg3, hprev):
            r = jax.nn.sigmoid(xg3[:, :Hd] + hg3[:, :Hd])
            z = jax.nn.sigmoid(xg3[:, Hd:2 * Hd] + hg3[:, Hd:2 * Hd])
            n = jnp.tanh(xg3[:, 2 * Hd:] + r * hg3[:, 2 * Hd:])
            return (1.0 - z) * n + z * hprev

        hf = gates(xg[:, :3 * Hd], hg[:, :3 * Hd], h[:, :Hd])
        hr = gates(xg[:, 3 * Hd:], hg[:, 3 * Hd:], h[:, Hd:])
        h_new = jnp.concatenate([hf, hr], axis=-1)
        h_ref[...] = h_new
        o_ref[i] = h_new
        return carry

    lax.fori_loop(0, t_chunk, step, 0, unroll=True)


def bigru_layer(x, p):
    """x: (b, s, f) -> (b, s, 2H) with PyTorch bidirectional GRU semantics."""
    b, s, f = x.shape
    Hd = p["whh_blk"].shape[0] // 2

    # Input gate projections for both directions in one big matmul.
    xg = fused_matmul(x.reshape(b * s, f), p["wih"], epi_shift=p["bih"],
                      out_dtype=jnp.float32)                  # (b*s, 6H)
    xg = xg.reshape(b, s, 6 * Hd)
    # Reverse-direction gate inputs are time-reversed before the scan.
    xg = jnp.concatenate([xg[:, :, :3 * Hd], xg[:, ::-1, 3 * Hd:]], axis=-1)
    xg_t = jnp.transpose(xg, (1, 0, 2))                       # (s, b, 6H)

    t_chunk = 8
    Bp = _round_up(b, 8)
    Tp = _round_up(s, t_chunk)
    xg_t = jnp.pad(xg_t, ((0, Tp - s), (0, Bp - b), (0, 0)))

    out = pl.pallas_call(
        functools.partial(_bigru_kernel, hidden=Hd, t_chunk=t_chunk),
        out_shape=jax.ShapeDtypeStruct((Tp, Bp, 2 * Hd), jnp.float32),
        grid=(Tp // t_chunk,),
        in_specs=[
            pl.BlockSpec((t_chunk, Bp, 6 * Hd), lambda t: (t, 0, 0)),
            pl.BlockSpec((2 * Hd, 6 * Hd), lambda t: (0, 0)),
            pl.BlockSpec((1, 6 * Hd), lambda t: (0, 0)),
        ],
        out_specs=pl.BlockSpec((t_chunk, Bp, 2 * Hd), lambda t: (t, 0, 0)),
        scratch_shapes=[pltpu.VMEM((Bp, 2 * Hd), jnp.float32)],
        compiler_params=_cparams(("arbitrary",)),
    )(xg_t, p["whh_blk"], p["bhh"])

    out = out[:s, :b]                                         # (s, b, 2H)
    fwd = jnp.transpose(out[:, :, :Hd], (1, 0, 2))            # (b, s, H)
    rev = jnp.transpose(out[::-1, :, Hd:], (1, 0, 2))         # (b, s, H)
    return jnp.concatenate([fwd, rev], axis=-1)


# ----------------------------------------------------------------------------
# Glue: stem im2col (one-time), DenseNet wiring, forward.
# ----------------------------------------------------------------------------

def im2col(x, kh, kw, stride, padding):
    # TODO(synk): the 7x7/s2 stem conv still uses a one-time im2col; dense-block
    # 3x3 convs use the direct conv3x3 kernel instead.
    B, H, W, C = x.shape
    xp = jnp.pad(x, ((0, 0), (padding, padding), (padding, padding), (0, 0)))
    Ho = (H + 2 * padding - kh) // stride + 1
    Wo = (W + 2 * padding - kw) // stride + 1
    cols = []
    for dy in range(kh):
        for dx in range(kw):
            cols.append(
                xp[:, dy:dy + stride * Ho:stride, dx:dx + stride * Wo:stride, :])
    patches = jnp.stack(cols, axis=3)
    return patches.reshape(B * Ho * Wo, kh * kw * C), Ho, Wo


def encode(x_nhwc, bb):
    B = x_nhwc.shape[0]
    # Stem: conv0 (7x7/s2/p3) with norm0 + ReLU fused into the epilogue.
    patches, Ho, Wo = im2col(x_nhwc.astype(jnp.bfloat16), 7, 7, 2, 3)
    x = fused_matmul(patches, bb["stem_w"],
                     epi_scale=bb["norm0"]["scale"],
                     epi_shift=bb["norm0"]["shift"], epi_relu=True)
    x = x.reshape(B, Ho, Wo, -1)
    x = maxpool_3x3_s2_p1(x)

    for blk in bb["blocks"]:
        for lp in blk["layers"]:
            B_, H_, W_, C_ = x.shape
            # norm1+ReLU (prologue) -> 1x1 conv -> norm2+ReLU (epilogue)
            bott = fused_matmul(
                x.reshape(-1, C_), lp["w1"],
                pro_scale=lp["bn1"]["scale"], pro_shift=lp["bn1"]["shift"],
                pro_relu=True,
                epi_scale=lp["bn2"]["scale"], epi_shift=lp["bn2"]["shift"],
                epi_relu=True)
            bott = bott.reshape(B_, H_, W_, -1)
            y = conv3x3(bott, lp["w2"])                       # 3x3, growth ch
            # TODO(synk): the DenseNet concat could write into a preallocated
            # wide buffer (input_output_aliases) to cut O(L^2) copy traffic.
            x = jnp.concatenate([x, y], axis=-1)
        tr = blk["transition"]
        if tr is not None:
            B_, H_, W_, C_ = x.shape
            y = fused_matmul(x.reshape(-1, C_), tr["w"],
                             pro_scale=tr["bn"]["scale"],
                             pro_shift=tr["bn"]["shift"], pro_relu=True)
            x = avgpool_2x2_s2(y.reshape(B_, H_, W_, -1))

    # norm5 + ReLU + AdaptiveAvgPool2d((1,1)) in one reduction kernel.
    feats = global_avgpool_bn_relu(x, bb["norm5"]["scale"], bb["norm5"]["shift"])
    # TODO(synk): nn.Dropout(p=0.5) is inference-mode identity (no RNG mask).
    return feats                                              # (B, C) f32


def forward(x, params):
    """x: (b, s, c, h, w) float32 (PyTorch NCHW-per-frame convention)."""
    b, s, c, h, w = x.shape
    xf = jnp.transpose(x.reshape(b * s, c, h, w), (0, 2, 3, 1))   # -> NHWC
    feats = encode(xf, params["backbone"])
    feats = feats.reshape(b, s, -1)
    y = bigru_layer(feats, params["gru1"])
    y = bigru_layer(y, params["gru2"])
    hidden = y.shape[-1]
    logits = fused_matmul(y.reshape(b * s, hidden), params["fc_w"],
                          epi_shift=params["fc_b"], out_dtype=jnp.float32)
    return logits                                             # (b*s, classes)


# ----------------------------------------------------------------------------
# Deterministic parameter initialisation (pre-packed for the kernels).
# Scaled-down DenseNet config; densenet201 = 64/32/4/(6,12,48,32), same path.
# ----------------------------------------------------------------------------

def _key_stream(key):
    while True:
        key, sub = jax.random.split(key)
        yield sub


def prep_gru(dirs):
    Hd = dirs[0]["w_hh"].shape[1]
    wih = jnp.concatenate([dirs[0]["w_ih"].T, dirs[1]["w_ih"].T], axis=1)
    bih = jnp.concatenate([dirs[0]["b_ih"], dirs[1]["b_ih"]])
    whh_blk = jnp.zeros((2 * Hd, 6 * Hd), jnp.float32)
    whh_blk = whh_blk.at[:Hd, :3 * Hd].set(dirs[0]["w_hh"].T)
    whh_blk = whh_blk.at[Hd:, 3 * Hd:].set(dirs[1]["w_hh"].T)
    bhh = jnp.concatenate([dirs[0]["b_hh"], dirs[1]["b_hh"]]).reshape(1, 6 * Hd)
    return {"wih": wih.astype(jnp.bfloat16), "bih": bih.astype(jnp.float32),
            "whh_blk": whh_blk, "bhh": bhh.astype(jnp.float32)}


def init_params(key, num_classes, hidden_size, in_ch=3, num_init=16, growth=8,
                bn_size=2, block_config=(2, 2)):
    ks = _key_stream(key)

    def convw(*shape):
        return 0.05 * jax.random.normal(next(ks), shape, jnp.float32)

    def bn(c):  # inference BN folded into y = x*scale + shift
        gamma = 1.0 + 0.1 * jax.random.normal(next(ks), (c,), jnp.float32)
        beta = 0.1 * jax.random.normal(next(ks), (c,), jnp.float32)
        mean = 0.1 * jax.random.normal(next(ks), (c,), jnp.float32)
        var = 1.0 + 0.1 * jnp.abs(jax.random.normal(next(ks), (c,), jnp.float32))
        scale = gamma / jnp.sqrt(var + 1e-5)
        shift = beta - mean * scale
        return {"scale": scale.reshape(1, c), "shift": shift.reshape(1, c)}

    w0 = convw(num_init, in_ch, 7, 7)
    backbone = {
        "stem_w": jnp.transpose(w0, (2, 3, 1, 0)).reshape(
            49 * in_ch, num_init).astype(jnp.bfloat16),
        "norm0": bn(num_init),
    }
    ch = num_init
    blocks = []
    for bi, nlayers in enumerate(block_config):
        layers = []
        for _ in range(nlayers):
            w1 = convw(bn_size * growth, ch, 1, 1)
            w2 = convw(growth, bn_size * growth, 3, 3)
            layers.append({
                "bn1": bn(ch),
                "w1": w1[:, :, 0, 0].T.astype(jnp.bfloat16),
                "bn2": bn(bn_size * growth),
                "w2": jnp.transpose(w2, (2, 3, 1, 0)).reshape(
                    9, bn_size * growth, growth).astype(jnp.bfloat16),
            })
            ch += growth
        tr = None
        if bi != len(block_config) - 1:
            wt = convw(ch // 2, ch, 1, 1)
            tr = {"bn": bn(ch), "w": wt[:, :, 0, 0].T.astype(jnp.bfloat16)}
            ch = ch // 2
        blocks.append({"layers": layers, "transition": tr})
    backbone["blocks"] = blocks
    backbone["norm5"] = bn(ch)

    Hd = hidden_size // 2

    def gru(in_dim):
        dirs = []
        for _ in range(2):  # forward, reverse
            dirs.append({
                "w_ih": 0.1 * jax.random.normal(next(ks), (3 * Hd, in_dim)),
                "w_hh": 0.1 * jax.random.normal(next(ks), (3 * Hd, Hd)),
                "b_ih": 0.1 * jax.random.normal(next(ks), (3 * Hd,)),
                "b_hh": 0.1 * jax.random.normal(next(ks), (3 * Hd,)),
            })
        return prep_gru(dirs)

    fc_w = 0.1 * jax.random.normal(next(ks), (num_classes, hidden_size))
    return {
        "backbone": backbone,
        "gru1": gru(ch),
        "gru2": gru(hidden_size),
        "fc_w": fc_w.T.astype(jnp.bfloat16),
        "fc_b": jnp.zeros((num_classes,), jnp.float32),
    }


# ----------------------------------------------------------------------------
# Main
# ----------------------------------------------------------------------------

if __name__ == "__main__":
    key = jax.random.PRNGKey(0)
    kx, kp = jax.random.split(key)

    b, s, c, h, w = 2, 3, 3, 32, 32
    num_classes, hidden_size = 5, 32

    x = jax.random.normal(kx, (b, s, c, h, w), jnp.float32)
    params = init_params(kp, num_classes, hidden_size)

    fwd = jax.jit(forward)
    out = jax.block_until_ready(fwd(x, params))

    assert out.shape == (b * s, num_classes), out.shape
    assert bool(jnp.all(jnp.isfinite(out)))
    print("KERNEL_OK")
</pallas_src>

<mosaic_0001>
module attributes {stable_mosaic.version = 11 : i64} {
  func.func @_maxpool_kernel(%arg0: i32, %arg1: i32, %arg2: memref<1x1x8x2x16xbf16, #tpu.memory_space<vmem>>, %arg3: memref<1x1x8x2x16xbf16, #tpu.memory_space<vmem>>, %arg4: memref<1x1x8x2x16xbf16, #tpu.memory_space<vmem>>, %arg5: memref<1x1x8x16xbf16, #tpu.memory_space<vmem>>) attributes {dimension_semantics = [#tpu.dimension_semantics<parallel>, #tpu.dimension_semantics<parallel>], iteration_bounds = array<i64: 6, 8>, scalar_prefetch = 0 : i64, scratch_operands = 0 : i64, tpu.core_type = #tpu.core_type<tc>, window_params = [{transform_indices = @transform_0, window_bounds = array<i64: 1, 1, 8, 2, 16>}, {transform_indices = @transform_1, window_bounds = array<i64: 1, 1, 8, 2, 16>}, {transform_indices = @transform_2, window_bounds = array<i64: 1, 1, 8, 2, 16>}, {transform_indices = @transform_3, window_bounds = array<i64: 1, 1, 8, 16>}]} {
    %c0 = arith.constant 0 : index
    %c0_0 = arith.constant 0 : index
    %c0_1 = arith.constant 0 : index
    %c0_2 = arith.constant 0 : index
    %c0_3 = arith.constant 0 : index
    %0 = vector.load %arg2[%c0, %c0_0, %c0_1, %c0_2, %c0_3] : memref<1x1x8x2x16xbf16, #tpu.memory_space<vmem>>, vector<1x1x8x2x16xbf16>
    %1 = vector.shape_cast %0 : vector<1x1x8x2x16xbf16> to vector<8x2x16xbf16>
    %2 = arith.extf %1 : vector<8x2x16xbf16> to vector<8x2x16xf32>
    %c0_4 = arith.constant 0 : index
    %c0_5 = arith.constant 0 : index
    %c0_6 = arith.constant 0 : index
    %c0_7 = arith.constant 0 : index
    %c0_8 = arith.constant 0 : index
    %3 = vector.load %arg3[%c0_4, %c0_5, %c0_6, %c0_7, %c0_8] : memref<1x1x8x2x16xbf16, #tpu.memory_space<vmem>>, vector<1x1x8x2x16xbf16>
    %4 = vector.shape_cast %3 : vector<1x1x8x2x16xbf16> to vector<8x2x16xbf16>
    %5 = arith.extf %4 : vector<8x2x16xbf16> to vector<8x2x16xf32>
    %c0_9 = arith.constant 0 : index
    %c0_10 = arith.constant 0 : index
    %c0_11 = arith.constant 0 : index
    %c0_12 = arith.constant 0 : index
    %c0_13 = arith.constant 0 : index
    %6 = vector.load %arg4[%c0_9, %c0_10, %c0_11, %c0_12, %c0_13] : memref<1x1x8x2x16xbf16, #tpu.memory_space<vmem>>, vector<1x1x8x2x16xbf16>
    %7 = vector.shape_cast %6 : vector<1x1x8x2x16xbf16> to vector<8x2x16xbf16>
    %8 = arith.extf %7 : vector<8x2x16xbf16> to vector<8x2x16xf32>
    %c0_i32 = arith.constant 0 : i32
    %9 = arith.cmpi eq, %arg1, %c0_i32 : i32
    %cst = arith.constant 0xFF800000 : f32
    %10 = vector.broadcast %cst : f32 to vector<8x2x16xf32>
    %11 = arith.select %9, %10, %2 : vector<8x2x16xf32>
    %12 = arith.maximumf %11, %5 : vector<8x2x16xf32>
    %13 = arith.maximumf %12, %8 : vector<8x2x16xf32>
    %cst_14 = arith.constant dense<0xFF800000> : vector<8x16xf32>
    %14 = vector.multi_reduction <maximumf>, %13, %cst_14 [1] : vector<8x2x16xf32> to vector<8x16xf32>
    %15 = tpu.iota {dimensions = array<i32: 1>} : vector<8x2x16xi32>
    %c1_i32 = arith.constant 1 : i32
    %16 = vector.broadcast %c1_i32 : i32 to vector<8x2x16xi32>
    %17 = arith.cmpi eq, %15, %16 : vector<8x2x16xi32>
    %cst_15 = arith.constant 0xFF800000 : f32
    %18 = vector.broadcast %cst_15 : f32 to vector<8x2x16xf32>
    %19 = arith.select %17, %13, %18 : vector<8x2x16xi1>, vector<8x2x16xf32>
    %cst_16 = arith.constant dense<0xFF800000> : vector<8x16xf32>
    %20 = vector.multi_reduction <maximumf>, %19, %cst_16 [1] : vector<8x2x16xf32> to vector<8x16xf32>
    %c1_i32_17 = arith.constant 1 : i32
    %21 = tpu.dynamic_rotate %20 by %c1_i32_17 dim 0 : vector<8x16xf32>, i32 -> vector<8x16xf32>
    %22 = tpu.iota {dimensions = array<i32: 0>} : vector<8x16xi32>
    %c0_i32_18 = arith.constant 0 : i32
    %23 = vector.broadcast %c0_i32_18 : i32 to vector<8x16xi32>
    %24 = arith.cmpi eq, %22, %23 : vector<8x16xi32>
    %cst_19 = arith.constant 0xFF800000 : f32
    %25 = vector.broadcast %cst_19 : f32 to vector<8x16xf32>
    %26 = arith.select %24, %25, %21 : vector<8x16xi1>, vector<8x16xf32>
    %27 = arith.maximumf %14, %26 : vector<8x16xf32>
    %28 = arith.truncf %27 : vector<8x16xf32> to vector<8x16xbf16>
    %c0_20 = arith.constant 0 : index
    %c0_21 = arith.constant 0 : index
    %c0_22 = arith.constant 0 : index
    %c0_23 = arith.constant 0 : index
    %29 = vector.load %arg5[%c0_20, %c0_21, %c0_22, %c0_23] : memref<1x1x8x16xbf16, #tpu.memory_space<vmem>>, vector<1x1x8x16xbf16>
    %30 = vector.shape_cast %29 : vector<1x1x8x16xbf16> to vector<8x16xbf16>
    %31 = vector.shape_cast %28 : vector<8x16xbf16> to vector<1x1x8x16xbf16>
    tpu.vector_store %arg5[%c0_20, %c0_21, %c0_22, %c0_23], %31 {strides = array<i32>} : memref<1x1x8x16xbf16, #tpu.memory_space<vmem>>, vector<1x1x8x16xbf16>,
    return
  }
  func.func @transform_0(%arg0: i32, %arg1: i32) -> (i32, i32, i32, i32, i32) {
    %c2_i32 = arith.constant 2 : i32
    %0 = arith.muli %c2_i32, %arg1 : i32
    %c1_i32 = arith.constant 1 : i32
    %1 = arith.subi %0, %c1_i32 : i32
    %c0_i32 = arith.constant 0 : i32
    %2 = arith.maxsi %1, %c0_i32 : i32
    %c0_i32_0 = arith.constant 0 : i32
    %c0_i32_1 = arith.constant 0 : i32
    %c0_i32_2 = arith.constant 0 : i32
    %c0_i32_3 = arith.constant 0 : i32
    return %arg0, %2, %c0_i32_0, %c0_i32_1, %c0_i32_2 : i32, i32, i32, i32, i32
  }
  func.func @transform_1(%arg0: i32, %arg1: i32) -> (i32, i32, i32, i32, i32) {
    %c2_i32 = arith.constant 2 : i32
    %0 = arith.muli %c2_i32, %arg1 : i32
    %c0_i32 = arith.constant 0 : i32
    %c0_i32_0 = arith.constant 0 : i32
    %c0_i32_1 = arith.constant 0 : i32
    %c0_i32_2 = arith.constant 0 : i32
    return %arg0, %0, %c0_i32, %c0_i32_0, %c0_i32_1 : i32, i32, i32, i32, i32
  }
  func.func @transform_2(%arg0: i32, %arg1: i32) -> (i32, i32, i32, i32, i32) {
    %c2_i32 = arith.constant 2 : i32
    %0 = arith.muli %c2_i32, %arg1 : i32
    %c1_i32 = arith.constant 1 : i32
    %1 = arith.addi %0, %c1_i32 : i32
    %c0_i32 = arith.constant 0 : i32
    %c0_i32_0 = arith.constant 0 : i32
    %c0_i32_1 = arith.constant 0 : i32
    %c0_i32_2 = arith.constant 0 : i32
    return %arg0, %1, %c0_i32, %c0_i32_0, %c0_i32_1 : i32, i32, i32, i32, i32
  }
  func.func @transform_3(%arg0: i32, %arg1: i32) -> (i32, i32, i32, i32) {
    %c0_i32 = arith.constant 0 : i32
    %c0_i32_0 = arith.constant 0 : i32
    %c0_i32_1 = arith.constant 0 : i32
    return %arg0, %arg1, %c0_i32, %c0_i32_0 : i32, i32, i32, i32
  }
}

module attributes {stable_mosaic.version = 11 : i64} {
  func.func @_mm_kernel(%arg0: i32, %arg1: i32, %arg2: i32, %arg3: memref<256x256xbf16, #tpu.memory_space<vmem>>, %arg4: memref<256x128xbf16, #tpu.memory_space<vmem>>, %arg5: memref<1x256xf32, #tpu.memory_space<vmem>>, %arg6: memref<1x256xf32, #tpu.memory_space<vmem>>, %arg7: memref<1x128xf32, #tpu.memory_space<vmem>>, %arg8: memref<1x128xf32, #tpu.memory_space<vmem>>, %arg9: memref<256x128xbf16, #tpu.memory_space<vmem>>, %arg10: memref<256x128xf32, #tpu.memory_space<vmem>>) attributes {dimension_semantics = [#tpu.dimension_semantics<parallel>, #tpu.dimension_semantics<parallel>, #tpu.dimension_semantics<arbitrary>], iteration_bounds = array<i64: 6, 1, 1>, scalar_prefetch = 0 : i64, scratch_operands = 1 : i64, tpu.core_type = #tpu.core_type<tc>, window_params = [{transform_indices = @transform_0, window_bounds = array<i64: 256, 256>}, {transform_indices = @transform_1, window_bounds = array<i64: 256, 128>}, {transform_indices = @transform_2, window_bounds = array<i64: 1, 256>}, {transform_indices = @transform_3, window_bounds = array<i64: 1, 256>}, {transform_indices = @transform_4, window_bounds = array<i64: 1, 128>}, {transform_indices = @transform_5, window_bounds = array<i64: 1, 128>}, {transform_indices = @transform_6, window_bounds = array<i64: 256, 128>}]} {
    %c0_i32 = arith.constant 0 : i32
    %0 = arith.cmpi eq, %arg2, %c0_i32 : i32
    %1 = arith.extui %0 : i1 to i32
    %c0_i32_0 = arith.constant 0 : i32
    %2 = arith.cmpi ne, %1, %c0_i32_0 : i32
    scf.if %2 {
      %cst_10 = arith.constant 0.000000e+00 : f32
      %12 = vector.broadcast %cst_10 : f32 to vector<256x128xf32>
      %c0_11 = arith.constant 0 : index
      %c0_12 = arith.constant 0 : index
      %13 = vector.load %arg10[%c0_11, %c0_12] : memref<256x128xf32, #tpu.memory_space<vmem>>, vector<256x128xf32>
      tpu.vector_store %arg10[%c0_11, %c0_12], %12 {strides = array<i32>} : memref<256x128xf32, #tpu.memory_space<vmem>>, vector<256x128xf32>,
    } else {
    }
    %c0 = arith.constant 0 : index
    %c0_1 = arith.constant 0 : index
    %3 = vector.load %arg3[%c0, %c0_1] : memref<256x256xbf16, #tpu.memory_space<vmem>>, vector<256x256xbf16>
    %c0_2 = arith.constant 0 : index
    %c0_3 = arith.constant 0 : index
    %4 = vector.load %arg10[%c0_2, %c0_3] : memref<256x128xf32, #tpu.memory_space<vmem>>, vector<256x128xf32>
    %c0_4 = arith.constant 0 : index
    %c0_5 = arith.constant 0 : index
    %5 = vector.load %arg4[%c0_4, %c0_5] : memref<256x128xbf16, #tpu.memory_space<vmem>>, vector<256x128xbf16>
    %cst = arith.constant dense<0.000000e+00> : vector<256x128xf32>
    %6 = tpu.matmul %3, %5, %cst {dimension_numbers = #tpu.dot_dimension_numbers<[1], [0], [0], [1], [0, 0, 1, 1], [], []>} : vector<256x256xbf16>, vector<256x128xbf16>, vector<256x128xf32> -> vector<256x128xf32>
    %7 = arith.addf %4, %6 : vector<256x128xf32>
    %c0_6 = arith.constant 0 : index
    %c0_7 = arith.constant 0 : index
    %8 = vector.load %arg10[%c0_6, %c0_7] : memref<256x128xf32, #tpu.memory_space<vmem>>, vector<256x128xf32>
    tpu.vector_store %arg10[%c0_6, %c0_7], %7 {strides = array<i32>} : memref<256x128xf32, #tpu.memory_space<vmem>>, vector<256x128xf32>,
    %c0_i32_8 = arith.constant 0 : i32
    %9 = arith.cmpi eq, %arg2, %c0_i32_8 : i32
    %10 = arith.extui %9 : i1 to i32
    %c0_i32_9 = arith.constant 0 : i32
    %11 = arith.cmpi ne, %10, %c0_i32_9 : i32
    scf.if %11 {
      %c0_10 = arith.constant 0 : index
      %c0_11 = arith.constant 0 : index
      %12 = vector.load %arg10[%c0_10, %c0_11] : memref<256x128xf32, #tpu.memory_space<vmem>>, vector<256x128xf32>
      %c0_12 = arith.constant 0 : index
      %c0_13 = arith.constant 0 : index
      %13 = vector.load %arg7[%c0_12, %c0_13] : memref<1x128xf32, #tpu.memory_space<vmem>>, vector<1x128xf32>
      %14 = vector.broadcast %13 : vector<1x128xf32> to vector<256x128xf32>
      %15 = arith.mulf %12, %14 : vector<256x128xf32>
      %c0_14 = arith.constant 0 : index
      %c0_15 = arith.constant 0 : index
      %16 = vector.load %arg8[%c0_14, %c0_15] : memref<1x128xf32, #tpu.memory_space<vmem>>, vector<1x128xf32>
      %17 = vector.broadcast %16 : vector<1x128xf32> to vector<256x128xf32>
      %18 = arith.addf %15, %17 : vector<256x128xf32>
      %cst_16 = arith.constant 0.000000e+00 : f32
      %19 = vector.broadcast %cst_16 : f32 to vector<256x128xf32>
      %20 = arith.maximumf %18, %19 : vector<256x128xf32>
      %21 = arith.truncf %20 : vector<256x128xf32> to vector<256x128xbf16>
      %c0_17 = arith.constant 0 : index
      %c0_18 = arith.constant 0 : index
      %22 = vector.load %arg9[%c0_17, %c0_18] : memref<256x128xbf16, #tpu.memory_space<vmem>>, vector<256x128xbf16>
      tpu.vector_store %arg9[%c0_17, %c0_18], %21 {strides = array<i32>} : memref<256x128xbf16, #tpu.memory_space<vmem>>, vector<256x128xbf16>,
    } else {
    }
    return
  }
  func.func @transform_0(%arg0: i32, %arg1: i32, %arg2: i32) -> (i32, i32) {
    %c0_i32 = arith.constant 0 : i32
    return %arg0, %arg2 : i32, i32
  }
  func.func @transform_1(%arg0: i32, %arg1: i32, %arg2: i32) -> (i32, i32) {
    %c0_i32 = arith.constant 0 : i32
    return %arg2, %arg1 : i32, i32
  }
  func.func @transform_2(%arg0: i32, %arg1: i32, %arg2: i32) -> (i32, i32) {
    %c0_i32 = arith.constant 0 : i32
    %c0_i32_0 = arith.constant 0 : i32
    return %c0_i32, %arg2 : i32, i32
  }
  func.func @transform_3(%arg0: i32, %arg1: i32, %arg2: i32) -> (i32, i32) {
    %c0_i32 = arith.constant 0 : i32
    %c0_i32_0 = arith.constant 0 : i32
    return %c0_i32, %arg2 : i32, i32
  }
  func.func @transform_4(%arg0: i32, %arg1: i32, %arg2: i32) -> (i32, i32) {
    %c0_i32 = arith.constant 0 : i32
    %c0_i32_0 = arith.constant 0 : i32
    return %c0_i32, %arg1 : i32, i32
  }
  func.func @transform_5(%arg0: i32, %arg1: i32, %arg2: i32) -> (i32, i32) {
    %c0_i32 = arith.constant 0 : i32
    %c0_i32_0 = arith.constant 0 : i32
    return %c0_i32, %arg1 : i32, i32
  }
  func.func @transform_6(%arg0: i32, %arg1: i32, %arg2: i32) -> (i32, i32) {
    %c0_i32 = arith.constant 0 : i32
    return %arg0, %arg1 : i32, i32
  }
}

module attributes {stable_mosaic.version = 11 : i64} {
  func.func @_mm_kernel(%arg0: i32, %arg1: i32, %arg2: i32, %arg3: memref<256x128xbf16, #tpu.memory_space<vmem>>, %arg4: memref<128x128xbf16, #tpu.memory_space<vmem>>, %arg5: memref<1x128xf32, #tpu.memory_space<vmem>>, %arg6: memref<1x128xf32, #tpu.memory_space<vmem>>, %arg7: memref<1x128xf32, #tpu.memory_space<vmem>>, %arg8: memref<1x128xf32, #tpu.memory_space<vmem>>, %arg9: memref<256x128xbf16, #tpu.memory_space<vmem>>, %arg10: memref<256x128xf32, #tpu.memory_space<vmem>>) attributes {dimension_semantics = [#tpu.dimension_semantics<parallel>, #tpu.dimension_semantics<parallel>, #tpu.dimension_semantics<arbitrary>], iteration_bounds = array<i64: 2, 1, 1>, scalar_prefetch = 0 : i64, scratch_operands = 1 : i64, tpu.core_type = #tpu.core_type<tc>, window_params = [{transform_indices = @transform_0, window_bounds = array<i64: 256, 128>}, {transform_indices = @transform_1, window_bounds = array<i64: 128, 128>}, {transform_indices = @transform_2, window_bounds = array<i64: 1, 128>}, {transform_indices = @transform_3, window_bounds = array<i64: 1, 128>}, {transform_indices = @transform_4, window_bounds = array<i64: 1, 128>}, {transform_indices = @transform_5, window_bounds = array<i64: 1, 128>}, {transform_indices = @transform_6, window_bounds = array<i64: 256, 128>}]} {
    %c0_i32 = arith.constant 0 : i32
    %0 = arith.cmpi eq, %arg2, %c0_i32 : i32
    %1 = arith.extui %0 : i1 to i32
    %c0_i32_0 = arith.constant 0 : i32
    %2 = arith.cmpi ne, %1, %c0_i32_0 : i32
    scf.if %2 {
      %cst_15 = arith.constant 0.000000e+00 : f32
      %22 = vector.broadcast %cst_15 : f32 to vector<256x128xf32>
      %c0_16 = arith.constant 0 : index
      %c0_17 = arith.constant 0 : index
      %23 = vector.load %arg10[%c0_16, %c0_17] : memref<256x128xf32, #tpu.memory_space<vmem>>, vector<256x128xf32>
      tpu.vector_store %arg10[%c0_16, %c0_17], %22 {strides = array<i32>} : memref<256x128xf32, #tpu.memory_space<vmem>>, vector<256x128xf32>,
    } else {
    }
    %c0 = arith.constant 0 : index
    %c0_1 = arith.constant 0 : index
    %3 = vector.load %arg3[%c0, %c0_1] : memref<256x128xbf16, #tpu.memory_space<vmem>>, vector<256x128xbf16>
    %4 = arith.extf %3 : vector<256x128xbf16> to vector<256x128xf32>
    %c0_2 = arith.constant 0 : index
    %c0_3 = arith.constant 0 : index
    %5 = vector.load %arg5[%c0_2, %c0_3] : memref<1x128xf32, #tpu.memory_space<vmem>>, vector<1x128xf32>
    %6 = vector.broadcast %5 : vector<1x128xf32> to vector<256x128xf32>
    %7 = arith.mulf %4, %6 : vector<256x128xf32>
    %c0_4 = arith.constant 0 : index
    %c0_5 = arith.constant 0 : index
    %8 = vector.load %arg6[%c0_4, %c0_5] : memref<1x128xf32, #tpu.memory_space<vmem>>, vector<1x128xf32>
    %9 = vector.broadcast %8 : vector<1x128xf32> to vector<256x128xf32>
    %10 = arith.addf %7, %9 : vector<256x128xf32>
    %cst = arith.constant 0.000000e+00 : f32
    %11 = vector.broadcast %cst : f32 to vector<256x128xf32>
    %12 = arith.maximumf %10, %11 : vector<256x128xf32>
    %13 = arith.truncf %12 : vector<256x128xf32> to vector<256x128xbf16>
    %c0_6 = arith.constant 0 : index
    %c0_7 = arith.constant 0 : index
    %14 = vector.load %arg10[%c0_6, %c0_7] : memref<256x128xf32, #tpu.memory_space<vmem>>, vector<256x128xf32>
    %c0_8 = arith.constant 0 : index
    %c0_9 = arith.constant 0 : index
    %15 = vector.load %arg4[%c0_8, %c0_9] : memref<128x128xbf16, #tpu.memory_space<vmem>>, vector<128x128xbf16>
    %cst_10 = arith.constant dense<0.000000e+00> : vector<256x128xf32>
    %16 = tpu.matmul %13, %15, %cst_10 {dimension_numbers = #tpu.dot_dimension_numbers<[1], [0], [0], [1], [0, 0, 1, 1], [], []>} : vector<256x128xbf16>, vector<128x128xbf16>, vector<256x128xf32> -> vector<256x128xf32>
    %17 = arith.addf %14, %16 : vector<256x128xf32>
    %c0_11 = arith.constant 0 : index
    %c0_12 = arith.constant 0 : index
    %18 = vector.load %arg10[%c0_11, %c0_12] : memref<256x128xf32, #tpu.memory_space<vmem>>, vector<256x128xf32>
    tpu.vector_store %arg10[%c0_11, %c0_12], %17 {strides = array<i32>} : memref<256x128xf32, #tpu.memory_space<vmem>>, vector<256x128xf32>,
    %c0_i32_13 = arith.constant 0 : i32
    %19 = arith.cmpi eq, %arg2, %c0_i32_13 : i32
    %20 = arith.extui %19 : i1 to i32
    %c0_i32_14 = arith.constant 0 : i32
    %21 = arith.cmpi ne, %20, %c0_i32_14 : i32
    scf.if %21 {
      %c0_15 = arith.constant 0 : index
      %c0_16 = arith.constant 0 : index
      %22 = vector.load %arg10[%c0_15, %c0_16] : memref<256x128xf32, #tpu.memory_space<vmem>>, vector<256x128xf32>
      %c0_17 = arith.constant 0 : index
      %c0_18 = arith.constant 0 : index
      %23 = vector.load %arg7[%c0_17, %c0_18] : memref<1x128xf32, #tpu.memory_space<vmem>>, vector<1x128xf32>
      %24 = vector.broadcast %23 : vector<1x128xf32> to vector<256x128xf32>
      %25 = arith.mulf %22, %24 : vector<256x128xf32>
      %c0_19 = arith.constant 0 : index
      %c0_20 = arith.constant 0 : index
      %26 = vector.load %arg8[%c0_19, %c0_20] : memref<1x128xf32, #tpu.memory_space<vmem>>, vector<1x128xf32>
      %27 = vector.broadcast %26 : vector<1x128xf32> to vector<256x128xf32>
      %28 = arith.addf %25, %27 : vector<256x128xf32>
      %cst_21 = arith.constant 0.000000e+00 : f32
      %29 = vector.broadcast %cst_21 : f32 to vector<256x128xf32>
      %30 = arith.maximumf %28, %29 : vector<256x128xf32>
      %31 = arith.truncf %30 : vector<256x128xf32> to vector<256x128xbf16>
      %c0_22 = arith.constant 0 : index
      %c0_23 = arith.constant 0 : index
      %32 = vector.load %arg9[%c0_22, %c0_23] : memref<256x128xbf16, #tpu.memory_space<vmem>>, vector<256x128xbf16>
      tpu.vector_store %arg9[%c0_22, %c0_23], %31 {strides = array<i32>} : memref<256x128xbf16, #tpu.memory_space<vmem>>, vector<256x128xbf16>,
    } else {
    }
    return
  }
  func.func @transform_0(%arg0: i32, %arg1: i32, %arg2: i32) -> (i32, i32) {
    %c0_i32 = arith.constant 0 : i32
    return %arg0, %arg2 : i32, i32
  }
  func.func @transform_1(%arg0: i32, %arg1: i32, %arg2: i32) -> (i32, i32) {
    %c0_i32 = arith.constant 0 : i32
    return %arg2, %arg1 : i32, i32
  }
  func.func @transform_2(%arg0: i32, %arg1: i32, %arg2: i32) -> (i32, i32) {
    %c0_i32 = arith.constant 0 : i32
    %c0_i32_0 = arith.constant 0 : i32
    return %c0_i32, %arg2 : i32, i32
  }
  func.func @transform_3(%arg0: i32, %arg1: i32, %arg2: i32) -> (i32, i32) {
    %c0_i32 = arith.constant 0 : i32
    %c0_i32_0 = arith.constant 0 : i32
    return %c0_i32, %arg2 : i32, i32
  }
  func.func @transform_4(%arg0: i32, %arg1: i32, %arg2: i32) -> (i32, i32) {
    %c0_i32 = arith.constant 0 : i32
    %c0_i32_0 = arith.constant 0 : i32
    return %c0_i32, %arg1 : i32, i32
  }
  func.func @transform_5(%arg0: i32, %arg1: i32, %arg2: i32) -> (i32, i32) {
    %c0_i32 = arith.constant 0 : i32
    %c0_i32_0 = arith.constant 0 : i32
    return %c0_i32, %arg1 : i32, i32
  }
  func.func @transform_6(%arg0: i32, %arg1: i32, %arg2: i32) -> (i32, i32) {
    %c0_i32 = arith.constant 0 : i32
    return %arg0, %arg1 : i32, i32
  }
}

module attributes {stable_mosaic.version = 11 : i64} {
  func.func @_conv3x3_kernel(%arg0: i32, %arg1: memref<1x10x10x16xbf16, #tpu.memory_space<vmem>>, %arg2: memref<9x16x8xbf16, #tpu.memory_space<vmem>>, %arg3: memref<1x8xf32, #tpu.memory_space<vmem>>, %arg4: memref<1x8xf32, #tpu.memory_space<vmem>>, %arg5: memref<1x64x8xbf16, #tpu.memory_space<vmem>>) attributes {dimension_semantics = [#tpu.dimension_semantics<parallel>], iteration_bounds = array<i64: 6>, scalar_prefetch = 0 : i64, scratch_operands = 0 : i64, tpu.core_type = #tpu.core_type<tc>, window_params = [{transform_indices = @transform_0, window_bounds = array<i64: 1, 10, 10, 16>}, {pipeline_mode = #tpu.pipeline_mode<synchronous>, transform_indices = @transform_1, window_bounds = array<i64: 9, 16, 8>}, {pipeline_mode = #tpu.pipeline_mode<synchronous>, transform_indices = @transform_2, window_bounds = array<i64: 1, 8>}, {pipeline_mode = #tpu.pipeline_mode<synchronous>, transform_indices = @transform_3, window_bounds = array<i64: 1, 8>}, {transform_indices = @transform_4, window_bounds = array<i64: 1, 64, 8>}]} {
    %cst = arith.constant 0.000000e+00 : f32
    %0 = vector.broadcast %cst : f32 to vector<64x8xf32>
    %c0 = arith.constant 0 : index
    %c0_0 = arith.constant 0 : index
    %c0_1 = arith.constant 0 : index
    %c0_2 = arith.constant 0 : index
    %1 = vector.load %arg1[%c0, %c0_0, %c0_1, %c0_2] : memref<1x10x10x16xbf16, #tpu.memory_space<vmem>>, vector<1x8x8x16xbf16>
    %2 = vector.shape_cast %1 : vector<1x8x8x16xbf16> to vector<8x8x16xbf16>
    %3 = vector.shape_cast %2 : vector<8x8x16xbf16> to vector<64x16xbf16>
    %c0_3 = arith.constant 0 : index
    %c0_4 = arith.constant 0 : index
    %c0_5 = arith.constant 0 : index
    %4 = vector.load %arg2[%c0_3, %c0_4, %c0_5] : memref<9x16x8xbf16, #tpu.memory_space<vmem>>, vector<1x16x8xbf16>
    %5 = vector.shape_cast %4 : vector<1x16x8xbf16> to vector<16x8xbf16>
    %cst_6 = arith.constant dense<0.000000e+00> : vector<64x8xf32>
    %6 = tpu.matmul %3, %5, %cst_6 {dimension_numbers = #tpu.dot_dimension_numbers<[1], [0], [0], [1], [0, 0, 1, 1], [], []>} : vector<64x16xbf16>, vector<16x8xbf16>, vector<64x8xf32> -> vector<64x8xf32>
    %7 = arith.addf %0, %6 : vector<64x8xf32>
    %c0_7 = arith.constant 0 : index
    %c0_8 = arith.constant 0 : index
    %c1 = arith.constant 1 : index
    %c0_9 = arith.constant 0 : index
    %8 = vector.load %arg1[%c0_7, %c0_8, %c1, %c0_9] : memref<1x10x10x16xbf16, #tpu.memory_space<vmem>>, vector<1x8x8x16xbf16>
    %9 = vector.shape_cast %8 : vector<1x8x8x16xbf16> to vector<8x8x16xbf16>
    %10 = vector.shape_cast %9 : vector<8x8x16xbf16> to vector<64x16xbf16>
    %c1_10 = arith.constant 1 : index
    %c0_11 = arith.constant 0 : index
    %c0_12 = arith.constant 0 : index
    %11 = vector.load %arg2[%c1_10, %c0_11, %c0_12] : memref<9x16x8xbf16, #tpu.memory_space<vmem>>, vector<1x16x8xbf16>
    %12 = vector.shape_cast %11 : vector<1x16x8xbf16> to vector<16x8xbf16>
    %cst_13 = arith.constant dense<0.000000e+00> : vector<64x8xf32>
    %13 = tpu.matmul %10, %12, %cst_13 {dimension_numbers = #tpu.dot_dimension_numbers<[1], [0], [0], [1], [0, 0, 1, 1], [], []>} : vector<64x16xbf16>, vector<16x8xbf16>, vector<64x8xf32> -> vector<64x8xf32>
    %14 = arith.addf %7, %13 : vector<64x8xf32>
    %c0_14 = arith.constant 0 : index
    %c0_15 = arith.constant 0 : index
    %c2 = arith.constant 2 : index
    %c0_16 = arith.constant 0 : index
    %15 = vector.load %arg1[%c0_14, %c0_15, %c2, %c0_16] : memref<1x10x10x16xbf16, #tpu.memory_space<vmem>>, vector<1x8x8x16xbf16>
    %16 = vector.shape_cast %15 : vector<1x8x8x16xbf16> to vector<8x8x16xbf16>
    %17 = vector.shape_cast %16 : vector<8x8x16xbf16> to vector<64x16xbf16>
    %c2_17 = arith.constant 2 : index
    %c0_18 = arith.constant 0 : index
    %c0_19 = arith.constant 0 : index
    %18 = vector.load %arg2[%c2_17, %c0_18, %c0_19] : memref<9x16x8xbf16, #tpu.memory_space<vmem>>, vector<1x16x8xbf16>
    %19 = vector.shape_cast %18 : vector<1x16x8xbf16> to vector<16x8xbf16>
    %cst_20 = arith.constant dense<0.000000e+00> : vector<64x8xf32>
    %20 = tpu.matmul %17, %19, %cst_20 {dimension_numbers = #tpu.dot_dimension_numbers<[1], [0], [0], [1], [0, 0, 1, 1], [], []>} : vector<64x16xbf16>, vector<16x8xbf16>, vector<64x8xf32> -> vector<64x8xf32>
    %21 = arith.addf %14, %20 : vector<64x8xf32>
    %c0_21 = arith.constant 0 : index
    %c1_22 = arith.constant 1 : index
    %c0_23 = arith.constant 0 : index
    %c0_24 = arith.constant 0 : index
    %22 = vector.load %arg1[%c0_21, %c1_22, %c0_23, %c0_24] : memref<1x10x10x16xbf16, #tpu.memory_space<vmem>>, vector<1x8x8x16xbf16>
    %23 = vector.shape_cast %22 : vector<1x8x8x16xbf16> to vector<8x8x16xbf16>
    %24 = vector.shape_cast %23 : vector<8x8x16xbf16> to vector<64x16xbf16>
    %c3 = arith.constant 3 : index
    %c0_25 = arith.constant 0 : index
    %c0_26 = arith.constant 0 : index
    %25 = vector.load %arg2[%c3, %c0_25, %c0_26] : memref<9x16x8xbf16, #tpu.memory_space<vmem>>, vector<1x16x8xbf16>
    %26 = vector.shape_cast %25 : vector<1x16x8xbf16> to vector<16x8xbf16>
    %cst_27 = arith.constant dense<0.000000e+00> : vector<64x8xf32>
    %27 = tpu.matmul %24, %26, %cst_27 {dimension_numbers = #tpu.dot_dimension_numbers<[1], [0], [0], [1], [0, 0, 1, 1], [], []>} : vector<64x16xbf16>, vector<16x8xbf16>, vector<64x8xf32> -> vector<64x8xf32>
    %28 = arith.addf %21, %27 : vector<64x8xf32>
    %c0_28 = arith.constant 0 : index
    %c1_29 = arith.constant 1 : index
    %c1_30 = arith.constant 1 : index
    %c0_31 = arith.constant 0 : index
    %29 = vector.load %arg1[%c0_28, %c1_29, %c1_30, %c0_31] : memref<1x10x10x16xbf16, #tpu.memory_space<vmem>>, vector<1x8x8x16xbf16>
    %30 = vector.shape_cast %29 : vector<1x8x8x16xbf16> to vector<8x8x16xbf16>
    %31 = vector.shape_cast %30 : vector<8x8x16xbf16> to vector<64x16xbf16>
    %c4 = arith.constant 4 : index
    %c0_32 = arith.constant 0 : index
    %c0_33 = arith.constant 0 : index
    %32 = vector.load %arg2[%c4, %c0_32, %c0_33] : memref<9x16x8xbf16, #tpu.memory_space<vmem>>, vector<1x16x8xbf16>
    %33 = vector.shape_cast %32 : vector<1x16x8xbf16> to vector<16x8xbf16>
    %cst_34 = arith.constant dense<0.000000e+00> : vector<64x8xf32>
    %34 = tpu.matmul %31, %33, %cst_34 {dimension_numbers = #tpu.dot_dimension_numbers<[1], [0], [0], [1], [0, 0, 1, 1], [], []>} : vector<64x16xbf16>, vector<16x8xbf16>, vector<64x8xf32> -> vector<64x8xf32>
    %35 = arith.addf %28, %34 : vector<64x8xf32>
    %c0_35 = arith.constant 0 : index
    %c1_36 = arith.constant 1 : index
    %c2_37 = arith.constant 2 : index
    %c0_38 = arith.constant 0 : index
    %36 = vector.load %arg1[%c0_35, %c1_36, %c2_37, %c0_38] : memref<1x10x10x16xbf16, #tpu.memory_space<vmem>>, vector<1x8x8x16xbf16>
    %37 = vector.shape_cast %36 : vector<1x8x8x16xbf16> to vector<8x8x16xbf16>
    %38 = vector.shape_cast %37 : vector<8x8x16xbf16> to vector<64x16xbf16>
    %c5 = arith.constant 5 : index
    %c0_39 = arith.constant 0 : index
    %c0_40 = arith.constant 0 : index
    %39 = vector.load %arg2[%c5, %c0_39, %c0_40] : memref<9x16x8xbf16, #tpu.memory_space<vmem>>, vector<1x16x8xbf16>
    %40 = vector.shape_cast %39 : vector<1x16x8xbf16> to vector<16x8xbf16>
    %cst_41 = arith.constant dense<0.000000e+00> : vector<64x8xf32>
    %41 = tpu.matmul %38, %40, %cst_41 {dimension_numbers = #tpu.dot_dimension_numbers<[1], [0], [0], [1], [0, 0, 1, 1], [], []>} : vector<64x16xbf16>, vector<16x8xbf16>, vector<64x8xf32> -> vector<64x8xf32>
    %42 = arith.addf %35, %41 : vector<64x8xf32>
    %c0_42 = arith.constant 0 : index
    %c2_43 = arith.constant 2 : index
    %c0_44 = arith.constant 0 : index
    %c0_45 = arith.constant 0 : index
    %43 = vector.load %arg1[%c0_42, %c2_43, %c0_44, %c0_45] : memref<1x10x10x16xbf16, #tpu.memory_space<vmem>>, vector<1x8x8x16xbf16>
    %44 = vector.shape_cast %43 : vector<1x8x8x16xbf16> to vector<8x8x16xbf16>
    %45 = vector.shape_cast %44 : vector<8x8x16xbf16> to vector<64x16xbf16>
    %c6 = arith.constant 6 : index
    %c0_46 = arith.constant 0 : index
    %c0_47 = arith.constant 0 : index
    %46 = vector.load %arg2[%c6, %c0_46, %c0_47] : memref<9x16x8xbf16, #tpu.memory_space<vmem>>, vector<1x16x8xbf16>
    %47 = vector.shape_cast %46 : vector<1x16x8xbf16> to vector<16x8xbf16>
    %cst_48 = arith.constant dense<0.000000e+00> : vector<64x8xf32>
    %48 = tpu.matmul %45, %47, %cst_48 {dimension_numbers = #tpu.dot_dimension_numbers<[1], [0], [0], [1], [0, 0, 1, 1], [], []>} : vector<64x16xbf16>, vector<16x8xbf16>, vector<64x8xf32> -> vector<64x8xf32>
    %49 = arith.addf %42, %48 : vector<64x8xf32>
    %c0_49 = arith.constant 0 : index
    %c2_50 = arith.constant 2 : index
    %c1_51 = arith.constant 1 : index
    %c0_52 = arith.constant 0 : index
    %50 = vector.load %arg1[%c0_49, %c2_50, %c1_51, %c0_52] : memref<1x10x10x16xbf16, #tpu.memory_space<vmem>>, vector<1x8x8x16xbf16>
    %51 = vector.shape_cast %50 : vector<1x8x8x16xbf16> to vector<8x8x16xbf16>
    %52 = vector.shape_cast %51 : vector<8x8x16xbf16> to vector<64x16xbf16>
    %c7 = arith.constant 7 : index
    %c0_53 = arith.constant 0 : index
    %c0_54 = arith.constant 0 : index
    %53 = vector.load %arg2[%c7, %c0_53, %c0_54] : memref<9x16x8xbf16, #tpu.memory_space<vmem>>, vector<1x16x8xbf16>
    %54 = vector.shape_cast %53 : vector<1x16x8xbf16> to vector<16x8xbf16>
    %cst_55 = arith.constant dense<0.000000e+00> : vector<64x8xf32>
    %55 = tpu.matmul %52, %54, %cst_55 {dimension_numbers = #tpu.dot_dimension_numbers<[1], [0], [0], [1], [0, 0, 1, 1], [], []>} : vector<64x16xbf16>, vector<16x8xbf16>, vector<64x8xf32> -> vector<64x8xf32>
    %56 = arith.addf %49, %55 : vector<64x8xf32>
    %c0_56 = arith.constant 0 : index
    %c2_57 = arith.constant 2 : index
    %c2_58 = arith.constant 2 : index
    %c0_59 = arith.constant 0 : index
    %57 = vector.load %arg1[%c0_56, %c2_57, %c2_58, %c0_59] : memref<1x10x10x16xbf16, #tpu.memory_space<vmem>>, vector<1x8x8x16xbf16>
    %58 = vector.shape_cast %57 : vector<1x8x8x16xbf16> to vector<8x8x16xbf16>
    %59 = vector.shape_cast %58 : vector<8x8x16xbf16> to vector<64x16xbf16>
    %c8 = arith.constant 8 : index
    %c0_60 = arith.constant 0 : index
    %c0_61 = arith.constant 0 : index
    %60 = vector.load %arg2[%c8, %c0_60, %c0_61] : memref<9x16x8xbf16, #tpu.memory_space<vmem>>, vector<1x16x8xbf16>
    %61 = vector.shape_cast %60 : vector<1x16x8xbf16> to vector<16x8xbf16>
    %cst_62 = arith.constant dense<0.000000e+00> : vector<64x8xf32>
    %62 = tpu.matmul %59, %61, %cst_62 {dimension_numbers = #tpu.dot_dimension_numbers<[1], [0], [0], [1], [0, 0, 1, 1], [], []>} : vector<64x16xbf16>, vector<16x8xbf16>, vector<64x8xf32> -> vector<64x8xf32>
    %63 = arith.addf %56, %62 : vector<64x8xf32>
    %c0_63 = arith.constant 0 : index
    %c0_64 = arith.constant 0 : index
    %64 = vector.load %arg3[%c0_63, %c0_64] : memref<1x8xf32, #tpu.memory_space<vmem>>, vector<1x8xf32>
    %65 = vector.broadcast %64 : vector<1x8xf32> to vector<64x8xf32>
    %66 = arith.mulf %63, %65 : vector<64x8xf32>
    %c0_65 = arith.constant 0 : index
    %c0_66 = arith.constant 0 : index
    %67 = vector.load %arg4[%c0_65, %c0_66] : memref<1x8xf32, #tpu.memory_space<vmem>>, vector<1x8xf32>
    %68 = vector.broadcast %67 : vector<1x8xf32> to vector<64x8xf32>
    %69 = arith.addf %66, %68 : vector<64x8xf32>
    %70 = arith.truncf %69 : vector<64x8xf32> to vector<64x8xbf16>
    %c0_67 = arith.constant 0 : index
    %c0_68 = arith.constant 0 : index
    %c0_69 = arith.constant 0 : index
    %71 = vector.load %arg5[%c0_67, %c0_68, %c0_69] : memref<1x64x8xbf16, #tpu.memory_space<vmem>>, vector<1x64x8xbf16>
    %72 = vector.shape_cast %71 : vector<1x64x8xbf16> to vector<64x8xbf16>
    %73 = vector.shape_cast %70 : vector<64x8xbf16> to vector<1x64x8xbf16>
    tpu.vector_store %arg5[%c0_67, %c0_68, %c0_69], %73 {strides = array<i32>} : memref<1x64x8xbf16, #tpu.memory_space<vmem>>, vector<1x64x8xbf16>,
    return
  }
  func.func @transform_0(%arg0: i32) -> (i32, i32, i32, i32) {
    %c0_i32 = arith.constant 0 : i32
    %c0_i32_0 = arith.constant 0 : i32
    %c0_i32_1 = arith.constant 0 : i32
    %c0_i32_2 = arith.constant 0 : i32
    return %arg0, %c0_i32, %c0_i32_0, %c0_i32_1 : i32, i32, i32, i32
  }
  func.func @transform_1(%arg0: i32) -> (i32, i32, i32) {
    %c0_i32 = arith.constant 0 : i32
    %c0_i32_0 = arith.constant 0 : i32
    %c0_i32_1 = arith.constant 0 : i32
    %c0_i32_2 = arith.constant 0 : i32
    return %c0_i32, %c0_i32_0, %c0_i32_1 : i32, i32, i32
  }
  func.func @transform_2(%arg0: i32) -> (i32, i32) {
    %c0_i32 = arith.constant 0 : i32
    %c0_i32_0 = arith.constant 0 : i32
    %c0_i32_1 = arith.constant 0 : i32
    return %c0_i32, %c0_i32_0 : i32, i32
  }
  func.func @transform_3(%arg0: i32) -> (i32, i32) {
    %c0_i32 = arith.constant 0 : i32
    %c0_i32_0 = arith.constant 0 : i32
    %c0_i32_1 = arith.constant 0 : i32
    return %c0_i32, %c0_i32_0 : i32, i32
  }
  func.func @transform_4(%arg0: i32) -> (i32, i32, i32) {
    %c0_i32 = arith.constant 0 : i32
    %c0_i32_0 = arith.constant 0 : i32
    %c0_i32_1 = arith.constant 0 : i32
    return %arg0, %c0_i32, %c0_i32_0 : i32, i32, i32
  }
}

module attributes {stable_mosaic.version = 11 : i64} {
  func.func @_mm_kernel(%arg0: i32, %arg1: i32, %arg2: i32, %arg3: memref<256x128xbf16, #tpu.memory_space<vmem>>, %arg4: memref<128x128xbf16, #tpu.memory_space<vmem>>, %arg5: memref<1x128xf32, #tpu.memory_space<vmem>>, %arg6: memref<1x128xf32, #tpu.memory_space<vmem>>, %arg7: memref<1x128xf32, #tpu.memory_space<vmem>>, %arg8: memref<1x128xf32, #tpu.memory_space<vmem>>, %arg9: memref<256x128xbf16, #tpu.memory_space<vmem>>, %arg10: memref<256x128xf32, #tpu.memory_space<vmem>>) attributes {dimension_semantics = [#tpu.dimension_semantics<parallel>, #tpu.dimension_semantics<parallel>, #tpu.dimension_semantics<arbitrary>], iteration_bounds = array<i64: 2, 1, 1>, scalar_prefetch = 0 : i64, scratch_operands = 1 : i64, tpu.core_type = #tpu.core_type<tc>, window_params = [{transform_indices = @transform_0, window_bounds = array<i64: 256, 128>}, {transform_indices = @transform_1, window_bounds = array<i64: 128, 128>}, {transform_indices = @transform_2, window_bounds = array<i64: 1, 128>}, {transform_indices = @transform_3, window_bounds = array<i64: 1, 128>}, {transform_indices = @transform_4, window_bounds = array<i64: 1, 128>}, {transform_indices = @transform_5, window_bounds = array<i64: 1, 128>}, {transform_indices = @transform_6, window_bounds = array<i64: 256, 128>}]} {
    %c0_i32 = arith.constant 0 : i32
    %0 = arith.cmpi eq, %arg2, %c0_i32 : i32
    %1 = arith.extui %0 : i1 to i32
    %c0_i32_0 = arith.constant 0 : i32
    %2 = arith.cmpi ne, %1, %c0_i32_0 : i32
    scf.if %2 {
      %cst_15 = arith.constant 0.000000e+00 : f32
      %22 = vector.broadcast %cst_15 : f32 to vector<256x128xf32>
      %c0_16 = arith.constant 0 : index
      %c0_17 = arith.constant 0 : index
      %23 = vector.load %arg10[%c0_16, %c0_17] : memref<256x128xf32, #tpu.memory_space<vmem>>, vector<256x128xf32>
      tpu.vector_store %arg10[%c0_16, %c0_17], %22 {strides = array<i32>} : memref<256x128xf32, #tpu.memory_space<vmem>>, vector<256x128xf32>,
    } else {
    }
    %c0 = arith.constant 0 : index
    %c0_1 = arith.constant 0 : index
    %3 = vector.load %arg3[%c0, %c0_1] : memref<256x128xbf16, #tpu.memory_space<vmem>>, vector<256x128xbf16>
    %4 = arith.extf %3 : vector<256x128xbf16> to vector<256x128xf32>
    %c0_2 = arith.constant 0 : index
    %c0_3 = arith.constant 0 : index
    %5 = vector.load %arg5[%c0_2, %c0_3] : memref<1x128xf32, #tpu.memory_space<vmem>>, vector<1x128xf32>
    %6 = vector.broadcast %5 : vector<1x128xf32> to vector<256x128xf32>
    %7 = arith.mulf %4, %6 : vector<256x128xf32>
    %c0_4 = arith.constant 0 : index
    %c0_5 = arith.constant 0 : index
    %8 = vector.load %arg6[%c0_4, %c0_5] : memref<1x128xf32, #tpu.memory_space<vmem>>, vector<1x128xf32>
    %9 = vector.broadcast %8 : vector<1x128xf32> to vector<256x128xf32>
    %10 = arith.addf %7, %9 : vector<256x128xf32>
    %cst = arith.constant 0.000000e+00 : f32
    %11 = vector.broadcast %cst : f32 to vector<256x128xf32>
    %12 = arith.maximumf %10, %11 : vector<256x128xf32>
    %13 = arith.truncf %12 : vector<256x128xf32> to vector<256x128xbf16>
    %c0_6 = arith.constant 0 : index
    %c0_7 = arith.constant 0 : index
    %14 = vector.load %arg10[%c0_6, %c0_7] : memref<256x128xf32, #tpu.memory_space<vmem>>, vector<256x128xf32>
    %c0_8 = arith.constant 0 : index
    %c0_9 = arith.constant 0 : index
    %15 = vector.load %arg4[%c0_8, %c0_9] : memref<128x128xbf16, #tpu.memory_space<vmem>>, vector<128x128xbf16>
    %cst_10 = arith.constant dense<0.000000e+00> : vector<256x128xf32>
    %16 = tpu.matmul %13, %15, %cst_10 {dimension_numbers = #tpu.dot_dimension_numbers<[1], [0], [0], [1], [0, 0, 1, 1], [], []>} : vector<256x128xbf16>, vector<128x128xbf16>, vector<256x128xf32> -> vector<256x128xf32>
    %17 = arith.addf %14, %16 : vector<256x128xf32>
    %c0_11 = arith.constant 0 : index
    %c0_12 = arith.constant 0 : index
    %18 = vector.load %arg10[%c0_11, %c0_12] : memref<256x128xf32, #tpu.memory_space<vmem>>, vector<256x128xf32>
    tpu.vector_store %arg10[%c0_11, %c0_12], %17 {strides = array<i32>} : memref<256x128xf32, #tpu.memory_space<vmem>>, vector<256x128xf32>,
    %c0_i32_13 = arith.constant 0 : i32
    %19 = arith.cmpi eq, %arg2, %c0_i32_13 : i32
    %20 = arith.extui %19 : i1 to i32
    %c0_i32_14 = arith.constant 0 : i32
    %21 = arith.cmpi ne, %20, %c0_i32_14 : i32
    scf.if %21 {
      %c0_15 = arith.constant 0 : index
      %c0_16 = arith.constant 0 : index
      %22 = vector.load %arg10[%c0_15, %c0_16] : memref<256x128xf32, #tpu.memory_space<vmem>>, vector<256x128xf32>
      %c0_17 = arith.constant 0 : index
      %c0_18 = arith.constant 0 : index
      %23 = vector.load %arg7[%c0_17, %c0_18] : memref<1x128xf32, #tpu.memory_space<vmem>>, vector<1x128xf32>
      %24 = vector.broadcast %23 : vector<1x128xf32> to vector<256x128xf32>
      %25 = arith.mulf %22, %24 : vector<256x128xf32>
      %c0_19 = arith.constant 0 : index
      %c0_20 = arith.constant 0 : index
      %26 = vector.load %arg8[%c0_19, %c0_20] : memref<1x128xf32, #tpu.memory_space<vmem>>, vector<1x128xf32>
      %27 = vector.broadcast %26 : vector<1x128xf32> to vector<256x128xf32>
      %28 = arith.addf %25, %27 : vector<256x128xf32>
      %29 = arith.truncf %28 : vector<256x128xf32> to vector<256x128xbf16>
      %c0_21 = arith.constant 0 : index
      %c0_22 = arith.constant 0 : index
      %30 = vector.load %arg9[%c0_21, %c0_22] : memref<256x128xbf16, #tpu.memory_space<vmem>>, vector<256x128xbf16>
      tpu.vector_store %arg9[%c0_21, %c0_22], %29 {strides = array<i32>} : memref<256x128xbf16, #tpu.memory_space<vmem>>, vector<256x128xbf16>,
    } else {
    }
    return
  }
  func.func @transform_0(%arg0: i32, %arg1: i32, %arg2: i32) -> (i32, i32) {
    %c0_i32 = arith.constant 0 : i32
    return %arg0, %arg2 : i32, i32
  }
  func.func @transform_1(%arg0: i32, %arg1: i32, %arg2: i32) -> (i32, i32) {
    %c0_i32 = arith.constant 0 : i32
    return %arg2, %arg1 : i32, i32
  }
  func.func @transform_2(%arg0: i32, %arg1: i32, %arg2: i32) -> (i32, i32) {
    %c0_i32 = arith.constant 0 : i32
    %c0_i32_0 = arith.constant 0 : i32
    return %c0_i32, %arg2 : i32, i32
  }
  func.func @transform_3(%arg0: i32, %arg1: i32, %arg2: i32) -> (i32, i32) {
    %c0_i32 = arith.constant 0 : i32
    %c0_i32_0 = arith.constant 0 : i32
    return %c0_i32, %arg2 : i32, i32
  }
  func.func @transform_4(%arg0: i32, %arg1: i32, %arg2: i32) -> (i32, i32) {
    %c0_i32 = arith.constant 0 : i32
    %c0_i32_0 = arith.constant 0 : i32
    return %c0_i32, %arg1 : i32, i32
  }
  func.func @transform_5(%arg0: i32, %arg1: i32, %arg2: i32) -> (i32, i32) {
    %c0_i32 = arith.constant 0 : i32
    %c0_i32_0 = arith.constant 0 : i32
    return %c0_i32, %arg1 : i32, i32
  }
  func.func @transform_6(%arg0: i32, %arg1: i32, %arg2: i32) -> (i32, i32) {
    %c0_i32 = arith.constant 0 : i32
    return %arg0, %arg1 : i32, i32
  }
}

module attributes {stable_mosaic.version = 11 : i64} {
  func.func @_avgpool_kernel(%arg0: i32, %arg1: i32, %arg2: memref<1x1x4x2x16xbf16, #tpu.memory_space<vmem>>, %arg3: memref<1x1x4x2x16xbf16, #tpu.memory_space<vmem>>, %arg4: memref<1x1x4x16xbf16, #tpu.memory_space<vmem>>) attributes {dimension_semantics = [#tpu.dimension_semantics<parallel>, #tpu.dimension_semantics<parallel>], iteration_bounds = array<i64: 6, 4>, scalar_prefetch = 0 : i64, scratch_operands = 0 : i64, tpu.core_type = #tpu.core_type<tc>, window_params = [{transform_indices = @transform_0, window_bounds = array<i64: 1, 1, 4, 2, 16>}, {transform_indices = @transform_1, window_bounds = array<i64: 1, 1, 4, 2, 16>}, {transform_indices = @transform_2, window_bounds = array<i64: 1, 1, 4, 16>}]} {
    %c0 = arith.constant 0 : index
    %c0_0 = arith.constant 0 : index
    %c0_1 = arith.constant 0 : index
    %c0_2 = arith.constant 0 : index
    %c0_3 = arith.constant 0 : index
    %0 = vector.load %arg2[%c0, %c0_0, %c0_1, %c0_2, %c0_3] : memref<1x1x4x2x16xbf16, #tpu.memory_space<vmem>>, vector<1x1x4x2x16xbf16>
    %1 = vector.shape_cast %0 : vector<1x1x4x2x16xbf16> to vector<4x2x16xbf16>
    %2 = arith.extf %1 : vector<4x2x16xbf16> to vector<4x2x16xf32>
    %c0_4 = arith.constant 0 : index
    %c0_5 = arith.constant 0 : index
    %c0_6 = arith.constant 0 : index
    %c0_7 = arith.constant 0 : index
    %c0_8 = arith.constant 0 : index
    %3 = vector.load %arg3[%c0_4, %c0_5, %c0_6, %c0_7, %c0_8] : memref<1x1x4x2x16xbf16, #tpu.memory_space<vmem>>, vector<1x1x4x2x16xbf16>
    %4 = vector.shape_cast %3 : vector<1x1x4x2x16xbf16> to vector<4x2x16xbf16>
    %5 = arith.extf %4 : vector<4x2x16xbf16> to vector<4x2x16xf32>
    %6 = arith.addf %2, %5 : vector<4x2x16xf32>
    %cst = arith.constant dense<0.000000e+00> : vector<4x16xf32>
    %7 = vector.multi_reduction <add>, %6, %cst [1] : vector<4x2x16xf32> to vector<4x16xf32>
    %cst_9 = arith.constant 2.500000e-01 : f32
    %8 = vector.broadcast %cst_9 : f32 to vector<4x16xf32>
    %9 = arith.mulf %8, %7 : vector<4x16xf32>
    %10 = arith.truncf %9 : vector<4x16xf32> to vector<4x16xbf16>
    %c0_10 = arith.constant 0 : index
    %c0_11 = arith.constant 0 : index
    %c0_12 = arith.constant 0 : index
    %c0_13 = arith.constant 0 : index
    %11 = vector.load %arg4[%c0_10, %c0_11, %c0_12, %c0_13] : memref<1x1x4x16xbf16, #tpu.memory_space<vmem>>, vector<1x1x4x16xbf16>
    %12 = vector.shape_cast %11 : vector<1x1x4x16xbf16> to vector<4x16xbf16>
    %13 = vector.shape_cast %10 : vector<4x16xbf16> to vector<1x1x4x16xbf16>
    tpu.vector_store %arg4[%c0_10, %c0_11, %c0_12, %c0_13], %13 {strides = array<i32>} : memref<1x1x4x16xbf16, #tpu.memory_space<vmem>>, vector<1x1x4x16xbf16>,
    return
  }
  func.func @transform_0(%arg0: i32, %arg1: i32) -> (i32, i32, i32, i32, i32) {
    %c2_i32 = arith.constant 2 : i32
    %0 = arith.muli %c2_i32, %arg1 : i32
    %c0_i32 = arith.constant 0 : i32
    %c0_i32_0 = arith.constant 0 : i32
    %c0_i32_1 = arith.constant 0 : i32
    %c0_i32_2 = arith.constant 0 : i32
    return %arg0, %0, %c0_i32, %c0_i32_0, %c0_i32_1 : i32, i32, i32, i32, i32
  }
  func.func @transform_1(%arg0: i32, %arg1: i32) -> (i32, i32, i32, i32, i32) {
    %c2_i32 = arith.constant 2 : i32
    %0 = arith.muli %c2_i32, %arg1 : i32
    %c1_i32 = arith.constant 1 : i32
    %1 = arith.addi %0, %c1_i32 : i32
    %c0_i32 = arith.constant 0 : i32
    %c0_i32_0 = arith.constant 0 : i32
    %c0_i32_1 = arith.constant 0 : i32
    %c0_i32_2 = arith.constant 0 : i32
    return %arg0, %1, %c0_i32, %c0_i32_0, %c0_i32_1 : i32, i32, i32, i32, i32
  }
  func.func @transform_2(%arg0: i32, %arg1: i32) -> (i32, i32, i32, i32) {
    %c0_i32 = arith.constant 0 : i32
    %c0_i32_0 = arith.constant 0 : i32
    %c0_i32_1 = arith.constant 0 : i32
    return %arg0, %arg1, %c0_i32, %c0_i32_0 : i32, i32, i32, i32
  }
}

module attributes {stable_mosaic.version = 11 : i64} {
  func.func @_mm_kernel(%arg0: i32, %arg1: i32, %arg2: i32, %arg3: memref<96x128xbf16, #tpu.memory_space<vmem>>, %arg4: memref<128x128xbf16, #tpu.memory_space<vmem>>, %arg5: memref<1x128xf32, #tpu.memory_space<vmem>>, %arg6: memref<1x128xf32, #tpu.memory_space<vmem>>, %arg7: memref<1x128xf32, #tpu.memory_space<vmem>>, %arg8: memref<1x128xf32, #tpu.memory_space<vmem>>, %arg9: memref<96x128xbf16, #tpu.memory_space<vmem>>, %arg10: memref<96x128xf32, #tpu.memory_space<vmem>>) attributes {dimension_semantics = [#tpu.dimension_semantics<parallel>, #tpu.dimension_semantics<parallel>, #tpu.dimension_semantics<arbitrary>], iteration_bounds = array<i64: 1, 1, 1>, scalar_prefetch = 0 : i64, scratch_operands = 1 : i64, tpu.core_type = #tpu.core_type<tc>, window_params = [{transform_indices = @transform_0, window_bounds = array<i64: 96, 128>}, {transform_indices = @transform_1, window_bounds = array<i64: 128, 128>}, {transform_indices = @transform_2, window_bounds = array<i64: 1, 128>}, {transform_indices = @transform_3, window_bounds = array<i64: 1, 128>}, {transform_indices = @transform_4, window_bounds = array<i64: 1, 128>}, {transform_indices = @transform_5, window_bounds = array<i64: 1, 128>}, {transform_indices = @transform_6, window_bounds = array<i64: 96, 128>}]} {
    %c0_i32 = arith.constant 0 : i32
    %0 = arith.cmpi eq, %arg2, %c0_i32 : i32
    %1 = arith.extui %0 : i1 to i32
    %c0_i32_0 = arith.constant 0 : i32
    %2 = arith.cmpi ne, %1, %c0_i32_0 : i32
    scf.if %2 {
      %cst_15 = arith.constant 0.000000e+00 : f32
      %22 = vector.broadcast %cst_15 : f32 to vector<96x128xf32>
      %c0_16 = arith.constant 0 : index
      %c0_17 = arith.constant 0 : index
      %23 = vector.load %arg10[%c0_16, %c0_17] : memref<96x128xf32, #tpu.memory_space<vmem>>, vector<96x128xf32>
      tpu.vector_store %arg10[%c0_16, %c0_17], %22 {strides = array<i32>} : memref<96x128xf32, #tpu.memory_space<vmem>>, vector<96x128xf32>,
    } else {
    }
    %c0 = arith.constant 0 : index
    %c0_1 = arith.constant 0 : index
    %3 = vector.load %arg3[%c0, %c0_1] : memref<96x128xbf16, #tpu.memory_space<vmem>>, vector<96x128xbf16>
    %4 = arith.extf %3 : vector<96x128xbf16> to vector<96x128xf32>
    %c0_2 = arith.constant 0 : index
    %c0_3 = arith.constant 0 : index
    %5 = vector.load %arg5[%c0_2, %c0_3] : memref<1x128xf32, #tpu.memory_space<vmem>>, vector<1x128xf32>
    %6 = vector.broadcast %5 : vector<1x128xf32> to vector<96x128xf32>
    %7 = arith.mulf %4, %6 : vector<96x128xf32>
    %c0_4 = arith.constant 0 : index
    %c0_5 = arith.constant 0 : index
    %8 = vector.load %arg6[%c0_4, %c0_5] : memref<1x128xf32, #tpu.memory_space<vmem>>, vector<1x128xf32>
    %9 = vector.broadcast %8 : vector<1x128xf32> to vector<96x128xf32>
    %10 = arith.addf %7, %9 : vector<96x128xf32>
    %cst = arith.constant 0.000000e+00 : f32
    %11 = vector.broadcast %cst : f32 to vector<96x128xf32>
    %12 = arith.maximumf %10, %11 : vector<96x128xf32>
    %13 = arith.truncf %12 : vector<96x128xf32> to vector<96x128xbf16>
    %c0_6 = arith.constant 0 : index
    %c0_7 = arith.constant 0 : index
    %14 = vector.load %arg10[%c0_6, %c0_7] : memref<96x128xf32, #tpu.memory_space<vmem>>, vector<96x128xf32>
    %c0_8 = arith.constant 0 : index
    %c0_9 = arith.constant 0 : index
    %15 = vector.load %arg4[%c0_8, %c0_9] : memref<128x128xbf16, #tpu.memory_space<vmem>>, vector<128x128xbf16>
    %cst_10 = arith.constant dense<0.000000e+00> : vector<96x128xf32>
    %16 = tpu.matmul %13, %15, %cst_10 {dimension_numbers = #tpu.dot_dimension_numbers<[1], [0], [0], [1], [0, 0, 1, 1], [], []>} : vector<96x128xbf16>, vector<128x128xbf16>, vector<96x128xf32> -> vector<96x128xf32>
    %17 = arith.addf %14, %16 : vector<96x128xf32>
    %c0_11 = arith.constant 0 : index
    %c0_12 = arith.constant 0 : index
    %18 = vector.load %arg10[%c0_11, %c0_12] : memref<96x128xf32, #tpu.memory_space<vmem>>, vector<96x128xf32>
    tpu.vector_store %arg10[%c0_11, %c0_12], %17 {strides = array<i32>} : memref<96x128xf32, #tpu.memory_space<vmem>>, vector<96x128xf32>,
    %c0_i32_13 = arith.constant 0 : i32
    %19 = arith.cmpi eq, %arg2, %c0_i32_13 : i32
    %20 = arith.extui %19 : i1 to i32
    %c0_i32_14 = arith.constant 0 : i32
    %21 = arith.cmpi ne, %20, %c0_i32_14 : i32
    scf.if %21 {
      %c0_15 = arith.constant 0 : index
      %c0_16 = arith.constant 0 : index
      %22 = vector.load %arg10[%c0_15, %c0_16] : memref<96x128xf32, #tpu.memory_space<vmem>>, vector<96x128xf32>
      %c0_17 = arith.constant 0 : index
      %c0_18 = arith.constant 0 : index
      %23 = vector.load %arg7[%c0_17, %c0_18] : memref<1x128xf32, #tpu.memory_space<vmem>>, vector<1x128xf32>
      %24 = vector.broadcast %23 : vector<1x128xf32> to vector<96x128xf32>
      %25 = arith.mulf %22, %24 : vector<96x128xf32>
      %c0_19 = arith.constant 0 : index
      %c0_20 = arith.constant 0 : index
      %26 = vector.load %arg8[%c0_19, %c0_20] : memref<1x128xf32, #tpu.memory_space<vmem>>, vector<1x128xf32>
      %27 = vector.broadcast %26 : vector<1x128xf32> to vector<96x128xf32>
      %28 = arith.addf %25, %27 : vector<96x128xf32>
      %cst_21 = arith.constant 0.000000e+00 : f32
      %29 = vector.broadcast %cst_21 : f32 to vector<96x128xf32>
      %30 = arith.maximumf %28, %29 : vector<96x128xf32>
      %31 = arith.truncf %30 : vector<96x128xf32> to vector<96x128xbf16>
      %c0_22 = arith.constant 0 : index
      %c0_23 = arith.constant 0 : index
      %32 = vector.load %arg9[%c0_22, %c0_23] : memref<96x128xbf16, #tpu.memory_space<vmem>>, vector<96x128xbf16>
      tpu.vector_store %arg9[%c0_22, %c0_23], %31 {strides = array<i32>} : memref<96x128xbf16, #tpu.memory_space<vmem>>, vector<96x128xbf16>,
    } else {
    }
    return
  }
  func.func @transform_0(%arg0: i32, %arg1: i32, %arg2: i32) -> (i32, i32) {
    %c0_i32 = arith.constant 0 : i32
    return %arg0, %arg2 : i32, i32
  }
  func.func @transform_1(%arg0: i32, %arg1: i32, %arg2: i32) -> (i32, i32) {
    %c0_i32 = arith.constant 0 : i32
    return %arg2, %arg1 : i32, i32
  }
  func.func @transform_2(%arg0: i32, %arg1: i32, %arg2: i32) -> (i32, i32) {
    %c0_i32 = arith.constant 0 : i32
    %c0_i32_0 = arith.constant 0 : i32
    return %c0_i32, %arg2 : i32, i32
  }
  func.func @transform_3(%arg0: i32, %arg1: i32, %arg2: i32) -> (i32, i32) {
    %c0_i32 = arith.constant 0 : i32
    %c0_i32_0 = arith.constant 0 : i32
    return %c0_i32, %arg2 : i32, i32
  }
  func.func @transform_4(%arg0: i32, %arg1: i32, %arg2: i32) -> (i32, i32) {
    %c0_i32 = arith.constant 0 : i32
    %c0_i32_0 = arith.constant 0 : i32
    return %c0_i32, %arg1 : i32, i32
  }
  func.func @transform_5(%arg0: i32, %arg1: i32, %arg2: i32) -> (i32, i32) {
    %c0_i32 = arith.constant 0 : i32
    %c0_i32_0 = arith.constant 0 : i32
    return %c0_i32, %arg1 : i32, i32
  }
  func.func @transform_6(%arg0: i32, %arg1: i32, %arg2: i32) -> (i32, i32) {
    %c0_i32 = arith.constant 0 : i32
    return %arg0, %arg1 : i32, i32
  }
}

module attributes {stable_mosaic.version = 11 : i64} {
  func.func @_conv3x3_kernel(%arg0: i32, %arg1: memref<1x6x6x16xbf16, #tpu.memory_space<vmem>>, %arg2: memref<9x16x8xbf16, #tpu.memory_space<vmem>>, %arg3: memref<1x8xf32, #tpu.memory_space<vmem>>, %arg4: memref<1x8xf32, #tpu.memory_space<vmem>>, %arg5: memref<1x16x8xbf16, #tpu.memory_space<vmem>>) attributes {dimension_semantics = [#tpu.dimension_semantics<parallel>], iteration_bounds = array<i64: 6>, scalar_prefetch = 0 : i64, scratch_operands = 0 : i64, tpu.core_type = #tpu.core_type<tc>, window_params = [{transform_indices = @transform_0, window_bounds = array<i64: 1, 6, 6, 16>}, {pipeline_mode = #tpu.pipeline_mode<synchronous>, transform_indices = @transform_1, window_bounds = array<i64: 9, 16, 8>}, {pipeline_mode = #tpu.pipeline_mode<synchronous>, transform_indices = @transform_2, window_bounds = array<i64: 1, 8>}, {pipeline_mode = #tpu.pipeline_mode<synchronous>, transform_indices = @transform_3, window_bounds = array<i64: 1, 8>}, {transform_indices = @transform_4, window_bounds = array<i64: 1, 16, 8>}]} {
    %cst = arith.constant 0.000000e+00 : f32
    %0 = vector.broadcast %cst : f32 to vector<16x8xf32>
    %c0 = arith.constant 0 : index
    %c0_0 = arith.constant 0 : index
    %c0_1 = arith.constant 0 : index
    %c0_2 = arith.constant 0 : index
    %1 = vector.load %arg1[%c0, %c0_0, %c0_1, %c0_2] : memref<1x6x6x16xbf16, #tpu.memory_space<vmem>>, vector<1x4x4x16xbf16>
    %2 = vector.shape_cast %1 : vector<1x4x4x16xbf16> to vector<4x4x16xbf16>
    %3 = vector.shape_cast %2 : vector<4x4x16xbf16> to vector<16x16xbf16>
    %c0_3 = arith.constant 0 : index
    %c0_4 = arith.constant 0 : index
    %c0_5 = arith.constant 0 : index
    %4 = vector.load %arg2[%c0_3, %c0_4, %c0_5] : memref<9x16x8xbf16, #tpu.memory_space<vmem>>, vector<1x16x8xbf16>
    %5 = vector.shape_cast %4 : vector<1x16x8xbf16> to vector<16x8xbf16>
    %cst_6 = arith.constant dense<0.000000e+00> : vector<16x8xf32>
    %6 = tpu.matmul %3, %5, %cst_6 {dimension_numbers = #tpu.dot_dimension_numbers<[1], [0], [0], [1], [0, 0, 1, 1], [], []>} : vector<16x16xbf16>, vector<16x8xbf16>, vector<16x8xf32> -> vector<16x8xf32>
    %7 = arith.addf %0, %6 : vector<16x8xf32>
    %c0_7 = arith.constant 0 : index
    %c0_8 = arith.constant 0 : index
    %c1 = arith.constant 1 : index
    %c0_9 = arith.constant 0 : index
    %8 = vector.load %arg1[%c0_7, %c0_8, %c1, %c0_9] : memref<1x6x6x16xbf16, #tpu.memory_space<vmem>>, vector<1x4x4x16xbf16>
    %9 = vector.shape_cast %8 : vector<1x4x4x16xbf16> to vector<4x4x16xbf16>
    %10 = vector.shape_cast %9 : vector<4x4x16xbf16> to vector<16x16xbf16>
    %c1_10 = arith.constant 1 : index
    %c0_11 = arith.constant 0 : index
    %c0_12 = arith.constant 0 : index
    %11 = vector.load %arg2[%c1_10, %c0_11, %c0_12] : memref<9x16x8xbf16, #tpu.memory_space<vmem>>, vector<1x16x8xbf16>
    %12 = vector.shape_cast %11 : vector<1x16x8xbf16> to vector<16x8xbf16>
    %cst_13 = arith.constant dense<0.000000e+00> : vector<16x8xf32>
    %13 = tpu.matmul %10, %12, %cst_13 {dimension_numbers = #tpu.dot_dimension_numbers<[1], [0], [0], [1], [0, 0, 1, 1], [], []>} : vector<16x16xbf16>, vector<16x8xbf16>, vector<16x8xf32> -> vector<16x8xf32>
    %14 = arith.addf %7, %13 : vector<16x8xf32>
    %c0_14 = arith.constant 0 : index
    %c0_15 = arith.constant 0 : index
    %c2 = arith.constant 2 : index
    %c0_16 = arith.constant 0 : index
    %15 = vector.load %arg1[%c0_14, %c0_15, %c2, %c0_16] : memref<1x6x6x16xbf16, #tpu.memory_space<vmem>>, vector<1x4x4x16xbf16>
    %16 = vector.shape_cast %15 : vector<1x4x4x16xbf16> to vector<4x4x16xbf16>
    %17 = vector.shape_cast %16 : vector<4x4x16xbf16> to vector<16x16xbf16>
    %c2_17 = arith.constant 2 : index
    %c0_18 = arith.constant 0 : index
    %c0_19 = arith.constant 0 : index
    %18 = vector.load %arg2[%c2_17, %c0_18, %c0_19] : memref<9x16x8xbf16, #tpu.memory_space<vmem>>, vector<1x16x8xbf16>
    %19 = vector.shape_cast %18 : vector<1x16x8xbf16> to vector<16x8xbf16>
    %cst_20 = arith.constant dense<0.000000e+00> : vector<16x8xf32>
    %20 = tpu.matmul %17, %19, %cst_20 {dimension_numbers = #tpu.dot_dimension_numbers<[1], [0], [0], [1], [0, 0, 1, 1], [], []>} : vector<16x16xbf16>, vector<16x8xbf16>, vector<16x8xf32> -> vector<16x8xf32>
    %21 = arith.addf %14, %20 : vector<16x8xf32>
    %c0_21 = arith.constant 0 : index
    %c1_22 = arith.constant 1 : index
    %c0_23 = arith.constant 0 : index
    %c0_24 = arith.constant 0 : index
    %22 = vector.load %arg1[%c0_21, %c1_22, %c0_23, %c0_24] : memref<1x6x6x16xbf16, #tpu.memory_space<vmem>>, vector<1x4x4x16xbf16>
    %23 = vector.shape_cast %22 : vector<1x4x4x16xbf16> to vector<4x4x16xbf16>
    %24 = vector.shape_cast %23 : vector<4x4x16xbf16> to vector<16x16xbf16>
    %c3 = arith.constant 3 : index
    %c0_25 = arith.constant 0 : index
    %c0_26 = arith.constant 0 : index
    %25 = vector.load %arg2[%c3, %c0_25, %c0_26] : memref<9x16x8xbf16, #tpu.memory_space<vmem>>, vector<1x16x8xbf16>
    %26 = vector.shape_cast %25 : vector<1x16x8xbf16> to vector<16x8xbf16>
    %cst_27 = arith.constant dense<0.000000e+00> : vector<16x8xf32>
    %27 = tpu.matmul %24, %26, %cst_27 {dimension_numbers = #tpu.dot_dimension_numbers<[1], [0], [0], [1], [0, 0, 1, 1], [], []>} : vector<16x16xbf16>, vector<16x8xbf16>, vector<16x8xf32> -> vector<16x8xf32>
    %28 = arith.addf %21, %27 : vector<16x8xf32>
    %c0_28 = arith.constant 0 : index
    %c1_29 = arith.constant 1 : index
    %c1_30 = arith.constant 1 : index
    %c0_31 = arith.constant 0 : index
    %29 = vector.load %arg1[%c0_28, %c1_29, %c1_30, %c0_31] : memref<1x6x6x16xbf16, #tpu.memory_space<vmem>>, vector<1x4x4x16xbf16>
    %30 = vector.shape_cast %29 : vector<1x4x4x16xbf16> to vector<4x4x16xbf16>
    %31 = vector.shape_cast %30 : vector<4x4x16xbf16> to vector<16x16xbf16>
    %c4 = arith.constant 4 : index
    %c0_32 = arith.constant 0 : index
    %c0_33 = arith.constant 0 : index
    %32 = vector.load %arg2[%c4, %c0_32, %c0_33] : memref<9x16x8xbf16, #tpu.memory_space<vmem>>, vector<1x16x8xbf16>
    %33 = vector.shape_cast %32 : vector<1x16x8xbf16> to vector<16x8xbf16>
    %cst_34 = arith.constant dense<0.000000e+00> : vector<16x8xf32>
    %34 = tpu.matmul %31, %33, %cst_34 {dimension_numbers = #tpu.dot_dimension_numbers<[1], [0], [0], [1], [0, 0, 1, 1], [], []>} : vector<16x16xbf16>, vector<16x8xbf16>, vector<16x8xf32> -> vector<16x8xf32>
    %35 = arith.addf %28, %34 : vector<16x8xf32>
    %c0_35 = arith.constant 0 : index
    %c1_36 = arith.constant 1 : index
    %c2_37 = arith.constant 2 : index
    %c0_38 = arith.constant 0 : index
    %36 = vector.load %arg1[%c0_35, %c1_36, %c2_37, %c0_38] : memref<1x6x6x16xbf16, #tpu.memory_space<vmem>>, vector<1x4x4x16xbf16>
    %37 = vector.shape_cast %36 : vector<1x4x4x16xbf16> to vector<4x4x16xbf16>
    %38 = vector.shape_cast %37 : vector<4x4x16xbf16> to vector<16x16xbf16>
    %c5 = arith.constant 5 : index
    %c0_39 = arith.constant 0 : index
    %c0_40 = arith.constant 0 : index
    %39 = vector.load %arg2[%c5, %c0_39, %c0_40] : memref<9x16x8xbf16, #tpu.memory_space<vmem>>, vector<1x16x8xbf16>
    %40 = vector.shape_cast %39 : vector<1x16x8xbf16> to vector<16x8xbf16>
    %cst_41 = arith.constant dense<0.000000e+00> : vector<16x8xf32>
    %41 = tpu.matmul %38, %40, %cst_41 {dimension_numbers = #tpu.dot_dimension_numbers<[1], [0], [0], [1], [0, 0, 1, 1], [], []>} : vector<16x16xbf16>, vector<16x8xbf16>, vector<16x8xf32> -> vector<16x8xf32>
    %42 = arith.addf %35, %41 : vector<16x8xf32>
    %c0_42 = arith.constant 0 : index
    %c2_43 = arith.constant 2 : index
    %c0_44 = arith.constant 0 : index
    %c0_45 = arith.constant 0 : index
    %43 = vector.load %arg1[%c0_42, %c2_43, %c0_44, %c0_45] : memref<1x6x6x16xbf16, #tpu.memory_space<vmem>>, vector<1x4x4x16xbf16>
    %44 = vector.shape_cast %43 : vector<1x4x4x16xbf16> to vector<4x4x16xbf16>
    %45 = vector.shape_cast %44 : vector<4x4x16xbf16> to vector<16x16xbf16>
    %c6 = arith.constant 6 : index
    %c0_46 = arith.constant 0 : index
    %c0_47 = arith.constant 0 : index
    %46 = vector.load %arg2[%c6, %c0_46, %c0_47] : memref<9x16x8xbf16, #tpu.memory_space<vmem>>, vector<1x16x8xbf16>
    %47 = vector.shape_cast %46 : vector<1x16x8xbf16> to vector<16x8xbf16>
    %cst_48 = arith.constant dense<0.000000e+00> : vector<16x8xf32>
    %48 = tpu.matmul %45, %47, %cst_48 {dimension_numbers = #tpu.dot_dimension_numbers<[1], [0], [0], [1], [0, 0, 1, 1], [], []>} : vector<16x16xbf16>, vector<16x8xbf16>, vector<16x8xf32> -> vector<16x8xf32>
    %49 = arith.addf %42, %48 : vector<16x8xf32>
    %c0_49 = arith.constant 0 : index
    %c2_50 = arith.constant 2 : index
    %c1_51 = arith.constant 1 : index
    %c0_52 = arith.constant 0 : index
    %50 = vector.load %arg1[%c0_49, %c2_50, %c1_51, %c0_52] : memref<1x6x6x16xbf16, #tpu.memory_space<vmem>>, vector<1x4x4x16xbf16>
    %51 = vector.shape_cast %50 : vector<1x4x4x16xbf16> to vector<4x4x16xbf16>
    %52 = vector.shape_cast %51 : vector<4x4x16xbf16> to vector<16x16xbf16>
    %c7 = arith.constant 7 : index
    %c0_53 = arith.constant 0 : index
    %c0_54 = arith.constant 0 : index
    %53 = vector.load %arg2[%c7, %c0_53, %c0_54] : memref<9x16x8xbf16, #tpu.memory_space<vmem>>, vector<1x16x8xbf16>
    %54 = vector.shape_cast %53 : vector<1x16x8xbf16> to vector<16x8xbf16>
    %cst_55 = arith.constant dense<0.000000e+00> : vector<16x8xf32>
    %55 = tpu.matmul %52, %54, %cst_55 {dimension_numbers = #tpu.dot_dimension_numbers<[1], [0], [0], [1], [0, 0, 1, 1], [], []>} : vector<16x16xbf16>, vector<16x8xbf16>, vector<16x8xf32> -> vector<16x8xf32>
    %56 = arith.addf %49, %55 : vector<16x8xf32>
    %c0_56 = arith.constant 0 : index
    %c2_57 = arith.constant 2 : index
    %c2_58 = arith.constant 2 : index
    %c0_59 = arith.constant 0 : index
    %57 = vector.load %arg1[%c0_56, %c2_57, %c2_58, %c0_59] : memref<1x6x6x16xbf16, #tpu.memory_space<vmem>>, vector<1x4x4x16xbf16>
    %58 = vector.shape_cast %57 : vector<1x4x4x16xbf16> to vector<4x4x16xbf16>
    %59 = vector.shape_cast %58 : vector<4x4x16xbf16> to vector<16x16xbf16>
    %c8 = arith.constant 8 : index
    %c0_60 = arith.constant 0 : index
    %c0_61 = arith.constant 0 : index
    %60 = vector.load %arg2[%c8, %c0_60, %c0_61] : memref<9x16x8xbf16, #tpu.memory_space<vmem>>, vector<1x16x8xbf16>
    %61 = vector.shape_cast %60 : vector<1x16x8xbf16> to vector<16x8xbf16>
    %cst_62 = arith.constant dense<0.000000e+00> : vector<16x8xf32>
    %62 = tpu.matmul %59, %61, %cst_62 {dimension_numbers = #tpu.dot_dimension_numbers<[1], [0], [0], [1], [0, 0, 1, 1], [], []>} : vector<16x16xbf16>, vector<16x8xbf16>, vector<16x8xf32> -> vector<16x8xf32>
    %63 = arith.addf %56, %62 : vector<16x8xf32>
    %c0_63 = arith.constant 0 : index
    %c0_64 = arith.constant 0 : index
    %64 = vector.load %arg3[%c0_63, %c0_64] : memref<1x8xf32, #tpu.memory_space<vmem>>, vector<1x8xf32>
    %65 = vector.broadcast %64 : vector<1x8xf32> to vector<16x8xf32>
    %66 = arith.mulf %63, %65 : vector<16x8xf32>
    %c0_65 = arith.constant 0 : index
    %c0_66 = arith.constant 0 : index
    %67 = vector.load %arg4[%c0_65, %c0_66] : memref<1x8xf32, #tpu.memory_space<vmem>>, vector<1x8xf32>
    %68 = vector.broadcast %67 : vector<1x8xf32> to vector<16x8xf32>
    %69 = arith.addf %66, %68 : vector<16x8xf32>
    %70 = arith.truncf %69 : vector<16x8xf32> to vector<16x8xbf16>
    %c0_67 = arith.constant 0 : index
    %c0_68 = arith.constant 0 : index
    %c0_69 = arith.constant 0 : index
    %71 = vector.load %arg5[%c0_67, %c0_68, %c0_69] : memref<1x16x8xbf16, #tpu.memory_space<vmem>>, vector<1x16x8xbf16>
    %72 = vector.shape_cast %71 : vector<1x16x8xbf16> to vector<16x8xbf16>
    %73 = vector.shape_cast %70 : vector<16x8xbf16> to vector<1x16x8xbf16>
    tpu.vector_store %arg5[%c0_67, %c0_68, %c0_69], %73 {strides = array<i32>} : memref<1x16x8xbf16, #tpu.memory_space<vmem>>, vector<1x16x8xbf16>,
    return
  }
  func.func @transform_0(%arg0: i32) -> (i32, i32, i32, i32) {
    %c0_i32 = arith.constant 0 : i32
    %c0_i32_0 = arith.constant 0 : i32
    %c0_i32_1 = arith.constant 0 : i32
    %c0_i32_2 = arith.constant 0 : i32
    return %arg0, %c0_i32, %c0_i32_0, %c0_i32_1 : i32, i32, i32, i32
  }
  func.func @transform_1(%arg0: i32) -> (i32, i32, i32) {
    %c0_i32 = arith.constant 0 : i32
    %c0_i32_0 = arith.constant 0 : i32
    %c0_i32_1 = arith.constant 0 : i32
    %c0_i32_2 = arith.constant 0 : i32
    return %c0_i32, %c0_i32_0, %c0_i32_1 : i32, i32, i32
  }
  func.func @transform_2(%arg0: i32) -> (i32, i32) {
    %c0_i32 = arith.constant 0 : i32
    %c0_i32_0 = arith.constant 0 : i32
    %c0_i32_1 = arith.constant 0 : i32
    return %c0_i32, %c0_i32_0 : i32, i32
  }
  func.func @transform_3(%arg0: i32) -> (i32, i32) {
    %c0_i32 = arith.constant 0 : i32
    %c0_i32_0 = arith.constant 0 : i32
    %c0_i32_1 = arith.constant 0 : i32
    return %c0_i32, %c0_i32_0 : i32, i32
  }
  func.func @transform_4(%arg0: i32) -> (i32, i32, i32) {
    %c0_i32 = arith.constant 0 : i32
    %c0_i32_0 = arith.constant 0 : i32
    %c0_i32_1 = arith.constant 0 : i32
    return %arg0, %c0_i32, %c0_i32_0 : i32, i32, i32
  }
}

module attributes {stable_mosaic.version = 11 : i64} {
  func.func @_gap_kernel(%arg0: i32, %arg1: memref<1x16x32xbf16, #tpu.memory_space<vmem>>, %arg2: memref<1x32xf32, #tpu.memory_space<vmem>>, %arg3: memref<1x32xf32, #tpu.memory_space<vmem>>, %arg4: memref<1x1x32xf32, #tpu.memory_space<vmem>>) attributes {dimension_semantics = [#tpu.dimension_semantics<parallel>], iteration_bounds = array<i64: 6>, scalar_prefetch = 0 : i64, scratch_operands = 0 : i64, tpu.core_type = #tpu.core_type<tc>, window_params = [{transform_indices = @transform_0, window_bounds = array<i64: 1, 16, 32>}, {pipeline_mode = #tpu.pipeline_mode<synchronous>, transform_indices = @transform_1, window_bounds = array<i64: 1, 32>}, {pipeline_mode = #tpu.pipeline_mode<synchronous>, transform_indices = @transform_2, window_bounds = array<i64: 1, 32>}, {transform_indices = @transform_3, window_bounds = array<i64: 1, 1, 32>}]} {
    %c0 = arith.constant 0 : index
    %c0_0 = arith.constant 0 : index
    %c0_1 = arith.constant 0 : index
    %0 = vector.load %arg1[%c0, %c0_0, %c0_1] : memref<1x16x32xbf16, #tpu.memory_space<vmem>>, vector<1x16x32xbf16>
    %1 = vector.shape_cast %0 : vector<1x16x32xbf16> to vector<16x32xbf16>
    %2 = arith.extf %1 : vector<16x32xbf16> to vector<16x32xf32>
    %c0_2 = arith.constant 0 : index
    %c0_3 = arith.constant 0 : index
    %3 = vector.load %arg2[%c0_2, %c0_3] : memref<1x32xf32, #tpu.memory_space<vmem>>, vector<1x32xf32>
    %4 = vector.broadcast %3 : vector<1x32xf32> to vector<16x32xf32>
    %5 = arith.mulf %2, %4 : vector<16x32xf32>
    %c0_4 = arith.constant 0 : index
    %c0_5 = arith.constant 0 : index
    %6 = vector.load %arg3[%c0_4, %c0_5] : memref<1x32xf32, #tpu.memory_space<vmem>>, vector<1x32xf32>
    %7 = vector.broadcast %6 : vector<1x32xf32> to vector<16x32xf32>
    %8 = arith.addf %5, %7 : vector<16x32xf32>
    %cst = arith.constant 0.000000e+00 : f32
    %9 = vector.broadcast %cst : f32 to vector<16x32xf32>
    %10 = arith.maximumf %8, %9 : vector<16x32xf32>
    %cst_6 = arith.constant dense<0.000000e+00> : vector<32xf32>
    %11 = vector.multi_reduction <add>, %10, %cst_6 [0] : vector<16x32xf32> to vector<32xf32>
    %12 = vector.shape_cast %11 : vector<32xf32> to vector<1x32xf32>
    %cst_7 = arith.constant 1.600000e+01 : f32
    %13 = vector.broadcast %cst_7 : f32 to vector<1x32xf32>
    %14 = arith.divf %12, %13 : vector<1x32xf32>
    %c0_8 = arith.constant 0 : index
    %c0_9 = arith.constant 0 : index
    %c0_10 = arith.constant 0 : index
    %15 = vector.load %arg4[%c0_8, %c0_9, %c0_10] : memref<1x1x32xf32, #tpu.memory_space<vmem>>, vector<1x1x32xf32>
    %16 = vector.shape_cast %15 : vector<1x1x32xf32> to vector<1x32xf32>
    %17 = vector.shape_cast %14 : vector<1x32xf32> to vector<1x1x32xf32>
    tpu.vector_store %arg4[%c0_8, %c0_9, %c0_10], %17 {strides = array<i32>} : memref<1x1x32xf32, #tpu.memory_space<vmem>>, vector<1x1x32xf32>,
    return
  }
  func.func @transform_0(%arg0: i32) -> (i32, i32, i32) {
    %c0_i32 = arith.constant 0 : i32
    %c0_i32_0 = arith.constant 0 : i32
    %c0_i32_1 = arith.constant 0 : i32
    return %arg0, %c0_i32, %c0_i32_0 : i32, i32, i32
  }
  func.func @transform_1(%arg0: i32) -> (i32, i32) {
    %c0_i32 = arith.constant 0 : i32
    %c0_i32_0 = arith.constant 0 : i32
    %c0_i32_1 = arith.constant 0 : i32
    return %c0_i32, %c0_i32_0 : i32, i32
  }
  func.func @transform_2(%arg0: i32) -> (i32, i32) {
    %c0_i32 = arith.constant 0 : i32
    %c0_i32_0 = arith.constant 0 : i32
    %c0_i32_1 = arith.constant 0 : i32
    return %c0_i32, %c0_i32_0 : i32, i32
  }
  func.func @transform_3(%arg0: i32) -> (i32, i32, i32) {
    %c0_i32 = arith.constant 0 : i32
    %c0_i32_0 = arith.constant 0 : i32
    %c0_i32_1 = arith.constant 0 : i32
    return %arg0, %c0_i32, %c0_i32_0 : i32, i32, i32
  }
}

module attributes {stable_mosaic.version = 11 : i64} {
  func.func @_mm_kernel(%arg0: i32, %arg1: i32, %arg2: i32, %arg3: memref<8x128xbf16, #tpu.memory_space<vmem>>, %arg4: memref<128x128xbf16, #tpu.memory_space<vmem>>, %arg5: memref<1x128xf32, #tpu.memory_space<vmem>>, %arg6: memref<1x128xf32, #tpu.memory_space<vmem>>, %arg7: memref<1x128xf32, #tpu.memory_space<vmem>>, %arg8: memref<1x128xf32, #tpu.memory_space<vmem>>, %arg9: memref<8x128xf32, #tpu.memory_space<vmem>>, %arg10: memref<8x128xf32, #tpu.memory_space<vmem>>) attributes {dimension_semantics = [#tpu.dimension_semantics<parallel>, #tpu.dimension_semantics<parallel>, #tpu.dimension_semantics<arbitrary>], iteration_bounds = array<i64: 1, 1, 1>, scalar_prefetch = 0 : i64, scratch_operands = 1 : i64, tpu.core_type = #tpu.core_type<tc>, window_params = [{transform_indices = @transform_0, window_bounds = array<i64: 8, 128>}, {transform_indices = @transform_1, window_bounds = array<i64: 128, 128>}, {transform_indices = @transform_2, window_bounds = array<i64: 1, 128>}, {transform_indices = @transform_3, window_bounds = array<i64: 1, 128>}, {transform_indices = @transform_4, window_bounds = array<i64: 1, 128>}, {transform_indices = @transform_5, window_bounds = array<i64: 1, 128>}, {transform_indices = @transform_6, window_bounds = array<i64: 8, 128>}]} {
    %c0_i32 = arith.constant 0 : i32
    %0 = arith.cmpi eq, %arg2, %c0_i32 : i32
    %1 = arith.extui %0 : i1 to i32
    %c0_i32_0 = arith.constant 0 : i32
    %2 = arith.cmpi ne, %1, %c0_i32_0 : i32
    scf.if %2 {
      %cst_10 = arith.constant 0.000000e+00 : f32
      %12 = vector.broadcast %cst_10 : f32 to vector<8x128xf32>
      %c0_11 = arith.constant 0 : index
      %c0_12 = arith.constant 0 : index
      %13 = vector.load %arg10[%c0_11, %c0_12] : memref<8x128xf32, #tpu.memory_space<vmem>>, vector<8x128xf32>
      tpu.vector_store %arg10[%c0_11, %c0_12], %12 {strides = array<i32>} : memref<8x128xf32, #tpu.memory_space<vmem>>, vector<8x128xf32>,
    } else {
    }
    %c0 = arith.constant 0 : index
    %c0_1 = arith.constant 0 : index
    %3 = vector.load %arg3[%c0, %c0_1] : memref<8x128xbf16, #tpu.memory_space<vmem>>, vector<8x128xbf16>
    %c0_2 = arith.constant 0 : index
    %c0_3 = arith.constant 0 : index
    %4 = vector.load %arg10[%c0_2, %c0_3] : memref<8x128xf32, #tpu.memory_space<vmem>>, vector<8x128xf32>
    %c0_4 = arith.constant 0 : index
    %c0_5 = arith.constant 0 : index
    %5 = vector.load %arg4[%c0_4, %c0_5] : memref<128x128xbf16, #tpu.memory_space<vmem>>, vector<128x128xbf16>
    %cst = arith.constant dense<0.000000e+00> : vector<8x128xf32>
    %6 = tpu.matmul %3, %5, %cst {dimension_numbers = #tpu.dot_dimension_numbers<[1], [0], [0], [1], [0, 0, 1, 1], [], []>} : vector<8x128xbf16>, vector<128x128xbf16>, vector<8x128xf32> -> vector<8x128xf32>
    %7 = arith.addf %4, %6 : vector<8x128xf32>
    %c0_6 = arith.constant 0 : index
    %c0_7 = arith.constant 0 : index
    %8 = vector.load %arg10[%c0_6, %c0_7] : memref<8x128xf32, #tpu.memory_space<vmem>>, vector<8x128xf32>
    tpu.vector_store %arg10[%c0_6, %c0_7], %7 {strides = array<i32>} : memref<8x128xf32, #tpu.memory_space<vmem>>, vector<8x128xf32>,
    %c0_i32_8 = arith.constant 0 : i32
    %9 = arith.cmpi eq, %arg2, %c0_i32_8 : i32
    %10 = arith.extui %9 : i1 to i32
    %c0_i32_9 = arith.constant 0 : i32
    %11 = arith.cmpi ne, %10, %c0_i32_9 : i32
    scf.if %11 {
      %c0_10 = arith.constant 0 : index
      %c0_11 = arith.constant 0 : index
      %12 = vector.load %arg10[%c0_10, %c0_11] : memref<8x128xf32, #tpu.memory_space<vmem>>, vector<8x128xf32>
      %c0_12 = arith.constant 0 : index
      %c0_13 = arith.constant 0 : index
      %13 = vector.load %arg7[%c0_12, %c0_13] : memref<1x128xf32, #tpu.memory_space<vmem>>, vector<1x128xf32>
      %14 = vector.broadcast %13 : vector<1x128xf32> to vector<8x128xf32>
      %15 = arith.mulf %12, %14 : vector<8x128xf32>
      %c0_14 = arith.constant 0 : index
      %c0_15 = arith.constant 0 : index
      %16 = vector.load %arg8[%c0_14, %c0_15] : memref<1x128xf32, #tpu.memory_space<vmem>>, vector<1x128xf32>
      %17 = vector.broadcast %16 : vector<1x128xf32> to vector<8x128xf32>
      %18 = arith.addf %15, %17 : vector<8x128xf32>
      %c0_16 = arith.constant 0 : index
      %c0_17 = arith.constant 0 : index
      %19 = vector.load %arg9[%c0_16, %c0_17] : memref<8x128xf32, #tpu.memory_space<vmem>>, vector<8x128xf32>
      tpu.vector_store %arg9[%c0_16, %c0_17], %18 {strides = array<i32>} : memref<8x128xf32, #tpu.memory_space<vmem>>, vector<8x128xf32>,
    } else {
    }
    return
  }
  func.func @transform_0(%arg0: i32, %arg1: i32, %arg2: i32) -> (i32, i32) {
    %c0_i32 = arith.constant 0 : i32
    return %arg0, %arg2 : i32, i32
  }
  func.func @transform_1(%arg0: i32, %arg1: i32, %arg2: i32) -> (i32, i32) {
    %c0_i32 = arith.constant 0 : i32
    return %arg2, %arg1 : i32, i32
  }
  func.func @transform_2(%arg0: i32, %arg1: i32, %arg2: i32) -> (i32, i32) {
    %c0_i32 = arith.constant 0 : i32
    %c0_i32_0 = arith.constant 0 : i32
    return %c0_i32, %arg2 : i32, i32
  }
  func.func @transform_3(%arg0: i32, %arg1: i32, %arg2: i32) -> (i32, i32) {
    %c0_i32 = arith.constant 0 : i32
    %c0_i32_0 = arith.constant 0 : i32
    return %c0_i32, %arg2 : i32, i32
  }
  func.func @transform_4(%arg0: i32, %arg1: i32, %arg2: i32) -> (i32, i32) {
    %c0_i32 = arith.constant 0 : i32
    %c0_i32_0 = arith.constant 0 : i32
    return %c0_i32, %arg1 : i32, i32
  }
  func.func @transform_5(%arg0: i32, %arg1: i32, %arg2: i32) -> (i32, i32) {
    %c0_i32 = arith.constant 0 : i32
    %c0_i32_0 = arith.constant 0 : i32
    return %c0_i32, %arg1 : i32, i32
  }
  func.func @transform_6(%arg0: i32, %arg1: i32, %arg2: i32) -> (i32, i32) {
    %c0_i32 = arith.constant 0 : i32
    return %arg0, %arg1 : i32, i32
  }
}

module attributes {stable_mosaic.version = 11 : i64} {
  func.func @_bigru_kernel(%arg0: i32, %arg1: memref<8x8x96xf32, #tpu.memory_space<vmem>>, %arg2: memref<32x96xf32, #tpu.memory_space<vmem>>, %arg3: memref<1x96xf32, #tpu.memory_space<vmem>>, %arg4: memref<8x8x32xf32, #tpu.memory_space<vmem>>, %arg5: memref<8x32xf32, #tpu.memory_space<vmem>>) attributes {dimension_semantics = [#tpu.dimension_semantics<arbitrary>], iteration_bounds = array<i64: 1>, scalar_prefetch = 0 : i64, scratch_operands = 1 : i64, tpu.core_type = #tpu.core_type<tc>, window_params = [{transform_indices = @transform_0, window_bounds = array<i64: 8, 8, 96>}, {pipeline_mode = #tpu.pipeline_mode<synchronous>, transform_indices = @transform_1, window_bounds = array<i64: 32, 96>}, {pipeline_mode = #tpu.pipeline_mode<synchronous>, transform_indices = @transform_2, window_bounds = array<i64: 1, 96>}, {transform_indices = @transform_3, window_bounds = array<i64: 8, 8, 32>}]} {
    %c0_i32 = arith.constant 0 : i32
    %0 = arith.cmpi eq, %arg0, %c0_i32 : i32
    %1 = arith.extui %0 : i1 to i32
    %c0_i32_0 = arith.constant 0 : i32
    %2 = arith.cmpi ne, %1, %c0_i32_0 : i32
    scf.if %2 {
      %cst_152 = arith.constant 0.000000e+00 : f32
      %587 = vector.broadcast %cst_152 : f32 to vector<8x32xf32>
      %c0_153 = arith.constant 0 : index
      %c0_154 = arith.constant 0 : index
      %588 = vector.load %arg5[%c0_153, %c0_154] : memref<8x32xf32, #tpu.memory_space<vmem>>, vector<8x32xf32>
      tpu.vector_store %arg5[%c0_153, %c0_154], %587 {strides = array<i32>} : memref<8x32xf32, #tpu.memory_space<vmem>>, vector<8x32xf32>,
    } else {
    }
    %c0_i32_1 = arith.constant 0 : i32
    %c0 = arith.constant 0 : index
    %c0_2 = arith.constant 0 : index
    %3 = vector.load %arg5[%c0, %c0_2] : memref<8x32xf32, #tpu.memory_space<vmem>>, vector<8x32xf32>
    %4 = arith.index_cast %c0_i32_1 : i32 to index
    %c0_3 = arith.constant 0 : index
    %c0_4 = arith.constant 0 : index
    %5 = vector.load %arg1[%4, %c0_3, %c0_4] : memref<8x8x96xf32, #tpu.memory_space<vmem>>, vector<1x8x96xf32>
    %6 = vector.shape_cast %5 : vector<1x8x96xf32> to vector<8x96xf32>
    %c0_5 = arith.constant 0 : index
    %c0_6 = arith.constant 0 : index
    %7 = vector.load %arg2[%c0_5, %c0_6] : memref<32x96xf32, #tpu.memory_space<vmem>>, vector<32x96xf32>
    %cst = arith.constant dense<0.000000e+00> : vector<8x96xf32>
    %8 = tpu.matmul %3, %7, %cst {dimension_numbers = #tpu.dot_dimension_numbers<[1], [0], [0], [1], [0, 0, 1, 1], [], []>} : vector<8x32xf32>, vector<32x96xf32>, vector<8x96xf32> -> vector<8x96xf32>
    %c0_7 = arith.constant 0 : index
    %c0_8 = arith.constant 0 : index
    %9 = vector.load %arg3[%c0_7, %c0_8] : memref<1x96xf32, #tpu.memory_space<vmem>>, vector<1x96xf32>
    %10 = vector.broadcast %9 : vector<1x96xf32> to vector<8x96xf32>
    %11 = arith.addf %8, %10 : vector<8x96xf32>
    %12 = vector.extract_strided_slice %6 {offsets = [0, 0], sizes = [8, 48], strides = [1, 1]} : vector<8x96xf32> to vector<8x48xf32>
    %13 = vector.extract_strided_slice %11 {offsets = [0, 0], sizes = [8, 48], strides = [1, 1]} : vector<8x96xf32> to vector<8x48xf32>
    %14 = vector.extract_strided_slice %3 {offsets = [0, 0], sizes = [8, 16], strides = [1, 1]} : vector<8x32xf32> to vector<8x16xf32>
    %15 = vector.extract_strided_slice %12 {offsets = [0, 0], sizes = [8, 16], strides = [1, 1]} : vector<8x48xf32> to vector<8x16xf32>
    %16 = vector.extract_strided_slice %13 {offsets = [0, 0], sizes = [8, 16], strides = [1, 1]} : vector<8x48xf32> to vector<8x16xf32>
    %17 = arith.addf %15, %16 : vector<8x16xf32>
    %18 = arith.negf %17 : vector<8x16xf32>
    %19 = math.exp %18 : vector<8x16xf32>
    %cst_9 = arith.constant 1.000000e+00 : f32
    %20 = vector.broadcast %cst_9 : f32 to vector<8x16xf32>
    %21 = arith.addf %20, %19 : vector<8x16xf32>
    %22 = arith.divf %20, %21 : vector<8x16xf32>
    %23 = vector.extract_strided_slice %12 {offsets = [0, 16], sizes = [8, 16], strides = [1, 1]} : vector<8x48xf32> to vector<8x16xf32>
    %24 = vector.extract_strided_slice %13 {offsets = [0, 16], sizes = [8, 16], strides = [1, 1]} : vector<8x48xf32> to vector<8x16xf32>
    %25 = arith.addf %23, %24 : vector<8x16xf32>
    %26 = arith.negf %25 : vector<8x16xf32>
    %27 = math.exp %26 : vector<8x16xf32>
    %cst_10 = arith.constant 1.000000e+00 : f32
    %28 = vector.broadcast %cst_10 : f32 to vector<8x16xf32>
    %29 = arith.addf %28, %27 : vector<8x16xf32>
    %30 = arith.divf %28, %29 : vector<8x16xf32>
    %31 = vector.extract_strided_slice %12 {offsets = [0, 32], sizes = [8, 16], strides = [1, 1]} : vector<8x48xf32> to vector<8x16xf32>
    %32 = vector.extract_strided_slice %13 {offsets = [0, 32], sizes = [8, 16], strides = [1, 1]} : vector<8x48xf32> to vector<8x16xf32>
    %33 = arith.mulf %22, %32 : vector<8x16xf32>
    %34 = arith.addf %31, %33 : vector<8x16xf32>
    %35 = math.tanh %34 : vector<8x16xf32>
    %cst_11 = arith.constant 1.000000e+00 : f32
    %36 = vector.broadcast %cst_11 : f32 to vector<8x16xf32>
    %37 = arith.subf %36, %30 : vector<8x16xf32>
    %38 = arith.mulf %37, %35 : vector<8x16xf32>
    %39 = arith.mulf %30, %14 : vector<8x16xf32>
    %40 = arith.addf %38, %39 : vector<8x16xf32>
    %41 = vector.extract_strided_slice %6 {offsets = [0, 48], sizes = [8, 48], strides = [1, 1]} : vector<8x96xf32> to vector<8x48xf32>
    %42 = vector.extract_strided_slice %11 {offsets = [0, 48], sizes = [8, 48], strides = [1, 1]} : vector<8x96xf32> to vector<8x48xf32>
    %43 = vector.extract_strided_slice %3 {offsets = [0, 16], sizes = [8, 16], strides = [1, 1]} : vector<8x32xf32> to vector<8x16xf32>
    %44 = vector.extract_strided_slice %41 {offsets = [0, 0], sizes = [8, 16], strides = [1, 1]} : vector<8x48xf32> to vector<8x16xf32>
    %45 = vector.extract_strided_slice %42 {offsets = [0, 0], sizes = [8, 16], strides = [1, 1]} : vector<8x48xf32> to vector<8x16xf32>
    %46 = arith.addf %44, %45 : vector<8x16xf32>
    %47 = arith.negf %46 : vector<8x16xf32>
    %48 = math.exp %47 : vector<8x16xf32>
    %cst_12 = arith.constant 1.000000e+00 : f32
    %49 = vector.broadcast %cst_12 : f32 to vector<8x16xf32>
    %50 = arith.addf %49, %48 : vector<8x16xf32>
    %51 = arith.divf %49, %50 : vector<8x16xf32>
    %52 = vector.extract_strided_slice %41 {offsets = [0, 16], sizes = [8, 16], strides = [1, 1]} : vector<8x48xf32> to vector<8x16xf32>
    %53 = vector.extract_strided_slice %42 {offsets = [0, 16], sizes = [8, 16], strides = [1, 1]} : vector<8x48xf32> to vector<8x16xf32>
    %54 = arith.addf %52, %53 : vector<8x16xf32>
    %55 = arith.negf %54 : vector<8x16xf32>
    %56 = math.exp %55 : vector<8x16xf32>
    %cst_13 = arith.constant 1.000000e+00 : f32
    %57 = vector.broadcast %cst_13 : f32 to vector<8x16xf32>
    %58 = arith.addf %57, %56 : vector<8x16xf32>
    %59 = arith.divf %57, %58 : vector<8x16xf32>
    %60 = vector.extract_strided_slice %41 {offsets = [0, 32], sizes = [8, 16], strides = [1, 1]} : vector<8x48xf32> to vector<8x16xf32>
    %61 = vector.extract_strided_slice %42 {offsets = [0, 32], sizes = [8, 16], strides = [1, 1]} : vector<8x48xf32> to vector<8x16xf32>
    %62 = arith.mulf %51, %61 : vector<8x16xf32>
    %63 = arith.addf %60, %62 : vector<8x16xf32>
    %64 = math.tanh %63 : vector<8x16xf32>
    %cst_14 = arith.constant 1.000000e+00 : f32
    %65 = vector.broadcast %cst_14 : f32 to vector<8x16xf32>
    %66 = arith.subf %65, %59 : vector<8x16xf32>
    %67 = arith.mulf %66, %64 : vector<8x16xf32>
    %68 = arith.mulf %59, %43 : vector<8x16xf32>
    %69 = arith.addf %67, %68 : vector<8x16xf32>
    %70 = tpu.concatenate %40, %69 in 1 : vector<8x16xf32>, vector<8x16xf32> -> vector<8x32xf32>
    %c0_15 = arith.constant 0 : index
    %c0_16 = arith.constant 0 : index
    %71 = vector.load %arg5[%c0_15, %c0_16] : memref<8x32xf32, #tpu.memory_space<vmem>>, vector<8x32xf32>
    tpu.vector_store %arg5[%c0_15, %c0_16], %70 {strides = array<i32>} : memref<8x32xf32, #tpu.memory_space<vmem>>, vector<8x32xf32>,
    %72 = arith.index_cast %c0_i32_1 : i32 to index
    %c0_17 = arith.constant 0 : index
    %c0_18 = arith.constant 0 : index
    %73 = vector.load %arg4[%72, %c0_17, %c0_18] : memref<8x8x32xf32, #tpu.memory_space<vmem>>, vector<1x8x32xf32>
    %74 = vector.shape_cast %73 : vector<1x8x32xf32> to vector<8x32xf32>
    %75 = vector.shape_cast %70 : vector<8x32xf32> to vector<1x8x32xf32>
    tpu.vector_store %arg4[%72, %c0_17, %c0_18], %75 {strides = array<i32>} : memref<8x8x32xf32, #tpu.memory_space<vmem>>, vector<1x8x32xf32>,
    %c1_i32 = arith.constant 1 : i32
    %c0_19 = arith.constant 0 : index
    %c0_20 = arith.constant 0 : index
    %76 = vector.load %arg5[%c0_19, %c0_20] : memref<8x32xf32, #tpu.memory_space<vmem>>, vector<8x32xf32>
    %77 = arith.index_cast %c1_i32 : i32 to index
    %c0_21 = arith.constant 0 : index
    %c0_22 = arith.constant 0 : index
    %78 = vector.load %arg1[%77, %c0_21, %c0_22] : memref<8x8x96xf32, #tpu.memory_space<vmem>>, vector<1x8x96xf32>
    %79 = vector.shape_cast %78 : vector<1x8x96xf32> to vector<8x96xf32>
    %c0_23 = arith.constant 0 : index
    %c0_24 = arith.constant 0 : index
    %80 = vector.load %arg2[%c0_23, %c0_24] : memref<32x96xf32, #tpu.memory_space<vmem>>, vector<32x96xf32>
    %cst_25 = arith.constant dense<0.000000e+00> : vector<8x96xf32>
    %81 = tpu.matmul %76, %80, %cst_25 {dimension_numbers = #tpu.dot_dimension_numbers<[1], [0], [0], [1], [0, 0, 1, 1], [], []>} : vector<8x32xf32>, vector<32x96xf32>, vector<8x96xf32> -> vector<8x96xf32>
    %c0_26 = arith.constant 0 : index
    %c0_27 = arith.constant 0 : index
    %82 = vector.load %arg3[%c0_26, %c0_27] : memref<1x96xf32, #tpu.memory_space<vmem>>, vector<1x96xf32>
    %83 = vector.broadcast %82 : vector<1x96xf32> to vector<8x96xf32>
    %84 = arith.addf %81, %83 : vector<8x96xf32>
    %85 = vector.extract_strided_slice %79 {offsets = [0, 0], sizes = [8, 48], strides = [1, 1]} : vector<8x96xf32> to vector<8x48xf32>
    %86 = vector.extract_strided_slice %84 {offsets = [0, 0], sizes = [8, 48], strides = [1, 1]} : vector<8x96xf32> to vector<8x48xf32>
    %87 = vector.extract_strided_slice %76 {offsets = [0, 0], sizes = [8, 16], strides = [1, 1]} : vector<8x32xf32> to vector<8x16xf32>
    %88 = vector.extract_strided_slice %85 {offsets = [0, 0], sizes = [8, 16], strides = [1, 1]} : vector<8x48xf32> to vector<8x16xf32>
    %89 = vector.extract_strided_slice %86 {offsets = [0, 0], sizes = [8, 16], strides = [1, 1]} : vector<8x48xf32> to vector<8x16xf32>
    %90 = arith.addf %88, %89 : vector<8x16xf32>
    %91 = arith.negf %90 : vector<8x16xf32>
    %92 = math.exp %91 : vector<8x16xf32>
    %cst_28 = arith.constant 1.000000e+00 : f32
    %93 = vector.broadcast %cst_28 : f32 to vector<8x16xf32>
    %94 = arith.addf %93, %92 : vector<8x16xf32>
    %95 = arith.divf %93, %94 : vector<8x16xf32>
    %96 = vector.extract_strided_slice %85 {offsets = [0, 16], sizes = [8, 16], strides = [1, 1]} : vector<8x48xf32> to vector<8x16xf32>
    %97 = vector.extract_strided_slice %86 {offsets = [0, 16], sizes = [8, 16], strides = [1, 1]} : vector<8x48xf32> to vector<8x16xf32>
    %98 = arith.addf %96, %97 : vector<8x16xf32>
    %99 = arith.negf %98 : vector<8x16xf32>
    %100 = math.exp %99 : vector<8x16xf32>
    %cst_29 = arith.constant 1.000000e+00 : f32
    %101 = vector.broadcast %cst_29 : f32 to vector<8x16xf32>
    %102 = arith.addf %101, %100 : vector<8x16xf32>
    %103 = arith.divf %101, %102 : vector<8x16xf32>
    %104 = vector.extract_strided_slice %85 {offsets = [0, 32], sizes = [8, 16], strides = [1, 1]} : vector<8x48xf32> to vector<8x16xf32>
    %105 = vector.extract_strided_slice %86 {offsets = [0, 32], sizes = [8, 16], strides = [1, 1]} : vector<8x48xf32> to vector<8x16xf32>
    %106 = arith.mulf %95, %105 : vector<8x16xf32>
    %107 = arith.addf %104, %106 : vector<8x16xf32>
    %108 = math.tanh %107 : vector<8x16xf32>
    %cst_30 = arith.constant 1.000000e+00 : f32
    %109 = vector.broadcast %cst_30 : f32 to vector<8x16xf32>
    %110 = arith.subf %109, %103 : vector<8x16xf32>
    %111 = arith.mulf %110, %108 : vector<8x16xf32>
    %112 = arith.mulf %103, %87 : vector<8x16xf32>
    %113 = arith.addf %111, %112 : vector<8x16xf32>
    %114 = vector.extract_strided_slice %79 {offsets = [0, 48], sizes = [8, 48], strides = [1, 1]} : vector<8x96xf32> to vector<8x48xf32>
    %115 = vector.extract_strided_slice %84 {offsets = [0, 48], sizes = [8, 48], strides = [1, 1]} : vector<8x96xf32> to vector<8x48xf32>
    %116 = vector.extract_strided_slice %76 {offsets = [0, 16], sizes = [8, 16], strides = [1, 1]} : vector<8x32xf32> to vector<8x16xf32>
    %117 = vector.extract_strided_slice %114 {offsets = [0, 0], sizes = [8, 16], strides = [1, 1]} : vector<8x48xf32> to vector<8x16xf32>
    %118 = vector.extract_strided_slice %115 {offsets = [0, 0], sizes = [8, 16], strides = [1, 1]} : vector<8x48xf32> to vector<8x16xf32>
    %119 = arith.addf %117, %118 : vector<8x16xf32>
    %120 = arith.negf %119 : vector<8x16xf32>
    %121 = math.exp %120 : vector<8x16xf32>
    %cst_31 = arith.constant 1.000000e+00 : f32
    %122 = vector.broadcast %cst_31 : f32 to vector<8x16xf32>
    %123 = arith.addf %122, %121 : vector<8x16xf32>
    %124 = arith.divf %122, %123 : vector<8x16xf32>
    %125 = vector.extract_strided_slice %114 {offsets = [0, 16], sizes = [8, 16], strides = [1, 1]} : vector<8x48xf32> to vector<8x16xf32>
    %126 = vector.extract_strided_slice %115 {offsets = [0, 16], sizes = [8, 16], strides = [1, 1]} : vector<8x48xf32> to vector<8x16xf32>
    %127 = arith.addf %125, %126 : vector<8x16xf32>
    %128 = arith.negf %127 : vector<8x16xf32>
    %129 = math.exp %128 : vector<8x16xf32>
    %cst_32 = arith.constant 1.000000e+00 : f32
    %130 = vector.broadcast %cst_32 : f32 to vector<8x16xf32>
    %131 = arith.addf %130, %129 : vector<8x16xf32>
    %132 = arith.divf %130, %131 : vector<8x16xf32>
    %133 = vector.extract_strided_slice %114 {offsets = [0, 32], sizes = [8, 16], strides = [1, 1]} : vector<8x48xf32> to vector<8x16xf32>
    %134 = vector.extract_strided_slice %115 {offsets = [0, 32], sizes = [8, 16], strides = [1, 1]} : vector<8x48xf32> to vector<8x16xf32>
    %135 = arith.mulf %124, %134 : vector<8x16xf32>
    %136 = arith.addf %133, %135 : vector<8x16xf32>
    %137 = math.tanh %136 : vector<8x16xf32>
    %cst_33 = arith.constant 1.000000e+00 : f32
    %138 = vector.broadcast %cst_33 : f32 to vector<8x16xf32>
    %139 = arith.subf %138, %132 : vector<8x16xf32>
    %140 = arith.mulf %139, %137 : vector<8x16xf32>
    %141 = arith.mulf %132, %116 : vector<8x16xf32>
    %142 = arith.addf %140, %141 : vector<8x16xf32>
    %143 = tpu.concatenate %113, %142 in 1 : vector<8x16xf32>, vector<8x16xf32> -> vector<8x32xf32>
    %c0_34 = arith.constant 0 : index
    %c0_35 = arith.constant 0 : index
    %144 = vector.load %arg5[%c0_34, %c0_35] : memref<8x32xf32, #tpu.memory_space<vmem>>, vector<8x32xf32>
    tpu.vector_store %arg5[%c0_34, %c0_35], %143 {strides = array<i32>} : memref<8x32xf32, #tpu.memory_space<vmem>>, vector<8x32xf32>,
    %145 = arith.index_cast %c1_i32 : i32 to index
    %c0_36 = arith.constant 0 : index
    %c0_37 = arith.constant 0 : index
    %146 = vector.load %arg4[%145, %c0_36, %c0_37] : memref<8x8x32xf32, #tpu.memory_space<vmem>>, vector<1x8x32xf32>
    %147 = vector.shape_cast %146 : vector<1x8x32xf32> to vector<8x32xf32>
    %148 = vector.shape_cast %143 : vector<8x32xf32> to vector<1x8x32xf32>
    tpu.vector_store %arg4[%145, %c0_36, %c0_37], %148 {strides = array<i32>} : memref<8x8x32xf32, #tpu.memory_space<vmem>>, vector<1x8x32xf32>,
    %c2_i32 = arith.constant 2 : i32
    %c0_38 = arith.constant 0 : index
    %c0_39 = arith.constant 0 : index
    %149 = vector.load %arg5[%c0_38, %c0_39] : memref<8x32xf32, #tpu.memory_space<vmem>>, vector<8x32xf32>
    %150 = arith.index_cast %c2_i32 : i32 to index
    %c0_40 = arith.constant 0 : index
    %c0_41 = arith.constant 0 : index
    %151 = vector.load %arg1[%150, %c0_40, %c0_41] : memref<8x8x96xf32, #tpu.memory_space<vmem>>, vector<1x8x96xf32>
    %152 = vector.shape_cast %151 : vector<1x8x96xf32> to vector<8x96xf32>
    %c0_42 = arith.constant 0 : index
    %c0_43 = arith.constant 0 : index
    %153 = vector.load %arg2[%c0_42, %c0_43] : memref<32x96xf32, #tpu.memory_space<vmem>>, vector<32x96xf32>
    %cst_44 = arith.constant dense<0.000000e+00> : vector<8x96xf32>
    %154 = tpu.matmul %149, %153, %cst_44 {dimension_numbers = #tpu.dot_dimension_numbers<[1], [0], [0], [1], [0, 0, 1, 1], [], []>} : vector<8x32xf32>, vector<32x96xf32>, vector<8x96xf32> -> vector<8x96xf32>
    %c0_45 = arith.constant 0 : index
    %c0_46 = arith.constant 0 : index
    %155 = vector.load %arg3[%c0_45, %c0_46] : memref<1x96xf32, #tpu.memory_space<vmem>>, vector<1x96xf32>
    %156 = vector.broadcast %155 : vector<1x96xf32> to vector<8x96xf32>
    %157 = arith.addf %154, %156 : vector<8x96xf32>
    %158 = vector.extract_strided_slice %152 {offsets = [0, 0], sizes = [8, 48], strides = [1, 1]} : vector<8x96xf32> to vector<8x48xf32>
    %159 = vector.extract_strided_slice %157 {offsets = [0, 0], sizes = [8, 48], strides = [1, 1]} : vector<8x96xf32> to vector<8x48xf32>
    %160 = vector.extract_strided_slice %149 {offsets = [0, 0], sizes = [8, 16], strides = [1, 1]} : vector<8x32xf32> to vector<8x16xf32>
    %161 = vector.extract_strided_slice %158 {offsets = [0, 0], sizes = [8, 16], strides = [1, 1]} : vector<8x48xf32> to vector<8x16xf32>
    %162 = vector.extract_strided_slice %159 {offsets = [0, 0], sizes = [8, 16], strides = [1, 1]} : vector<8x48xf32> to vector<8x16xf32>
    %163 = arith.addf %161, %162 : vector<8x16xf32>
    %164 = arith.negf %163 : vector<8x16xf32>
    %165 = math.exp %164 : vector<8x16xf32>
    %cst_47 = arith.constant 1.000000e+00 : f32
    %166 = vector.broadcast %cst_47 : f32 to vector<8x16xf32>
    %167 = arith.addf %166, %165 : vector<8x16xf32>
    %168 = arith.divf %166, %167 : vector<8x16xf32>
    %169 = vector.extract_strided_slice %158 {offsets = [0, 16], sizes = [8, 16], strides = [1, 1]} : vector<8x48xf32> to vector<8x16xf32>
    %170 = vector.extract_strided_slice %159 {offsets = [0, 16], sizes = [8, 16], strides = [1, 1]} : vector<8x48xf32> to vector<8x16xf32>
    %171 = arith.addf %169, %170 : vector<8x16xf32>
    %172 = arith.negf %171 : vector<8x16xf32>
    %173 = math.exp %172 : vector<8x16xf32>
    %cst_48 = arith.constant 1.000000e+00 : f32
    %174 = vector.broadcast %cst_48 : f32 to vector<8x16xf32>
    %175 = arith.addf %174, %173 : vector<8x16xf32>
    %176 = arith.divf %174, %175 : vector<8x16xf32>
    %177 = vector.extract_strided_slice %158 {offsets = [0, 32], sizes = [8, 16], strides = [1, 1]} : vector<8x48xf32> to vector<8x16xf32>
    %178 = vector.extract_strided_slice %159 {offsets = [0, 32], sizes = [8, 16], strides = [1, 1]} : vector<8x48xf32> to vector<8x16xf32>
    %179 = arith.mulf %168, %178 : vector<8x16xf32>
    %180 = arith.addf %177, %179 : vector<8x16xf32>
    %181 = math.tanh %180 : vector<8x16xf32>
    %cst_49 = arith.constant 1.000000e+00 : f32
    %182 = vector.broadcast %cst_49 : f32 to vector<8x16xf32>
    %183 = arith.subf %182, %176 : vector<8x16xf32>
    %184 = arith.mulf %183, %181 : vector<8x16xf32>
    %185 = arith.mulf %176, %160 : vector<8x16xf32>
    %186 = arith.addf %184, %185 : vector<8x16xf32>
    %187 = vector.extract_strided_slice %152 {offsets = [0, 48], sizes = [8, 48], strides = [1, 1]} : vector<8x96xf32> to vector<8x48xf32>
    %188 = vector.extract_strided_slice %157 {offsets = [0, 48], sizes = [8, 48], strides = [1, 1]} : vector<8x96xf32> to vector<8x48xf32>
    %189 = vector.extract_strided_slice %149 {offsets = [0, 16], sizes = [8, 16], strides = [1, 1]} : vector<8x32xf32> to vector<8x16xf32>
    %190 = vector.extract_strided_slice %187 {offsets = [0, 0], sizes = [8, 16], strides = [1, 1]} : vector<8x48xf32> to vector<8x16xf32>
    %191 = vector.extract_strided_slice %188 {offsets = [0, 0], sizes = [8, 16], strides = [1, 1]} : vector<8x48xf32> to vector<8x16xf32>
    %192 = arith.addf %190, %191 : vector<8x16xf32>
    %193 = arith.negf %192 : vector<8x16xf32>
    %194 = math.exp %193 : vector<8x16xf32>
    %cst_50 = arith.constant 1.000000e+00 : f32
    %195 = vector.broadcast %cst_50 : f32 to vector<8x16xf32>
    %196 = arith.addf %195, %194 : vector<8x16xf32>
    %197 = arith.divf %195, %196 : vector<8x16xf32>
    %198 = vector.extract_strided_slice %187 {offsets = [0, 16], sizes = [8, 16], strides = [1, 1]} : vector<8x48xf32> to vector<8x16xf32>
    %199 = vector.extract_strided_slice %188 {offsets = [0, 16], sizes = [8, 16], strides = [1, 1]} : vector<8x48xf32> to vector<8x16xf32>
    %200 = arith.addf %198, %199 : vector<8x16xf32>
    %201 = arith.negf %200 : vector<8x16xf32>
    %202 = math.exp %201 : vector<8x16xf32>
    %cst_51 = arith.constant 1.000000e+00 : f32
    %203 = vector.broadcast %cst_51 : f32 to vector<8x16xf32>
    %204 = arith.addf %203, %202 : vector<8x16xf32>
    %205 = arith.divf %203, %204 : vector<8x16xf32>
    %206 = vector.extract_strided_slice %187 {offsets = [0, 32], sizes = [8, 16], strides = [1, 1]} : vector<8x48xf32> to vector<8x16xf32>
    %207 = vector.extract_strided_slice %188 {offsets = [0, 32], sizes = [8, 16], strides = [1, 1]} : vector<8x48xf32> to vector<8x16xf32>
    %208 = arith.mulf %197, %207 : vector<8x16xf32>
    %209 = arith.addf %206, %208 : vector<8x16xf32>
    %210 = math.tanh %209 : vector<8x16xf32>
    %cst_52 = arith.constant 1.000000e+00 : f32
    %211 = vector.broadcast %cst_52 : f32 to vector<8x16xf32>
    %212 = arith.subf %211, %205 : vector<8x16xf32>
    %213 = arith.mulf %212, %210 : vector<8x16xf32>
    %214 = arith.mulf %205, %189 : vector<8x16xf32>
    %215 = arith.addf %213, %214 : vector<8x16xf32>
    %216 = tpu.concatenate %186, %215 in 1 : vector<8x16xf32>, vector<8x16xf32> -> vector<8x32xf32>
    %c0_53 = arith.constant 0 : index
    %c0_54 = arith.constant 0 : index
    %217 = vector.load %arg5[%c0_53, %c0_54] : memref<8x32xf32, #tpu.memory_space<vmem>>, vector<8x32xf32>
    tpu.vector_store %arg5[%c0_53, %c0_54], %216 {strides = array<i32>} : memref<8x32xf32, #tpu.memory_space<vmem>>, vector<8x32xf32>,
    %218 = arith.index_cast %c2_i32 : i32 to index
    %c0_55 = arith.constant 0 : index
    %c0_56 = arith.constant 0 : index
    %219 = vector.load %arg4[%218, %c0_55, %c0_56] : memref<8x8x32xf32, #tpu.memory_space<vmem>>, vector<1x8x32xf32>
    %220 = vector.shape_cast %219 : vector<1x8x32xf32> to vector<8x32xf32>
    %221 = vector.shape_cast %216 : vector<8x32xf32> to vector<1x8x32xf32>
    tpu.vector_store %arg4[%218, %c0_55, %c0_56], %221 {strides = array<i32>} : memref<8x8x32xf32, #tpu.memory_space<vmem>>, vector<1x8x32xf32>,
    %c3_i32 = arith.constant 3 : i32
    %c0_57 = arith.constant 0 : index
    %c0_58 = arith.constant 0 : index
    %222 = vector.load %arg5[%c0_57, %c0_58] : memref<8x32xf32, #tpu.memory_space<vmem>>, vector<8x32xf32>
    %223 = arith.index_cast %c3_i32 : i32 to index
    %c0_59 = arith.constant 0 : index
    %c0_60 = arith.constant 0 : index
    %224 = vector.load %arg1[%223, %c0_59, %c0_60] : memref<8x8x96xf32, #tpu.memory_space<vmem>>, vector<1x8x96xf32>
    %225 = vector.shape_cast %224 : vector<1x8x96xf32> to vector<8x96xf32>
    %c0_61 = arith.constant 0 : index
    %c0_62 = arith.constant 0 : index
    %226 = vector.load %arg2[%c0_61, %c0_62] : memref<32x96xf32, #tpu.memory_space<vmem>>, vector<32x96xf32>
    %cst_63 = arith.constant dense<0.000000e+00> : vector<8x96xf32>
    %227 = tpu.matmul %222, %226, %cst_63 {dimension_numbers = #tpu.dot_dimension_numbers<[1], [0], [0], [1], [0, 0, 1, 1], [], []>} : vector<8x32xf32>, vector<32x96xf32>, vector<8x96xf32> -> vector<8x96xf32>
    %c0_64 = arith.constant 0 : index
    %c0_65 = arith.constant 0 : index
    %228 = vector.load %arg3[%c0_64, %c0_65] : memref<1x96xf32, #tpu.memory_space<vmem>>, vector<1x96xf32>
    %229 = vector.broadcast %228 : vector<1x96xf32> to vector<8x96xf32>
    %230 = arith.addf %227, %229 : vector<8x96xf32>
    %231 = vector.extract_strided_slice %225 {offsets = [0, 0], sizes = [8, 48], strides = [1, 1]} : vector<8x96xf32> to vector<8x48xf32>
    %232 = vector.extract_strided_slice %230 {offsets = [0, 0], sizes = [8, 48], strides = [1, 1]} : vector<8x96xf32> to vector<8x48xf32>
    %233 = vector.extract_strided_slice %222 {offsets = [0, 0], sizes = [8, 16], strides = [1, 1]} : vector<8x32xf32> to vector<8x16xf32>
    %234 = vector.extract_strided_slice %231 {offsets = [0, 0], sizes = [8, 16], strides = [1, 1]} : vector<8x48xf32> to vector<8x16xf32>
    %235 = vector.extract_strided_slice %232 {offsets = [0, 0], sizes = [8, 16], strides = [1, 1]} : vector<8x48xf32> to vector<8x16xf32>
    %236 = arith.addf %234, %235 : vector<8x16xf32>
    %237 = arith.negf %236 : vector<8x16xf32>
    %238 = math.exp %237 : vector<8x16xf32>
    %cst_66 = arith.constant 1.000000e+00 : f32
    %239 = vector.broadcast %cst_66 : f32 to vector<8x16xf32>
    %240 = arith.addf %239, %238 : vector<8x16xf32>
    %241 = arith.divf %239, %240 : vector<8x16xf32>
    %242 = vector.extract_strided_slice %231 {offsets = [0, 16], sizes = [8, 16], strides = [1, 1]} : vector<8x48xf32> to vector<8x16xf32>
    %243 = vector.extract_strided_slice %232 {offsets = [0, 16], sizes = [8, 16], strides = [1, 1]} : vector<8x48xf32> to vector<8x16xf32>
    %244 = arith.addf %242, %243 : vector<8x16xf32>
    %245 = arith.negf %244 : vector<8x16xf32>
    %246 = math.exp %245 : vector<8x16xf32>
    %cst_67 = arith.constant 1.000000e+00 : f32
    %247 = vector.broadcast %cst_67 : f32 to vector<8x16xf32>
    %248 = arith.addf %247, %246 : vector<8x16xf32>
    %249 = arith.divf %247, %248 : vector<8x16xf32>
    %250 = vector.extract_strided_slice %231 {offsets = [0, 32], sizes = [8, 16], strides = [1, 1]} : vector<8x48xf32> to vector<8x16xf32>
    %251 = vector.extract_strided_slice %232 {offsets = [0, 32], sizes = [8, 16], strides = [1, 1]} : vector<8x48xf32> to vector<8x16xf32>
    %252 = arith.mulf %241, %251 : vector<8x16xf32>
    %253 = arith.addf %250, %252 : vector<8x16xf32>
    %254 = math.tanh %253 : vector<8x16xf32>
    %cst_68 = arith.constant 1.000000e+00 : f32
    %255 = vector.broadcast %cst_68 : f32 to vector<8x16xf32>
    %256 = arith.subf %255, %249 : vector<8x16xf32>
    %257 = arith.mulf %256, %254 : vector<8x16xf32>
    %258 = arith.mulf %249, %233 : vector<8x16xf32>
    %259 = arith.addf %257, %258 : vector<8x16xf32>
    %260 = vector.extract_strided_slice %225 {offsets = [0, 48], sizes = [8, 48], strides = [1, 1]} : vector<8x96xf32> to vector<8x48xf32>
    %261 = vector.extract_strided_slice %230 {offsets = [0, 48], sizes = [8, 48], strides = [1, 1]} : vector<8x96xf32> to vector<8x48xf32>
    %262 = vector.extract_strided_slice %222 {offsets = [0, 16], sizes = [8, 16], strides = [1, 1]} : vector<8x32xf32> to vector<8x16xf32>
    %263 = vector.extract_strided_slice %260 {offsets = [0, 0], sizes = [8, 16], strides = [1, 1]} : vector<8x48xf32> to vector<8x16xf32>
    %264 = vector.extract_strided_slice %261 {offsets = [0, 0], sizes = [8, 16], strides = [1, 1]} : vector<8x48xf32> to vector<8x16xf32>
    %265 = arith.addf %263, %264 : vector<8x16xf32>
    %266 = arith.negf %265 : vector<8x16xf32>
    %267 = math.exp %266 : vector<8x16xf32>
    %cst_69 = arith.constant 1.000000e+00 : f32
    %268 = vector.broadcast %cst_69 : f32 to vector<8x16xf32>
    %269 = arith.addf %268, %267 : vector<8x16xf32>
    %270 = arith.divf %268, %269 : vector<8x16xf32>
    %271 = vector.extract_strided_slice %260 {offsets = [0, 16], sizes = [8, 16], strides = [1, 1]} : vector<8x48xf32> to vector<8x16xf32>
    %272 = vector.extract_strided_slice %261 {offsets = [0, 16], sizes = [8, 16], strides = [1, 1]} : vector<8x48xf32> to vector<8x16xf32>
    %273 = arith.addf %271, %272 : vector<8x16xf32>
    %274 = arith.negf %273 : vector<8x16xf32>
    %275 = math.exp %274 : vector<8x16xf32>
    %cst_70 = arith.constant 1.000000e+00 : f32
    %276 = vector.broadcast %cst_70 : f32 to vector<8x16xf32>
    %277 = arith.addf %276, %275 : vector<8x16xf32>
    %278 = arith.divf %276, %277 : vector<8x16xf32>
    %279 = vector.extract_strided_slice %260 {offsets = [0, 32], sizes = [8, 16], strides = [1, 1]} : vector<8x48xf32> to vector<8x16xf32>
    %280 = vector.extract_strided_slice %261 {offsets = [0, 32], sizes = [8, 16], strides = [1, 1]} : vector<8x48xf32> to vector<8x16xf32>
    %281 = arith.mulf %270, %280 : vector<8x16xf32>
    %282 = arith.addf %279, %281 : vector<8x16xf32>
    %283 = math.tanh %282 : vector<8x16xf32>
    %cst_71 = arith.constant 1.000000e+00 : f32
    %284 = vector.broadcast %cst_71 : f32 to vector<8x16xf32>
    %285 = arith.subf %284, %278 : vector<8x16xf32>
    %286 = arith.mulf %285, %283 : vector<8x16xf32>
    %287 = arith.mulf %278, %262 : vector<8x16xf32>
    %288 = arith.addf %286, %287 : vector<8x16xf32>
    %289 = tpu.concatenate %259, %288 in 1 : vector<8x16xf32>, vector<8x16xf32> -> vector<8x32xf32>
    %c0_72 = arith.constant 0 : index
    %c0_73 = arith.constant 0 : index
    %290 = vector.load %arg5[%c0_72, %c0_73] : memref<8x32xf32, #tpu.memory_space<vmem>>, vector<8x32xf32>
    tpu.vector_store %arg5[%c0_72, %c0_73], %289 {strides = array<i32>} : memref<8x32xf32, #tpu.memory_space<vmem>>, vector<8x32xf32>,
    %291 = arith.index_cast %c3_i32 : i32 to index
    %c0_74 = arith.constant 0 : index
    %c0_75 = arith.constant 0 : index
    %292 = vector.load %arg4[%291, %c0_74, %c0_75] : memref<8x8x32xf32, #tpu.memory_space<vmem>>, vector<1x8x32xf32>
    %293 = vector.shape_cast %292 : vector<1x8x32xf32> to vector<8x32xf32>
    %294 = vector.shape_cast %289 : vector<8x32xf32> to vector<1x8x32xf32>
    tpu.vector_store %arg4[%291, %c0_74, %c0_75], %294 {strides = array<i32>} : memref<8x8x32xf32, #tpu.memory_space<vmem>>, vector<1x8x32xf32>,
    %c4_i32 = arith.constant 4 : i32
    %c0_76 = arith.constant 0 : index
    %c0_77 = arith.constant 0 : index
    %295 = vector.load %arg5[%c0_76, %c0_77] : memref<8x32xf32, #tpu.memory_space<vmem>>, vector<8x32xf32>
    %296 = arith.index_cast %c4_i32 : i32 to index
    %c0_78 = arith.constant 0 : index
    %c0_79 = arith.constant 0 : index
    %297 = vector.load %arg1[%296, %c0_78, %c0_79] : memref<8x8x96xf32, #tpu.memory_space<vmem>>, vector<1x8x96xf32>
    %298 = vector.shape_cast %297 : vector<1x8x96xf32> to vector<8x96xf32>
    %c0_80 = arith.constant 0 : index
    %c0_81 = arith.constant 0 : index
    %299 = vector.load %arg2[%c0_80, %c0_81] : memref<32x96xf32, #tpu.memory_space<vmem>>, vector<32x96xf32>
    %cst_82 = arith.constant dense<0.000000e+00> : vector<8x96xf32>
    %300 = tpu.matmul %295, %299, %cst_82 {dimension_numbers = #tpu.dot_dimension_numbers<[1], [0], [0], [1], [0, 0, 1, 1], [], []>} : vector<8x32xf32>, vector<32x96xf32>, vector<8x96xf32> -> vector<8x96xf32>
    %c0_83 = arith.constant 0 : index
    %c0_84 = arith.constant 0 : index
    %301 = vector.load %arg3[%c0_83, %c0_84] : memref<1x96xf32, #tpu.memory_space<vmem>>, vector<1x96xf32>
    %302 = vector.broadcast %301 : vector<1x96xf32> to vector<8x96xf32>
    %303 = arith.addf %300, %302 : vector<8x96xf32>
    %304 = vector.extract_strided_slice %298 {offsets = [0, 0], sizes = [8, 48], strides = [1, 1]} : vector<8x96xf32> to vector<8x48xf32>
    %305 = vector.extract_strided_slice %303 {offsets = [0, 0], sizes = [8, 48], strides = [1, 1]} : vector<8x96xf32> to vector<8x48xf32>
    %306 = vector.extract_strided_slice %295 {offsets = [0, 0], sizes = [8, 16], strides = [1, 1]} : vector<8x32xf32> to vector<8x16xf32>
    %307 = vector.extract_strided_slice %304 {offsets = [0, 0], sizes = [8, 16], strides = [1, 1]} : vector<8x48xf32> to vector<8x16xf32>
    %308 = vector.extract_strided_slice %305 {offsets = [0, 0], sizes = [8, 16], strides = [1, 1]} : vector<8x48xf32> to vector<8x16xf32>
    %309 = arith.addf %307, %308 : vector<8x16xf32>
    %310 = arith.negf %309 : vector<8x16xf32>
    %311 = math.exp %310 : vector<8x16xf32>
    %cst_85 = arith.constant 1.000000e+00 : f32
    %312 = vector.broadcast %cst_85 : f32 to vector<8x16xf32>
    %313 = arith.addf %312, %311 : vector<8x16xf32>
    %314 = arith.divf %312, %313 : vector<8x16xf32>
    %315 = vector.extract_strided_slice %304 {offsets = [0, 16], sizes = [8, 16], strides = [1, 1]} : vector<8x48xf32> to vector<8x16xf32>
    %316 = vector.extract_strided_slice %305 {offsets = [0, 16], sizes = [8, 16], strides = [1, 1]} : vector<8x48xf32> to vector<8x16xf32>
    %317 = arith.addf %315, %316 : vector<8x16xf32>
    %318 = arith.negf %317 : vector<8x16xf32>
    %319 = math.exp %318 : vector<8x16xf32>
    %cst_86 = arith.constant 1.000000e+00 : f32
    %320 = vector.broadcast %cst_86 : f32 to vector<8x16xf32>
    %321 = arith.addf %320, %319 : vector<8x16xf32>
    %322 = arith.divf %320, %321 : vector<8x16xf32>
    %323 = vector.extract_strided_slice %304 {offsets = [0, 32], sizes = [8, 16], strides = [1, 1]} : vector<8x48xf32> to vector<8x16xf32>
    %324 = vector.extract_strided_slice %305 {offsets = [0, 32], sizes = [8, 16], strides = [1, 1]} : vector<8x48xf32> to vector<8x16xf32>
    %325 = arith.mulf %314, %324 : vector<8x16xf32>
    %326 = arith.addf %323, %325 : vector<8x16xf32>
    %327 = math.tanh %326 : vector<8x16xf32>
    %cst_87 = arith.constant 1.000000e+00 : f32
    %328 = vector.broadcast %cst_87 : f32 to vector<8x16xf32>
    %329 = arith.subf %328, %322 : vector<8x16xf32>
    %330 = arith.mulf %329, %327 : vector<8x16xf32>
    %331 = arith.mulf %322, %306 : vector<8x16xf32>
    %332 = arith.addf %330, %331 : vector<8x16xf32>
    %333 = vector.extract_strided_slice %298 {offsets = [0, 48], sizes = [8, 48], strides = [1, 1]} : vector<8x96xf32> to vector<8x48xf32>
    %334 = vector.extract_strided_slice %303 {offsets = [0, 48], sizes = [8, 48], strides = [1, 1]} : vector<8x96xf32> to vector<8x48xf32>
    %335 = vector.extract_strided_slice %295 {offsets = [0, 16], sizes = [8, 16], strides = [1, 1]} : vector<8x32xf32> to vector<8x16xf32>
    %336 = vector.extract_strided_slice %333 {offsets = [0, 0], sizes = [8, 16], strides = [1, 1]} : vector<8x48xf32> to vector<8x16xf32>
    %337 = vector.extract_strided_slice %334 {offsets = [0, 0], sizes = [8, 16], strides = [1, 1]} : vector<8x48xf32> to vector<8x16xf32>
    %338 = arith.addf %336, %337 : vector<8x16xf32>
    %339 = arith.negf %338 : vector<8x16xf32>
    %340 = math.exp %339 : vector<8x16xf32>
    %cst_88 = arith.constant 1.000000e+00 : f32
    %341 = vector.broadcast %cst_88 : f32 to vector<8x16xf32>
    %342 = arith.addf %341, %340 : vector<8x16xf32>
    %343 = arith.divf %341, %342 : vector<8x16xf32>
    %344 = vector.extract_strided_slice %333 {offsets = [0, 16], sizes = [8, 16], strides = [1, 1]} : vector<8x48xf32> to vector<8x16xf32>
    %345 = vector.extract_strided_slice %334 {offsets = [0, 16], sizes = [8, 16], strides = [1, 1]} : vector<8x48xf32> to vector<8x16xf32>
    %346 = arith.addf %344, %345 : vector<8x16xf32>
    %347 = arith.negf %346 : vector<8x16xf32>
    %348 = math.exp %347 : vector<8x16xf32>
    %cst_89 = arith.constant 1.000000e+00 : f32
    %349 = vector.broadcast %cst_89 : f32 to vector<8x16xf32>
    %350 = arith.addf %349, %348 : vector<8x16xf32>
    %351 = arith.divf %349, %350 : vector<8x16xf32>
    %352 = vector.extract_strided_slice %333 {offsets = [0, 32], sizes = [8, 16], strides = [1, 1]} : vector<8x48xf32> to vector<8x16xf32>
    %353 = vector.extract_strided_slice %334 {offsets = [0, 32], sizes = [8, 16], strides = [1, 1]} : vector<8x48xf32> to vector<8x16xf32>
    %354 = arith.mulf %343, %353 : vector<8x16xf32>
    %355 = arith.addf %352, %354 : vector<8x16xf32>
    %356 = math.tanh %355 : vector<8x16xf32>
    %cst_90 = arith.constant 1.000000e+00 : f32
    %357 = vector.broadcast %cst_90 : f32 to vector<8x16xf32>
    %358 = arith.subf %357, %351 : vector<8x16xf32>
    %359 = arith.mulf %358, %356 : vector<8x16xf32>
    %360 = arith.mulf %351, %335 : vector<8x16xf32>
    %361 = arith.addf %359, %360 : vector<8x16xf32>
    %362 = tpu.concatenate %332, %361 in 1 : vector<8x16xf32>, vector<8x16xf32> -> vector<8x32xf32>
    %c0_91 = arith.constant 0 : index
    %c0_92 = arith.constant 0 : index
    %363 = vector.load %arg5[%c0_91, %c0_92] : memref<8x32xf32, #tpu.memory_space<vmem>>, vector<8x32xf32>
    tpu.vector_store %arg5[%c0_91, %c0_92], %362 {strides = array<i32>} : memref<8x32xf32, #tpu.memory_space<vmem>>, vector<8x32xf32>,
    %364 = arith.index_cast %c4_i32 : i32 to index
    %c0_93 = arith.constant 0 : index
    %c0_94 = arith.constant 0 : index
    %365 = vector.load %arg4[%364, %c0_93, %c0_94] : memref<8x8x32xf32, #tpu.memory_space<vmem>>, vector<1x8x32xf32>
    %366 = vector.shape_cast %365 : vector<1x8x32xf32> to vector<8x32xf32>
    %367 = vector.shape_cast %362 : vector<8x32xf32> to vector<1x8x32xf32>
    tpu.vector_store %arg4[%364, %c0_93, %c0_94], %367 {strides = array<i32>} : memref<8x8x32xf32, #tpu.memory_space<vmem>>, vector<1x8x32xf32>,
    %c5_i32 = arith.constant 5 : i32
    %c0_95 = arith.constant 0 : index
    %c0_96 = arith.constant 0 : index
    %368 = vector.load %arg5[%c0_95, %c0_96] : memref<8x32xf32, #tpu.memory_space<vmem>>, vector<8x32xf32>
    %369 = arith.index_cast %c5_i32 : i32 to index
    %c0_97 = arith.constant 0 : index
    %c0_98 = arith.constant 0 : index
    %370 = vector.load %arg1[%369, %c0_97, %c0_98] : memref<8x8x96xf32, #tpu.memory_space<vmem>>, vector<1x8x96xf32>
    %371 = vector.shape_cast %370 : vector<1x8x96xf32> to vector<8x96xf32>
    %c0_99 = arith.constant 0 : index
    %c0_100 = arith.constant 0 : index
    %372 = vector.load %arg2[%c0_99, %c0_100] : memref<32x96xf32, #tpu.memory_space<vmem>>, vector<32x96xf32>
    %cst_101 = arith.constant dense<0.000000e+00> : vector<8x96xf32>
    %373 = tpu.matmul %368, %372, %cst_101 {dimension_numbers = #tpu.dot_dimension_numbers<[1], [0], [0], [1], [0, 0, 1, 1], [], []>} : vector<8x32xf32>, vector<32x96xf32>, vector<8x96xf32> -> vector<8x96xf32>
    %c0_102 = arith.constant 0 : index
    %c0_103 = arith.constant 0 : index
    %374 = vector.load %arg3[%c0_102, %c0_103] : memref<1x96xf32, #tpu.memory_space<vmem>>, vector<1x96xf32>
    %375 = vector.broadcast %374 : vector<1x96xf32> to vector<8x96xf32>
    %376 = arith.addf %373, %375 : vector<8x96xf32>
    %377 = vector.extract_strided_slice %371 {offsets = [0, 0], sizes = [8, 48], strides = [1, 1]} : vector<8x96xf32> to vector<8x48xf32>
    %378 = vector.extract_strided_slice %376 {offsets = [0, 0], sizes = [8, 48], strides = [1, 1]} : vector<8x96xf32> to vector<8x48xf32>
    %379 = vector.extract_strided_slice %368 {offsets = [0, 0], sizes = [8, 16], strides = [1, 1]} : vector<8x32xf32> to vector<8x16xf32>
    %380 = vector.extract_strided_slice %377 {offsets = [0, 0], sizes = [8, 16], strides = [1, 1]} : vector<8x48xf32> to vector<8x16xf32>
    %381 = vector.extract_strided_slice %378 {offsets = [0, 0], sizes = [8, 16], strides = [1, 1]} : vector<8x48xf32> to vector<8x16xf32>
    %382 = arith.addf %380, %381 : vector<8x16xf32>
    %383 = arith.negf %382 : vector<8x16xf32>
    %384 = math.exp %383 : vector<8x16xf32>
    %cst_104 = arith.constant 1.000000e+00 : f32
    %385 = vector.broadcast %cst_104 : f32 to vector<8x16xf32>
    %386 = arith.addf %385, %384 : vector<8x16xf32>
    %387 = arith.divf %385, %386 : vector<8x16xf32>
    %388 = vector.extract_strided_slice %377 {offsets = [0, 16], sizes = [8, 16], strides = [1, 1]} : vector<8x48xf32> to vector<8x16xf32>
    %389 = vector.extract_strided_slice %378 {offsets = [0, 16], sizes = [8, 16], strides = [1, 1]} : vector<8x48xf32> to vector<8x16xf32>
    %390 = arith.addf %388, %389 : vector<8x16xf32>
    %391 = arith.negf %390 : vector<8x16xf32>
    %392 = math.exp %391 : vector<8x16xf32>
    %cst_105 = arith.constant 1.000000e+00 : f32
    %393 = vector.broadcast %cst_105 : f32 to vector<8x16xf32>
    %394 = arith.addf %393, %392 : vector<8x16xf32>
    %395 = arith.divf %393, %394 : vector<8x16xf32>
    %396 = vector.extract_strided_slice %377 {offsets = [0, 32], sizes = [8, 16], strides = [1, 1]} : vector<8x48xf32> to vector<8x16xf32>
    %397 = vector.extract_strided_slice %378 {offsets = [0, 32], sizes = [8, 16], strides = [1, 1]} : vector<8x48xf32> to vector<8x16xf32>
    %398 = arith.mulf %387, %397 : vector<8x16xf32>
    %399 = arith.addf %396, %398 : vector<8x16xf32>
    %400 = math.tanh %399 : vector<8x16xf32>
    %cst_106 = arith.constant 1.000000e+00 : f32
    %401 = vector.broadcast %cst_106 : f32 to vector<8x16xf32>
    %402 = arith.subf %401, %395 : vector<8x16xf32>
    %403 = arith.mulf %402, %400 : vector<8x16xf32>
    %404 = arith.mulf %395, %379 : vector<8x16xf32>
    %405 = arith.addf %403, %404 : vector<8x16xf32>
    %406 = vector.extract_strided_slice %371 {offsets = [0, 48], sizes = [8, 48], strides = [1, 1]} : vector<8x96xf32> to vector<8x48xf32>
    %407 = vector.extract_strided_slice %376 {offsets = [0, 48], sizes = [8, 48], strides = [1, 1]} : vector<8x96xf32> to vector<8x48xf32>
    %408 = vector.extract_strided_slice %368 {offsets = [0, 16], sizes = [8, 16], strides = [1, 1]} : vector<8x32xf32> to vector<8x16xf32>
    %409 = vector.extract_strided_slice %406 {offsets = [0, 0], sizes = [8, 16], strides = [1, 1]} : vector<8x48xf32> to vector<8x16xf32>
    %410 = vector.extract_strided_slice %407 {offsets = [0, 0], sizes = [8, 16], strides = [1, 1]} : vector<8x48xf32> to vector<8x16xf32>
    %411 = arith.addf %409, %410 : vector<8x16xf32>
    %412 = arith.negf %411 : vector<8x16xf32>
    %413 = math.exp %412 : vector<8x16xf32>
    %cst_107 = arith.constant 1.000000e+00 : f32
    %414 = vector.broadcast %cst_107 : f32 to vector<8x16xf32>
    %415 = arith.addf %414, %413 : vector<8x16xf32>
    %416 = arith.divf %414, %415 : vector<8x16xf32>
    %417 = vector.extract_strided_slice %406 {offsets = [0, 16], sizes = [8, 16], strides = [1, 1]} : vector<8x48xf32> to vector<8x16xf32>
    %418 = vector.extract_strided_slice %407 {offsets = [0, 16], sizes = [8, 16], strides = [1, 1]} : vector<8x48xf32> to vector<8x16xf32>
    %419 = arith.addf %417, %418 : vector<8x16xf32>
    %420 = arith.negf %419 : vector<8x16xf32>
    %421 = math.exp %420 : vector<8x16xf32>
    %cst_108 = arith.constant 1.000000e+00 : f32
    %422 = vector.broadcast %cst_108 : f32 to vector<8x16xf32>
    %423 = arith.addf %422, %421 : vector<8x16xf32>
    %424 = arith.divf %422, %423 : vector<8x16xf32>
    %425 = vector.extract_strided_slice %406 {offsets = [0, 32], sizes = [8, 16], strides = [1, 1]} : vector<8x48xf32> to vector<8x16xf32>
    %426 = vector.extract_strided_slice %407 {offsets = [0, 32], sizes = [8, 16], strides = [1, 1]} : vector<8x48xf32> to vector<8x16xf32>
    %427 = arith.mulf %416, %426 : vector<8x16xf32>
    %428 = arith.addf %425, %427 : vector<8x16xf32>
    %429 = math.tanh %428 : vector<8x16xf32>
    %cst_109 = arith.constant 1.000000e+00 : f32
    %430 = vector.broadcast %cst_109 : f32 to vector<8x16xf32>
    %431 = arith.subf %430, %424 : vector<8x16xf32>
    %432 = arith.mulf %431, %429 : vector<8x16xf32>
    %433 = arith.mulf %424, %408 : vector<8x16xf32>
    %434 = arith.addf %432, %433 : vector<8x16xf32>
    %435 = tpu.concatenate %405, %434 in 1 : vector<8x16xf32>, vector<8x16xf32> -> vector<8x32xf32>
    %c0_110 = arith.constant 0 : index
    %c0_111 = arith.constant 0 : index
    %436 = vector.load %arg5[%c0_110, %c0_111] : memref<8x32xf32, #tpu.memory_space<vmem>>, vector<8x32xf32>
    tpu.vector_store %arg5[%c0_110, %c0_111], %435 {strides = array<i32>} : memref<8x32xf32, #tpu.memory_space<vmem>>, vector<8x32xf32>,
    %437 = arith.index_cast %c5_i32 : i32 to index
    %c0_112 = arith.constant 0 : index
    %c0_113 = arith.constant 0 : index
    %438 = vector.load %arg4[%437, %c0_112, %c0_113] : memref<8x8x32xf32, #tpu.memory_space<vmem>>, vector<1x8x32xf32>
    %439 = vector.shape_cast %438 : vector<1x8x32xf32> to vector<8x32xf32>
    %440 = vector.shape_cast %435 : vector<8x32xf32> to vector<1x8x32xf32>
    tpu.vector_store %arg4[%437, %c0_112, %c0_113], %440 {strides = array<i32>} : memref<8x8x32xf32, #tpu.memory_space<vmem>>, vector<1x8x32xf32>,
    %c6_i32 = arith.constant 6 : i32
    %c0_114 = arith.constant 0 : index
    %c0_115 = arith.constant 0 : index
    %441 = vector.load %arg5[%c0_114, %c0_115] : memref<8x32xf32, #tpu.memory_space<vmem>>, vector<8x32xf32>
    %442 = arith.index_cast %c6_i32 : i32 to index
    %c0_116 = arith.constant 0 : index
    %c0_117 = arith.constant 0 : index
    %443 = vector.load %arg1[%442, %c0_116, %c0_117] : memref<8x8x96xf32, #tpu.memory_space<vmem>>, vector<1x8x96xf32>
    %444 = vector.shape_cast %443 : vector<1x8x96xf32> to vector<8x96xf32>
    %c0_118 = arith.constant 0 : index
    %c0_119 = arith.constant 0 : index
    %445 = vector.load %arg2[%c0_118, %c0_119] : memref<32x96xf32, #tpu.memory_space<vmem>>, vector<32x96xf32>
    %cst_120 = arith.constant dense<0.000000e+00> : vector<8x96xf32>
    %446 = tpu.matmul %441, %445, %cst_120 {dimension_numbers = #tpu.dot_dimension_numbers<[1], [0], [0], [1], [0, 0, 1, 1], [], []>} : vector<8x32xf32>, vector<32x96xf32>, vector<8x96xf32> -> vector<8x96xf32>
    %c0_121 = arith.constant 0 : index
    %c0_122 = arith.constant 0 : index
    %447 = vector.load %arg3[%c0_121, %c0_122] : memref<1x96xf32, #tpu.memory_space<vmem>>, vector<1x96xf32>
    %448 = vector.broadcast %447 : vector<1x96xf32> to vector<8x96xf32>
    %449 = arith.addf %446, %448 : vector<8x96xf32>
    %450 = vector.extract_strided_slice %444 {offsets = [0, 0], sizes = [8, 48], strides = [1, 1]} : vector<8x96xf32> to vector<8x48xf32>
    %451 = vector.extract_strided_slice %449 {offsets = [0, 0], sizes = [8, 48], strides = [1, 1]} : vector<8x96xf32> to vector<8x48xf32>
    %452 = vector.extract_strided_slice %441 {offsets = [0, 0], sizes = [8, 16], strides = [1, 1]} : vector<8x32xf32> to vector<8x16xf32>
    %453 = vector.extract_strided_slice %450 {offsets = [0, 0], sizes = [8, 16], strides = [1, 1]} : vector<8x48xf32> to vector<8x16xf32>
    %454 = vector.extract_strided_slice %451 {offsets = [0, 0], sizes = [8, 16], strides = [1, 1]} : vector<8x48xf32> to vector<8x16xf32>
    %455 = arith.addf %453, %454 : vector<8x16xf32>
    %456 = arith.negf %455 : vector<8x16xf32>
    %457 = math.exp %456 : vector<8x16xf32>
    %cst_123 = arith.constant 1.000000e+00 : f32
    %458 = vector.broadcast %cst_123 : f32 to vector<8x16xf32>
    %459 = arith.addf %458, %457 : vector<8x16xf32>
    %460 = arith.divf %458, %459 : vector<8x16xf32>
    %461 = vector.extract_strided_slice %450 {offsets = [0, 16], sizes = [8, 16], strides = [1, 1]} : vector<8x48xf32> to vector<8x16xf32>
    %462 = vector.extract_strided_slice %451 {offsets = [0, 16], sizes = [8, 16], strides = [1, 1]} : vector<8x48xf32> to vector<8x16xf32>
    %463 = arith.addf %461, %462 : vector<8x16xf32>
    %464 = arith.negf %463 : vector<8x16xf32>
    %465 = math.exp %464 : vector<8x16xf32>
    %cst_124 = arith.constant 1.000000e+00 : f32
    %466 = vector.broadcast %cst_124 : f32 to vector<8x16xf32>
    %467 = arith.addf %466, %465 : vector<8x16xf32>
    %468 = arith.divf %466, %467 : vector<8x16xf32>
    %469 = vector.extract_strided_slice %450 {offsets = [0, 32], sizes = [8, 16], strides = [1, 1]} : vector<8x48xf32> to vector<8x16xf32>
    %470 = vector.extract_strided_slice %451 {offsets = [0, 32], sizes = [8, 16], strides = [1, 1]} : vector<8x48xf32> to vector<8x16xf32>
    %471 = arith.mulf %460, %470 : vector<8x16xf32>
    %472 = arith.addf %469, %471 : vector<8x16xf32>
    %473 = math.tanh %472 : vector<8x16xf32>
    %cst_125 = arith.constant 1.000000e+00 : f32
    %474 = vector.broadcast %cst_125 : f32 to vector<8x16xf32>
    %475 = arith.subf %474, %468 : vector<8x16xf32>
    %476 = arith.mulf %475, %473 : vector<8x16xf32>
    %477 = arith.mulf %468, %452 : vector<8x16xf32>
    %478 = arith.addf %476, %477 : vector<8x16xf32>
    %479 = vector.extract_strided_slice %444 {offsets = [0, 48], sizes = [8, 48], strides = [1, 1]} : vector<8x96xf32> to vector<8x48xf32>
    %480 = vector.extract_strided_slice %449 {offsets = [0, 48], sizes = [8, 48], strides = [1, 1]} : vector<8x96xf32> to vector<8x48xf32>
    %481 = vector.extract_strided_slice %441 {offsets = [0, 16], sizes = [8, 16], strides = [1, 1]} : vector<8x32xf32> to vector<8x16xf32>
    %482 = vector.extract_strided_slice %479 {offsets = [0, 0], sizes = [8, 16], strides = [1, 1]} : vector<8x48xf32> to vector<8x16xf32>
    %483 = vector.extract_strided_slice %480 {offsets = [0, 0], sizes = [8, 16], strides = [1, 1]} : vector<8x48xf32> to vector<8x16xf32>
    %484 = arith.addf %482, %483 : vector<8x16xf32>
    %485 = arith.negf %484 : vector<8x16xf32>
    %486 = math.exp %485 : vector<8x16xf32>
    %cst_126 = arith.constant 1.000000e+00 : f32
    %487 = vector.broadcast %cst_126 : f32 to vector<8x16xf32>
    %488 = arith.addf %487, %486 : vector<8x16xf32>
    %489 = arith.divf %487, %488 : vector<8x16xf32>
    %490 = vector.extract_strided_slice %479 {offsets = [0, 16], sizes = [8, 16], strides = [1, 1]} : vector<8x48xf32> to vector<8x16xf32>
    %491 = vector.extract_strided_slice %480 {offsets = [0, 16], sizes = [8, 16], strides = [1, 1]} : vector<8x48xf32> to vector<8x16xf32>
    %492 = arith.addf %490, %491 : vector<8x16xf32>
    %493 = arith.negf %492 : vector<8x16xf32>
    %494 = math.exp %493 : vector<8x16xf32>
    %cst_127 = arith.constant 1.000000e+00 : f32
    %495 = vector.broadcast %cst_127 : f32 to vector<8x16xf32>
    %496 = arith.addf %495, %494 : vector<8x16xf32>
    %497 = arith.divf %495, %496 : vector<8x16xf32>
    %498 = vector.extract_strided_slice %479 {offsets = [0, 32], sizes = [8, 16], strides = [1, 1]} : vector<8x48xf32> to vector<8x16xf32>
    %499 = vector.extract_strided_slice %480 {offsets = [0, 32], sizes = [8, 16], strides = [1, 1]} : vector<8x48xf32> to vector<8x16xf32>
    %500 = arith.mulf %489, %499 : vector<8x16xf32>
    %501 = arith.addf %498, %500 : vector<8x16xf32>
    %502 = math.tanh %501 : vector<8x16xf32>
    %cst_128 = arith.constant 1.000000e+00 : f32
    %503 = vector.broadcast %cst_128 : f32 to vector<8x16xf32>
    %504 = arith.subf %503, %497 : vector<8x16xf32>
    %505 = arith.mulf %504, %502 : vector<8x16xf32>
    %506 = arith.mulf %497, %481 : vector<8x16xf32>
    %507 = arith.addf %505, %506 : vector<8x16xf32>
    %508 = tpu.concatenate %478, %507 in 1 : vector<8x16xf32>, vector<8x16xf32> -> vector<8x32xf32>
    %c0_129 = arith.constant 0 : index
    %c0_130 = arith.constant 0 : index
    %509 = vector.load %arg5[%c0_129, %c0_130] : memref<8x32xf32, #tpu.memory_space<vmem>>, vector<8x32xf32>
    tpu.vector_store %arg5[%c0_129, %c0_130], %508 {strides = array<i32>} : memref<8x32xf32, #tpu.memory_space<vmem>>, vector<8x32xf32>,
    %510 = arith.index_cast %c6_i32 : i32 to index
    %c0_131 = arith.constant 0 : index
    %c0_132 = arith.constant 0 : index
    %511 = vector.load %arg4[%510, %c0_131, %c0_132] : memref<8x8x32xf32, #tpu.memory_space<vmem>>, vector<1x8x32xf32>
    %512 = vector.shape_cast %511 : vector<1x8x32xf32> to vector<8x32xf32>
    %513 = vector.shape_cast %508 : vector<8x32xf32> to vector<1x8x32xf32>
    tpu.vector_store %arg4[%510, %c0_131, %c0_132], %513 {strides = array<i32>} : memref<8x8x32xf32, #tpu.memory_space<vmem>>, vector<1x8x32xf32>,
    %c7_i32 = arith.constant 7 : i32
    %c0_133 = arith.constant 0 : index
    %c0_134 = arith.constant 0 : index
    %514 = vector.load %arg5[%c0_133, %c0_134] : memref<8x32xf32, #tpu.memory_space<vmem>>, vector<8x32xf32>
    %515 = arith.index_cast %c7_i32 : i32 to index
    %c0_135 = arith.constant 0 : index
    %c0_136 = arith.constant 0 : index
    %516 = vector.load %arg1[%515, %c0_135, %c0_136] : memref<8x8x96xf32, #tpu.memory_space<vmem>>, vector<1x8x96xf32>
    %517 = vector.shape_cast %516 : vector<1x8x96xf32> to vector<8x96xf32>
    %c0_137 = arith.constant 0 : index
    %c0_138 = arith.constant 0 : index
    %518 = vector.load %arg2[%c0_137, %c0_138] : memref<32x96xf32, #tpu.memory_space<vmem>>, vector<32x96xf32>
    %cst_139 = arith.constant dense<0.000000e+00> : vector<8x96xf32>
    %519 = tpu.matmul %514, %518, %cst_139 {dimension_numbers = #tpu.dot_dimension_numbers<[1], [0], [0], [1], [0, 0, 1, 1], [], []>} : vector<8x32xf32>, vector<32x96xf32>, vector<8x96xf32> -> vector<8x96xf32>
    %c0_140 = arith.constant 0 : index
    %c0_141 = arith.constant 0 : index
    %520 = vector.load %arg3[%c0_140, %c0_141] : memref<1x96xf32, #tpu.memory_space<vmem>>, vector<1x96xf32>
    %521 = vector.broadcast %520 : vector<1x96xf32> to vector<8x96xf32>
    %522 = arith.addf %519, %521 : vector<8x96xf32>
    %523 = vector.extract_strided_slice %517 {offsets = [0, 0], sizes = [8, 48], strides = [1, 1]} : vector<8x96xf32> to vector<8x48xf32>
    %524 = vector.extract_strided_slice %522 {offsets = [0, 0], sizes = [8, 48], strides = [1, 1]} : vector<8x96xf32> to vector<8x48xf32>
    %525 = vector.extract_strided_slice %514 {offsets = [0, 0], sizes = [8, 16], strides = [1, 1]} : vector<8x32xf32> to vector<8x16xf32>
    %526 = vector.extract_strided_slice %523 {offsets = [0, 0], sizes = [8, 16], strides = [1, 1]} : vector<8x48xf32> to vector<8x16xf32>
    %527 = vector.extract_strided_slice %524 {offsets = [0, 0], sizes = [8, 16], strides = [1, 1]} : vector<8x48xf32> to vector<8x16xf32>
    %528 = arith.addf %526, %527 : vector<8x16xf32>
    %529 = arith.negf %528 : vector<8x16xf32>
    %530 = math.exp %529 : vector<8x16xf32>
    %cst_142 = arith.constant 1.000000e+00 : f32
    %531 = vector.broadcast %cst_142 : f32 to vector<8x16xf32>
    %532 = arith.addf %531, %530 : vector<8x16xf32>
    %533 = arith.divf %531, %532 : vector<8x16xf32>
    %534 = vector.extract_strided_slice %523 {offsets = [0, 16], sizes = [8, 16], strides = [1, 1]} : vector<8x48xf32> to vector<8x16xf32>
    %535 = vector.extract_strided_slice %524 {offsets = [0, 16], sizes = [8, 16], strides = [1, 1]} : vector<8x48xf32> to vector<8x16xf32>
    %536 = arith.addf %534, %535 : vector<8x16xf32>
    %537 = arith.negf %536 : vector<8x16xf32>
    %538 = math.exp %537 : vector<8x16xf32>
    %cst_143 = arith.constant 1.000000e+00 : f32
    %539 = vector.broadcast %cst_143 : f32 to vector<8x16xf32>
    %540 = arith.addf %539, %538 : vector<8x16xf32>
    %541 = arith.divf %539, %540 : vector<8x16xf32>
    %542 = vector.extract_strided_slice %523 {offsets = [0, 32], sizes = [8, 16], strides = [1, 1]} : vector<8x48xf32> to vector<8x16xf32>
    %543 = vector.extract_strided_slice %524 {offsets = [0, 32], sizes = [8, 16], strides = [1, 1]} : vector<8x48xf32> to vector<8x16xf32>
    %544 = arith.mulf %533, %543 : vector<8x16xf32>
    %545 = arith.addf %542, %544 : vector<8x16xf32>
    %546 = math.tanh %545 : vector<8x16xf32>
    %cst_144 = arith.constant 1.000000e+00 : f32
    %547 = vector.broadcast %cst_144 : f32 to vector<8x16xf32>
    %548 = arith.subf %547, %541 : vector<8x16xf32>
    %549 = arith.mulf %548, %546 : vector<8x16xf32>
    %550 = arith.mulf %541, %525 : vector<8x16xf32>
    %551 = arith.addf %549, %550 : vector<8x16xf32>
    %552 = vector.extract_strided_slice %517 {offsets = [0, 48], sizes = [8, 48], strides = [1, 1]} : vector<8x96xf32> to vector<8x48xf32>
    %553 = vector.extract_strided_slice %522 {offsets = [0, 48], sizes = [8, 48], strides = [1, 1]} : vector<8x96xf32> to vector<8x48xf32>
    %554 = vector.extract_strided_slice %514 {offsets = [0, 16], sizes = [8, 16], strides = [1, 1]} : vector<8x32xf32> to vector<8x16xf32>
    %555 = vector.extract_strided_slice %552 {offsets = [0, 0], sizes = [8, 16], strides = [1, 1]} : vector<8x48xf32> to vector<8x16xf32>
    %556 = vector.extract_strided_slice %553 {offsets = [0, 0], sizes = [8, 16], strides = [1, 1]} : vector<8x48xf32> to vector<8x16xf32>
    %557 = arith.addf %555, %556 : vector<8x16xf32>
    %558 = arith.negf %557 : vector<8x16xf32>
    %559 = math.exp %558 : vector<8x16xf32>
    %cst_145 = arith.constant 1.000000e+00 : f32
    %560 = vector.broadcast %cst_145 : f32 to vector<8x16xf32>
    %561 = arith.addf %560, %559 : vector<8x16xf32>
    %562 = arith.divf %560, %561 : vector<8x16xf32>
    %563 = vector.extract_strided_slice %552 {offsets = [0, 16], sizes = [8, 16], strides = [1, 1]} : vector<8x48xf32> to vector<8x16xf32>
    %564 = vector.extract_strided_slice %553 {offsets = [0, 16], sizes = [8, 16], strides = [1, 1]} : vector<8x48xf32> to vector<8x16xf32>
    %565 = arith.addf %563, %564 : vector<8x16xf32>
    %566 = arith.negf %565 : vector<8x16xf32>
    %567 = math.exp %566 : vector<8x16xf32>
    %cst_146 = arith.constant 1.000000e+00 : f32
    %568 = vector.broadcast %cst_146 : f32 to vector<8x16xf32>
    %569 = arith.addf %568, %567 : vector<8x16xf32>
    %570 = arith.divf %568, %569 : vector<8x16xf32>
    %571 = vector.extract_strided_slice %552 {offsets = [0, 32], sizes = [8, 16], strides = [1, 1]} : vector<8x48xf32> to vector<8x16xf32>
    %572 = vector.extract_strided_slice %553 {offsets = [0, 32], sizes = [8, 16], strides = [1, 1]} : vector<8x48xf32> to vector<8x16xf32>
    %573 = arith.mulf %562, %572 : vector<8x16xf32>
    %574 = arith.addf %571, %573 : vector<8x16xf32>
    %575 = math.tanh %574 : vector<8x16xf32>
    %cst_147 = arith.constant 1.000000e+00 : f32
    %576 = vector.broadcast %cst_147 : f32 to vector<8x16xf32>
    %577 = arith.subf %576, %570 : vector<8x16xf32>
    %578 = arith.mulf %577, %575 : vector<8x16xf32>
    %579 = arith.mulf %570, %554 : vector<8x16xf32>
    %580 = arith.addf %578, %579 : vector<8x16xf32>
    %581 = tpu.concatenate %551, %580 in 1 : vector<8x16xf32>, vector<8x16xf32> -> vector<8x32xf32>
    %c0_148 = arith.constant 0 : index
    %c0_149 = arith.constant 0 : index
    %582 = vector.load %arg5[%c0_148, %c0_149] : memref<8x32xf32, #tpu.memory_space<vmem>>, vector<8x32xf32>
    tpu.vector_store %arg5[%c0_148, %c0_149], %581 {strides = array<i32>} : memref<8x32xf32, #tpu.memory_space<vmem>>, vector<8x32xf32>,
    %583 = arith.index_cast %c7_i32 : i32 to index
    %c0_150 = arith.constant 0 : index
    %c0_151 = arith.constant 0 : index
    %584 = vector.load %arg4[%583, %c0_150, %c0_151] : memref<8x8x32xf32, #tpu.memory_space<vmem>>, vector<1x8x32xf32>
    %585 = vector.shape_cast %584 : vector<1x8x32xf32> to vector<8x32xf32>
    %586 = vector.shape_cast %581 : vector<8x32xf32> to vector<1x8x32xf32>
    tpu.vector_store %arg4[%583, %c0_150, %c0_151], %586 {strides = array<i32>} : memref<8x8x32xf32, #tpu.memory_space<vmem>>, vector<1x8x32xf32>,
    %c8_i32 = arith.constant 8 : i32
    return
  }
  func.func @transform_0(%arg0: i32) -> (i32, i32, i32) {
    %c0_i32 = arith.constant 0 : i32
    %c0_i32_0 = arith.constant 0 : i32
    %c0_i32_1 = arith.constant 0 : i32
    return %arg0, %c0_i32, %c0_i32_0 : i32, i32, i32
  }
  func.func @transform_1(%arg0: i32) -> (i32, i32) {
    %c0_i32 = arith.constant 0 : i32
    %c0_i32_0 = arith.constant 0 : i32
    %c0_i32_1 = arith.constant 0 : i32
    return %c0_i32, %c0_i32_0 : i32, i32
  }
  func.func @transform_2(%arg0: i32) -> (i32, i32) {
    %c0_i32 = arith.constant 0 : i32
    %c0_i32_0 = arith.constant 0 : i32
    %c0_i32_1 = arith.constant 0 : i32
    return %c0_i32, %c0_i32_0 : i32, i32
  }
  func.func @transform_3(%arg0: i32) -> (i32, i32, i32) {
    %c0_i32 = arith.constant 0 : i32
    %c0_i32_0 = arith.constant 0 : i32
    %c0_i32_1 = arith.constant 0 : i32
    return %arg0, %c0_i32, %c0_i32_0 : i32, i32, i32
  }
}

module attributes {stable_mosaic.version = 11 : i64} {
  func.func @_mm_kernel(%arg0: i32, %arg1: i32, %arg2: i32, %arg3: memref<8x128xbf16, #tpu.memory_space<vmem>>, %arg4: memref<128x128xbf16, #tpu.memory_space<vmem>>, %arg5: memref<1x128xf32, #tpu.memory_space<vmem>>, %arg6: memref<1x128xf32, #tpu.memory_space<vmem>>, %arg7: memref<1x128xf32, #tpu.memory_space<vmem>>, %arg8: memref<1x128xf32, #tpu.memory_space<vmem>>, %arg9: memref<8x128xf32, #tpu.memory_space<vmem>>, %arg10: memref<8x128xf32, #tpu.memory_space<vmem>>) attributes {dimension_semantics = [#tpu.dimension_semantics<parallel>, #tpu.dimension_semantics<parallel>, #tpu.dimension_semantics<arbitrary>], iteration_bounds = array<i64: 1, 1, 1>, scalar_prefetch = 0 : i64, scratch_operands = 1 : i64, tpu.core_type = #tpu.core_type<tc>, window_params = [{transform_indices = @transform_0, window_bounds = array<i64: 8, 128>}, {transform_indices = @transform_1, window_bounds = array<i64: 128, 128>}, {transform_indices = @transform_2, window_bounds = array<i64: 1, 128>}, {transform_indices = @transform_3, window_bounds = array<i64: 1, 128>}, {transform_indices = @transform_4, window_bounds = array<i64: 1, 128>}, {transform_indices = @transform_5, window_bounds = array<i64: 1, 128>}, {transform_indices = @transform_6, window_bounds = array<i64: 8, 128>}]} {
    %c0_i32 = arith.constant 0 : i32
    %0 = arith.cmpi eq, %arg2, %c0_i32 : i32
    %1 = arith.extui %0 : i1 to i32
    %c0_i32_0 = arith.constant 0 : i32
    %2 = arith.cmpi ne, %1, %c0_i32_0 : i32
    scf.if %2 {
      %cst_10 = arith.constant 0.000000e+00 : f32
      %12 = vector.broadcast %cst_10 : f32 to vector<8x128xf32>
      %c0_11 = arith.constant 0 : index
      %c0_12 = arith.constant 0 : index
      %13 = vector.load %arg10[%c0_11, %c0_12] : memref<8x128xf32, #tpu.memory_space<vmem>>, vector<8x128xf32>
      tpu.vector_store %arg10[%c0_11, %c0_12], %12 {strides = array<i32>} : memref<8x128xf32, #tpu.memory_space<vmem>>, vector<8x128xf32>,
    } else {
    }
    %c0 = arith.constant 0 : index
    %c0_1 = arith.constant 0 : index
    %3 = vector.load %arg3[%c0, %c0_1] : memref<8x128xbf16, #tpu.memory_space<vmem>>, vector<8x128xbf16>
    %c0_2 = arith.constant 0 : index
    %c0_3 = arith.constant 0 : index
    %4 = vector.load %arg10[%c0_2, %c0_3] : memref<8x128xf32, #tpu.memory_space<vmem>>, vector<8x128xf32>
    %c0_4 = arith.constant 0 : index
    %c0_5 = arith.constant 0 : index
    %5 = vector.load %arg4[%c0_4, %c0_5] : memref<128x128xbf16, #tpu.memory_space<vmem>>, vector<128x128xbf16>
    %cst = arith.constant dense<0.000000e+00> : vector<8x128xf32>
    %6 = tpu.matmul %3, %5, %cst {dimension_numbers = #tpu.dot_dimension_numbers<[1], [0], [0], [1], [0, 0, 1, 1], [], []>} : vector<8x128xbf16>, vector<128x128xbf16>, vector<8x128xf32> -> vector<8x128xf32>
    %7 = arith.addf %4, %6 : vector<8x128xf32>
    %c0_6 = arith.constant 0 : index
    %c0_7 = arith.constant 0 : index
    %8 = vector.load %arg10[%c0_6, %c0_7] : memref<8x128xf32, #tpu.memory_space<vmem>>, vector<8x128xf32>
    tpu.vector_store %arg10[%c0_6, %c0_7], %7 {strides = array<i32>} : memref<8x128xf32, #tpu.memory_space<vmem>>, vector<8x128xf32>,
    %c0_i32_8 = arith.constant 0 : i32
    %9 = arith.cmpi eq, %arg2, %c0_i32_8 : i32
    %10 = arith.extui %9 : i1 to i32
    %c0_i32_9 = arith.constant 0 : i32
    %11 = arith.cmpi ne, %10, %c0_i32_9 : i32
    scf.if %11 {
      %c0_10 = arith.constant 0 : index
      %c0_11 = arith.constant 0 : index
      %12 = vector.load %arg10[%c0_10, %c0_11] : memref<8x128xf32, #tpu.memory_space<vmem>>, vector<8x128xf32>
      %c0_12 = arith.constant 0 : index
      %c0_13 = arith.constant 0 : index
      %13 = vector.load %arg7[%c0_12, %c0_13] : memref<1x128xf32, #tpu.memory_space<vmem>>, vector<1x128xf32>
      %14 = vector.broadcast %13 : vector<1x128xf32> to vector<8x128xf32>
      %15 = arith.mulf %12, %14 : vector<8x128xf32>
      %c0_14 = arith.constant 0 : index
      %c0_15 = arith.constant 0 : index
      %16 = vector.load %arg8[%c0_14, %c0_15] : memref<1x128xf32, #tpu.memory_space<vmem>>, vector<1x128xf32>
      %17 = vector.broadcast %16 : vector<1x128xf32> to vector<8x128xf32>
      %18 = arith.addf %15, %17 : vector<8x128xf32>
      %c0_16 = arith.constant 0 : index
      %c0_17 = arith.constant 0 : index
      %19 = vector.load %arg9[%c0_16, %c0_17] : memref<8x128xf32, #tpu.memory_space<vmem>>, vector<8x128xf32>
      tpu.vector_store %arg9[%c0_16, %c0_17], %18 {strides = array<i32>} : memref<8x128xf32, #tpu.memory_space<vmem>>, vector<8x128xf32>,
    } else {
    }
    return
  }
  func.func @transform_0(%arg0: i32, %arg1: i32, %arg2: i32) -> (i32, i32) {
    %c0_i32 = arith.constant 0 : i32
    return %arg0, %arg2 : i32, i32
  }
  func.func @transform_1(%arg0: i32, %arg1: i32, %arg2: i32) -> (i32, i32) {
    %c0_i32 = arith.constant 0 : i32
    return %arg2, %arg1 : i32, i32
  }
  func.func @transform_2(%arg0: i32, %arg1: i32, %arg2: i32) -> (i32, i32) {
    %c0_i32 = arith.constant 0 : i32
    %c0_i32_0 = arith.constant 0 : i32
    return %c0_i32, %arg2 : i32, i32
  }
  func.func @transform_3(%arg0: i32, %arg1: i32, %arg2: i32) -> (i32, i32) {
    %c0_i32 = arith.constant 0 : i32
    %c0_i32_0 = arith.constant 0 : i32
    return %c0_i32, %arg2 : i32, i32
  }
  func.func @transform_4(%arg0: i32, %arg1: i32, %arg2: i32) -> (i32, i32) {
    %c0_i32 = arith.constant 0 : i32
    %c0_i32_0 = arith.constant 0 : i32
    return %c0_i32, %arg1 : i32, i32
  }
  func.func @transform_5(%arg0: i32, %arg1: i32, %arg2: i32) -> (i32, i32) {
    %c0_i32 = arith.constant 0 : i32
    %c0_i32_0 = arith.constant 0 : i32
    return %c0_i32, %arg1 : i32, i32
  }
  func.func @transform_6(%arg0: i32, %arg1: i32, %arg2: i32) -> (i32, i32) {
    %c0_i32 = arith.constant 0 : i32
    return %arg0, %arg1 : i32, i32
  }
}

</mosaic_0001>

<bundles_post_ra>
// kernel: forward.19
= control target key start
LH: loop header
LB: loop body
LE: loop exit
PB: predicated region body
PF: predicated region fallthrough
CT: control target
= control target key end

     0   :  { %s893_s12 = smov 0   ;;  %s895_s13 = smov 0   ;;  %s1070_s0 = inlined_call_operand.vmem [shape: bf16[6,16,8,2,16], index: 0, kind: input, shape index: {}, may-alias: {0,1,2}]   ;;  %s1071_s1 = inlined_call_operand.vmem [shape: bf16[6,16,8,2,16], index: 1, kind: input, shape index: {}, may-alias: {0,1,2}]   ;;  %s1072_s2 = inlined_call_operand.vmem [shape: bf16[6,16,8,2,16], index: 2, kind: input, shape index: {}, may-alias: {0,1,2}]   ;;  %s1073_s3 = inlined_call_operand.vmem [shape: bf16[6,8,8,16], index: 3, kind: output, shape index: {}]  }
   0x1   :  { %s897_s14 = smov 0   ;;  %s899_s15 = smov 0  }
   0x2   :  { %s901_s16 = smov 0  }
   0x3 LB: > { %s22_s17 = sadd.s32 1, %s863_s14  ;;  %s25_s18 = sadd.s32 1, %s867_s15  ;;  %s871_s16 = sphi %s901_s16, %s13_s16   ;;  %s867_s15 = sphi %s899_s15, %s1077_s15   ;;  %s863_s14 = sphi %s897_s14, %s1076_s14   ;;  %s859_s13 = sphi %s895_s13, %s1075_s13   ;;  %s855_s12 = sphi %s893_s12, %s1074_s12  }
   0x4   : > { %p23_p0 = scmp.ge.s32.totalorder %s22_s17, 8  ;;  %p755_p1 = scmp.ge.s32.totalorder %s871_s16, 1 }
   0x5   : > { %p214_p2 = scmp.lt.s32.totalorder %s871_s16, 49 }
   0x6   : > { %s1079_s17 = smov (%p23_p0, %s22_s17), 0  ;;  %s1081_s18 = smov (!%p23_p0, %s25_s18), %s867_s15 }
   0x7   : > { %p215_p3 = pnand %p755_p1, %p214_p2  ;;  %p27_p4 = scmp.ge.s32.totalorder %s1081_s18, 6 }
   0x8   : > { %s756_s19 = sshll.u32 (!%p215_p3), %s855_s12, 1  ;;  %p271_p5 = scmp.lt.s32.totalorder (!%p215_p3), %s859_s13, 5  ;;  %vm389_vm1 = vcmask (!%p215_p3), 123904   ;;  %vm521_vm3 = vcmask (!%p215_p3), 1041409   ;;  %vm523_vm4 = vcmask (!%p215_p3), 1042434   ;;  %vm525_vm5 = vcmask (!%p215_p3), 1043459  }
   0x9   : > { %s1083_s18 = smov (%p27_p4, %s1081_s18), 0  ;;  %218 = sbr.rel (%p215_p3) target bundleno = 94 (0x5e), region = 32 }
   0xa   : > { %s757_s20 = sadd.s32 (!%p215_p3), 4294967295, %s756_s19  ;;  %p286_p6 = scmp.lt.s32.totalorder (!%p215_p3), %s756_s19, 15  ;;  %vm527_vm6 = vcmask (!%p215_p3), 1044484   ;;  %vm529_vm7 = vcmask (!%p215_p3), 1045509   ;;  %vm531_vm8 = vcmask (!%p215_p3), 1046534   ;;  %vm533_vm9 = vcmask (!%p215_p3), 1047559  }
   0xb   : > { %p269_p7 = scmp.gt.s32.totalorder (!%p215_p3), %s757_s20, 0  ;;  %p758_p8 = scmp.lt.s32.totalorder (!%p215_p3), %s757_s20, 15  ;;  %vm619_vm11 = vcmask (!%p215_p3), 125952  }
   0xc   : > { %s294_s22 = sadd.s32 (!%p215_p3), 1, %s756_s19  ;;  %p361_p10 = scmp.eq.s32.totalorder (!%p215_p3), %s855_s12, 0 }
   0xd   : > { %p297_p9 = scmp.lt.s32.totalorder (!%p215_p3), %s294_s22, 15  ;;  %p307_p11 = scmp.lt.s32.totalorder (!%p215_p3), %s855_s12, 7 }
  0x10   : > { %s1085_s13 = smov (!%p271_p5, %s859_s13), 5  ;;  %s1087_s20 = smov (!%p269_p7, %s757_s20), 0 }
  0x11   : > { %s764_s21 = sshll.u32 %s1085_s13, 7  ;;  %s1089_s20 = smov (!%p758_p8, %s1087_s20), 15 }
  0x12   : > { %s1091_s19 = smov (!%p286_p6, %s756_s19), 15  ;;  %s763_s23 = sshll.u32 %s1089_s20, 3 }
  0x13   : > { %s277_s24 = sadd.s32 %s764_s21, %s763_s23  ;;  %s766_s25 = sshll.u32 %s1091_s19, 3 }
  0x14   : > { %s278_s28 = scalar_lea.vmem %s1070_s0, %s277_s24  ;;  %s290_s29 = sadd.s32 %s766_s25, %s764_s21 }
  0x15   : > { %s1093_s22 = smov (!%p297_p9, %s294_s22), 15  ;;  %s291_s5 = scalar_lea.vmem %s1071_s1, %s290_s29  ;;  %v313_v0 = vld [vmem:[%s278_s28] sm:$0x1]  ;;  %v314_v1 = vld [vmem:[%s278_s28 + $0x1] sm:$0x1] }
  0x16   : > { %s769_s6 = sshll.u32 %s1093_s22, 3  ;;  %v315_v2 = vld [vmem:[%s278_s28 + $0x2] sm:$0x1]  ;;  %v316_v3 = vld [vmem:[%s278_s28 + $0x3] sm:$0x1]  ;;  %v321_v14 = vunpack.c.l.bf16 %v313_v0  ;;  %v322_v15 = vunpack.c.l.bf16 %v314_v1  ;;  %s1095_s12 = smov (!%p307_p11, %s855_s12), 7 }
  0x17   : > { %s301_s7 = sadd.s32 %s769_s6, %s764_s21  ;;  %v317_v4 = vld [vmem:[%s278_s28 + $0x4] sm:$0x1]  ;;  %v318_v5 = vld [vmem:[%s278_s28 + $0x5] sm:$0x1]  ;;  %v319_v6 = vld [vmem:[%s278_s28 + $0x6] sm:$0x1]  ;;  %v323_v19 = vunpack.c.l.bf16 %v315_v2  ;;  %v324_v20 = vunpack.c.l.bf16 %v316_v3  ;;  %v446_v2 = vlaneseq }
  0x18   : > { %s938_s10 = scalar_lea.vmem %s1072_s2, %s301_s7  ;;  %v320_v7 = vld [vmem:[%s278_s28 + $0x7] sm:$0x1]  ;;  %v329_v8 = vld [vmem:[%s291_s5] sm:$0x1]  ;;  %v330_v9 = vld [vmem:[%s291_s5 + $0x1] sm:$0x1]  ;;  %v325_v21 = vunpack.c.l.bf16 %v317_v4  ;;  %v326_v22 = vunpack.c.l.bf16 %v318_v5  ;;  %v327_v25 = vunpack.c.l.bf16 %v319_v6 }
  0x19   : > { %v331_v10 = vld [vmem:[%s291_s5 + $0x2] sm:$0x1]  ;;  %v332_v11 = vld [vmem:[%s291_s5 + $0x3] sm:$0x1]  ;;  %v333_v12 = vld [vmem:[%s291_s5 + $0x4] sm:$0x1]  ;;  %v328_v26 = vunpack.c.l.bf16 %v320_v7  ;;  %v337_v27 = vunpack.c.l.bf16 %v329_v8  ;;  %v338_v28 = vunpack.c.l.bf16 %v330_v9 }
  0x1a   : > { %v334_v13 = vld [vmem:[%s291_s5 + $0x5] sm:$0x1]  ;;  %v335_v16 = vld [vmem:[%s291_s5 + $0x6] sm:$0x1]  ;;  %v336_v17 = vld [vmem:[%s291_s5 + $0x7] sm:$0x1]  ;;  %v339_v32 = vunpack.c.l.bf16 %v331_v10  ;;  %v340_v33 = vunpack.c.l.bf16 %v332_v11  ;;  %v341_v34 = vunpack.c.l.bf16 %v333_v12 }
  0x1b   : > { %v345_v18 = vld [vmem:[%s938_s10] sm:$0x1]  ;;  %v346_v23 = vld [vmem:[%s938_s10 + $0x1] sm:$0x1]  ;;  %v347_v24 = vld [vmem:[%s938_s10 + $0x2] sm:$0x1]  ;;  %v342_v35 = vunpack.c.l.bf16 %v334_v13  ;;  %v343_v38 = vunpack.c.l.bf16 %v335_v16  ;;  %v344_v39 = vunpack.c.l.bf16 %v336_v17 }
  0x1c   : > { %v348_v29 = vld [vmem:[%s938_s10 + $0x3] sm:$0x1]  ;;  %v349_v30 = vld [vmem:[%s938_s10 + $0x4] sm:$0x1]  ;;  %v350_v31 = vld [vmem:[%s938_s10 + $0x5] sm:$0x1]  ;;  %v353_v40 = vunpack.c.l.bf16 %v345_v18  ;;  %v354_v41 = vunpack.c.l.bf16 %v346_v23  ;;  %v355_v42 = vunpack.c.l.bf16 %v347_v24 }
  0x1d   : > { %v351_v36 = vld [vmem:[%s938_s10 + $0x6] sm:$0x1]  ;;  %v352_v37 = vld [vmem:[%s938_s10 + $0x7] sm:$0x1]  ;;  %s362_s11 = scalar_select %p361_p10, 1, 0  ;;  %v356_v43 = vunpack.c.l.bf16 %v348_v29  ;;  %v357_v44 = vunpack.c.l.bf16 %v349_v30  ;;  %v358_v46 = vunpack.c.l.bf16 %v350_v31 }
  0x1e   : > { %v359_v47 = vunpack.c.l.bf16 %v351_v36  ;;  %v360_v48 = vunpack.c.l.bf16 %v352_v37  ;;  %v959_v23 = vshrl.u32 %v446_v2, 7  ;;  %s771_s19 = sshll.u32 %s1085_s13, 3 }
  0x1f   : > { %v363_v45 = vstv %s362_s11  ;;  %s310_s20 = sadd.s32 %s771_s19, %s1095_s12 }
  0x20   : > { %vm364_vm0 = vcmp.eq.s32.totalorder %v363_v45, 1  ;;  %vm448_vm2 = vcmp.eq.s32.totalorder %v959_v23, 1  ;;  %vm537_vm10 = vcmp.eq.s32.totalorder %v959_v23, 0  ;;  %s772_s21 = sshll.u32 %s310_s20, 2 }
  0x21   : > { %v365_v49 = vsel %vm364_vm0, -inf, %v321_v14  ;;  %v366_v50 = vsel %vm364_vm0, -inf, %v322_v15  ;;  %v367_v51 = vsel %vm364_vm0, -inf, %v323_v19  ;;  %v368_v52 = vsel %vm364_vm0, -inf, %v324_v20  ;;  %s312_s12 = scalar_lea.vmem %s1073_s3, %s772_s21 }
  0x22   : > { %v369_v53 = vsel %vm364_vm0, -inf, %v325_v21  ;;  %v370_v54 = vsel %vm364_vm0, -inf, %v326_v22  ;;  %v371_v55 = vsel %vm364_vm0, -inf, %v327_v25  ;;  %v372_v56 = vsel %vm364_vm0, -inf, %v328_v26 }
  0x23   : > { %v373_v57 = vmax.f32 %v365_v49, %v337_v27  ;;  %v374_v58 = vmax.f32 %v366_v50, %v338_v28  ;;  %v375_v59 = vmax.f32 %v367_v51, %v339_v32  ;;  %v376_v60 = vmax.f32 %v368_v52, %v340_v33 }
  0x24   : > { %v377_v61 = vmax.f32 %v369_v53, %v341_v34  ;;  %v378_v62 = vmax.f32 %v370_v54, %v342_v35  ;;  %v379_v63 = vmax.f32 %v371_v55, %v343_v38  ;;  %v380_v0 = vmax.f32 %v372_v56, %v344_v39 }
  0x25   : > { %v381_v1 = vmax.f32 %v373_v57, %v353_v40  ;;  %v382_v3 = vmax.f32 %v374_v58, %v354_v41  ;;  %v383_v4 = vmax.f32 %v375_v59, %v355_v42  ;;  %v384_v5 = vmax.f32 %v376_v60, %v356_v43 }
  0x26   : > { %v385_v6 = vmax.f32 %v377_v61, %v357_v44  ;;  %v386_v7 = vmax.f32 %v378_v62, %v358_v46  ;;  %v387_v8 = vmax.f32 %v379_v63, %v359_v47  ;;  %v388_v9 = vmax.f32 %v380_v0, %v360_v48 }
  0x27   : > { %v390_v10 = vsel %vm389_vm1, %v381_v1, -inf  ;;  %v397_v12 = vsel %vm389_vm1, %v382_v3, -inf  ;;  %v404_v13 = vsel %vm389_vm1, %v383_v4, -inf  ;;  %v411_v14 = vsel %vm389_vm1, %v384_v5, -inf }
  0x28   : > { %v391_v11 = vrot.slane %v390_v10, 4  ;;  %v418_v15 = vsel %vm389_vm1, %v385_v6, -inf  ;;  %v425_v16 = vsel %vm389_vm1, %v386_v7, -inf  ;;  %v432_v17 = vsel %vm389_vm1, %v387_v8, -inf }
  0x29   : > { %v439_v18 = vsel %vm389_vm1, %v388_v9, -inf  ;;  %v398_v20 = vrot.slane %v397_v12, 4  ;;  %v405_v21 = vrot.slane %v404_v13, 4  ;;  %v412_v22 = vrot.slane %v411_v14, 4 }
  0x2a   : > { %v392_v19 = vmax.f32 %v390_v10, %v391_v11  ;;  %v419_v24 = vrot.slane %v418_v15, 4  ;;  %v426_v25 = vrot.slane %v425_v16, 4  ;;  %v433_v26 = vrot.slane %v432_v17, 4 }
  0x2b   : > { %v440_v27 = vrot.slane %v439_v18, 4  ;;  %v961_v29 = vmax.f32 %v397_v12, %v398_v20  ;;  %v963_v30 = vmax.f32 %v404_v13, %v405_v21  ;;  %v965_v31 = vmax.f32 %v411_v14, %v412_v22 }
  0x2c   : > { %v393_v28 = vrot.slane %v392_v19, 2  ;;  %v968_v32 = vmax.f32 %v418_v15, %v419_v24  ;;  %v970_v33 = vmax.f32 %v425_v16, %v426_v25  ;;  %v972_v34 = vmax.f32 %v432_v17, %v433_v26 }
  0x2d   : > { %v974_v35 = vmax.f32 %v439_v18, %v440_v27  ;;  %v400_v37 = vrot.slane %v961_v29, 2  ;;  %v407_v38 = vrot.slane %v963_v30, 2  ;;  %v414_v39 = vrot.slane %v965_v31, 2 }
  0x2e   : > { %v976_v36 = vmax.f32 %v392_v19, %v393_v28  ;;  %v449_v40 = vsel %vm448_vm2, %v381_v1, -inf  ;;  %v450_v41 = vsel %vm448_vm2, %v382_v3, -inf  ;;  %v451_v42 = vsel %vm448_vm2, %v383_v4, -inf }
  0x2f   : > { %v452_v43 = vsel %vm448_vm2, %v384_v5, -inf  ;;  %v421_v44 = vrot.slane %v968_v32, 2  ;;  %v428_v45 = vrot.slane %v970_v33, 2  ;;  %v435_v46 = vrot.slane %v972_v34, 2 }
  0x30   : > { %v442_v47 = vrot.slane %v974_v35, 2  ;;  %v453_v48 = vsel %vm448_vm2, %v385_v6, -inf  ;;  %v454_v49 = vsel %vm448_vm2, %v386_v7, -inf  ;;  %v455_v50 = vsel %vm448_vm2, %v387_v8, -inf }
  0x31   : > { %v456_v51 = vsel %vm448_vm2, %v388_v9, -inf  ;;  %v457_v52 = vsel %vm389_vm1, %v449_v40, -inf  ;;  %v464_v53 = vsel %vm389_vm1, %v450_v41, -inf  ;;  %v471_v54 = vsel %vm389_vm1, %v451_v42, -inf }
  0x32   : > { %v478_v55 = vsel %vm389_vm1, %v452_v43, -inf  ;;  %v458_v56 = vrot.slane %v457_v52, 4  ;;  %v465_v57 = vrot.slane %v464_v53, 4  ;;  %v472_v58 = vrot.slane %v471_v54, 4 }
  0x33   : > { %v479_v59 = vrot.slane %v478_v55, 4  ;;  %v485_v60 = vsel %vm389_vm1, %v453_v48, -inf  ;;  %v492_v61 = vsel %vm389_vm1, %v454_v49, -inf  ;;  %v499_v62 = vsel %vm389_vm1, %v455_v50, -inf }
  0x34   : > { %v506_v63 = vsel %vm389_vm1, %v456_v51, -inf  ;;  %v459_v0 = vmax.f32 %v457_v52, %v458_v56  ;;  %v466_v1 = vmax.f32 %v464_v53, %v465_v57  ;;  %v473_v2 = vmax.f32 %v471_v54, %v472_v58 }
  0x35   : > { %v480_v3 = vmax.f32 %v478_v55, %v479_v59  ;;  %v486_v4 = vrot.slane %v485_v60, 4  ;;  %v493_v5 = vrot.slane %v492_v61, 4  ;;  %v500_v6 = vrot.slane %v499_v62, 4 }
  0x36   : > { %v507_v7 = vrot.slane %v506_v63, 4  ;;  %v460_v8 = vrot.slane %v459_v0, 2  ;;  %v467_v9 = vrot.slane %v466_v1, 2  ;;  %v474_v10 = vrot.slane %v473_v2, 2 }
  0x37   : > { %v481_v11 = vrot.slane %v480_v3, 2  ;;  %v487_v12 = vmax.f32 %v485_v60, %v486_v4  ;;  %v494_v13 = vmax.f32 %v492_v61, %v493_v5  ;;  %v501_v14 = vmax.f32 %v499_v62, %v500_v6 }
  0x38   : > { %v508_v15 = vmax.f32 %v506_v63, %v507_v7  ;;  %v461_v16 = vmax.f32 %v459_v0, %v460_v8  ;;  %v468_v17 = vmax.f32 %v466_v1, %v467_v9  ;;  %v475_v18 = vmax.f32 %v473_v2, %v474_v10 }
  0x39   : > { %v482_v19 = vmax.f32 %v480_v3, %v481_v11  ;;  %v488_v20 = vrot.slane %v487_v12, 2  ;;  %v495_v21 = vrot.slane %v494_v13, 2  ;;  %v502_v22 = vrot.slane %v501_v14, 2 }
  0x3a   : > { %v509_v24 = vrot.slane %v508_v15, 2  ;;  %v462_v25 = vrot.slane %v461_v16, 1  ;;  %v469_v26 = vrot.slane %v468_v17, 1  ;;  %v476_v27 = vrot.slane %v475_v18, 1 }
  0x3b   : > { %v483_v28 = vrot.slane %v482_v19, 1  ;;  %v489_v40 = vmax.f32 %v487_v12, %v488_v20  ;;  %v496_v41 = vmax.f32 %v494_v13, %v495_v21  ;;  %v503_v42 = vmax.f32 %v501_v14, %v502_v22 }
  0x3c   : > { %v510_v43 = vmax.f32 %v508_v15, %v509_v24  ;;  %v463_v48 = vmax.f32 %v461_v16, %v462_v25  ;;  %v470_v49 = vmax.f32 %v468_v17, %v469_v26  ;;  %v477_v50 = vmax.f32 %v475_v18, %v476_v27 }
  0x3d   : > { %v484_v51 = vmax.f32 %v482_v19, %v483_v28  ;;  %v490_v52 = vrot.slane %v489_v40, 1  ;;  %v497_v53 = vrot.slane %v496_v41, 1  ;;  %v504_v54 = vrot.slane %v503_v42, 1 }
  0x3e   : > { %v511_v55 = vrot.slane %v510_v43, 1  ;;  %v401_v56 = vmax.f32 %v961_v29, %v400_v37  ;;  %v408_v57 = vmax.f32 %v963_v30, %v407_v38  ;;  %v415_v58 = vmax.f32 %v965_v31, %v414_v39 }
  0x3f   : > { %v522_v59 = vsel %vm521_vm3, %v470_v49, %v463_v48  ;;  %v422_v60 = vmax.f32 %v968_v32, %v421_v44  ;;  %v429_v61 = vmax.f32 %v970_v33, %v428_v45  ;;  %v491_v62 = vmax.f32 %v489_v40, %v490_v52 }
  0x40   : > { %v498_v29 = vmax.f32 %v496_v41, %v497_v53  ;;  %v436_v30 = vmax.f32 %v972_v34, %v435_v46  ;;  %v443_v31 = vmax.f32 %v974_v35, %v442_v47  ;;  %v505_v37 = vmax.f32 %v503_v42, %v504_v54 }
  0x41   : > { %v524_v38 = vsel %vm523_vm4, %v477_v50, %v522_v59  ;;  %v512_v39 = vmax.f32 %v510_v43, %v511_v55  ;;  %v395_v44 = vrot.slane %v976_v36, 1  ;;  %v402_v33 = vrot.slane %v401_v56, 1 }
  0x42   : > { %v526_v32 = vsel %vm525_vm5, %v484_v51, %v524_v38  ;;  %v409_v63 = vrot.slane %v408_v57, 1  ;;  %v416_v0 = vrot.slane %v415_v58, 1  ;;  %v423_v34 = vrot.slane %v422_v60, 1 }
  0x43   : > { %v528_v45 = vsel %vm527_vm6, %v491_v62, %v526_v32  ;;  %v430_v1 = vrot.slane %v429_v61, 1  ;;  %v437_v35 = vrot.slane %v436_v30, 1  ;;  %v444_v47 = vrot.slane %v443_v31, 1 }
  0x44   : > { %v530_v46 = vsel %vm529_vm7, %v498_v29, %v528_v45  ;;  %v396_v4 = vmax.f32 %v976_v36, %v395_v44  ;;  %v403_v6 = vmax.f32 %v401_v56, %v402_v33  ;;  %v410_v7 = vmax.f32 %v408_v57, %v409_v63 }
  0x45   : > { %v532_v2 = vsel %vm531_vm8, %v505_v37, %v530_v46  ;;  %v417_v8 = vmax.f32 %v415_v58, %v416_v0  ;;  %v424_v9 = vmax.f32 %v422_v60, %v423_v34  ;;  %v431_v10 = vmax.f32 %v429_v61, %v430_v1 }
  0x46   : > { %v534_v3 = vsel %vm533_vm9, %v512_v39, %v532_v2  ;;  %v438_v11 = vmax.f32 %v436_v30, %v437_v35  ;;  %v445_v12 = vmax.f32 %v443_v31, %v444_v47 }
  0x47   : > { %v536_v5 = vrot.slane %v534_v3, 7 }
  0x49   : > { %v538_v13 = vsel %vm537_vm10, -inf, %v536_v5 }
  0x4a   : > { %v540_v14 = vrot.slane %v538_v13, 1  ;;  %v541_v15 = vrot.slane %v538_v13, 2  ;;  %v542_v16 = vrot.slane %v538_v13, 3  ;;  %v543_v17 = vrot.slane %v538_v13, 4 }
  0x4b   : > { %v544_v18 = vrot.slane %v538_v13, 5  ;;  %v545_v19 = vrot.slane %v538_v13, 6  ;;  %v546_v20 = vrot.slane %v538_v13, 7  ;;  %v555_v23 = vmax.f32 %v396_v4, %v538_v13 }
  0x4c   : > { %v556_v36 = vmax.f32 %v403_v6, %v540_v14  ;;  %v557_v21 = vmax.f32 %v410_v7, %v541_v15  ;;  %v558_v22 = vmax.f32 %v417_v8, %v542_v16  ;;  %v559_v24 = vmax.f32 %v424_v9, %v543_v17 }
  0x4d   : > { %v560_v25 = vmax.f32 %v431_v10, %v544_v18  ;;  %v561_v26 = vmax.f32 %v438_v11, %v545_v19  ;;  %v562_v27 = vmax.f32 %v445_v12, %v546_v20  ;;  %v785_v28 = vpack.c.bf16 %v555_v23, %v555_v23 }
  0x4e   : > { %v786_v40 = vpack.c.bf16 %v556_v36, %v556_v36  ;;  %v787_v41 = vpack.c.bf16 %v557_v21, %v557_v21  ;;  %v788_v42 = vpack.c.bf16 %v558_v22, %v558_v22  ;;  %v789_v43 = vpack.c.bf16 %v559_v24, %v559_v24 }
  0x4f   : > { %v790_v48 = vpack.c.bf16 %v560_v25, %v560_v25  ;;  %v791_v49 = vpack.c.bf16 %v561_v26, %v561_v26  ;;  %v792_v50 = vpack.c.bf16 %v562_v27, %v562_v27  ;;  %v595_v51 = vunpack.c.l.b16 %v785_v28 }
  0x50   : > { %v596_v52 = vunpack.c.l.b16 %v786_v40  ;;  %v597_v53 = vunpack.c.l.b16 %v787_v41  ;;  %v598_v54 = vunpack.c.l.b16 %v788_v42  ;;  %v599_v55 = vunpack.c.l.b16 %v789_v43 }
  0x51   : > { %v600_v56 = vunpack.c.l.b16 %v790_v48  ;;  %v601_v57 = vunpack.c.l.b16 %v791_v49  ;;  %v602_v58 = vunpack.c.l.b16 %v792_v50 }
  0x52   : > { %v603_v59 = vrot.slane %v596_v52, 7  ;;  %v605_v60 = vrot.slane %v597_v53, 6  ;;  %v607_v61 = vrot.slane %v598_v54, 5  ;;  %v609_v62 = vrot.slane %v599_v55, 4 }
  0x53   : > { %v611_v30 = vrot.slane %v600_v56, 3  ;;  %v613_v37 = vrot.slane %v601_v57, 2  ;;  %v615_v39 = vrot.slane %v602_v58, 1 }
  0x54   : > { %v604_v29 = vsel %vm521_vm3, %v603_v59, %v595_v51 }
  0x55   : > { %v606_v31 = vsel %vm523_vm4, %v605_v60, %v604_v29 }
  0x56   : > { %v608_v38 = vsel %vm525_vm5, %v607_v61, %v606_v31 }
  0x57   : > { %v610_v32 = vsel %vm527_vm6, %v609_v62, %v608_v38 }
  0x58   : > { %v612_v44 = vsel %vm529_vm7, %v611_v30, %v610_v32 }
  0x59   : > { %v614_v33 = vsel %vm531_vm8, %v613_v37, %v612_v44 }
  0x5a   : > { %v616_v45 = vsel %vm533_vm9, %v615_v39, %v614_v33 }
  0x5b   : > { %v617_v63 = vpack.c.b16 %v616_v45, %v616_v45 }
  0x5d   : > { %620 = vst.msk [vmem:[%s312_s12] sm:$0xf] %vm619_vm11, %v617_v63 }
  0x5e PF: > { %s13_s16 = sadd.s32 1, %s871_s16   ;;  %s1074_s12 = smov %s863_s14 }
  0x5f   : > { %p10_p12 = scmp.ge.s32.totalorder %s13_s16, 50   ;;  %s1075_s13 = smov %s867_s15 }
  0x60   : > { %s1076_s14 = smov %s1079_s17  ;;  %s1077_s15 = smov %s1083_s18 }
  0x61   :  { %12 = sbr.rel (!%p10_p12) target bundleno = 3 (0x3), region = 68 }

// kernel: forward.18
= control target key start
LH: loop header
LB: loop body
LE: loop exit
PB: predicated region body
PF: predicated region fallthrough
CT: control target
= control target key end

     0   :  { %s1971_s21 = smov 0   ;;  %s1973_s22 = smov 0   ;;  %s2182_s0 = inlined_call_operand.vmem [shape: bf16[1536,256], index: 0, kind: input, shape index: {}]   ;;  %s2183_s1 = inlined_call_operand.vmem [shape: bf16[256,128], index: 1, kind: input, shape index: {}]   ;;  %s2184_s2 = inlined_call_operand.vmem [shape: f32[1,256], index: 2, kind: input, shape index: {}]   ;;  %s2185_s3 = inlined_call_operand.vmem [shape: f32[1,256], index: 3, kind: input, shape index: {}]   ;;  %s2186_s4 = inlined_call_operand.vmem [shape: f32[1,128], index: 4, kind: input, shape index: {}]   ;;  %s2187_s5 = inlined_call_operand.vmem [shape: f32[1,128], index: 5, kind: input, shape index: {}]   ;;  %s2188_s6 = inlined_call_operand.vmem [shape: bf16[1536,128], index: 6, kind: output, shape index: {}]  }
   0x1   :  { %s1975_s23 = smov 0  }
   0x2 LB: > { %s35_s2 = sadd.s32 1, %s1930_s22  ;;  %p1478_p0 = scmp.ge.s32.totalorder %s1934_s23, 1  ;;  %s1934_s23 = sphi %s1975_s23, %s16_s23   ;;  %s1930_s22 = sphi %s1973_s22, %s2190_s22   ;;  %s1926_s21 = sphi %s1971_s21, %s2189_s21  }
   0x3   : > { %p37_p1 = scmp.ge.s32.totalorder %s35_s2, 6  ;;  %p294_p2 = scmp.lt.s32.totalorder %s1934_s23, 7 }
   0x5   : > { %s2192_s2 = smov (%p37_p1, %s35_s2), 0  ;;  %p295_p3 = pnand %p1478_p0, %p294_p2 }
   0x6   : > { %v1848_v0 = vld [vmem:[%s2183_s1 + $0x40] sm:$0xff] (!%p295_p3)   ;;  %s1479_s25 = sshll.u32 (!%p295_p3), %s1926_s21, 5  ;;  %v1850_v2 = vld [vmem:[%s2183_s1 + $0x48] sm:$0xff] (!%p295_p3)   ;;  %v1852_v4 = vld [vmem:[%s2183_s1 + $0x50] sm:$0xff] (!%p295_p3)  }
   0x7   : > { %298 = sbr.rel (%p295_p3) target bundleno = 322 (0x142), region = 44  ;;  %v1849_v1 = vld [vmem:[%s2183_s1] sm:$0xff] (!%p295_p3)   ;;  %1696 = vmatprep.subr.bf16.mxu0 (!%p295_p3), %v1848_v0  ;;  %1808 = vmatprep.subr.bf16.mxu1 (!%p295_p3), %v1848_v0  ;;  %v1851_v3 = vld [vmem:[%s2183_s1 + $0x8] sm:$0xff] (!%p295_p3)   ;;  %p356_p4 = scmp.lt.s32.totalorder (!%p295_p3), %s1479_s25, 191  ;;  %v1853_v5 = vld [vmem:[%s2183_s1 + $0x10] sm:$0xff] (!%p295_p3)  }
   0x8   : > { %1697 = vmatpush3.bf16.msra.mxu0 (!%p295_p3), %v1849_v1  ;;  %1816 = vmatpush3.bf16.msra.mxu1 (!%p295_p3), %v1849_v1  ;;  %v1854_v6 = vld [vmem:[%s2183_s1 + $0x58] sm:$0xff] (!%p295_p3)   ;;  %v1856_v8 = vld [vmem:[%s2183_s1 + $0x60] sm:$0xff] (!%p295_p3)   ;;  %v1858_v10 = vld [vmem:[%s2183_s1 + $0x68] sm:$0xff] (!%p295_p3)  }
   0x9   : > { %1698 = vmatprep.subr.bf16.mxu0 (!%p295_p3), %v1850_v2  ;;  %1809 = vmatprep.subr.bf16.mxu1 (!%p295_p3), %v1850_v2  ;;  %v1855_v7 = vld [vmem:[%s2183_s1 + $0x18] sm:$0xff] (!%p295_p3)   ;;  %v1857_v9 = vld [vmem:[%s2183_s1 + $0x20] sm:$0xff] (!%p295_p3)   ;;  %v1859_v13 = vld [vmem:[%s2183_s1 + $0x28] sm:$0xff] (!%p295_p3)  }
   0xa   : > { %v1860_v14 = vld [vmem:[%s2183_s1 + $0x70] sm:$0xff] (!%p295_p3)   ;;  %v1862_v16 = vld [vmem:[%s2183_s1 + $0x78] sm:$0xff] (!%p295_p3)   ;;  %v2080_v51 = vld [vmem:[%s2186_s4] ss:$0 sm:$0xff] (!%p295_p3) }
   0xb   : > { %v1861_v15 = vld [vmem:[%s2183_s1 + $0x30] sm:$0xff] (!%p295_p3)   ;;  %v1863_v17 = vld [vmem:[%s2183_s1 + $0x38] sm:$0xff] (!%p295_p3)   ;;  %v2085_v57 = vld [vmem:[%s2187_s5] ss:$0 sm:$0xff] (!%p295_p3) }
   0xc   : > { %1699 = vmatpush3.bf16.msra.mxu0 (!%p295_p3), %v1851_v3  ;;  %1817 = vmatpush3.bf16.msra.mxu1 (!%p295_p3), %v1851_v3 }
   0xd   : > { %1700 = vmatprep.subr.bf16.mxu0 (!%p295_p3), %v1852_v4  ;;  %1810 = vmatprep.subr.bf16.mxu1 (!%p295_p3), %v1852_v4 }
   0xe   : > { %s2194_s25 = smov (!%p356_p4, %s1479_s25), 191 }
   0xf   : > { %s1568_s16 = sshll.u32 %s2194_s25, 3  ;;  %s1483_s18 = sshll.u32 %s2194_s25, 2 }
  0x10   : > { %1701 = vmatpush3.bf16.msra.mxu0 %v1853_v5  ;;  %1818 = vmatpush3.bf16.msra.mxu1 %v1853_v5  ;;  %s2022_s21 = scalar_lea.vmem %s2182_s0, %s1568_s16  ;;  %s2099_s25 = scalar_lea.vmem %s2188_s6, %s1483_s18 }
  0x11   : > { %1702 = vmatprep.subr.bf16.mxu0 %v1854_v6  ;;  %1811 = vmatprep.subr.bf16.mxu1 %v1854_v6  ;;  %v1866_v11 = vld [vmem:[%s2022_s21 + $0x4] ss:$8 sps:$4 sm:$0xff]   ;;  %v1864_v18 = vld [vmem:[%s2022_s21] ss:$8 sps:$4 sm:$0xff]   ;;  %v1870_v20 = vld [vmem:[%s2022_s21 + $0x14] ss:$8 sps:$4 sm:$0xff]  }
  0x12   : > { %v1869_v12 = vld [vmem:[%s2022_s21 + $0x84] ss:$8 sps:$4 sm:$0xff]   ;;  %821 = vmatprep.mubr.bf16.mxu0 %v1866_v11  ;;  %v1867_v19 = vld [vmem:[%s2022_s21 + $0x80] ss:$8 sps:$4 sm:$0xff]   ;;  %v1872_v21 = vld [vmem:[%s2022_s21 + $0x94] ss:$8 sps:$4 sm:$0xff]  }
  0x13   : > { %885 = vmatprep.mubr.bf16.mxu1 %v1869_v12  ;;  %v1874_v22 = vld [vmem:[%s2022_s21 + $0x10] ss:$8 sps:$4 sm:$0xff]   ;;  %v1876_v24 = vld [vmem:[%s2022_s21 + $0x24] ss:$8 sps:$4 sm:$0xff]   ;;  %v1880_v26 = vld [vmem:[%s2022_s21 + $0x20] ss:$8 sps:$4 sm:$0xff]  }
  0x14   : > { %1703 = vmatpush3.bf16.msra.mxu0 %v1855_v7  ;;  %1819 = vmatpush3.bf16.msra.mxu1 %v1855_v7  ;;  %v1875_v23 = vld [vmem:[%s2022_s21 + $0x90] ss:$8 sps:$4 sm:$0xff]   ;;  %v1878_v25 = vld [vmem:[%s2022_s21 + $0xa4] ss:$8 sps:$4 sm:$0xff]   ;;  %v1881_v27 = vld [vmem:[%s2022_s21 + $0xa0] ss:$8 sps:$4 sm:$0xff]  }
  0x15   : > { %1704 = vmatprep.subr.bf16.mxu0 %v1856_v8  ;;  %1812 = vmatprep.subr.bf16.mxu1 %v1856_v8  ;;  %v1882_v28 = vld [vmem:[%s2022_s21 + $0x34] ss:$8 sps:$4 sm:$0xff]   ;;  %v1886_v30 = vld [vmem:[%s2022_s21 + $0x30] ss:$8 sps:$4 sm:$0xff]   ;;  %v1888_v32 = vld [vmem:[%s2022_s21 + $0x44] ss:$8 sps:$4 sm:$0xff]  }
  0x16   : > { %v1884_v29 = vld [vmem:[%s2022_s21 + $0xb4] ss:$8 sps:$4 sm:$0xff]   ;;  %v1887_v31 = vld [vmem:[%s2022_s21 + $0xb0] ss:$8 sps:$4 sm:$0xff]   ;;  %v1890_v33 = vld [vmem:[%s2022_s21 + $0xc4] ss:$8 sps:$4 sm:$0xff]  }
  0x17   : > { %v1892_v34 = vld [vmem:[%s2022_s21 + $0x40] ss:$8 sps:$4 sm:$0xff]   ;;  %v1894_v36 = vld [vmem:[%s2022_s21 + $0x54] ss:$8 sps:$4 sm:$0xff]   ;;  %v1898_v38 = vld [vmem:[%s2022_s21 + $0x50] ss:$8 sps:$4 sm:$0xff]  }
  0x18   : > { %1705 = vmatpush3.bf16.msra.mxu0 %v1857_v9  ;;  %1820 = vmatpush3.bf16.msra.mxu1 %v1857_v9  ;;  %v1893_v35 = vld [vmem:[%s2022_s21 + $0xc0] ss:$8 sps:$4 sm:$0xff]   ;;  %v1896_v37 = vld [vmem:[%s2022_s21 + $0xd4] ss:$8 sps:$4 sm:$0xff]   ;;  %v1899_v39 = vld [vmem:[%s2022_s21 + $0xd0] ss:$8 sps:$4 sm:$0xff]  }
  0x19   : > { %1706 = vmatprep.subr.bf16.mxu0 %v1858_v10  ;;  %1813 = vmatprep.subr.bf16.mxu1 %v1858_v10  ;;  %v1900_v40 = vld [vmem:[%s2022_s21 + $0x64] ss:$8 sps:$4 sm:$0xff]   ;;  %v1904_v42 = vld [vmem:[%s2022_s21 + $0x60] ss:$8 sps:$4 sm:$0xff]   ;;  %v1906_v44 = vld [vmem:[%s2022_s21 + $0x74] ss:$8 sps:$4 sm:$0xff]  }
  0x1a   : > { %v1902_v41 = vld [vmem:[%s2022_s21 + $0xe4] ss:$8 sps:$4 sm:$0xff]   ;;  %v1905_v43 = vld [vmem:[%s2022_s21 + $0xe0] ss:$8 sps:$4 sm:$0xff]   ;;  %v1908_v45 = vld [vmem:[%s2022_s21 + $0xf4] ss:$8 sps:$4 sm:$0xff]  }
  0x1b   : > { %v1910_v46 = vld [vmem:[%s2022_s21 + $0x70] ss:$8 sps:$4 sm:$0xff]  }
  0x1c   : > { %1707 = vmatpush3.bf16.msra.mxu0 %v1859_v13  ;;  %1821 = vmatpush3.bf16.msra.mxu1 %v1859_v13  ;;  %v1911_v47 = vld [vmem:[%s2022_s21 + $0xf0] ss:$8 sps:$4 sm:$0xff]  }
  0x1d   : > { %1708 = vmatprep.subr.bf16.mxu0 %v1860_v14  ;;  %1814 = vmatprep.subr.bf16.mxu1 %v1860_v14 }
  0x20   : > { %1709 = vmatpush3.bf16.msra.mxu0 %v1861_v15  ;;  %1822 = vmatpush3.bf16.msra.mxu1 %v1861_v15 }
  0x21   : > { %1710 = vmatprep.subr.bf16.mxu0 %v1862_v16  ;;  %1815 = vmatprep.subr.bf16.mxu1 %v1862_v16 }
  0x24   : > { %1711 = vmatpush3.bf16.msra.mxu0 %v1863_v17  ;;  %1823 = vmatpush3.bf16.msra.mxu1 %v1863_v17 }
  0x27   : > { %822 = vmatmul.mubr.bf16.vlgmr.msra.gmra.mrb[0].mxu0 %v1864_v18  ;;  %886 = vmatmul.mubr.bf16.vlgmr.msra.gmra.mrb[0].mxu1 %v1867_v19 }
  0x28   : > { %829 = vmatprep.mubr.bf16.mxu0 %v1870_v20  ;;  %893 = vmatprep.mubr.bf16.mxu1 %v1872_v21 }
  0x2f   : > { %830 = vmatmul.mubr.bf16.gmra.mrb[4].mxu0 %v1874_v22  ;;  %894 = vmatmul.mubr.bf16.gmra.mrb[4].mxu1 %v1875_v23 }
  0x30   : > { %837 = vmatprep.mubr.bf16.mxu0 %v1876_v24  ;;  %901 = vmatprep.mubr.bf16.mxu1 %v1878_v25 }
  0x37   : > { %838 = vmatmul.mubr.bf16.gmra.mrb[8].mxu0 %v1880_v26  ;;  %902 = vmatmul.mubr.bf16.gmra.mrb[8].mxu1 %v1881_v27 }
  0x38   : > { %845 = vmatprep.mubr.bf16.mxu0 %v1882_v28  ;;  %909 = vmatprep.mubr.bf16.mxu1 %v1884_v29 }
  0x3f   : > { %846 = vmatmul.mubr.bf16.gmra.mrb[12].mxu0 %v1886_v30  ;;  %910 = vmatmul.mubr.bf16.gmra.mrb[12].mxu1 %v1887_v31 }
  0x40   : > { %853 = vmatprep.mubr.bf16.mxu0 %v1888_v32  ;;  %917 = vmatprep.mubr.bf16.mxu1 %v1890_v33 }
  0x47   : > { %854 = vmatmul.mubr.bf16.gmra.mrb[16].mxu0 %v1892_v34  ;;  %918 = vmatmul.mubr.bf16.gmra.mrb[16].mxu1 %v1893_v35 }
  0x48   : > { %861 = vmatprep.mubr.bf16.mxu0 %v1894_v36  ;;  %925 = vmatprep.mubr.bf16.mxu1 %v1896_v37 }
  0x4f   : > { %862 = vmatmul.mubr.bf16.gmra.mrb[20].mxu0 %v1898_v38  ;;  %926 = vmatmul.mubr.bf16.gmra.mrb[20].mxu1 %v1899_v39 }
  0x50   : > { %869 = vmatprep.mubr.bf16.mxu0 %v1900_v40  ;;  %933 = vmatprep.mubr.bf16.mxu1 %v1902_v41 }
  0x57   : > { %870 = vmatmul.mubr.bf16.gmra.mrb[24].mxu0 %v1904_v42  ;;  %934 = vmatmul.mubr.bf16.gmra.mrb[24].mxu1 %v1905_v43 }
  0x58   : > { %877 = vmatprep.mubr.bf16.mxu0 %v1906_v44  ;;  %941 = vmatprep.mubr.bf16.mxu1 %v1908_v45 }
  0x5f   : > { %878 = vmatmul.mubr.bf16.gmra.mrb[28].mxu0 %v1910_v46  ;;  %942 = vmatmul.mubr.bf16.gmra.mrb[28].mxu1 %v1911_v47 }
  0xfa   : > { %v1712_v48 = vpop.f32.mrb[0].mxu0  ;;  %v1760_v49 = vpop.f32.mrb[0].mxu1 }
  0xfb   : > { %v1713_v50 = vpop.f32.mrb[1].mxu0  ;;  %v1761_v52 = vpop.f32.mrb[1].mxu1 }
  0xfc   : > { %v1714_v53 = vadd.f32 %v1713_v50, %v1712_v48  ;;  %v1762_v54 = vadd.f32 %v1761_v52, %v1760_v49  ;;  %v1715_v55 = vpop.f32.mrb[2].mxu0  ;;  %v1763_v56 = vpop.f32.mrb[2].mxu1 }
  0xfd   : > { %v1716_v58 = vpop.f32.mrb[3].mxu0  ;;  %v1764_v59 = vpop.f32.mrb[3].mxu1 }
  0xfe   : > { %v1056_v60 = vmul.f32 %v1714_v53, %v2080_v51  ;;  %v1072_v61 = vmul.f32 %v1762_v54, %v2080_v51  ;;  %v1717_v62 = vadd.f32 %v1716_v58, %v1715_v55  ;;  %v1765_v63 = vadd.f32 %v1764_v59, %v1763_v56 }
 0x100   : > { %v1095_v0 = vadd.f32 %v2085_v57, %v1056_v60  ;;  %v1111_v1 = vadd.f32 %v2085_v57, %v1072_v61  ;;  %v1057_v2 = vmul.f32 %v1717_v62, %v2080_v51  ;;  %v1073_v3 = vmul.f32 %v1765_v63, %v2080_v51 }
 0x102   : > { %v1096_v4 = vadd.f32 %v2085_v57, %v1057_v2  ;;  %v1112_v5 = vadd.f32 %v2085_v57, %v1073_v3  ;;  %v1718_v6 = vpop.f32.mrb[4].mxu0  ;;  %v1766_v7 = vpop.f32.mrb[4].mxu1  ;;  %v1127_v8 = vmax.f32 %v1095_v0, 0.0  ;;  %v1143_v9 = vmax.f32 %v1111_v1, 0.0 }
 0x103   : > { %v1719_v10 = vpop.f32.mrb[5].mxu0  ;;  %v1767_v11 = vpop.f32.mrb[5].mxu1 }
 0x104   : > { %v1128_v12 = vmax.f32 %v1096_v4, 0.0  ;;  %v1144_v13 = vmax.f32 %v1112_v5, 0.0  ;;  %v1720_v14 = vadd.f32 %v1719_v10, %v1718_v6  ;;  %v1768_v15 = vadd.f32 %v1767_v11, %v1766_v7  ;;  %v1721_v16 = vpop.f32.mrb[6].mxu0  ;;  %v1769_v17 = vpop.f32.mrb[6].mxu1 }
 0x105   : > { %v1722_v18 = vpop.f32.mrb[7].mxu0  ;;  %v1770_v19 = vpop.f32.mrb[7].mxu1 }
 0x106   : > { %v1604_v20 = vpack.c.bf16 %v1128_v12, %v1127_v8  ;;  %v1644_v21 = vpack.c.bf16 %v1144_v13, %v1143_v9  ;;  %v1058_v22 = vmul.f32 %v1720_v14, %v2080_v51  ;;  %v1074_v23 = vmul.f32 %v1768_v15, %v2080_v51 }
 0x107   : > { %v1723_v24 = vadd.f32 %v1722_v18, %v1721_v16  ;;  %v1771_v25 = vadd.f32 %v1770_v19, %v1769_v17 }
 0x108   : > { %1605 = vst [vmem:[%s2099_s25] sm:$0xff] %v1604_v20   ;;  %1688 = vst [vmem:[%s2099_s25 + $0x40] sm:$0xff] %v1644_v21   ;;  %v1097_v26 = vadd.f32 %v2085_v57, %v1058_v22  ;;  %v1113_v27 = vadd.f32 %v2085_v57, %v1074_v23 }
 0x109   : > { %v1059_v28 = vmul.f32 %v1723_v24, %v2080_v51  ;;  %v1075_v29 = vmul.f32 %v1771_v25, %v2080_v51 }
 0x10a   : > { %v1724_v30 = vpop.f32.mrb[8].mxu0  ;;  %v1772_v31 = vpop.f32.mrb[8].mxu1  ;;  %v1129_v40 = vmax.f32 %v1097_v26, 0.0  ;;  %v1145_v41 = vmax.f32 %v1113_v27, 0.0 }
 0x10b   : > { %v1098_v32 = vadd.f32 %v2085_v57, %v1059_v28  ;;  %v1114_v33 = vadd.f32 %v2085_v57, %v1075_v29  ;;  %v1725_v34 = vpop.f32.mrb[9].mxu0  ;;  %v1773_v35 = vpop.f32.mrb[9].mxu1 }
 0x10c   : > { %v1726_v36 = vadd.f32 %v1725_v34, %v1724_v30  ;;  %v1774_v37 = vadd.f32 %v1773_v35, %v1772_v31  ;;  %v1727_v38 = vpop.f32.mrb[10].mxu0  ;;  %v1775_v39 = vpop.f32.mrb[10].mxu1 }
 0x10d   : > { %v1130_v42 = vmax.f32 %v1098_v32, 0.0  ;;  %v1146_v43 = vmax.f32 %v1114_v33, 0.0  ;;  %v1728_v44 = vpop.f32.mrb[11].mxu0  ;;  %v1776_v45 = vpop.f32.mrb[11].mxu1 }
 0x10e   : > { %v1060_v46 = vmul.f32 %v1726_v36, %v2080_v51  ;;  %v1076_v47 = vmul.f32 %v1774_v37, %v2080_v51  ;;  %v1729_v48 = vadd.f32 %v1728_v44, %v1727_v38  ;;  %v1777_v49 = vadd.f32 %v1776_v45, %v1775_v39 }
 0x10f   : > { %v1609_v50 = vpack.c.bf16 %v1130_v42, %v1129_v40  ;;  %v1649_v52 = vpack.c.bf16 %v1146_v43, %v1145_v41 }
 0x110   : > { %v1099_v53 = vadd.f32 %v2085_v57, %v1060_v46  ;;  %v1115_v54 = vadd.f32 %v2085_v57, %v1076_v47  ;;  %v1061_v55 = vmul.f32 %v1729_v48, %v2080_v51  ;;  %v1077_v56 = vmul.f32 %v1777_v49, %v2080_v51 }
 0x111   : > { %1681 = vst [vmem:[%s2099_s25 + $0x8] sm:$0xff] %v1609_v50   ;;  %1689 = vst [vmem:[%s2099_s25 + $0x48] sm:$0xff] %v1649_v52  }
 0x112   : > { %v1100_v58 = vadd.f32 %v2085_v57, %v1061_v55  ;;  %v1116_v59 = vadd.f32 %v2085_v57, %v1077_v56  ;;  %v1730_v60 = vpop.f32.mrb[12].mxu0  ;;  %v1778_v61 = vpop.f32.mrb[12].mxu1  ;;  %v1131_v62 = vmax.f32 %v1099_v53, 0.0  ;;  %v1147_v63 = vmax.f32 %v1115_v54, 0.0 }
 0x113   : > { %v1731_v0 = vpop.f32.mrb[13].mxu0  ;;  %v1779_v1 = vpop.f32.mrb[13].mxu1 }
 0x114   : > { %v1132_v2 = vmax.f32 %v1100_v58, 0.0  ;;  %v1148_v3 = vmax.f32 %v1116_v59, 0.0  ;;  %v1732_v4 = vadd.f32 %v1731_v0, %v1730_v60  ;;  %v1780_v5 = vadd.f32 %v1779_v1, %v1778_v61  ;;  %v1733_v6 = vpop.f32.mrb[14].mxu0  ;;  %v1781_v7 = vpop.f32.mrb[14].mxu1 }
 0x115   : > { %v1734_v8 = vpop.f32.mrb[15].mxu0  ;;  %v1782_v9 = vpop.f32.mrb[15].mxu1 }
 0x116   : > { %v1614_v10 = vpack.c.bf16 %v1132_v2, %v1131_v62  ;;  %v1654_v11 = vpack.c.bf16 %v1148_v3, %v1147_v63  ;;  %v1062_v12 = vmul.f32 %v1732_v4, %v2080_v51  ;;  %v1078_v13 = vmul.f32 %v1780_v5, %v2080_v51 }
 0x117   : > { %v1735_v14 = vadd.f32 %v1734_v8, %v1733_v6  ;;  %v1783_v15 = vadd.f32 %v1782_v9, %v1781_v7 }
 0x118   : > { %1682 = vst [vmem:[%s2099_s25 + $0x10] sm:$0xff] %v1614_v10   ;;  %1690 = vst [vmem:[%s2099_s25 + $0x50] sm:$0xff] %v1654_v11   ;;  %v1101_v16 = vadd.f32 %v2085_v57, %v1062_v12  ;;  %v1117_v17 = vadd.f32 %v2085_v57, %v1078_v13 }
 0x119   : > { %v1063_v18 = vmul.f32 %v1735_v14, %v2080_v51  ;;  %v1079_v19 = vmul.f32 %v1783_v15, %v2080_v51 }
 0x11a   : > { %v1736_v20 = vpop.f32.mrb[16].mxu0  ;;  %v1784_v21 = vpop.f32.mrb[16].mxu1  ;;  %v1133_v30 = vmax.f32 %v1101_v16, 0.0  ;;  %v1149_v31 = vmax.f32 %v1117_v17, 0.0 }
 0x11b   : > { %v1102_v22 = vadd.f32 %v2085_v57, %v1063_v18  ;;  %v1118_v23 = vadd.f32 %v2085_v57, %v1079_v19  ;;  %v1737_v24 = vpop.f32.mrb[17].mxu0  ;;  %v1785_v25 = vpop.f32.mrb[17].mxu1 }
 0x11c   : > { %v1738_v26 = vadd.f32 %v1737_v24, %v1736_v20  ;;  %v1786_v27 = vadd.f32 %v1785_v25, %v1784_v21  ;;  %v1739_v28 = vpop.f32.mrb[18].mxu0  ;;  %v1787_v29 = vpop.f32.mrb[18].mxu1 }
 0x11d   : > { %v1134_v32 = vmax.f32 %v1102_v22, 0.0  ;;  %v1150_v33 = vmax.f32 %v1118_v23, 0.0  ;;  %v1740_v34 = vpop.f32.mrb[19].mxu0  ;;  %v1788_v35 = vpop.f32.mrb[19].mxu1 }
 0x11e   : > { %v1064_v36 = vmul.f32 %v1738_v26, %v2080_v51  ;;  %v1080_v37 = vmul.f32 %v1786_v27, %v2080_v51  ;;  %v1741_v38 = vadd.f32 %v1740_v34, %v1739_v28  ;;  %v1789_v39 = vadd.f32 %v1788_v35, %v1787_v29 }
 0x11f   : > { %v1619_v40 = vpack.c.bf16 %v1134_v32, %v1133_v30  ;;  %v1659_v41 = vpack.c.bf16 %v1150_v33, %v1149_v31 }
 0x120   : > { %v1103_v42 = vadd.f32 %v2085_v57, %v1064_v36  ;;  %v1119_v43 = vadd.f32 %v2085_v57, %v1080_v37  ;;  %v1065_v44 = vmul.f32 %v1741_v38, %v2080_v51  ;;  %v1081_v45 = vmul.f32 %v1789_v39, %v2080_v51 }
 0x121   : > { %1683 = vst [vmem:[%s2099_s25 + $0x18] sm:$0xff] %v1619_v40   ;;  %1691 = vst [vmem:[%s2099_s25 + $0x58] sm:$0xff] %v1659_v41  }
 0x122   : > { %v1104_v46 = vadd.f32 %v2085_v57, %v1065_v44  ;;  %v1120_v47 = vadd.f32 %v2085_v57, %v1081_v45  ;;  %v1742_v48 = vpop.f32.mrb[20].mxu0  ;;  %v1790_v49 = vpop.f32.mrb[20].mxu1  ;;  %v1135_v50 = vmax.f32 %v1103_v42, 0.0  ;;  %v1151_v52 = vmax.f32 %v1119_v43, 0.0 }
 0x123   : > { %v1743_v53 = vpop.f32.mrb[21].mxu0  ;;  %v1791_v54 = vpop.f32.mrb[21].mxu1 }
 0x124   : > { %v1136_v55 = vmax.f32 %v1104_v46, 0.0  ;;  %v1152_v56 = vmax.f32 %v1120_v47, 0.0  ;;  %v1744_v58 = vadd.f32 %v1743_v53, %v1742_v48  ;;  %v1792_v59 = vadd.f32 %v1791_v54, %v1790_v49  ;;  %v1745_v60 = vpop.f32.mrb[22].mxu0  ;;  %v1793_v61 = vpop.f32.mrb[22].mxu1 }
 0x125   : > { %v1746_v62 = vpop.f32.mrb[23].mxu0  ;;  %v1794_v63 = vpop.f32.mrb[23].mxu1 }
 0x126   : > { %v1624_v0 = vpack.c.bf16 %v1136_v55, %v1135_v50  ;;  %v1664_v1 = vpack.c.bf16 %v1152_v56, %v1151_v52  ;;  %v1066_v2 = vmul.f32 %v1744_v58, %v2080_v51  ;;  %v1082_v3 = vmul.f32 %v1792_v59, %v2080_v51 }
 0x127   : > { %v1747_v4 = vadd.f32 %v1746_v62, %v1745_v60  ;;  %v1795_v5 = vadd.f32 %v1794_v63, %v1793_v61 }
 0x128   : > { %1684 = vst [vmem:[%s2099_s25 + $0x20] sm:$0xff] %v1624_v0   ;;  %1692 = vst [vmem:[%s2099_s25 + $0x60] sm:$0xff] %v1664_v1   ;;  %v1105_v6 = vadd.f32 %v2085_v57, %v1066_v2  ;;  %v1121_v7 = vadd.f32 %v2085_v57, %v1082_v3 }
 0x129   : > { %v1067_v8 = vmul.f32 %v1747_v4, %v2080_v51  ;;  %v1083_v9 = vmul.f32 %v1795_v5, %v2080_v51 }
 0x12a   : > { %v1748_v10 = vpop.f32.mrb[24].mxu0  ;;  %v1796_v11 = vpop.f32.mrb[24].mxu1  ;;  %v1137_v20 = vmax.f32 %v1105_v6, 0.0  ;;  %v1153_v21 = vmax.f32 %v1121_v7, 0.0 }
 0x12b   : > { %v1106_v12 = vadd.f32 %v2085_v57, %v1067_v8  ;;  %v1122_v13 = vadd.f32 %v2085_v57, %v1083_v9  ;;  %v1749_v14 = vpop.f32.mrb[25].mxu0  ;;  %v1797_v15 = vpop.f32.mrb[25].mxu1 }
 0x12c   : > { %v1750_v16 = vadd.f32 %v1749_v14, %v1748_v10  ;;  %v1798_v17 = vadd.f32 %v1797_v15, %v1796_v11  ;;  %v1751_v18 = vpop.f32.mrb[26].mxu0  ;;  %v1799_v19 = vpop.f32.mrb[26].mxu1 }
 0x12d   : > { %v1138_v22 = vmax.f32 %v1106_v12, 0.0  ;;  %v1154_v23 = vmax.f32 %v1122_v13, 0.0  ;;  %v1752_v24 = vpop.f32.mrb[27].mxu0  ;;  %v1800_v25 = vpop.f32.mrb[27].mxu1 }
 0x12e   : > { %v1068_v26 = vmul.f32 %v1750_v16, %v2080_v51  ;;  %v1084_v27 = vmul.f32 %v1798_v17, %v2080_v51  ;;  %v1753_v28 = vadd.f32 %v1752_v24, %v1751_v18  ;;  %v1801_v29 = vadd.f32 %v1800_v25, %v1799_v19 }
 0x12f   : > { %v1629_v30 = vpack.c.bf16 %v1138_v22, %v1137_v20  ;;  %v1669_v31 = vpack.c.bf16 %v1154_v23, %v1153_v21 }
 0x130   : > { %v1107_v32 = vadd.f32 %v2085_v57, %v1068_v26  ;;  %v1123_v33 = vadd.f32 %v2085_v57, %v1084_v27  ;;  %v1069_v34 = vmul.f32 %v1753_v28, %v2080_v51  ;;  %v1085_v35 = vmul.f32 %v1801_v29, %v2080_v51 }
 0x131   : > { %1685 = vst [vmem:[%s2099_s25 + $0x28] sm:$0xff] %v1629_v30   ;;  %1693 = vst [vmem:[%s2099_s25 + $0x68] sm:$0xff] %v1669_v31  }
 0x132   : > { %v1108_v36 = vadd.f32 %v2085_v57, %v1069_v34  ;;  %v1124_v37 = vadd.f32 %v2085_v57, %v1085_v35  ;;  %v1754_v38 = vpop.f32.mrb[28].mxu0  ;;  %v1802_v39 = vpop.f32.mrb[28].mxu1  ;;  %v1139_v40 = vmax.f32 %v1107_v32, 0.0  ;;  %v1155_v41 = vmax.f32 %v1123_v33, 0.0 }
 0x133   : > { %v1755_v42 = vpop.f32.mrb[29].mxu0  ;;  %v1803_v43 = vpop.f32.mrb[29].mxu1 }
 0x134   : > { %v1140_v44 = vmax.f32 %v1108_v36, 0.0  ;;  %v1156_v45 = vmax.f32 %v1124_v37, 0.0  ;;  %v1756_v46 = vadd.f32 %v1755_v42, %v1754_v38  ;;  %v1804_v47 = vadd.f32 %v1803_v43, %v1802_v39  ;;  %v1757_v48 = vpop.f32.mrb[30].mxu0  ;;  %v1805_v49 = vpop.f32.mrb[30].mxu1 }
 0x135   : > { %v1758_v50 = vpop.f32.mrb[31].mxu0  ;;  %v1806_v52 = vpop.f32.mrb[31].mxu1 }
 0x136   : > { %v1634_v53 = vpack.c.bf16 %v1140_v44, %v1139_v40  ;;  %v1674_v54 = vpack.c.bf16 %v1156_v45, %v1155_v41  ;;  %v1070_v55 = vmul.f32 %v1756_v46, %v2080_v51  ;;  %v1086_v56 = vmul.f32 %v1804_v47, %v2080_v51 }
 0x137   : > { %v1759_v58 = vadd.f32 %v1758_v50, %v1757_v48  ;;  %v1807_v59 = vadd.f32 %v1806_v52, %v1805_v49 }
 0x138   : > { %1686 = vst [vmem:[%s2099_s25 + $0x30] sm:$0xff] %v1634_v53   ;;  %1694 = vst [vmem:[%s2099_s25 + $0x70] sm:$0xff] %v1674_v54   ;;  %v1109_v60 = vadd.f32 %v2085_v57, %v1070_v55  ;;  %v1125_v61 = vadd.f32 %v2085_v57, %v1086_v56 }
 0x139   : > { %v1071_v62 = vmul.f32 %v1759_v58, %v2080_v51  ;;  %v1087_v63 = vmul.f32 %v1807_v59, %v2080_v51 }
 0x13a   : > { %v1141_v2 = vmax.f32 %v1109_v60, 0.0  ;;  %v1157_v3 = vmax.f32 %v1125_v61, 0.0 }
 0x13b   : > { %v1110_v0 = vadd.f32 %v2085_v57, %v1071_v62  ;;  %v1126_v1 = vadd.f32 %v2085_v57, %v1087_v63 }
 0x13d   : > { %v1142_v4 = vmax.f32 %v1110_v0, 0.0  ;;  %v1158_v5 = vmax.f32 %v1126_v1, 0.0 }
 0x13f   : > { %v1639_v6 = vpack.c.bf16 %v1142_v4, %v1141_v2  ;;  %v1679_v7 = vpack.c.bf16 %v1158_v5, %v1157_v3 }
 0x141   : > { %1687 = vst [vmem:[%s2099_s25 + $0x38] sm:$0xff] %v1639_v6   ;;  %1695 = vst [vmem:[%s2099_s25 + $0x78] sm:$0xff] %v1679_v7  }
 0x142 PF: > { %s16_s23 = sadd.s32 1, %s1934_s23   ;;  %s2189_s21 = smov %s1930_s22 }
 0x143   : > { %p13_p5 = scmp.ge.s32.totalorder %s16_s23, 8   ;;  %s2190_s22 = smov %s2192_s2 }
 0x145   :  { %15 = sbr.rel (!%p13_p5) target bundleno = 2 (0x2), region = 97 }

// kernel: forward.20
= control target key start
LH: loop header
LB: loop body
LE: loop exit
PB: predicated region body
PF: predicated region fallthrough
CT: control target
= control target key end

     0   :  { %s1827_s21 = smov 0   ;;  %s1829_s22 = smov 0   ;;  %s2075_s0 = inlined_call_operand.vmem [shape: bf16[512,128], index: 0, kind: input, shape index: {}]   ;;  %s2076_s1 = inlined_call_operand.vmem [shape: bf16[128,128], index: 1, kind: input, shape index: {}]   ;;  %s2077_s2 = inlined_call_operand.vmem [shape: f32[1,128], index: 2, kind: input, shape index: {}]   ;;  %s2078_s3 = inlined_call_operand.vmem [shape: f32[1,128], index: 3, kind: input, shape index: {}]   ;;  %s2079_s4 = inlined_call_operand.vmem [shape: f32[1,128], index: 4, kind: input, shape index: {}]   ;;  %s2080_s5 = inlined_call_operand.vmem [shape: f32[1,128], index: 5, kind: input, shape index: {}]   ;;  %s2081_s6 = inlined_call_operand.vmem [shape: bf16[512,128], index: 6, kind: output, shape index: {}]  }
   0x1   :  { %s1831_s23 = smov 0  }
   0x2 LB: > { %s35_s24 = sadd.s32 1, %s1786_s22  ;;  %p1391_p0 = scmp.ge.s32.totalorder %s1790_s23, 1  ;;  %s1790_s23 = sphi %s1831_s23, %s16_s23   ;;  %s1786_s22 = sphi %s1829_s22, %s2083_s22   ;;  %s1782_s21 = sphi %s1827_s21, %s2082_s21  }
   0x3   : > { %p37_p1 = scmp.ge.s32.totalorder %s35_s24, 2  ;;  %p287_p2 = scmp.lt.s32.totalorder %s1790_s23, 3 }
   0x5   : > { %s2085_s24 = smov (%p37_p1, %s35_s24), 0  ;;  %p288_p3 = pnand %p1391_p0, %p287_p2 }
   0x6   : > { %v1760_v0 = vld [vmem:[%s2076_s1] sm:$0xff] (!%p288_p3)   ;;  %s1392_s27 = sshll.u32 (!%p288_p3), %s1782_s21, 5  ;;  %v1761_v1 = vld [vmem:[%s2076_s1 + $0x8] sm:$0xff] (!%p288_p3)   ;;  %v1762_v2 = vld [vmem:[%s2076_s1 + $0x10] sm:$0xff] (!%p288_p3)  }
   0x7   : > { %291 = sbr.rel (%p288_p3) target bundleno = 289 (0x121), region = 44  ;;  %p344_p4 = scmp.lt.s32.totalorder (!%p288_p3), %s1392_s27, 63  ;;  %1672 = vmatprep.subr.bf16.mxu0 (!%p288_p3), %v1760_v0  ;;  %1720 = vmatprep.subr.bf16.mxu1 (!%p288_p3), %v1760_v0  ;;  %v1763_v3 = vld [vmem:[%s2076_s1 + $0x18] sm:$0xff] (!%p288_p3)   ;;  %v1871_v5 = vld [vmem:[%s2077_s2] ss:$0 sm:$0xff] (!%p288_p3)  ;;  %v1765_v37 = vld [vmem:[%s2076_s1 + $0x28] sm:$0xff] (!%p288_p3)  }
   0x8   : > { %1673 = vmatpush3.bf16.msra.mxu0 (!%p288_p3), %v1760_v0  ;;  %1728 = vmatpush3.bf16.msra.mxu1 (!%p288_p3), %v1760_v0  ;;  %v1879_v11 = vld [vmem:[%s2078_s3] ss:$0 sm:$0xff] (!%p288_p3)  ;;  %v1766_v54 = vld [vmem:[%s2076_s1 + $0x30] sm:$0xff] (!%p288_p3)  }
   0x9   : > { %1674 = vmatprep.subr.bf16.mxu0 (!%p288_p3), %v1761_v1  ;;  %1721 = vmatprep.subr.bf16.mxu1 (!%p288_p3), %v1761_v1  ;;  %v1764_v21 = vld [vmem:[%s2076_s1 + $0x20] sm:$0xff] (!%p288_p3)  }
   0xc   : > { %1675 = vmatpush3.bf16.msra.mxu0 (!%p288_p3), %v1761_v1  ;;  %1729 = vmatpush3.bf16.msra.mxu1 (!%p288_p3), %v1761_v1 }
   0xd   : > { %1676 = vmatprep.subr.bf16.mxu0 (!%p288_p3), %v1762_v2  ;;  %1722 = vmatprep.subr.bf16.mxu1 (!%p288_p3), %v1762_v2 }
   0xe   : > { %s2087_s27 = smov (!%p344_p4, %s1392_s27), 63 }
   0xf   : > { %s1393_s8 = sshll.u32 %s2087_s27, 2 }
  0x10   : > { %s1862_s11 = scalar_lea.vmem %s2075_s0, %s1393_s8  ;;  %1677 = vmatpush3.bf16.msra.mxu0 %v1762_v2  ;;  %1730 = vmatpush3.bf16.msra.mxu1 %v1762_v2  ;;  %s2000_s13 = scalar_lea.vmem %s2081_s6, %s1393_s8 }
  0x11   : > { %v1475_v4 = vld [vmem:[%s1862_s11] sm:$0xff]   ;;  %v1618_v9 = vld [vmem:[%s1862_s11 + $0x8] sm:$0xff]   ;;  %v1619_v20 = vld [vmem:[%s1862_s11 + $0x10] sm:$0xff]   ;;  %1678 = vmatprep.subr.bf16.mxu0 %v1763_v3  ;;  %1723 = vmatprep.subr.bf16.mxu1 %v1763_v3 }
  0x12   : > { %v1476_v6 = vunpack.c.l.bf16 %v1475_v4  ;;  %v1477_v7 = vunpack.c.h.bf16 %v1475_v4  ;;  %v1625_v8 = vld [vmem:[%s1862_s11 + $0x40] sm:$0xff]   ;;  %v1626_v10 = vld [vmem:[%s1862_s11 + $0x48] sm:$0xff]   ;;  %v1480_v14 = vunpack.c.l.bf16 %v1618_v9  ;;  %v1481_v15 = vunpack.c.h.bf16 %v1618_v9  ;;  %v1627_v36 = vld [vmem:[%s1862_s11 + $0x50] sm:$0xff]  }
  0x13   : > { %v1508_v12 = vunpack.c.l.bf16 %v1625_v8  ;;  %v1509_v13 = vunpack.c.h.bf16 %v1625_v8  ;;  %v1512_v18 = vunpack.c.l.bf16 %v1626_v10  ;;  %v1513_v19 = vunpack.c.h.bf16 %v1626_v10  ;;  %v1620_v41 = vld [vmem:[%s1862_s11 + $0x18] sm:$0xff]   ;;  %v1621_v63 = vld [vmem:[%s1862_s11 + $0x20] sm:$0xff]  }
  0x14   : > { %v490_v16 = vmul.f32 %v1476_v6, %v1871_v5  ;;  %v491_v17 = vmul.f32 %v1477_v7, %v1871_v5  ;;  %v492_v24 = vmul.f32 %v1480_v14, %v1871_v5  ;;  %v493_v27 = vmul.f32 %v1481_v15, %v1871_v5  ;;  %1679 = vmatpush3.bf16.msra.mxu0 %v1763_v3  ;;  %v1628_v49 = vld [vmem:[%s1862_s11 + $0x58] sm:$0xff]   ;;  %v1629_v15 = vld [vmem:[%s1862_s11 + $0x60] sm:$0xff]  }
  0x15   : > { %v506_v22 = vmul.f32 %v1508_v12, %v1871_v5  ;;  %v507_v23 = vmul.f32 %v1509_v13, %v1871_v5  ;;  %v508_v28 = vmul.f32 %v1512_v18, %v1871_v5  ;;  %v1484_v32 = vunpack.c.l.bf16 %v1619_v20  ;;  %1731 = vmatpush3.bf16.msra.mxu1 %v1763_v3  ;;  %1680 = vmatprep.subr.bf16.mxu0 %v1764_v21  ;;  %v1767_v9 = vld [vmem:[%s2076_s1 + $0x38] sm:$0xff]  }
  0x16   : > { %v529_v25 = vadd.f32 %v1879_v11, %v490_v16  ;;  %v530_v26 = vadd.f32 %v1879_v11, %v491_v17  ;;  %v531_v31 = vadd.f32 %v1879_v11, %v492_v24  ;;  %v509_v35 = vmul.f32 %v1513_v19, %v1871_v5  ;;  %1724 = vmatprep.subr.bf16.mxu1 %v1764_v21 }
  0x17   : > { %v545_v29 = vadd.f32 %v1879_v11, %v506_v22  ;;  %v546_v30 = vadd.f32 %v1879_v11, %v507_v23  ;;  %v532_v40 = vadd.f32 %v1879_v11, %v493_v27  ;;  %v547_v43 = vadd.f32 %v1879_v11, %v508_v28  ;;  %v1622_v22 = vld [vmem:[%s1862_s11 + $0x28] sm:$0xff]  }
  0x18   : > { %v561_v33 = vmax.f32 %v529_v25, 0.0  ;;  %v562_v34 = vmax.f32 %v530_v26, 0.0  ;;  %v1485_v44 = vunpack.c.h.bf16 %v1619_v20  ;;  %v563_v46 = vmax.f32 %v531_v31, 0.0  ;;  %1681 = vmatpush3.bf16.msra.mxu0 %v1764_v21  ;;  %v1630_v27 = vld [vmem:[%s1862_s11 + $0x68] sm:$0xff]  }
  0x19   : > { %v577_v38 = vmax.f32 %v545_v29, 0.0  ;;  %v578_v39 = vmax.f32 %v546_v30, 0.0  ;;  %v494_v47 = vmul.f32 %v1484_v32, %v1871_v5  ;;  %v1516_v48 = vunpack.c.l.bf16 %v1627_v36  ;;  %1732 = vmatpush3.bf16.msra.mxu1 %v1764_v21  ;;  %1682 = vmatprep.subr.bf16.mxu0 %v1765_v37 }
  0x1a   : > { %v593_v42 = vpack.c.bf16 %v562_v34, %v561_v33  ;;  %v548_v50 = vadd.f32 %v1879_v11, %v509_v35  ;;  %v495_v51 = vmul.f32 %v1485_v44, %v1871_v5  ;;  %v1517_v52 = vunpack.c.h.bf16 %v1627_v36  ;;  %1725 = vmatprep.subr.bf16.mxu1 %v1765_v37  ;;  %v1623_v36 = vld [vmem:[%s1862_s11 + $0x30] sm:$0xff]  }
  0x1b   : > { %v601_v45 = vpack.c.bf16 %v578_v39, %v577_v38  ;;  %v1488_v53 = vunpack.c.l.bf16 %v1620_v41  ;;  %v564_v55 = vmax.f32 %v532_v40, 0.0  ;;  %v533_v56 = vadd.f32 %v1879_v11, %v494_v47 }
  0x1c   : > { %v510_v57 = vmul.f32 %v1516_v48, %v1871_v5  ;;  %v1489_v58 = vunpack.c.h.bf16 %v1620_v41  ;;  %1688 = vmatprep.mubr.bf16.mxu0 %v593_v42  ;;  %v534_v59 = vadd.f32 %v1879_v11, %v495_v51  ;;  %v511_v60 = vmul.f32 %v1517_v52, %v1871_v5  ;;  %1683 = vmatpush3.bf16.msra.mxu0 %v1765_v37  ;;  %v1631_v52 = vld [vmem:[%s1862_s11 + $0x70] sm:$0xff]  }
  0x1d   : > { %1704 = vmatprep.mubr.bf16.mxu1 %v601_v45  ;;  %v496_v61 = vmul.f32 %v1488_v53, %v1871_v5  ;;  %v1520_v62 = vunpack.c.l.bf16 %v1628_v49  ;;  %v579_v0 = vmax.f32 %v547_v43, 0.0  ;;  %v1521_v3 = vunpack.c.h.bf16 %v1628_v49  ;;  %1733 = vmatpush3.bf16.msra.mxu1 %v1765_v37 }
  0x1e   : > { %v549_v1 = vadd.f32 %v1879_v11, %v510_v57  ;;  %v497_v2 = vmul.f32 %v1489_v58, %v1871_v5  ;;  %v580_v4 = vmax.f32 %v548_v50, 0.0  ;;  %v565_v6 = vmax.f32 %v533_v56, 0.0  ;;  %1684 = vmatprep.subr.bf16.mxu0 %v1766_v54  ;;  %1726 = vmatprep.subr.bf16.mxu1 %v1766_v54 }
  0x1f   : > { %v566_v7 = vmax.f32 %v534_v59, 0.0  ;;  %v550_v8 = vadd.f32 %v1879_v11, %v511_v60  ;;  %v535_v10 = vadd.f32 %v1879_v11, %v496_v61  ;;  %v512_v12 = vmul.f32 %v1520_v62, %v1871_v5  ;;  %v1624_v60 = vld [vmem:[%s1862_s11 + $0x38] sm:$0xff]  }
  0x20   : > { %v513_v13 = vmul.f32 %v1521_v3, %v1871_v5  ;;  %v1492_v14 = vunpack.c.l.bf16 %v1621_v63  ;;  %v594_v16 = vpack.c.bf16 %v564_v55, %v563_v46  ;;  %v581_v17 = vmax.f32 %v549_v1, 0.0  ;;  %1685 = vmatpush3.bf16.msra.mxu0 %v1766_v54 }
  0x21   : > { %v582_v18 = vmax.f32 %v550_v8, 0.0  ;;  %v536_v19 = vadd.f32 %v1879_v11, %v497_v2  ;;  %v1493_v20 = vunpack.c.h.bf16 %v1621_v63  ;;  %1734 = vmatpush3.bf16.msra.mxu1 %v1766_v54  ;;  %v602_v23 = vpack.c.bf16 %v580_v4, %v579_v0  ;;  %1686 = vmatprep.subr.bf16.mxu0 %v1767_v9 }
  0x22   : > { %v498_v21 = vmul.f32 %v1492_v14, %v1871_v5  ;;  %v595_v24 = vpack.c.bf16 %v566_v7, %v565_v6  ;;  %v1524_v25 = vunpack.c.l.bf16 %v1629_v15  ;;  %v1525_v26 = vunpack.c.h.bf16 %v1629_v15  ;;  %1727 = vmatprep.subr.bf16.mxu1 %v1767_v9  ;;  %v1632_v6 = vld [vmem:[%s1862_s11 + $0x78] sm:$0xff]  }
  0x23   : > { %v567_v28 = vmax.f32 %v535_v10, 0.0  ;;  %v551_v29 = vadd.f32 %v1879_v11, %v512_v12  ;;  %v552_v30 = vadd.f32 %v1879_v11, %v513_v13  ;;  %v499_v31 = vmul.f32 %v1493_v20, %v1871_v5 }
  0x24   : > { %v514_v32 = vmul.f32 %v1524_v25, %v1871_v5  ;;  %v515_v33 = vmul.f32 %v1525_v26, %v1871_v5  ;;  %v1496_v34 = vunpack.c.l.bf16 %v1622_v22  ;;  %v1497_v35 = vunpack.c.h.bf16 %v1622_v22  ;;  %1687 = vmatpush3.bf16.msra.mxu0 %v1767_v9 }
  0x25   : > { %v603_v37 = vpack.c.bf16 %v582_v18, %v581_v17  ;;  %v568_v38 = vmax.f32 %v536_v19, 0.0  ;;  %v537_v39 = vadd.f32 %v1879_v11, %v498_v21  ;;  %v1528_v40 = vunpack.c.l.bf16 %v1630_v27  ;;  %1735 = vmatpush3.bf16.msra.mxu1 %v1767_v9 }
  0x26   : > { %v538_v41 = vadd.f32 %v1879_v11, %v499_v31  ;;  %v553_v42 = vadd.f32 %v1879_v11, %v514_v32  ;;  %v554_v43 = vadd.f32 %v1879_v11, %v515_v33  ;;  %v1529_v44 = vunpack.c.h.bf16 %v1630_v27 }
  0x27   : > { %v500_v45 = vmul.f32 %v1496_v34, %v1871_v5  ;;  %v501_v46 = vmul.f32 %v1497_v35, %v1871_v5  ;;  %v1500_v47 = vunpack.c.l.bf16 %v1623_v36  ;;  %v583_v48 = vmax.f32 %v551_v29, 0.0  ;;  %1689 = vmatmul.mubr.bf16.vlgmr.msra.gmra.mrb[0].mxu0 %v594_v16 }
  0x28   : > { %v584_v49 = vmax.f32 %v552_v30, 0.0  ;;  %v516_v50 = vmul.f32 %v1528_v40, %v1871_v5  ;;  %v517_v51 = vmul.f32 %v1529_v44, %v1871_v5  ;;  %1705 = vmatmul.mubr.bf16.vlgmr.msra.gmra.mrb[0].mxu1 %v602_v23  ;;  %v596_v53 = vpack.c.bf16 %v568_v38, %v567_v28  ;;  %1692 = vmatprep.mubr.bf16.mxu0 %v595_v24 }
  0x29   : > { %v569_v54 = vmax.f32 %v537_v39, 0.0  ;;  %v1501_v55 = vunpack.c.h.bf16 %v1623_v36  ;;  %1708 = vmatprep.mubr.bf16.mxu1 %v603_v37  ;;  %v570_v56 = vmax.f32 %v538_v41, 0.0  ;;  %v585_v57 = vmax.f32 %v553_v42, 0.0 }
  0x2a   : > { %v586_v58 = vmax.f32 %v554_v43, 0.0  ;;  %v502_v59 = vmul.f32 %v1500_v47, %v1871_v5  ;;  %v539_v61 = vadd.f32 %v1879_v11, %v500_v45  ;;  %v540_v62 = vadd.f32 %v1879_v11, %v501_v46  ;;  %v1972_v45 = vld [vmem:[%s2079_s4] ss:$0 sm:$0xff] }
  0x2b   : > { %v503_v63 = vmul.f32 %v1501_v55, %v1871_v5  ;;  %v1532_v0 = vunpack.c.l.bf16 %v1631_v52  ;;  %v604_v1 = vpack.c.bf16 %v584_v49, %v583_v48  ;;  %v555_v2 = vadd.f32 %v1879_v11, %v516_v50  ;;  %v1977_v46 = vld [vmem:[%s2080_s5] ss:$0 sm:$0xff] }
  0x2c   : > { %v556_v3 = vadd.f32 %v1879_v11, %v517_v51  ;;  %v1533_v4 = vunpack.c.h.bf16 %v1631_v52  ;;  %v541_v7 = vadd.f32 %v1879_v11, %v502_v59  ;;  %v1504_v9 = vunpack.c.l.bf16 %v1624_v60 }
  0x2d   : > { %v518_v8 = vmul.f32 %v1532_v0, %v1871_v5  ;;  %v1505_v10 = vunpack.c.h.bf16 %v1624_v60  ;;  %v597_v12 = vpack.c.bf16 %v570_v56, %v569_v54  ;;  %v605_v13 = vpack.c.bf16 %v586_v58, %v585_v57 }
  0x2e   : > { %v542_v14 = vadd.f32 %v1879_v11, %v503_v63  ;;  %v519_v15 = vmul.f32 %v1533_v4, %v1871_v5  ;;  %v571_v16 = vmax.f32 %v539_v61, 0.0  ;;  %v572_v17 = vmax.f32 %v540_v62, 0.0 }
  0x2f   : > { %v557_v18 = vadd.f32 %v1879_v11, %v518_v8  ;;  %v1536_v19 = vunpack.c.l.bf16 %v1632_v6  ;;  %v587_v20 = vmax.f32 %v555_v2, 0.0  ;;  %v588_v21 = vmax.f32 %v556_v3, 0.0  ;;  %1693 = vmatmul.mubr.bf16.gmra.mrb[4].mxu0 %v596_v53 }
  0x30   : > { %v558_v22 = vadd.f32 %v1879_v11, %v519_v15  ;;  %v1537_v23 = vunpack.c.h.bf16 %v1632_v6  ;;  %1709 = vmatmul.mubr.bf16.gmra.mrb[4].mxu1 %v604_v1  ;;  %v573_v24 = vmax.f32 %v541_v7, 0.0  ;;  %v504_v25 = vmul.f32 %v1504_v9, %v1871_v5  ;;  %1696 = vmatprep.mubr.bf16.mxu0 %v597_v12 }
  0x31   : > { %v505_v26 = vmul.f32 %v1505_v10, %v1871_v5  ;;  %v520_v27 = vmul.f32 %v1536_v19, %v1871_v5  ;;  %1712 = vmatprep.mubr.bf16.mxu1 %v605_v13  ;;  %v574_v28 = vmax.f32 %v542_v14, 0.0  ;;  %v589_v29 = vmax.f32 %v557_v18, 0.0 }
  0x32   : > { %v590_v30 = vmax.f32 %v558_v22, 0.0  ;;  %v521_v31 = vmul.f32 %v1537_v23, %v1871_v5  ;;  %v598_v32 = vpack.c.bf16 %v572_v17, %v571_v16  ;;  %v606_v33 = vpack.c.bf16 %v588_v21, %v587_v20 }
  0x33   : > { %v543_v34 = vadd.f32 %v1879_v11, %v504_v25  ;;  %v544_v35 = vadd.f32 %v1879_v11, %v505_v26  ;;  %v559_v36 = vadd.f32 %v1879_v11, %v520_v27  ;;  %v599_v38 = vpack.c.bf16 %v574_v28, %v573_v24 }
  0x34   : > { %v560_v37 = vadd.f32 %v1879_v11, %v521_v31  ;;  %v607_v39 = vpack.c.bf16 %v590_v30, %v589_v29 }
  0x35   : > { %v575_v40 = vmax.f32 %v543_v34, 0.0  ;;  %v576_v41 = vmax.f32 %v544_v35, 0.0  ;;  %v591_v42 = vmax.f32 %v559_v36, 0.0 }
  0x36   : > { %v592_v43 = vmax.f32 %v560_v37, 0.0 }
  0x37   : > { %1697 = vmatmul.mubr.bf16.gmra.mrb[8].mxu0 %v598_v32  ;;  %v600_v5 = vpack.c.bf16 %v576_v41, %v575_v40 }
  0x38   : > { %1713 = vmatmul.mubr.bf16.gmra.mrb[8].mxu1 %v606_v33  ;;  %1700 = vmatprep.mubr.bf16.mxu0 %v599_v38  ;;  %v608_v44 = vpack.c.bf16 %v592_v43, %v591_v42 }
  0x39   : > { %1716 = vmatprep.mubr.bf16.mxu1 %v607_v39 }
  0x3f   : > { %1701 = vmatmul.mubr.bf16.gmra.mrb[12].mxu0 %v600_v5 }
  0x40   : > { %1717 = vmatmul.mubr.bf16.gmra.mrb[12].mxu1 %v608_v44 }
  0xfa   : > { %v1690_v11 = vpop.f32.mrb[0].mxu0 }
  0xfb   : > { %v1706_v47 = vpop.f32.mrb[0].mxu1  ;;  %v974_v48 = vmul.f32 %v1690_v11, %v1972_v45  ;;  %v739_v50 = vpop.f32.mrb[1].mxu0 }
  0xfc   : > { %v990_v49 = vmul.f32 %v1706_v47, %v1972_v45  ;;  %v803_v51 = vpop.f32.mrb[1].mxu1  ;;  %v972_v52 = vmul.f32 %v1972_v45, %v739_v50  ;;  %v1691_v54 = vpop.f32.mrb[2].mxu0 }
  0xfd   : > { %v988_v53 = vmul.f32 %v1972_v45, %v803_v51  ;;  %v1707_v55 = vpop.f32.mrb[2].mxu1  ;;  %v1013_v56 = vadd.f32 %v1977_v46, %v974_v48  ;;  %v975_v58 = vmul.f32 %v1691_v54, %v1972_v45  ;;  %v742_v60 = vpop.f32.mrb[3].mxu0 }
  0xfe   : > { %v1029_v57 = vadd.f32 %v1977_v46, %v990_v49  ;;  %v991_v59 = vmul.f32 %v1707_v55, %v1972_v45  ;;  %v806_v61 = vpop.f32.mrb[3].mxu1  ;;  %v1011_v62 = vadd.f32 %v1977_v46, %v972_v52  ;;  %v973_v0 = vmul.f32 %v1972_v45, %v742_v60 }
  0xff   : > { %v1027_v63 = vadd.f32 %v1977_v46, %v988_v53  ;;  %v989_v1 = vmul.f32 %v1972_v45, %v806_v61  ;;  %v1014_v2 = vadd.f32 %v1977_v46, %v975_v58  ;;  %v1045_v7 = vmax.f32 %v1013_v56, 0.0 }
 0x100   : > { %v1030_v3 = vadd.f32 %v1977_v46, %v991_v59  ;;  %v1012_v4 = vadd.f32 %v1977_v46, %v973_v0  ;;  %v1061_v8 = vmax.f32 %v1029_v57, 0.0  ;;  %v1043_v12 = vmax.f32 %v1011_v62, 0.0 }
 0x101   : > { %v1028_v6 = vadd.f32 %v1977_v46, %v989_v1  ;;  %v1046_v9 = vmax.f32 %v1014_v2, 0.0  ;;  %v1059_v13 = vmax.f32 %v1027_v63, 0.0 }
 0x102   : > { %v1062_v10 = vmax.f32 %v1030_v3, 0.0  ;;  %v1044_v14 = vmax.f32 %v1012_v4, 0.0  ;;  %v1694_v16 = vpop.f32.mrb[4].mxu0 }
 0x103   : > { %v1060_v15 = vmax.f32 %v1028_v6, 0.0  ;;  %v1710_v17 = vpop.f32.mrb[4].mxu1  ;;  %v1546_v18 = vpack.c.bf16 %v1046_v9, %v1045_v7  ;;  %v978_v20 = vmul.f32 %v1694_v16, %v1972_v45  ;;  %v755_v22 = vpop.f32.mrb[5].mxu0 }
 0x104   : > { %v1586_v19 = vpack.c.bf16 %v1062_v10, %v1061_v8  ;;  %v994_v21 = vmul.f32 %v1710_v17, %v1972_v45  ;;  %v819_v23 = vpop.f32.mrb[5].mxu1  ;;  %v1541_v24 = vpack.c.bf16 %v1044_v14, %v1043_v12  ;;  %v976_v26 = vmul.f32 %v1972_v45, %v755_v22  ;;  %v1695_v28 = vpop.f32.mrb[6].mxu0 }
 0x105   : > { %v1581_v25 = vpack.c.bf16 %v1060_v15, %v1059_v13  ;;  %v992_v27 = vmul.f32 %v1972_v45, %v819_v23  ;;  %v1711_v29 = vpop.f32.mrb[6].mxu1  ;;  %1633 = vst [vmem:[%s2000_s13 + $0x8] sm:$0xff] %v1546_v18   ;;  %v1017_v30 = vadd.f32 %v1977_v46, %v978_v20  ;;  %v979_v32 = vmul.f32 %v1695_v28, %v1972_v45  ;;  %v758_v34 = vpop.f32.mrb[7].mxu0 }
 0x106   : > { %1641 = vst [vmem:[%s2000_s13 + $0x48] sm:$0xff] %v1586_v19   ;;  %v1033_v31 = vadd.f32 %v1977_v46, %v994_v21  ;;  %v995_v33 = vmul.f32 %v1711_v29, %v1972_v45  ;;  %v822_v35 = vpop.f32.mrb[7].mxu1  ;;  %1542 = vst [vmem:[%s2000_s13] sm:$0xff] %v1541_v24   ;;  %v1015_v36 = vadd.f32 %v1977_v46, %v976_v26 }
 0x107   : > { %1640 = vst [vmem:[%s2000_s13 + $0x40] sm:$0xff] %v1581_v25   ;;  %v1031_v37 = vadd.f32 %v1977_v46, %v992_v27  ;;  %v977_v38 = vmul.f32 %v1972_v45, %v758_v34  ;;  %v993_v39 = vmul.f32 %v1972_v45, %v822_v35  ;;  %v1018_v40 = vadd.f32 %v1977_v46, %v979_v32 }
 0x108   : > { %v1034_v41 = vadd.f32 %v1977_v46, %v995_v33  ;;  %v1049_v5 = vmax.f32 %v1017_v30, 0.0  ;;  %v1065_v44 = vmax.f32 %v1033_v31, 0.0  ;;  %v1047_v48 = vmax.f32 %v1015_v36, 0.0 }
 0x109   : > { %v1016_v42 = vadd.f32 %v1977_v46, %v977_v38  ;;  %v1032_v43 = vadd.f32 %v1977_v46, %v993_v39  ;;  %v1050_v11 = vmax.f32 %v1018_v40, 0.0  ;;  %v1063_v49 = vmax.f32 %v1031_v37, 0.0 }
 0x10a   : > { %v1066_v47 = vmax.f32 %v1034_v41, 0.0  ;;  %v1698_v52 = vpop.f32.mrb[8].mxu0 }
 0x10b   : > { %v1048_v50 = vmax.f32 %v1016_v42, 0.0  ;;  %v1064_v51 = vmax.f32 %v1032_v43, 0.0  ;;  %v1714_v53 = vpop.f32.mrb[8].mxu1  ;;  %v1556_v54 = vpack.c.bf16 %v1050_v11, %v1049_v5  ;;  %v982_v56 = vmul.f32 %v1698_v52, %v1972_v45  ;;  %v771_v58 = vpop.f32.mrb[9].mxu0 }
 0x10c   : > { %v1596_v55 = vpack.c.bf16 %v1066_v47, %v1065_v44  ;;  %v998_v57 = vmul.f32 %v1714_v53, %v1972_v45  ;;  %v835_v59 = vpop.f32.mrb[9].mxu1  ;;  %v980_v62 = vmul.f32 %v1972_v45, %v771_v58  ;;  %v1699_v0 = vpop.f32.mrb[10].mxu0 }
 0x10d   : > { %v1551_v60 = vpack.c.bf16 %v1048_v50, %v1047_v48  ;;  %v1591_v61 = vpack.c.bf16 %v1064_v51, %v1063_v49  ;;  %v996_v63 = vmul.f32 %v1972_v45, %v835_v59  ;;  %v1715_v1 = vpop.f32.mrb[10].mxu1  ;;  %1635 = vst [vmem:[%s2000_s13 + $0x18] sm:$0xff] %v1556_v54   ;;  %v1021_v2 = vadd.f32 %v1977_v46, %v982_v56  ;;  %v774_v7 = vpop.f32.mrb[11].mxu0 }
 0x10e   : > { %1643 = vst [vmem:[%s2000_s13 + $0x58] sm:$0xff] %v1596_v55   ;;  %v1037_v3 = vadd.f32 %v1977_v46, %v998_v57  ;;  %v983_v4 = vmul.f32 %v1699_v0, %v1972_v45  ;;  %v999_v6 = vmul.f32 %v1715_v1, %v1972_v45  ;;  %v838_v8 = vpop.f32.mrb[11].mxu1  ;;  %v1019_v9 = vadd.f32 %v1977_v46, %v980_v62 }
 0x10f   : > { %1634 = vst [vmem:[%s2000_s13 + $0x10] sm:$0xff] %v1551_v60   ;;  %1642 = vst [vmem:[%s2000_s13 + $0x50] sm:$0xff] %v1591_v61   ;;  %v1035_v10 = vadd.f32 %v1977_v46, %v996_v63  ;;  %v981_v12 = vmul.f32 %v1972_v45, %v774_v7  ;;  %v997_v13 = vmul.f32 %v1972_v45, %v838_v8  ;;  %v1053_v18 = vmax.f32 %v1021_v2, 0.0 }
 0x110   : > { %v1022_v14 = vadd.f32 %v1977_v46, %v983_v4  ;;  %v1038_v15 = vadd.f32 %v1977_v46, %v999_v6  ;;  %v1069_v19 = vmax.f32 %v1037_v3, 0.0  ;;  %v1051_v22 = vmax.f32 %v1019_v9, 0.0 }
 0x111   : > { %v1020_v16 = vadd.f32 %v1977_v46, %v981_v12  ;;  %v1036_v17 = vadd.f32 %v1977_v46, %v997_v13  ;;  %v1067_v23 = vmax.f32 %v1035_v10, 0.0 }
 0x112   : > { %v1054_v20 = vmax.f32 %v1022_v14, 0.0  ;;  %v1070_v21 = vmax.f32 %v1038_v15, 0.0  ;;  %v1702_v26 = vpop.f32.mrb[12].mxu0 }
 0x113   : > { %v1052_v24 = vmax.f32 %v1020_v16, 0.0  ;;  %v1068_v25 = vmax.f32 %v1036_v17, 0.0  ;;  %v1718_v27 = vpop.f32.mrb[12].mxu1  ;;  %v986_v30 = vmul.f32 %v1702_v26, %v1972_v45  ;;  %v787_v32 = vpop.f32.mrb[13].mxu0 }
 0x114   : > { %v1566_v28 = vpack.c.bf16 %v1054_v20, %v1053_v18  ;;  %v1606_v29 = vpack.c.bf16 %v1070_v21, %v1069_v19  ;;  %v1002_v31 = vmul.f32 %v1718_v27, %v1972_v45  ;;  %v851_v33 = vpop.f32.mrb[13].mxu1  ;;  %v984_v36 = vmul.f32 %v1972_v45, %v787_v32  ;;  %v1703_v38 = vpop.f32.mrb[14].mxu0 }
 0x115   : > { %v1561_v34 = vpack.c.bf16 %v1052_v24, %v1051_v22  ;;  %v1601_v35 = vpack.c.bf16 %v1068_v25, %v1067_v23  ;;  %v1000_v37 = vmul.f32 %v1972_v45, %v851_v33  ;;  %v1719_v39 = vpop.f32.mrb[14].mxu1  ;;  %v1025_v40 = vadd.f32 %v1977_v46, %v986_v30  ;;  %v790_v5 = vpop.f32.mrb[15].mxu0 }
 0x116   : > { %1637 = vst [vmem:[%s2000_s13 + $0x28] sm:$0xff] %v1566_v28   ;;  %1645 = vst [vmem:[%s2000_s13 + $0x68] sm:$0xff] %v1606_v29   ;;  %v1041_v41 = vadd.f32 %v1977_v46, %v1002_v31  ;;  %v987_v42 = vmul.f32 %v1703_v38, %v1972_v45  ;;  %v1003_v43 = vmul.f32 %v1719_v39, %v1972_v45  ;;  %v854_v44 = vpop.f32.mrb[15].mxu1 }
 0x117   : > { %1636 = vst [vmem:[%s2000_s13 + $0x20] sm:$0xff] %v1561_v34   ;;  %1644 = vst [vmem:[%s2000_s13 + $0x60] sm:$0xff] %v1601_v35   ;;  %v1023_v11 = vadd.f32 %v1977_v46, %v984_v36  ;;  %v1039_v47 = vadd.f32 %v1977_v46, %v1000_v37  ;;  %v985_v48 = vmul.f32 %v1972_v45, %v790_v5  ;;  %v1057_v54 = vmax.f32 %v1025_v40, 0.0 }
 0x118   : > { %v1001_v49 = vmul.f32 %v1972_v45, %v854_v44  ;;  %v1026_v50 = vadd.f32 %v1977_v46, %v987_v42  ;;  %v1042_v51 = vadd.f32 %v1977_v46, %v1003_v43  ;;  %v1073_v55 = vmax.f32 %v1041_v41, 0.0 }
 0x119   : > { %v1024_v52 = vadd.f32 %v1977_v46, %v985_v48  ;;  %v1055_v58 = vmax.f32 %v1023_v11, 0.0  ;;  %v1071_v59 = vmax.f32 %v1039_v47, 0.0 }
 0x11a   : > { %v1040_v53 = vadd.f32 %v1977_v46, %v1001_v49  ;;  %v1058_v56 = vmax.f32 %v1026_v50, 0.0  ;;  %v1074_v57 = vmax.f32 %v1042_v51, 0.0 }
 0x11b   : > { %v1056_v60 = vmax.f32 %v1024_v52, 0.0 }
 0x11c   : > { %v1072_v45 = vmax.f32 %v1040_v53, 0.0  ;;  %v1576_v61 = vpack.c.bf16 %v1058_v56, %v1057_v54  ;;  %v1616_v62 = vpack.c.bf16 %v1074_v57, %v1073_v55 }
 0x11d   : > { %v1571_v63 = vpack.c.bf16 %v1056_v60, %v1055_v58 }
 0x11e   : > { %v1611_v0 = vpack.c.bf16 %v1072_v45, %v1071_v59  ;;  %1639 = vst [vmem:[%s2000_s13 + $0x38] sm:$0xff] %v1576_v61   ;;  %1647 = vst [vmem:[%s2000_s13 + $0x78] sm:$0xff] %v1616_v62  }
 0x11f   : > { %1638 = vst [vmem:[%s2000_s13 + $0x30] sm:$0xff] %v1571_v63  }
 0x120   : > { %1646 = vst [vmem:[%s2000_s13 + $0x70] sm:$0xff] %v1611_v0  }
 0x121 PF: > { %s16_s23 = sadd.s32 1, %s1790_s23   ;;  %s2082_s21 = smov %s1786_s22 }
 0x122   : > { %p13_p5 = scmp.ge.s32.totalorder %s16_s23, 4   ;;  %s2083_s22 = smov %s2085_s24 }
 0x124   :  { %15 = sbr.rel (!%p13_p5) target bundleno = 2 (0x2), region = 97 }

// kernel: forward.21
= control target key start
LH: loop header
LB: loop body
LE: loop exit
PB: predicated region body
PF: predicated region fallthrough
CT: control target
= control target key end

     0   :  { %s2341_s15 = smov 0   ;;  %s2853_s0 = inlined_call_operand.vmem [shape: bf16[6,10,10,16], index: 0, kind: input, shape index: {}]   ;;  %s2854_s1 = inlined_call_operand.vmem [shape: bf16[9,16,8], index: 1, kind: input, shape index: {}]   ;;  %s2855_s2 = inlined_call_operand.vmem [shape: f32[1,8], index: 2, kind: input, shape index: {}]   ;;  %s2856_s3 = inlined_call_operand.vmem [shape: f32[1,8], index: 3, kind: input, shape index: {}]   ;;  %s2857_s4 = inlined_call_operand.vmem [shape: bf16[6,64,8], index: 4, kind: output, shape index: {}]  }
   0x1 LB: > { %s1863_s16 = sadd.s32 4294967295, %s2314_s15   ;;  %p1867_p0 = scmp.ge.s32.totalorder %s2314_s15, 1  ;;  %s2314_s15 = sphi %s2341_s15, %s14_s15  }
   0x2   : > { %p162_p1 = scmp.lt.s32.totalorder %s2314_s15, 7 }
   0x4   : > { %p163_p2 = pnand %p1867_p0, %p162_p1 }
   0x5   : > { %v2287_v0 = vld [vmem:[%s2854_s1 + $0x8] sm:$0xff] (!%p163_p2)   ;;  %p188_p3 = scmp.lt.s32.totalorder (!%p163_p2), %s1863_s16, 5  ;;  %v2355_v1 = vld [vmem:[%s2854_s1 + $0x20] sm:$0xff] (!%p163_p2)   ;;  %vm217_vm0 = vsmask.f32 (!%p163_p2), 3328  ;;  %vm353_vm2 = vcmask (!%p163_p2), 130048  }
   0x6   : > { %166 = sbr.rel (%p163_p2) target bundleno = 339 (0x153), region = 36  ;;  %2122 = vmatprep.subr.bf16.mxu1 (!%p163_p2), %v2287_v0  ;;  %v2362_v2 = vld [vmem:[%s2854_s1] sm:$0xff] (!%p163_p2)   ;;  %2162 = vmatprep.subr.bf16.mxu0 (!%p163_p2), %v2355_v1  ;;  %v2371_v3 = vld [vmem:[%s2854_s1 + $0x28] sm:$0xff] (!%p163_p2)   ;;  %vm218_vm1 = vsmask.f32 (!%p163_p2), 7440  ;;  %vm558_vm4 = vcmask (!%p163_p2), 1042432  }
   0x7   : > { %2123 = vmatpush3.bf16.msra.mxu1 (!%p163_p2), %v2287_v0  ;;  %2163 = vmatpush3.bf16.msra.mxu0 (!%p163_p2), %v2355_v1  ;;  %vm2408_vm3 = vmor (!%p163_p2), %vm217_vm0, %vm218_vm1  ;;  %vm559_vm5 = vcmask (!%p163_p2), 1046532   ;;  %v2057_v28 = vld [vmem:[%s2856_s3] ss:$0 sm:$0xff] (!%p163_p2)  ;;  %vm1799_vm7 = vcmask (!%p163_p2), 60416  }
   0x8   : > { %2132 = vmatprep.subr.bf16.mxu1 (!%p163_p2), %v2362_v2  ;;  %2172 = vmatprep.subr.bf16.mxu0 (!%p163_p2), %v2371_v3  ;;  %vm2518_vm6 = vmor (!%p163_p2), %vm558_vm4, %vm559_vm5 }
   0xd   : > { %s2863_s16 = smov (!%p188_p3, %s1863_s16), 5 }
   0xe   : > { %s2278_s23 = smul.u32 80, %s2863_s16  ;;  %s2068_s19 = sshll.u32 %s2863_s16, 5 }
   0xf   : > { %s2832_s22 = scalar_lea.vmem %s2857_s4, %s2068_s19 }
  0x10   : > { %s2376_s28 = scalar_lea.vmem %s2853_s0, %s2278_s23 }
  0x11   : > { %v2380_v4 = vld [vmem:[%s2376_s28] sm:$0xf]  ;;  %v2383_v5 = vld [vmem:[%s2376_s28 + $0x8] sm:$0xf]  ;;  %v2386_v6 = vld [vmem:[%s2376_s28 + $0x4] sm:$0x1] }
  0x12   : > { %v2389_v7 = vld [vmem:[%s2376_s28 + $0xc] sm:$0x1]  ;;  %v221_v8 = vshrl.u32 %v2380_v4, 16  ;;  %v224_v9 = vshll.u32 %v2380_v4, 16  ;;  %v230_v10 = vshll.u32 %v2386_v6, 16  ;;  %v235_v11 = vshrl.u32 %v2383_v5, 16 }
  0x13   : > { %v238_v12 = vshll.u32 %v2383_v5, 16  ;;  %v244_v13 = vshll.u32 %v2389_v7, 16  ;;  %v1929_v14 = vld [vmem:[%s2376_s28 + $0x8] sm:$0xf]  ;;  %v2399_v19 = vld [vmem:[%s2376_s28 + $0xc] sm:$0x1] }
  0x14   : > { %v223_v15 = vrot.slane %v221_v8, 4  ;;  %v226_v16 = vrot.slane %v224_v9, 5  ;;  %v232_v17 = vrot.slane %v230_v10, 5  ;;  %v237_v18 = vrot.slane %v235_v11, 4  ;;  %v1931_v22 = vld [vmem:[%s2376_s28 + $0x10] sm:$0xf] }
  0x15   : > { %v240_v20 = vrot.slane %v238_v12, 5  ;;  %v246_v21 = vrot.slane %v244_v13, 5  ;;  %v2403_v23 = vld [vmem:[%s2376_s28 + $0x14] sm:$0x1]  ;;  %v839_v25 = vshrl.u32 %v1929_v14, 16  ;;  %v842_v26 = vshll.u32 %v1929_v14, 16 }
  0x16   : > { %v227_v24 = vor.u32 %v226_v16, %v223_v15  ;;  %v848_v27 = vshll.u32 %v2399_v19, 16  ;;  %v853_v30 = vshrl.u32 %v1931_v22, 16  ;;  %v856_v31 = vshll.u32 %v1931_v22, 16  ;;  %v2414_v33 = vld [vmem:[%s2376_s28 + $0x10] sm:$0xf] }
  0x17   : > { %v241_v29 = vor.u32 %v240_v20, %v237_v18  ;;  %v862_v32 = vshll.u32 %v2403_v23, 16  ;;  %v563_v35 = vrot.slane %v2386_v6, 5  ;;  %v841_v36 = vrot.slane %v839_v25, 4  ;;  %v2418_v38 = vld [vmem:[%s2376_s28 + $0x18] sm:$0xf] }
  0x18   : > { %v228_v34 = vrot.slane %v227_v24, 4  ;;  %v844_v37 = vrot.slane %v842_v26, 5  ;;  %v567_v40 = vrot.slane %v2389_v7, 5  ;;  %v855_v41 = vrot.slane %v853_v30, 4  ;;  %v2422_v43 = vld [vmem:[%s2376_s28 + $0x14] sm:$0x1] }
  0x19   : > { %v242_v39 = vrot.slane %v241_v29, 4  ;;  %v858_v42 = vrot.slane %v856_v31, 5  ;;  %v850_v46 = vrot.slane %v848_v27, 5  ;;  %v864_v47 = vrot.slane %v862_v32, 5  ;;  %v2429_v50 = vld [vmem:[%s2376_s28 + $0x1c] sm:$0x1] }
  0x1a   : > { %v233_v44 = vsel %vm2408_vm3, %v228_v34, %v232_v17  ;;  %v845_v45 = vor.u32 %v844_v37, %v841_v36  ;;  %v249_v51 = vshrl.u32 %v2414_v33, 16  ;;  %v252_v52 = vshll.u32 %v2414_v33, 16  ;;  %v1933_v61 = vld [vmem:[%s2376_s28 + $0x18] sm:$0xf]  ;;  %v2443_v9 = vld [vmem:[%s2376_s28 + $0x1c] sm:$0x1] }
  0x1b   : > { %v247_v48 = vsel %vm2408_vm3, %v242_v39, %v246_v21  ;;  %v859_v49 = vor.u32 %v858_v42, %v855_v41  ;;  %v258_v55 = vshll.u32 %v2422_v43, 16  ;;  %v263_v56 = vshrl.u32 %v2418_v38, 16  ;;  %v1935_v14 = vld [vmem:[%s2376_s28 + $0x20] sm:$0xf]  ;;  %v2449_v15 = vld [vmem:[%s2376_s28 + $0x24] sm:$0x1] }
  0x1c   : > { %v1873_v53 = vcombine.low %v233_v44, %v247_v48  ;;  %v846_v54 = vrot.slane %v845_v45, 4  ;;  %v251_v58 = vrot.slane %v249_v51, 4  ;;  %v254_v59 = vrot.slane %v252_v52, 5  ;;  %v2456_v31 = vld [vmem:[%s2376_s28 + $0x20] sm:$0xf] }
  0x1d   : > { %v860_v57 = vrot.slane %v859_v49, 4  ;;  %v266_v60 = vshll.u32 %v2418_v38, 16  ;;  %v1082_v63 = vrot.slane %v2399_v19, 5  ;;  %v265_v0 = vrot.slane %v263_v56, 4  ;;  %v2461_v39 = vld [vmem:[%s2376_s28 + $0x24] sm:$0x1] }
  0x1e   : > { %2124 = vmatprep.mubr.msk.bf16.mxu1 %vm353_vm2, %v1873_v53  ;;  %v851_v62 = vsel %vm2408_vm3, %v846_v54, %v850_v46  ;;  %v272_v8 = vshll.u32 %v2429_v50, 16  ;;  %v255_v11 = vor.u32 %v254_v59, %v251_v58  ;;  %v260_v12 = vrot.slane %v258_v55, 5  ;;  %v2465_v46 = vld [vmem:[%s2376_s28 + $0x28] sm:$0xf]  ;;  %v2471_v51 = vld [vmem:[%s2376_s28 + $0x2c] sm:$0x1] }
  0x1f   : > { %v865_v10 = vsel %vm2408_vm3, %v860_v57, %v864_v47  ;;  %v268_v13 = vrot.slane %v266_v60, 5  ;;  %v1086_v17 = vrot.slane %v2403_v23, 5  ;;  %v867_v20 = vshrl.u32 %v1933_v61, 16  ;;  %v2477_v57 = vld [vmem:[%s2376_s28 + $0x30] sm:$0xf] }
  0x20   : > { %v1947_v16 = vcombine.low %v851_v62, %v865_v10  ;;  %v274_v18 = vrot.slane %v272_v8, 5  ;;  %v256_v21 = vrot.slane %v255_v11, 4  ;;  %v870_v24 = vshll.u32 %v1933_v61, 16  ;;  %v2482_v58 = vld [vmem:[%s2854_s1 + $0x10] sm:$0xff]  }
  0x21   : > { %v269_v22 = vor.u32 %v268_v13, %v265_v0  ;;  %v876_v25 = vshll.u32 %v2443_v9, 16  ;;  %v869_v26 = vrot.slane %v867_v20, 4  ;;  %v881_v27 = vshrl.u32 %v1935_v14, 16  ;;  %v2487_v0 = vld [vmem:[%s2376_s28 + $0x38] sm:$0xf] }
  0x22   : > { %2164 = vmatprep.mubr.msk.bf16.mxu0 %vm353_vm2, %v1947_v16  ;;  %v884_v29 = vshll.u32 %v1935_v14, 16  ;;  %v890_v30 = vshll.u32 %v2449_v15, 16  ;;  %v261_v32 = vsel %vm2408_vm3, %v256_v21, %v260_v12  ;;  %v872_v36 = vrot.slane %v870_v24, 5  ;;  %v2492_v13 = vld [vmem:[%s2376_s28 + $0x34] sm:$0x1] }
  0x23   : > { %v270_v34 = vrot.slane %v269_v22, 4  ;;  %v878_v37 = vrot.slane %v876_v25, 5  ;;  %v883_v41 = vrot.slane %v881_v27, 4  ;;  %v1090_v45 = vrot.slane %v2443_v9, 5  ;;  %v2498_v20 = vld [vmem:[%s2376_s28 + $0x3c] sm:$0x1] }
  0x24   : > { %v886_v42 = vrot.slane %v884_v29, 5  ;;  %v892_v44 = vrot.slane %v890_v30, 5  ;;  %v873_v48 = vor.u32 %v872_v36, %v869_v26  ;;  %v1094_v49 = vrot.slane %v2449_v15, 5  ;;  %v2504_v22 = vld [vmem:[%s2854_s1 + $0x30] sm:$0xff]   ;;  %v1956_v27 = vld [vmem:[%s2376_s28 + $0x8] sm:$0xe] }
  0x25   : > { %v275_v47 = vsel %vm2408_vm3, %v270_v34, %v274_v18  ;;  %v277_v52 = vshrl.u32 %v2456_v31, 16  ;;  %v280_v55 = vshll.u32 %v2456_v31, 16  ;;  %v286_v56 = vshll.u32 %v2461_v39, 16  ;;  %v1957_v29 = vld [vmem:[%s2376_s28 + $0x10] sm:$0xe] }
  0x26   : > { %v1874_v53 = vcombine.low %v261_v32, %v275_v47  ;;  %v887_v54 = vor.u32 %v886_v42, %v883_v41  ;;  %v874_v59 = vrot.slane %v873_v48, 4  ;;  %v291_v61 = vshrl.u32 %v2465_v46, 16  ;;  %v2056_v48 = vld [vmem:[%s2855_s2] ss:$0 sm:$0xff] }
  0x27   : > { %v279_v60 = vrot.slane %v277_v52, 4  ;;  %v294_v62 = vshll.u32 %v2465_v46, 16  ;;  %v282_v10 = vrot.slane %v280_v55, 5  ;;  %v288_v11 = vrot.slane %v286_v56, 5  ;;  %v1959_v52 = vld [vmem:[%s2376_s28 + $0x20] sm:$0xe] }
  0x28   : > { %2125 = vmatmul.mubr.msk.bf16.vlgmr.msra.gmra.mrb[0].mxu1 %vm353_vm2, %v1874_v53  ;;  %v888_v8 = vrot.slane %v887_v54, 4  ;;  %v300_v12 = vshll.u32 %v2471_v51, 16  ;;  %v879_v14 = vsel %vm2408_vm3, %v874_v59, %v878_v37  ;;  %v293_v16 = vrot.slane %v291_v61, 4  ;;  %v1958_v37 = vld [vmem:[%s2376_s28 + $0x18] sm:$0xe] }
  0x29   : > { %2133 = vmatpush3.bf16.msra.mxu1 %v2362_v2  ;;  %v296_v18 = vrot.slane %v294_v62, 5  ;;  %v305_v21 = vshrl.u32 %v2477_v57, 16  ;;  %v283_v25 = vor.u32 %v282_v10, %v279_v60  ;;  %v308_v26 = vshll.u32 %v2477_v57, 16  ;;  %v1960_v59 = vld [vmem:[%s2376_s28 + $0x28] sm:$0xe] }
  0x2a   : > { %v893_v24 = vsel %vm2408_vm3, %v888_v8, %v892_v44  ;;  %v302_v2 = vrot.slane %v300_v12, 5  ;;  %2142 = vmatprep.subr.bf16.mxu1 %v2482_v58  ;;  %v314_v36 = vshll.u32 %v2492_v13, 16  ;;  %v319_v44 = vshrl.u32 %v2487_v0, 16  ;;  %v2530_v10 = vld [vmem:[%s2376_s28 + $0x2c] sm:$0x1] }
  0x2b   : > { %v1948_v30 = vcombine.low %v879_v14, %v893_v24  ;;  %v297_v32 = vor.u32 %v296_v18, %v293_v16  ;;  %v307_v34 = vrot.slane %v305_v21, 4  ;;  %v284_v41 = vrot.slane %v283_v25, 4  ;;  %v2540_v25 = vld [vmem:[%s2376_s28 + $0x34] sm:$0x1] }
  0x2c   : > { %v310_v42 = vrot.slane %v308_v26, 5  ;;  %v322_v47 = vshll.u32 %v2487_v0, 16  ;;  %v316_v54 = vrot.slane %v314_v36, 5  ;;  %v328_v55 = vshll.u32 %v2498_v20, 16  ;;  %v1961_v26 = vld [vmem:[%s2376_s28 + $0x30] sm:$0xe] }
  0x2d   : > { %2165 = vmatmul.mubr.msk.bf16.vlgmr.msra.gmra.mrb[0].mxu0 %vm353_vm2, %v1948_v30  ;;  %v298_v53 = vrot.slane %v297_v32, 4  ;;  %v1964_v56 = vrot.slane %v1956_v27, 9  ;;  %v289_v60 = vsel %vm2408_vm3, %v284_v41, %v288_v11  ;;  %v321_v62 = vrot.slane %v319_v44, 4  ;;  %v2548_v27 = vld [vmem:[%s2376_s28 + $0x3c] sm:$0x1] }
  0x2e   : > { %2173 = vmatpush3.bf16.msra.mxu0 %v2371_v3  ;;  %v311_v61 = vor.u32 %v310_v42, %v307_v34  ;;  %v324_v8 = vrot.slane %v322_v47, 5  ;;  %v330_v14 = vrot.slane %v328_v55, 5  ;;  %v1965_v3 = vrot.slane %v1957_v29, 9  ;;  %v2558_v34 = vld [vmem:[%s2376_s28 + $0x44] sm:$0x1] }
  0x2f   : > { %v303_v12 = vsel %vm2408_vm3, %v298_v53, %v302_v2  ;;  %v1083_v16 = vsel %vm2518_vm6, %v1964_v56, %v1082_v63  ;;  %2182 = vmatprep.subr.bf16.mxu0 %v2504_v22  ;;  %v1966_v24 = vrot.slane %v1958_v37, 9  ;;  %v1967_v2 = vrot.slane %v1959_v52, 9  ;;  %v1963_v44 = vld [vmem:[%s2376_s28 + $0x40] sm:$0xe]  ;;  %v535_v55 = vld [vmem:[%s2376_s28 + $0x8] sm:$0xe] }
  0x30   : > { %v1875_v11 = vcombine.low %v289_v60, %v303_v12  ;;  %v312_v18 = vrot.slane %v311_v61, 4  ;;  %v325_v21 = vor.u32 %v324_v8, %v321_v62  ;;  %v1087_v19 = vsel %vm2518_vm6, %v1965_v3, %v1086_v17  ;;  %v1962_v17 = vld [vmem:[%s2376_s28 + $0x38] sm:$0xe]  ;;  %v534_v47 = vld [vmem:[%s2376_s28] sm:$0xe] }
  0x31   : > { %v1968_v63 = vrot.slane %v1960_v59, 9  ;;  %v1974_v32 = vcombine.low %v1083_v16, %v1087_v19  ;;  %v1091_v23 = vsel %vm2518_vm6, %v1966_v24, %v1090_v45  ;;  %v1095_v36 = vsel %vm2518_vm6, %v1967_v2, %v1094_v49  ;;  %v2583_v60 = vld [vmem:[%s2854_s1 + $0x38] sm:$0xff]   ;;  %v538_v8 = vld [vmem:[%s2376_s28 + $0x20] sm:$0xe]  ;;  %v539_v3 = vld [vmem:[%s2376_s28 + $0x28] sm:$0xe] }
  0x32   : > { %2128 = vmatprep.mubr.msk.bf16.mxu1 %vm353_vm2, %v1875_v11  ;;  %v317_v29 = vsel %vm2408_vm3, %v312_v18, %v316_v54  ;;  %v326_v30 = vrot.slane %v325_v21, 4  ;;  %v1098_v37 = vrot.slane %v2530_v10, 5  ;;  %v1969_v41 = vrot.slane %v1961_v26, 9  ;;  %v537_v62 = vld [vmem:[%s2376_s28 + $0x18] sm:$0xe] }
  0x33   : > { %v1102_v42 = vrot.slane %v2540_v25, 5  ;;  %2174 = vmatprep.mubr.msk.bf16.mxu0 %vm353_vm2, %v1974_v32  ;;  %v1975_v45 = vcombine.low %v1091_v23, %v1095_v36  ;;  %v1882_v15 = vcombine.low %v2380_v4, %v2383_v5  ;;  %v1970_v54 = vrot.slane %v1962_v17, 9  ;;  %v536_v4 = vld [vmem:[%s2376_s28 + $0x10] sm:$0xe]  ;;  %v2633_v32 = vld [vmem:[%s2376_s28 + $0x38] sm:$0xe] }
  0x34   : > { %v331_v9 = vsel %vm2408_vm3, %v326_v30, %v330_v14  ;;  %v1099_v52 = vsel %vm2518_vm6, %v1968_v63, %v1098_v37  ;;  %v1106_v59 = vrot.slane %v2548_v27, 5  ;;  %v1971_v5 = vrot.slane %v1963_v44, 9  ;;  %v2004_v63 = vld [vmem:[%s2376_s28 + $0x18] sm:$0xf]  ;;  %v2636_v23 = vld [vmem:[%s2376_s28 + $0x14] sm:$0x1] }
  0x35   : > { %v1876_v49 = vcombine.low %v317_v29, %v331_v9  ;;  %v1103_v53 = vsel %vm2518_vm6, %v1969_v41, %v1102_v42  ;;  %v1110_v61 = vrot.slane %v2558_v34, 5  ;;  %v571_v12 = vrot.slane %v2422_v43, 5  ;;  %v2645_v36 = vld [vmem:[%s2376_s28 + $0x1c] sm:$0x1]  ;;  %v2006_v42 = vld [vmem:[%s2376_s28 + $0x20] sm:$0xf] }
  0x36   : > { %v1976_v56 = vcombine.low %v1099_v52, %v1103_v53  ;;  %v1891_v14 = vrot.slane %v534_v47, 9  ;;  %v1892_v16 = vrot.slane %v535_v55, 9  ;;  %v575_v11 = vrot.slane %v2429_v50, 5  ;;  %v2008_v47 = vld [vmem:[%s2376_s28 + $0x28] sm:$0xf] }
  0x37   : > { %2129 = vmatmul.mubr.msk.bf16.gmra.mrb[4].mxu1 %vm353_vm2, %v1876_v49  ;;  %v1107_v18 = vsel %vm2518_vm6, %v1970_v54, %v1106_v59  ;;  %v1111_v21 = vsel %vm2518_vm6, %v1971_v5, %v1110_v61  ;;  %v1893_v24 = vrot.slane %v536_v4, 9  ;;  %v1894_v26 = vrot.slane %v537_v62, 9  ;;  %v2666_v53 = vld [vmem:[%s2376_s28 + $0x24] sm:$0x1]  ;;  %v2677_v5 = vld [vmem:[%s2376_s28 + $0x2c] sm:$0x1] }
  0x38   : > { %2134 = vmatprep.mubr.msk.bf16.mxu1 %vm353_vm2, %v1882_v15  ;;  %v2605_v43 = vsel %vm2518_vm6, %v1891_v14, %v563_v35  ;;  %v2611_v50 = vsel %vm2518_vm6, %v1892_v16, %v567_v40  ;;  %v1895_v19 = vrot.slane %v538_v8, 9  ;;  %v1883_v6 = vcombine.low %v2414_v33, %v2418_v38  ;;  %v2620_v35 = vld [vmem:[%s2854_s1 + $0x18] sm:$0xff]   ;;  %v2624_v40 = vld [vmem:[%s2376_s28 + $0x30] sm:$0xe]  ;;  %v2299_v8 = vld [vmem:[%s2376_s28 + $0x20] ss:$8 sps:$4 sm:$0xff]  }
  0x39   : > { %2175 = vmatmul.mubr.msk.bf16.vlgmr.msra.gmra.mrb[0].mxu0 %vm353_vm2, %v1975_v45  ;;  %v579_v7 = vrot.slane %v2461_v39, 5  ;;  %v1896_v2 = vrot.slane %v539_v3, 9  ;;  %v1977_v29 = vcombine.low %v1107_v18, %v1111_v21  ;;  %v1884_v30 = vcombine.low %v2456_v31, %v2465_v46  ;;  %v2297_v38 = vld [vmem:[%s2376_s28 + $0x10] ss:$8 sps:$4 sm:$0xff]  }
  0x3a   : > { %2183 = vmatpush3.bf16.msra.mxu0 %v2504_v22  ;;  %2178 = vmatprep.mubr.msk.bf16.mxu0 %vm353_vm2, %v1976_v56  ;;  %v2002_v22 = vld [vmem:[%s2376_s28 + $0x10] sm:$0xf]  ;;  %v1885_v33 = vcombine.low %v2477_v57, %v2487_v0  ;;  %v1901_v39 = vcombine.low %v2605_v43, %v2611_v50  ;;  %v2642_v17 = vsel %vm2518_vm6, %v1893_v24, %v571_v12  ;;  %v583_v46 = vrot.slane %v2471_v51, 5 }
  0x3b   : > { %2192 = vmatprep.subr.bf16.mxu0 %v2583_v60  ;;  %v1358_v37 = vshrl.u32 %v2002_v22, 16  ;;  %v1361_v31 = vshll.u32 %v2002_v22, 16  ;;  %v1897_v57 = vrot.slane %v2624_v40, 9  ;;  %v587_v0 = vrot.slane %v2492_v13, 5  ;;  %v2688_v40 = vld [vmem:[%s2376_s28 + $0x34] sm:$0x1] }
  0x3c   : > { %v1372_v41 = vshrl.u32 %v2004_v63, 16  ;;  %v1898_v44 = vrot.slane %v2633_v32, 9  ;;  %v1367_v15 = vshll.u32 %v2636_v23, 16  ;;  %v2659_v51 = vsel %vm2518_vm6, %v1894_v26, %v575_v11  ;;  %v2301_v11 = vld [vmem:[%s2376_s28 + $0x30] ss:$8 sps:$4 sm:$0xff]  }
  0x3d   : > { %v1360_v9 = vrot.slane %v1358_v37, 4  ;;  %v1363_v45 = vrot.slane %v1361_v31, 5  ;;  %v2663_v13 = vsel %vm2518_vm6, %v1895_v19, %v579_v7  ;;  %v1375_v52 = vshll.u32 %v2004_v63, 16  ;;  %v2012_v63 = vld [vmem:[%s2376_s28 + $0x38] sm:$0xf] }
  0x3e   : > { %v1374_v49 = vrot.slane %v1372_v41, 4  ;;  %v1381_v54 = vshll.u32 %v2645_v36, 16  ;;  %v1386_v55 = vshrl.u32 %v2006_v42, 16  ;;  %v1389_v56 = vshll.u32 %v2006_v42, 16  ;;  %v2706_v37 = vld [vmem:[%s2376_s28 + $0x3c] sm:$0x1] }
  0x3f   : > { %2135 = vmatmul.mubr.msk.bf16.vlgmr.msra.gmra.mrb[0].mxu1 %vm353_vm2, %v1883_v6  ;;  %v2674_v59 = vsel %vm2518_vm6, %v1896_v2, %v583_v46  ;;  %v1377_v4 = vrot.slane %v1375_v52, 5  ;;  %v1400_v61 = vshrl.u32 %v2008_v47, 16  ;;  %v1403_v62 = vshll.u32 %v2008_v47, 16  ;;  %v2010_v6 = vld [vmem:[%s2376_s28 + $0x30] sm:$0xf] }
  0x40   : > { %2143 = vmatpush3.bf16.msra.mxu1 %v2482_v58  ;;  %2138 = vmatprep.mubr.msk.bf16.mxu1 %vm353_vm2, %v1884_v30  ;;  %v1364_v58 = vor.u32 %v1363_v45, %v1360_v9  ;;  %v1369_v12 = vrot.slane %v1367_v15, 5  ;;  %v1388_v14 = vrot.slane %v1386_v55, 4  ;;  %v1391_v16 = vrot.slane %v1389_v56, 5  ;;  %v2014_v41 = vld [vmem:[%s2376_s28 + $0x40] sm:$0xf] }
  0x41   : > { %2179 = vmatmul.mubr.msk.bf16.gmra.mrb[4].mxu0 %vm353_vm2, %v1977_v29  ;;  %2152 = vmatprep.subr.bf16.mxu1 %v2620_v35  ;;  %v1395_v3 = vshll.u32 %v2666_v53, 16  ;;  %v1378_v21 = vor.u32 %v1377_v4, %v1374_v49  ;;  %v1402_v24 = vrot.slane %v1400_v61, 4  ;;  %v1405_v43 = vrot.slane %v1403_v62, 5  ;;  %v2016_v47 = vld [vmem:[%s2376_s28 + $0x48] sm:$0xf] }
  0x42   : > { %2184 = vmatprep.mubr.msk.bf16.mxu0 %vm353_vm2, %v2297_v38  ;;  %v1365_v18 = vrot.slane %v1364_v58, 4  ;;  %v591_v50 = vrot.slane %v2498_v20, 5  ;;  %v1383_v26 = vrot.slane %v1381_v54, 5  ;;  %v1392_v19 = vor.u32 %v1391_v16, %v1388_v14  ;;  %v2701_v38 = vld [vmem:[%s2854_s1 + $0x40] sm:$0xff]   ;;  %v2730_v62 = vld [vmem:[%s2376_s28 + $0x4c] sm:$0x1] }
  0x43   : > { %v1409_v22 = vshll.u32 %v2677_v5, 16  ;;  %v1902_v7 = vcombine.low %v2642_v17, %v2659_v51  ;;  %v1379_v2 = vrot.slane %v1378_v21, 4  ;;  %v1414_v29 = vshrl.u32 %v2010_v6, 16  ;;  %v2721_v52 = vld [vmem:[%s2376_s28 + $0x44] sm:$0x1] }
  0x44   : > { %v1903_v30 = vcombine.low %v2663_v13, %v2674_v59  ;;  %v2696_v20 = vsel %vm2518_vm6, %v1897_v57, %v587_v0  ;;  %v2703_v17 = vrot.slane %v1395_v3, 5  ;;  %v1417_v31 = vshll.u32 %v2010_v6, 16  ;;  %v2302_v58 = vld [vmem:[%s2376_s28 + $0x40] ss:$8 sps:$4 sm:$0xff]  }
  0x45   : > { %v1406_v46 = vor.u32 %v1405_v43, %v1402_v24  ;;  %v1416_v57 = vrot.slane %v1414_v29, 4  ;;  %v1428_v0 = vshrl.u32 %v2012_v63, 16  ;;  %v1384_v42 = vsel %vm2408_vm3, %v1379_v2, %v1383_v26 }
  0x46   : > { %v1393_v9 = vrot.slane %v1392_v19, 4  ;;  %v1419_v45 = vrot.slane %v1417_v31, 5  ;;  %v1423_v15 = vshll.u32 %v2688_v40, 16  ;;  %v1431_v13 = vshll.u32 %v2012_v63, 16  ;;  %v2029_v19 = vld [vmem:[%s2376_s28 + $0x10] sm:$0xe] }
  0x47   : > { %2139 = vmatmul.mubr.msk.bf16.gmra.mrb[4].mxu1 %vm353_vm2, %v1885_v33  ;;  %v1370_v33 = vsel %vm2408_vm3, %v1365_v18, %v1369_v12  ;;  %v1430_v51 = vrot.slane %v1428_v0, 4  ;;  %v1437_v49 = vshll.u32 %v2706_v37, 16  ;;  %v592_v54 = vsel %vm2518_vm6, %v1898_v44, %v591_v50  ;;  %v1939_v31 = vld [vmem:[%s2376_s28 + $0x30] sm:$0xf] }
  0x48   : > { %2144 = vmatprep.mubr.msk.bf16.mxu1 %vm353_vm2, %v1901_v39  ;;  %v1411_v39 = vrot.slane %v1409_v22, 5  ;;  %v1420_v55 = vor.u32 %v1419_v45, %v1416_v57  ;;  %v1445_v56 = vshll.u32 %v2014_v41, 16  ;;  %v2020_v59 = vcombine.low %v1370_v33, %v1384_v42  ;;  %v2304_v0 = vld [vmem:[%s2376_s28 + $0x8] ss:$8 sps:$4 sm:$0xff]  }
  0x49   : > { %2185 = vmatmul.mubr.msk.bf16.vlgmr.msra.gmra.mrb[0].mxu0 %vm353_vm2, %v2299_v8  ;;  %v1407_v4 = vrot.slane %v1406_v46, 4  ;;  %v1433_v61 = vrot.slane %v1431_v13, 5  ;;  %v1456_v8 = vshrl.u32 %v2016_v47, 16  ;;  %v1425_v12 = vrot.slane %v1423_v15, 5 }
  0x4a   : > { %2193 = vmatpush3.bf16.msra.mxu0 %v2583_v60  ;;  %2188 = vmatprep.mubr.msk.bf16.mxu0 %vm353_vm2, %v2301_v11  ;;  %v1442_v60 = vshrl.u32 %v2014_v41, 16  ;;  %v1447_v16 = vrot.slane %v1445_v56, 5  ;;  %v1459_v3 = vshll.u32 %v2016_v47, 16  ;;  %v1421_v32 = vrot.slane %v1420_v55, 4 }
  0x4b   : > { %2202 = vmatprep.subr.bf16.mxu0 %v2701_v38  ;;  %v1434_v11 = vor.u32 %v1433_v61, %v1430_v51  ;;  %v1451_v44 = vshll.u32 %v2721_v52, 16  ;;  %v1458_v18 = vrot.slane %v1456_v8, 4  ;;  %v1439_v21 = vrot.slane %v1437_v49, 5 }
  0x4c   : > { %v1444_v14 = vrot.slane %v1442_v60, 4  ;;  %v1461_v24 = vrot.slane %v1459_v3, 5  ;;  %v1465_v43 = vshll.u32 %v2730_v62, 16  ;;  %v1904_v22 = vcombine.low %v2696_v20, %v592_v54  ;;  %v1937_v20 = vld [vmem:[%s2376_s28 + $0x28] sm:$0xf] }
  0x4d   : > { %v1435_v50 = vrot.slane %v1434_v11, 4  ;;  %v1601_v2 = vrot.slane %v2636_v23, 5  ;;  %v1412_v63 = vsel %vm2408_vm3, %v1407_v4, %v1411_v39  ;;  %v1426_v29 = vsel %vm2408_vm3, %v1421_v32, %v1425_v12  ;;  %v2305_v3 = vld [vmem:[%s2376_s28 + $0x18] ss:$8 sps:$4 sm:$0xff]  }
  0x4e   : > { %v1448_v26 = vor.u32 %v1447_v16, %v1444_v14  ;;  %v1462_v6 = vor.u32 %v1461_v24, %v1458_v18  ;;  %v1467_v46 = vrot.slane %v1465_v43, 5  ;;  %v2037_v23 = vrot.slane %v2029_v19, 9  ;;  %v1941_v14 = vld [vmem:[%s2376_s28 + $0x38] sm:$0xf]  ;;  %v1943_v16 = vld [vmem:[%s2376_s28 + $0x40] sm:$0xf] }
  0x4f   : > { %2145 = vmatmul.mubr.msk.bf16.vlgmr.msra.gmra.mrb[0].mxu1 %vm353_vm2, %v1902_v7  ;;  %v2030_v7 = vld [vmem:[%s2376_s28 + $0x18] sm:$0xe]  ;;  %v1440_v33 = vsel %vm2408_vm3, %v1435_v50, %v1439_v21  ;;  %v1605_v57 = vrot.slane %v2645_v36, 5  ;;  %v898_v15 = vshll.u32 %v1937_v20, 16  ;;  %v909_v47 = vshrl.u32 %v1939_v31, 16 }
  0x50   : > { %2153 = vmatpush3.bf16.msra.mxu1 %v2620_v35  ;;  %2148 = vmatprep.mubr.msk.bf16.mxu1 %vm353_vm2, %v1903_v30  ;;  %v1398_v35 = vsel %vm2408_vm3, %v1393_v9, %v2703_v17  ;;  %v1453_v30 = vrot.slane %v1451_v44, 5  ;;  %v1449_v41 = vrot.slane %v1448_v26, 4  ;;  %v1463_v17 = vrot.slane %v1462_v6, 4  ;;  %v2031_v36 = vld [vmem:[%s2376_s28 + $0x20] sm:$0xe] }
  0x51   : > { %2189 = vmatmul.mubr.msk.bf16.gmra.mrb[4].mxu0 %vm353_vm2, %v2302_v58  ;;  %2212 = vmatprep.subr.bf16.mxu1 %v2355_v1  ;;  %v2038_v42 = vrot.slane %v2030_v7, 9  ;;  %v895_v9 = vshrl.u32 %v1937_v20, 16  ;;  %v2021_v45 = vcombine.low %v1398_v35, %v1412_v63  ;;  %v2022_v39 = vcombine.low %v1426_v29, %v1440_v33  ;;  %v2034_v50 = vld [vmem:[%s2376_s28 + $0x38] sm:$0xe]  ;;  %v2306_v26 = vld [vmem:[%s2376_s28 + $0x28] ss:$8 sps:$4 sm:$0xff]  }
  0x52   : > { %2194 = vmatprep.mubr.msk.bf16.mxu0 %vm353_vm2, %v2020_v59  ;;  %v912_v13 = vshll.u32 %v1939_v31, 16  ;;  %v1602_v49 = vsel %vm2518_vm6, %v2037_v23, %v1601_v2  ;;  %v900_v58 = vrot.slane %v898_v15, 5  ;;  %v911_v54 = vrot.slane %v909_v47, 4  ;;  %v2032_v59 = vld [vmem:[%s2376_s28 + $0x28] sm:$0xe] }
  0x53   : > { %v897_v51 = vrot.slane %v895_v9, 4  ;;  %v1454_v55 = vsel %vm2408_vm3, %v1449_v41, %v1453_v30  ;;  %v1468_v60 = vsel %vm2408_vm3, %v1463_v17, %v1467_v46  ;;  %v1606_v56 = vsel %vm2518_vm6, %v2038_v42, %v1605_v57  ;;  %v2035_v41 = vld [vmem:[%s2376_s28 + $0x40] sm:$0xe]  ;;  %v2036_v17 = vld [vmem:[%s2376_s28 + $0x48] sm:$0xe] }
  0x54   : > { %v914_v4 = vrot.slane %v912_v13, 5  ;;  %v904_v8 = vshll.u32 %v2530_v10, 16  ;;  %v918_v12 = vshll.u32 %v2540_v25, 16  ;;  %v2039_v32 = vrot.slane %v2031_v36, 9  ;;  %v2033_v10 = vld [vmem:[%s2376_s28 + $0x30] sm:$0xe] }
  0x55   : > { %v901_v61 = vor.u32 %v900_v58, %v897_v51  ;;  %v1609_v11 = vrot.slane %v2666_v53, 5  ;;  %v2023_v18 = vcombine.low %v1454_v55, %v1468_v60  ;;  %v2047_v21 = vcombine.low %v1602_v49, %v1606_v56 }
  0x56   : > { %v915_v44 = vor.u32 %v914_v4, %v911_v54  ;;  %v2040_v24 = vrot.slane %v2032_v59, 9  ;;  %v1613_v43 = vrot.slane %v2677_v5, 5  ;;  %v923_v25 = vshrl.u32 %v1941_v14, 16 }
  0x57   : > { %2149 = vmatmul.mubr.msk.bf16.gmra.mrb[4].mxu1 %vm353_vm2, %v1904_v22  ;;  %v926_v19 = vshll.u32 %v1941_v14, 16  ;;  %v937_v22 = vshrl.u32 %v1943_v16, 16  ;;  %v940_v6 = vshll.u32 %v1943_v16, 16  ;;  %v906_v7 = vrot.slane %v904_v8, 5 }
  0x58   : > { %2154 = vmatprep.mubr.msk.bf16.mxu1 %vm353_vm2, %v2304_v0  ;;  %v916_v2 = vrot.slane %v915_v44, 4  ;;  %v920_v35 = vrot.slane %v918_v12, 5  ;;  %v2041_v63 = vrot.slane %v2033_v10, 9  ;;  %v1617_v53 = vrot.slane %v2688_v40, 5  ;;  %v2307_v0 = vld [vmem:[%s2376_s28 + $0x38] ss:$8 sps:$4 sm:$0xff]  }
  0x59   : > { %2195 = vmatmul.mubr.msk.bf16.vlgmr.msra.gmra.mrb[0].mxu0 %vm353_vm2, %v2021_v45  ;;  %v2042_v29 = vrot.slane %v2034_v50, 9  ;;  %v1621_v30 = vrot.slane %v2706_v37, 5  ;;  %v925_v5 = vrot.slane %v923_v25, 4  ;;  %v928_v20 = vrot.slane %v926_v19, 5 }
  0x5a   : > { %2203 = vmatpush3.bf16.msra.mxu0 %v2701_v38  ;;  %2198 = vmatprep.mubr.msk.bf16.mxu0 %vm353_vm2, %v2022_v39  ;;  %v902_v38 = vrot.slane %v901_v61, 4  ;;  %v939_v31 = vrot.slane %v937_v22, 4  ;;  %v942_v33 = vrot.slane %v940_v6, 5  ;;  %v932_v46 = vshll.u32 %v2548_v27, 16 }
  0x5b   : > { %v921_v37 = vsel %vm2408_vm3, %v916_v2, %v920_v35  ;;  %v1614_v23 = vsel %vm2518_vm6, %v2040_v24, %v1613_v43  ;;  %v1618_v57 = vsel %vm2518_vm6, %v2041_v63, %v1617_v53  ;;  %v1622_v27 = vsel %vm2518_vm6, %v2042_v29, %v1621_v30 }
  0x5c   : > { %v907_v40 = vsel %vm2408_vm3, %v902_v38, %v906_v7  ;;  %v946_v42 = vshll.u32 %v2558_v34, 16  ;;  %v929_v45 = vor.u32 %v928_v20, %v925_v5  ;;  %v943_v15 = vor.u32 %v942_v33, %v939_v31 }
  0x5d   : > { %v1949_v9 = vcombine.low %v907_v40, %v921_v37  ;;  %v2049_v39 = vcombine.low %v1618_v57, %v1622_v27  ;;  %v2043_v51 = vrot.slane %v2035_v41, 9  ;;  %v1625_v13 = vrot.slane %v2721_v52, 5 }
  0x5e   : > { %v2044_v49 = vrot.slane %v2036_v17, 9  ;;  %v1629_v36 = vrot.slane %v2730_v62, 5  ;;  %v934_v58 = vrot.slane %v932_v46, 5  ;;  %v948_v54 = vrot.slane %v946_v42, 5 }
  0x5f   : > { %2155 = vmatmul.mubr.msk.bf16.vlgmr.msra.gmra.mrb[0].mxu1 %vm353_vm2, %v2305_v3  ;;  %v930_v55 = vrot.slane %v929_v45, 4  ;;  %v944_v60 = vrot.slane %v943_v15, 4  ;;  %v1626_v34 = vsel %vm2518_vm6, %v2043_v51, %v1625_v13 }
  0x60   : > { %2213 = vmatpush3.bf16.msra.mxu1 %v2355_v1  ;;  %2158 = vmatprep.mubr.msk.bf16.mxu1 %vm353_vm2, %v2306_v26  ;;  %v1610_v1 = vsel %vm2518_vm6, %v2039_v32, %v1609_v11  ;;  %v1630_v52 = vsel %vm2518_vm6, %v2044_v49, %v1629_v36 }
  0x61   : > { %2199 = vmatmul.mubr.msk.bf16.gmra.mrb[4].mxu0 %vm353_vm2, %v2023_v18  ;;  %v2048_v47 = vcombine.low %v1610_v1, %v1614_v23  ;;  %v935_v62 = vsel %vm2408_vm3, %v930_v55, %v934_v58  ;;  %v949_v56 = vsel %vm2408_vm3, %v944_v60, %v948_v54  ;;  %v2050_v59 = vcombine.low %v1626_v34, %v1630_v52 }
  0x62   : > { %2204 = vmatprep.mubr.msk.bf16.mxu0 %vm353_vm2, %v2047_v21  ;;  %v1950_v4 = vcombine.low %v935_v62, %v949_v56 }
  0x67   : > { %2159 = vmatmul.mubr.msk.bf16.gmra.mrb[4].mxu1 %vm353_vm2, %v2307_v0 }
  0x68   : > { %2168 = vmatprep.mubr.msk.bf16.mxu1 %vm353_vm2, %v1949_v9 }
  0x69   : > { %2205 = vmatmul.mubr.msk.bf16.vlgmr.msra.gmra.mrb[0].mxu0 %vm353_vm2, %v2048_v47 }
  0x6a   : > { %2208 = vmatprep.mubr.msk.bf16.mxu0 %vm353_vm2, %v2049_v39 }
  0x71   : > { %2209 = vmatmul.mubr.msk.bf16.gmra.mrb[4].mxu0 %vm353_vm2, %v2050_v59 }
  0x73   : > { %2169 = vmatmul.mubr.msk.bf16.vlgmr.msra.gmra.mrb[4].mxu1 %vm353_vm2, %v1950_v4 }
 0x132   : > { %v2156_v61 = vpop.f32.mrb[0].mxu1 }
 0x133   : > { %v783_v8 = vpop.f32.mrb[1].mxu1 }
 0x134   : > { %v2157_v12 = vpop.f32.mrb[2].mxu1 }
 0x135   : > { %v786_v14 = vpop.f32.mrb[3].mxu1 }
 0x13c   : > { %v2206_v16 = vpop.f32.mrb[0].mxu0 }
 0x13d   : > { %v2214_v3 = vadd.f32 %v2206_v16, %v2156_v61  ;;  %v1698_v32 = vpop.f32.mrb[1].mxu0 }
 0x13e   : > { %v2215_v11 = vadd.f32 %v1698_v32, %v783_v8  ;;  %v2207_v44 = vpop.f32.mrb[2].mxu0 }
 0x13f   : > { %v1746_v18 = vmul.f32 %v2214_v3, %v2056_v48  ;;  %v2216_v21 = vadd.f32 %v2207_v44, %v2157_v12  ;;  %v1701_v24 = vpop.f32.mrb[3].mxu0 }
 0x140   : > { %v1744_v43 = vmul.f32 %v2215_v11, %v2056_v48  ;;  %v2217_v10 = vadd.f32 %v1701_v24, %v786_v14 }
 0x141   : > { %v1761_v50 = vadd.f32 %v2057_v28, %v1746_v18  ;;  %v1747_v26 = vmul.f32 %v2216_v21, %v2056_v48 }
 0x142   : > { %v1759_v25 = vadd.f32 %v2057_v28, %v1744_v43  ;;  %v1745_v19 = vmul.f32 %v2217_v10, %v2056_v48 }
 0x143   : > { %v2071_v22 = vpack.c.bf16 %v1761_v50, %v1761_v50  ;;  %v1762_v6 = vadd.f32 %v2057_v28, %v1747_v26 }
 0x144   : > { %v2069_v38 = vpack.c.bf16 %v1759_v25, %v1759_v25  ;;  %v1760_v7 = vadd.f32 %v2057_v28, %v1745_v19  ;;  %v2210_v2 = vpop.f32.mrb[4].mxu0 }
 0x145   : > { %1802 = vst.msk [vmem:[%s2832_s22 + $0x8] sm:$0xf] %vm1799_vm7, %v2071_v22  ;;  %v2072_v35 = vpack.c.bf16 %v1762_v6, %v1762_v6  ;;  %v1714_v63 = vpop.f32.mrb[5].mxu0 }
 0x146   : > { %1800 = vst.msk [vmem:[%s2832_s22] sm:$0xf] %vm1799_vm7, %v2069_v38  ;;  %v2070_v53 = vpack.c.bf16 %v1760_v7, %v1760_v7  ;;  %v2170_v29 = vpop.f32.mrb[4].mxu1  ;;  %v2211_v30 = vpop.f32.mrb[6].mxu0 }
 0x147   : > { %1803 = vst.msk [vmem:[%s2832_s22 + $0xc] sm:$0xf] %vm1799_vm7, %v2072_v35  ;;  %v2218_v5 = vadd.f32 %v2210_v2, %v2170_v29  ;;  %v1033_v20 = vpop.f32.mrb[5].mxu1  ;;  %v1717_v31 = vpop.f32.mrb[7].mxu0 }
 0x148   : > { %1801 = vst.msk [vmem:[%s2832_s22 + $0x4] sm:$0xf] %vm1799_vm7, %v2070_v53  ;;  %v2219_v33 = vadd.f32 %v1714_v63, %v1033_v20  ;;  %v2171_v46 = vpop.f32.mrb[6].mxu1 }
 0x149   : > { %v1750_v40 = vmul.f32 %v2218_v5, %v2056_v48  ;;  %v2220_v37 = vadd.f32 %v2211_v30, %v2171_v46  ;;  %v1036_v1 = vpop.f32.mrb[7].mxu1 }
 0x14a   : > { %v1748_v23 = vmul.f32 %v2219_v33, %v2056_v48  ;;  %v2221_v57 = vadd.f32 %v1717_v31, %v1036_v1 }
 0x14b   : > { %v1765_v27 = vadd.f32 %v2057_v28, %v1750_v40  ;;  %v1751_v0 = vmul.f32 %v2220_v37, %v2056_v48 }
 0x14c   : > { %v1763_v41 = vadd.f32 %v2057_v28, %v1748_v23  ;;  %v1749_v17 = vmul.f32 %v2221_v57, %v2056_v48 }
 0x14d   : > { %v2075_v42 = vpack.c.bf16 %v1765_v27, %v1765_v27  ;;  %v1766_v9 = vadd.f32 %v2057_v28, %v1751_v0 }
 0x14e   : > { %v2073_v45 = vpack.c.bf16 %v1763_v41, %v1763_v41  ;;  %v1764_v15 = vadd.f32 %v2057_v28, %v1749_v17 }
 0x14f   : > { %1806 = vst.msk [vmem:[%s2832_s22 + $0x18] sm:$0xf] %vm1799_vm7, %v2075_v42  ;;  %v2076_v47 = vpack.c.bf16 %v1766_v9, %v1766_v9 }
 0x150   : > { %1804 = vst.msk [vmem:[%s2832_s22 + $0x10] sm:$0xf] %vm1799_vm7, %v2073_v45  ;;  %v2074_v39 = vpack.c.bf16 %v1764_v15, %v1764_v15 }
 0x151   : > { %1807 = vst.msk [vmem:[%s2832_s22 + $0x1c] sm:$0xf] %vm1799_vm7, %v2076_v47 }
 0x152   : > { %1805 = vst.msk [vmem:[%s2832_s22 + $0x14] sm:$0xf] %vm1799_vm7, %v2074_v39 }
 0x153 PF: > { %s14_s15 = sadd.s32 1, %s2314_s15  }
 0x154   : > { %p11_p4 = scmp.ge.s32.totalorder %s14_s15, 8  }
 0x156   :  { %13 = sbr.rel (!%p11_p4) target bundleno = 1 (0x1), region = 76 }

// kernel: forward.25
= control target key start
LH: loop header
LB: loop body
LE: loop exit
PB: predicated region body
PF: predicated region fallthrough
CT: control target
= control target key end

     0   :  { %s587_s9 = smov 0   ;;  %s589_s10 = smov 0   ;;  %s655_s0 = inlined_call_operand.vmem [shape: bf16[6,8,4,2,16], index: 0, kind: input, shape index: {}, may-alias: {0,1}]   ;;  %s656_s1 = inlined_call_operand.vmem [shape: bf16[6,8,4,2,16], index: 1, kind: input, shape index: {}, may-alias: {0,1}]   ;;  %s657_s2 = inlined_call_operand.vmem [shape: bf16[6,4,4,16], index: 2, kind: output, shape index: {}]  }
   0x1   :  { %s591_s11 = smov 0   ;;  %s593_s12 = smov 0  }
   0x2   :  { %s595_s13 = smov 0  }
   0x3 LB: > { %s21_s14 = sadd.s32 1, %s561_s11  ;;  %s24_s15 = sadd.s32 1, %s565_s12  ;;  %s569_s13 = sphi %s595_s13, %s12_s13   ;;  %s565_s12 = sphi %s593_s12, %s661_s12   ;;  %s561_s11 = sphi %s591_s11, %s660_s11   ;;  %s557_s10 = sphi %s589_s10, %s659_s10   ;;  %s553_s9 = sphi %s587_s9, %s658_s9  }
   0x4   : > { %p22_p0 = scmp.ge.s32.totalorder %s21_s14, 4  ;;  %p479_p1 = scmp.ge.s32.totalorder %s569_s13, 1 }
   0x5   : > { %p158_p2 = scmp.lt.s32.totalorder %s569_s13, 25 }
   0x6   : > { %s663_s14 = smov (%p22_p0, %s21_s14), 0  ;;  %s665_s15 = smov (!%p22_p0, %s24_s15), %s565_s12 }
   0x7   : > { %p159_p3 = pnand %p479_p1, %p158_p2  ;;  %p26_p4 = scmp.ge.s32.totalorder %s665_s15, 6 }
   0x8   : > { %s480_s16 = sshll.u32 (!%p159_p3), %s553_s9, 1  ;;  %p198_p5 = scmp.lt.s32.totalorder (!%p159_p3), %s557_s10, 5  ;;  %vm247_vm0 = vcmask (!%p159_p3), 123904   ;;  %v291_v32 = vlaneseq (!%p159_p3)  ;;  %v571_v36 = vmov (!%p159_p3), 1983009808   ;;  %vm349_vm1 = vcmask (!%p159_p3), 1041409  }
   0x9   : > { %s667_s15 = smov (%p26_p4, %s665_s15), 0  ;;  %162 = sbr.rel (%p159_p3) target bundleno = 60 (0x3c), region = 28 }
   0xa   : > { %p200_p6 = scmp.lt.s32.totalorder (!%p159_p3), %s480_s16, 7  ;;  %s208_s17 = sadd.s32 (!%p159_p3), 1, %s480_s16  ;;  %v289_v37 = vunpack.c.l.s4 (!%p159_p3), %v571_v36  ;;  %v292_v43 = vshrl.u32 (!%p159_p3), %v291_v32, 7  ;;  %vm352_vm2 = vcmask (!%p159_p3), 1042434   ;;  %vm355_vm3 = vcmask (!%p159_p3), 1043459  }
   0xb   : > { %p211_p7 = scmp.lt.s32.totalorder (!%p159_p3), %s208_s17, 7  ;;  %p221_p8 = scmp.lt.s32.totalorder (!%p159_p3), %s553_s9, 3 }
   0xc   : > { %v290_v47 = vunpack.c.0.s8 (!%p159_p3), %v289_v37 }
   0xe   : > { %v293_v56 = vsub.s32 (!%p159_p3), %v290_v47, %v292_v43 }
  0x10   : > { %s669_s10 = smov (!%p198_p5, %s557_s10), 5  ;;  %s671_s16 = smov (!%p200_p6, %s480_s16), 7 }
  0x11   : > { %s482_s18 = sshll.u32 %s669_s10, 5  ;;  %s481_s19 = sshll.u32 %s671_s16, 2 }
  0x12   : > { %s204_s20 = sadd.s32 %s482_s18, %s481_s19  ;;  %s673_s17 = smov (!%p211_p7, %s208_s17), 7 }
  0x13   : > { %s205_s23 = scalar_lea.vmem %s655_s0, %s204_s20  ;;  %s484_s24 = sshll.u32 %s673_s17, 2 }
  0x14   : > { %v227_v0 = vld [vmem:[%s205_s23] sm:$0x1]  ;;  %v228_v1 = vld [vmem:[%s205_s23 + $0x1] sm:$0x1]  ;;  %v229_v2 = vld [vmem:[%s205_s23 + $0x2] sm:$0x1]  ;;  %s215_s25 = sadd.s32 %s484_s24, %s482_s18 }
  0x15   : > { %v230_v3 = vld [vmem:[%s205_s23 + $0x3] sm:$0x1]  ;;  %s216_s28 = scalar_lea.vmem %s656_s1, %s215_s25  ;;  %v231_v4 = vunpack.c.l.bf16 %v227_v0  ;;  %v232_v5 = vunpack.c.l.bf16 %v228_v1  ;;  %v233_v6 = vunpack.c.l.bf16 %v229_v2  ;;  %s675_s9 = smov (!%p221_p8, %s553_s9), 3 }
  0x16   : > { %v234_v7 = vunpack.c.l.bf16 %v230_v3  ;;  %v235_v8 = vld [vmem:[%s216_s28] sm:$0x1]  ;;  %v236_v9 = vld [vmem:[%s216_s28 + $0x1] sm:$0x1]  ;;  %v237_v10 = vld [vmem:[%s216_s28 + $0x2] sm:$0x1] }
  0x17   : > { %v238_v11 = vld [vmem:[%s216_s28 + $0x3] sm:$0x1]  ;;  %v239_v12 = vunpack.c.l.bf16 %v235_v8  ;;  %v240_v13 = vunpack.c.l.bf16 %v236_v9  ;;  %v241_v14 = vunpack.c.l.bf16 %v237_v10  ;;  %s486_s29 = sshll.u32 %s669_s10, 2 }
  0x18   : > { %v242_v15 = vunpack.c.l.bf16 %v238_v11  ;;  %s224_s30 = sadd.s32 %s486_s29, %s675_s9 }
  0x19   : > { %v243_v16 = vadd.f32 %v239_v12, %v231_v4  ;;  %v244_v17 = vadd.f32 %v240_v13, %v232_v5  ;;  %v245_v18 = vadd.f32 %v241_v14, %v233_v6  ;;  %s487_s3 = sshll.u32 %s224_s30, 1 }
  0x1a   : > { %v246_v19 = vadd.f32 %v242_v15, %v234_v7  ;;  %s226_s6 = scalar_lea.vmem %s657_s2, %s487_s3 }
  0x1b   : > { %v248_v20 = vsel %vm247_vm0, %v243_v16, 0.0  ;;  %v255_v21 = vsel %vm247_vm0, %v244_v17, 0.0  ;;  %v262_v22 = vsel %vm247_vm0, %v245_v18, 0.0 }
  0x1c   : > { %v249_v23 = vrot.slane %v248_v20, 4  ;;  %v256_v24 = vrot.slane %v255_v21, 4  ;;  %v263_v25 = vrot.slane %v262_v22, 4  ;;  %v269_v26 = vsel %vm247_vm0, %v246_v19, 0.0 }
  0x1d   : > { %v270_v27 = vrot.slane %v269_v26, 4 }
  0x1e   : > { %v250_v28 = vadd.f32 %v249_v23, %v248_v20  ;;  %v257_v29 = vadd.f32 %v256_v24, %v255_v21  ;;  %v264_v30 = vadd.f32 %v263_v25, %v262_v22 }
  0x1f   : > { %v271_v31 = vadd.f32 %v270_v27, %v269_v26 }
  0x20   : > { %v251_v33 = vrot.slane %v250_v28, 2  ;;  %v258_v34 = vrot.slane %v257_v29, 2  ;;  %v265_v35 = vrot.slane %v264_v30, 2 }
  0x21   : > { %v272_v38 = vrot.slane %v271_v31, 2 }
  0x22   : > { %v252_v39 = vadd.f32 %v251_v33, %v250_v28  ;;  %v259_v40 = vadd.f32 %v258_v34, %v257_v29  ;;  %v266_v41 = vadd.f32 %v265_v35, %v264_v30 }
  0x23   : > { %v273_v42 = vadd.f32 %v272_v38, %v271_v31 }
  0x24   : > { %v253_v44 = vrot.slane %v252_v39, 1  ;;  %v260_v45 = vrot.slane %v259_v40, 1  ;;  %v267_v46 = vrot.slane %v266_v41, 1 }
  0x25   : > { %v274_v48 = vrot.slane %v273_v42, 1 }
  0x26   : > { %v254_v49 = vadd.f32 %v253_v44, %v252_v39  ;;  %v261_v50 = vadd.f32 %v260_v45, %v259_v40  ;;  %v268_v51 = vadd.f32 %v267_v46, %v266_v41 }
  0x27   : > { %v275_v52 = vadd.f32 %v274_v48, %v273_v42 }
  0x28   : > { %v276_v53 = vmul.f32 0.25, %v254_v49  ;;  %v277_v54 = vmul.f32 0.25, %v261_v50  ;;  %v278_v55 = vmul.f32 0.25, %v268_v51 }
  0x29   : > { %v279_v57 = vmul.f32 0.25, %v275_v52 }
  0x2a   : > { %v280_v58 = vpack.c.bf16 %v276_v53, %v276_v53  ;;  %v281_v59 = vpack.c.bf16 %v277_v54, %v277_v54  ;;  %v282_v60 = vpack.c.bf16 %v278_v55, %v278_v55 }
  0x2b   : > { %v283_v61 = vpack.c.bf16 %v279_v57, %v279_v57 }
  0x2c   : > { %v294_v62 = vrot.slane %v280_v58, %v293_v56  ;;  %v301_v63 = vrot.slane %v281_v59, %v293_v56  ;;  %v308_v0 = vrot.slane %v282_v60, %v293_v56 }
  0x2d   : > { %v315_v1 = vrot.slane %v283_v61, %v293_v56 }
  0x2e   : > { %v322_v2 = vrot.slane %v294_v62, %v293_v56  ;;  %v329_v3 = vrot.slane %v301_v63, %v293_v56  ;;  %v336_v4 = vrot.slane %v308_v0, %v293_v56 }
  0x2f   : > { %v343_v5 = vrot.slane %v315_v1, %v293_v56 }
  0x30   : > { %v344_v6 = vunpack.c.l.b16 %v322_v2  ;;  %v345_v7 = vunpack.c.l.b16 %v329_v3  ;;  %v346_v8 = vunpack.c.l.b16 %v336_v4 }
  0x31   : > { %v347_v9 = vunpack.c.l.b16 %v343_v5 }
  0x32   : > { %v348_v10 = vrot.slane %v345_v7, 7  ;;  %v351_v11 = vrot.slane %v346_v8, 6 }
  0x33   : > { %v354_v12 = vrot.slane %v347_v9, 5 }
  0x34   : > { %v350_v13 = vsel %vm349_vm1, %v348_v10, %v344_v6 }
  0x35   : > { %v353_v14 = vsel %vm352_vm2, %v351_v11, %v350_v13 }
  0x36   : > { %v356_v15 = vsel %vm355_vm3, %v354_v12, %v353_v14 }
  0x37   : > { %v357_v16 = vpack.c.b16 %v356_v15, %v356_v15 }
  0x39   : > { %v364_v17 = vrot.slane %v357_v16, %v293_v56 }
  0x3b   : > { %366 = vst.msk [vmem:[%s226_s6] sm:$0x3] %vm247_vm0, %v364_v17 }
  0x3c PF: > { %s12_s13 = sadd.s32 1, %s569_s13   ;;  %s658_s9 = smov %s561_s11 }
  0x3d   : > { %p9_p9 = scmp.ge.s32.totalorder %s12_s13, 26   ;;  %s659_s10 = smov %s565_s12 }
  0x3e   : > { %s660_s11 = smov %s663_s14  ;;  %s661_s12 = smov %s667_s15 }
  0x3f   :  { %11 = sbr.rel (!%p9_p9) target bundleno = 3 (0x3), region = 61 }

// kernel: forward.24
= control target key start
LH: loop header
LB: loop body
LE: loop exit
PB: predicated region body
PF: predicated region fallthrough
CT: control target
= control target key end

     0   :  { %s1795_s21 = smov 0   ;;  %s1797_s22 = smov 0   ;;  %s2043_s0 = inlined_call_operand.vmem [shape: bf16[512,128], index: 0, kind: input, shape index: {}]   ;;  %s2044_s1 = inlined_call_operand.vmem [shape: bf16[128,128], index: 1, kind: input, shape index: {}]   ;;  %s2045_s2 = inlined_call_operand.vmem [shape: f32[1,128], index: 2, kind: input, shape index: {}]   ;;  %s2046_s3 = inlined_call_operand.vmem [shape: f32[1,128], index: 3, kind: input, shape index: {}]   ;;  %s2047_s4 = inlined_call_operand.vmem [shape: f32[1,128], index: 4, kind: input, shape index: {}]   ;;  %s2048_s5 = inlined_call_operand.vmem [shape: f32[1,128], index: 5, kind: input, shape index: {}]   ;;  %s2049_s6 = inlined_call_operand.vmem [shape: bf16[512,128], index: 6, kind: output, shape index: {}]  }
   0x1   :  { %s1799_s23 = smov 0  }
   0x2 LB: > { %s35_s24 = sadd.s32 1, %s1754_s22  ;;  %p1359_p0 = scmp.ge.s32.totalorder %s1758_s23, 1  ;;  %s1758_s23 = sphi %s1799_s23, %s16_s23   ;;  %s1754_s22 = sphi %s1797_s22, %s2051_s22   ;;  %s1750_s21 = sphi %s1795_s21, %s2050_s21  }
   0x3   : > { %p37_p1 = scmp.ge.s32.totalorder %s35_s24, 2  ;;  %p287_p2 = scmp.lt.s32.totalorder %s1758_s23, 3 }
   0x5   : > { %s2053_s24 = smov (%p37_p1, %s35_s24), 0  ;;  %p288_p3 = pnand %p1359_p0, %p287_p2 }
   0x6   : > { %v1728_v0 = vld [vmem:[%s2044_s1] sm:$0xff] (!%p288_p3)   ;;  %s1360_s27 = sshll.u32 (!%p288_p3), %s1750_s21, 5  ;;  %v1729_v1 = vld [vmem:[%s2044_s1 + $0x8] sm:$0xff] (!%p288_p3)   ;;  %v1730_v2 = vld [vmem:[%s2044_s1 + $0x10] sm:$0xff] (!%p288_p3)  }
   0x7   : > { %291 = sbr.rel (%p288_p3) target bundleno = 286 (0x11e), region = 44  ;;  %p344_p4 = scmp.lt.s32.totalorder (!%p288_p3), %s1360_s27, 63  ;;  %1640 = vmatprep.subr.bf16.mxu0 (!%p288_p3), %v1728_v0  ;;  %1688 = vmatprep.subr.bf16.mxu1 (!%p288_p3), %v1728_v0  ;;  %v1731_v3 = vld [vmem:[%s2044_s1 + $0x18] sm:$0xff] (!%p288_p3)   ;;  %v1839_v5 = vld [vmem:[%s2045_s2] ss:$0 sm:$0xff] (!%p288_p3)  ;;  %v1733_v37 = vld [vmem:[%s2044_s1 + $0x28] sm:$0xff] (!%p288_p3)  }
   0x8   : > { %1641 = vmatpush3.bf16.msra.mxu0 (!%p288_p3), %v1728_v0  ;;  %1696 = vmatpush3.bf16.msra.mxu1 (!%p288_p3), %v1728_v0  ;;  %v1847_v11 = vld [vmem:[%s2046_s3] ss:$0 sm:$0xff] (!%p288_p3)  ;;  %v1734_v54 = vld [vmem:[%s2044_s1 + $0x30] sm:$0xff] (!%p288_p3)  }
   0x9   : > { %1642 = vmatprep.subr.bf16.mxu0 (!%p288_p3), %v1729_v1  ;;  %1689 = vmatprep.subr.bf16.mxu1 (!%p288_p3), %v1729_v1  ;;  %v1732_v21 = vld [vmem:[%s2044_s1 + $0x20] sm:$0xff] (!%p288_p3)  }
   0xc   : > { %1643 = vmatpush3.bf16.msra.mxu0 (!%p288_p3), %v1729_v1  ;;  %1697 = vmatpush3.bf16.msra.mxu1 (!%p288_p3), %v1729_v1 }
   0xd   : > { %1644 = vmatprep.subr.bf16.mxu0 (!%p288_p3), %v1730_v2  ;;  %1690 = vmatprep.subr.bf16.mxu1 (!%p288_p3), %v1730_v2 }
   0xe   : > { %s2055_s27 = smov (!%p344_p4, %s1360_s27), 63 }
   0xf   : > { %s1361_s8 = sshll.u32 %s2055_s27, 2 }
  0x10   : > { %s1830_s11 = scalar_lea.vmem %s2043_s0, %s1361_s8  ;;  %1645 = vmatpush3.bf16.msra.mxu0 %v1730_v2  ;;  %1698 = vmatpush3.bf16.msra.mxu1 %v1730_v2  ;;  %s1966_s13 = scalar_lea.vmem %s2049_s6, %s1361_s8 }
  0x11   : > { %v1443_v4 = vld [vmem:[%s1830_s11] sm:$0xff]   ;;  %v1586_v9 = vld [vmem:[%s1830_s11 + $0x8] sm:$0xff]   ;;  %v1587_v20 = vld [vmem:[%s1830_s11 + $0x10] sm:$0xff]   ;;  %1646 = vmatprep.subr.bf16.mxu0 %v1731_v3  ;;  %1691 = vmatprep.subr.bf16.mxu1 %v1731_v3 }
  0x12   : > { %v1444_v6 = vunpack.c.l.bf16 %v1443_v4  ;;  %v1445_v7 = vunpack.c.h.bf16 %v1443_v4  ;;  %v1593_v8 = vld [vmem:[%s1830_s11 + $0x40] sm:$0xff]   ;;  %v1594_v10 = vld [vmem:[%s1830_s11 + $0x48] sm:$0xff]   ;;  %v1448_v14 = vunpack.c.l.bf16 %v1586_v9  ;;  %v1449_v15 = vunpack.c.h.bf16 %v1586_v9  ;;  %v1595_v36 = vld [vmem:[%s1830_s11 + $0x50] sm:$0xff]  }
  0x13   : > { %v1476_v12 = vunpack.c.l.bf16 %v1593_v8  ;;  %v1477_v13 = vunpack.c.h.bf16 %v1593_v8  ;;  %v1480_v18 = vunpack.c.l.bf16 %v1594_v10  ;;  %v1481_v19 = vunpack.c.h.bf16 %v1594_v10  ;;  %v1588_v41 = vld [vmem:[%s1830_s11 + $0x18] sm:$0xff]   ;;  %v1589_v63 = vld [vmem:[%s1830_s11 + $0x20] sm:$0xff]  }
  0x14   : > { %v490_v16 = vmul.f32 %v1444_v6, %v1839_v5  ;;  %v491_v17 = vmul.f32 %v1445_v7, %v1839_v5  ;;  %v492_v24 = vmul.f32 %v1448_v14, %v1839_v5  ;;  %v493_v27 = vmul.f32 %v1449_v15, %v1839_v5  ;;  %1647 = vmatpush3.bf16.msra.mxu0 %v1731_v3  ;;  %v1596_v49 = vld [vmem:[%s1830_s11 + $0x58] sm:$0xff]   ;;  %v1597_v15 = vld [vmem:[%s1830_s11 + $0x60] sm:$0xff]  }
  0x15   : > { %v506_v22 = vmul.f32 %v1476_v12, %v1839_v5  ;;  %v507_v23 = vmul.f32 %v1477_v13, %v1839_v5  ;;  %v508_v28 = vmul.f32 %v1480_v18, %v1839_v5  ;;  %v1452_v32 = vunpack.c.l.bf16 %v1587_v20  ;;  %1699 = vmatpush3.bf16.msra.mxu1 %v1731_v3  ;;  %1648 = vmatprep.subr.bf16.mxu0 %v1732_v21  ;;  %v1735_v9 = vld [vmem:[%s2044_s1 + $0x38] sm:$0xff]  }
  0x16   : > { %v529_v25 = vadd.f32 %v1847_v11, %v490_v16  ;;  %v530_v26 = vadd.f32 %v1847_v11, %v491_v17  ;;  %v531_v31 = vadd.f32 %v1847_v11, %v492_v24  ;;  %v509_v35 = vmul.f32 %v1481_v19, %v1839_v5  ;;  %1692 = vmatprep.subr.bf16.mxu1 %v1732_v21 }
  0x17   : > { %v545_v29 = vadd.f32 %v1847_v11, %v506_v22  ;;  %v546_v30 = vadd.f32 %v1847_v11, %v507_v23  ;;  %v532_v40 = vadd.f32 %v1847_v11, %v493_v27  ;;  %v547_v43 = vadd.f32 %v1847_v11, %v508_v28  ;;  %v1590_v22 = vld [vmem:[%s1830_s11 + $0x28] sm:$0xff]  }
  0x18   : > { %v561_v33 = vmax.f32 %v529_v25, 0.0  ;;  %v562_v34 = vmax.f32 %v530_v26, 0.0  ;;  %v1453_v44 = vunpack.c.h.bf16 %v1587_v20  ;;  %v563_v46 = vmax.f32 %v531_v31, 0.0  ;;  %1649 = vmatpush3.bf16.msra.mxu0 %v1732_v21  ;;  %v1598_v27 = vld [vmem:[%s1830_s11 + $0x68] sm:$0xff]  }
  0x19   : > { %v577_v38 = vmax.f32 %v545_v29, 0.0  ;;  %v578_v39 = vmax.f32 %v546_v30, 0.0  ;;  %v494_v47 = vmul.f32 %v1452_v32, %v1839_v5  ;;  %v1484_v48 = vunpack.c.l.bf16 %v1595_v36  ;;  %1700 = vmatpush3.bf16.msra.mxu1 %v1732_v21  ;;  %1650 = vmatprep.subr.bf16.mxu0 %v1733_v37 }
  0x1a   : > { %v593_v42 = vpack.c.bf16 %v562_v34, %v561_v33  ;;  %v548_v50 = vadd.f32 %v1847_v11, %v509_v35  ;;  %v495_v51 = vmul.f32 %v1453_v44, %v1839_v5  ;;  %v1485_v52 = vunpack.c.h.bf16 %v1595_v36  ;;  %1693 = vmatprep.subr.bf16.mxu1 %v1733_v37  ;;  %v1591_v36 = vld [vmem:[%s1830_s11 + $0x30] sm:$0xff]  }
  0x1b   : > { %v601_v45 = vpack.c.bf16 %v578_v39, %v577_v38  ;;  %v1456_v53 = vunpack.c.l.bf16 %v1588_v41  ;;  %v564_v55 = vmax.f32 %v532_v40, 0.0  ;;  %v533_v56 = vadd.f32 %v1847_v11, %v494_v47 }
  0x1c   : > { %v510_v57 = vmul.f32 %v1484_v48, %v1839_v5  ;;  %v1457_v58 = vunpack.c.h.bf16 %v1588_v41  ;;  %1656 = vmatprep.mubr.bf16.mxu0 %v593_v42  ;;  %v534_v59 = vadd.f32 %v1847_v11, %v495_v51  ;;  %v511_v60 = vmul.f32 %v1485_v52, %v1839_v5  ;;  %1651 = vmatpush3.bf16.msra.mxu0 %v1733_v37  ;;  %v1599_v52 = vld [vmem:[%s1830_s11 + $0x70] sm:$0xff]  }
  0x1d   : > { %1672 = vmatprep.mubr.bf16.mxu1 %v601_v45  ;;  %v496_v61 = vmul.f32 %v1456_v53, %v1839_v5  ;;  %v1488_v62 = vunpack.c.l.bf16 %v1596_v49  ;;  %v579_v0 = vmax.f32 %v547_v43, 0.0  ;;  %v1489_v3 = vunpack.c.h.bf16 %v1596_v49  ;;  %1701 = vmatpush3.bf16.msra.mxu1 %v1733_v37 }
  0x1e   : > { %v549_v1 = vadd.f32 %v1847_v11, %v510_v57  ;;  %v497_v2 = vmul.f32 %v1457_v58, %v1839_v5  ;;  %v580_v4 = vmax.f32 %v548_v50, 0.0  ;;  %v565_v6 = vmax.f32 %v533_v56, 0.0  ;;  %1652 = vmatprep.subr.bf16.mxu0 %v1734_v54  ;;  %1694 = vmatprep.subr.bf16.mxu1 %v1734_v54 }
  0x1f   : > { %v566_v7 = vmax.f32 %v534_v59, 0.0  ;;  %v550_v8 = vadd.f32 %v1847_v11, %v511_v60  ;;  %v535_v10 = vadd.f32 %v1847_v11, %v496_v61  ;;  %v512_v12 = vmul.f32 %v1488_v62, %v1839_v5  ;;  %v1592_v60 = vld [vmem:[%s1830_s11 + $0x38] sm:$0xff]  }
  0x20   : > { %v513_v13 = vmul.f32 %v1489_v3, %v1839_v5  ;;  %v1460_v14 = vunpack.c.l.bf16 %v1589_v63  ;;  %v594_v16 = vpack.c.bf16 %v564_v55, %v563_v46  ;;  %v581_v17 = vmax.f32 %v549_v1, 0.0  ;;  %1653 = vmatpush3.bf16.msra.mxu0 %v1734_v54 }
  0x21   : > { %v582_v18 = vmax.f32 %v550_v8, 0.0  ;;  %v536_v19 = vadd.f32 %v1847_v11, %v497_v2  ;;  %v1461_v20 = vunpack.c.h.bf16 %v1589_v63  ;;  %1702 = vmatpush3.bf16.msra.mxu1 %v1734_v54  ;;  %v602_v23 = vpack.c.bf16 %v580_v4, %v579_v0  ;;  %1654 = vmatprep.subr.bf16.mxu0 %v1735_v9 }
  0x22   : > { %v498_v21 = vmul.f32 %v1460_v14, %v1839_v5  ;;  %v595_v24 = vpack.c.bf16 %v566_v7, %v565_v6  ;;  %v1492_v25 = vunpack.c.l.bf16 %v1597_v15  ;;  %v1493_v26 = vunpack.c.h.bf16 %v1597_v15  ;;  %1695 = vmatprep.subr.bf16.mxu1 %v1735_v9  ;;  %v1600_v6 = vld [vmem:[%s1830_s11 + $0x78] sm:$0xff]  }
  0x23   : > { %v567_v28 = vmax.f32 %v535_v10, 0.0  ;;  %v551_v29 = vadd.f32 %v1847_v11, %v512_v12  ;;  %v552_v30 = vadd.f32 %v1847_v11, %v513_v13  ;;  %v499_v31 = vmul.f32 %v1461_v20, %v1839_v5 }
  0x24   : > { %v514_v32 = vmul.f32 %v1492_v25, %v1839_v5  ;;  %v515_v33 = vmul.f32 %v1493_v26, %v1839_v5  ;;  %v1464_v34 = vunpack.c.l.bf16 %v1590_v22  ;;  %v1465_v35 = vunpack.c.h.bf16 %v1590_v22  ;;  %1655 = vmatpush3.bf16.msra.mxu0 %v1735_v9 }
  0x25   : > { %v603_v37 = vpack.c.bf16 %v582_v18, %v581_v17  ;;  %v568_v38 = vmax.f32 %v536_v19, 0.0  ;;  %v537_v39 = vadd.f32 %v1847_v11, %v498_v21  ;;  %v1496_v40 = vunpack.c.l.bf16 %v1598_v27  ;;  %1703 = vmatpush3.bf16.msra.mxu1 %v1735_v9 }
  0x26   : > { %v538_v41 = vadd.f32 %v1847_v11, %v499_v31  ;;  %v553_v42 = vadd.f32 %v1847_v11, %v514_v32  ;;  %v554_v43 = vadd.f32 %v1847_v11, %v515_v33  ;;  %v1497_v44 = vunpack.c.h.bf16 %v1598_v27 }
  0x27   : > { %v500_v45 = vmul.f32 %v1464_v34, %v1839_v5  ;;  %v501_v46 = vmul.f32 %v1465_v35, %v1839_v5  ;;  %v1468_v47 = vunpack.c.l.bf16 %v1591_v36  ;;  %v583_v48 = vmax.f32 %v551_v29, 0.0  ;;  %1657 = vmatmul.mubr.bf16.vlgmr.msra.gmra.mrb[0].mxu0 %v594_v16 }
  0x28   : > { %v584_v49 = vmax.f32 %v552_v30, 0.0  ;;  %v516_v50 = vmul.f32 %v1496_v40, %v1839_v5  ;;  %v517_v51 = vmul.f32 %v1497_v44, %v1839_v5  ;;  %1673 = vmatmul.mubr.bf16.vlgmr.msra.gmra.mrb[0].mxu1 %v602_v23  ;;  %v596_v53 = vpack.c.bf16 %v568_v38, %v567_v28  ;;  %1660 = vmatprep.mubr.bf16.mxu0 %v595_v24 }
  0x29   : > { %v569_v54 = vmax.f32 %v537_v39, 0.0  ;;  %v1469_v55 = vunpack.c.h.bf16 %v1591_v36  ;;  %1676 = vmatprep.mubr.bf16.mxu1 %v603_v37  ;;  %v570_v56 = vmax.f32 %v538_v41, 0.0  ;;  %v585_v57 = vmax.f32 %v553_v42, 0.0 }
  0x2a   : > { %v586_v58 = vmax.f32 %v554_v43, 0.0  ;;  %v502_v59 = vmul.f32 %v1468_v47, %v1839_v5  ;;  %v539_v61 = vadd.f32 %v1847_v11, %v500_v45  ;;  %v540_v62 = vadd.f32 %v1847_v11, %v501_v46  ;;  %v1940_v45 = vld [vmem:[%s2047_s4] ss:$0 sm:$0xff] }
  0x2b   : > { %v503_v63 = vmul.f32 %v1469_v55, %v1839_v5  ;;  %v1500_v0 = vunpack.c.l.bf16 %v1599_v52  ;;  %v604_v1 = vpack.c.bf16 %v584_v49, %v583_v48  ;;  %v555_v2 = vadd.f32 %v1847_v11, %v516_v50 }
  0x2c   : > { %v556_v3 = vadd.f32 %v1847_v11, %v517_v51  ;;  %v1501_v4 = vunpack.c.h.bf16 %v1599_v52  ;;  %v541_v7 = vadd.f32 %v1847_v11, %v502_v59  ;;  %v1472_v9 = vunpack.c.l.bf16 %v1592_v60  ;;  %v1947_v51 = vld [vmem:[%s2048_s5] ss:$0 sm:$0xff] }
  0x2d   : > { %v518_v8 = vmul.f32 %v1500_v0, %v1839_v5  ;;  %v1473_v10 = vunpack.c.h.bf16 %v1592_v60  ;;  %v597_v12 = vpack.c.bf16 %v570_v56, %v569_v54  ;;  %v605_v13 = vpack.c.bf16 %v586_v58, %v585_v57 }
  0x2e   : > { %v542_v14 = vadd.f32 %v1847_v11, %v503_v63  ;;  %v519_v15 = vmul.f32 %v1501_v4, %v1839_v5  ;;  %v571_v16 = vmax.f32 %v539_v61, 0.0  ;;  %v572_v17 = vmax.f32 %v540_v62, 0.0 }
  0x2f   : > { %v557_v18 = vadd.f32 %v1847_v11, %v518_v8  ;;  %v1504_v19 = vunpack.c.l.bf16 %v1600_v6  ;;  %v587_v20 = vmax.f32 %v555_v2, 0.0  ;;  %v588_v21 = vmax.f32 %v556_v3, 0.0  ;;  %1661 = vmatmul.mubr.bf16.gmra.mrb[4].mxu0 %v596_v53 }
  0x30   : > { %v558_v22 = vadd.f32 %v1847_v11, %v519_v15  ;;  %v1505_v23 = vunpack.c.h.bf16 %v1600_v6  ;;  %1677 = vmatmul.mubr.bf16.gmra.mrb[4].mxu1 %v604_v1  ;;  %v573_v24 = vmax.f32 %v541_v7, 0.0  ;;  %v504_v25 = vmul.f32 %v1472_v9, %v1839_v5  ;;  %1664 = vmatprep.mubr.bf16.mxu0 %v597_v12 }
  0x31   : > { %v505_v26 = vmul.f32 %v1473_v10, %v1839_v5  ;;  %v520_v27 = vmul.f32 %v1504_v19, %v1839_v5  ;;  %1680 = vmatprep.mubr.bf16.mxu1 %v605_v13  ;;  %v574_v28 = vmax.f32 %v542_v14, 0.0  ;;  %v589_v29 = vmax.f32 %v557_v18, 0.0 }
  0x32   : > { %v590_v30 = vmax.f32 %v558_v22, 0.0  ;;  %v521_v31 = vmul.f32 %v1505_v23, %v1839_v5  ;;  %v598_v32 = vpack.c.bf16 %v572_v17, %v571_v16  ;;  %v606_v33 = vpack.c.bf16 %v588_v21, %v587_v20 }
  0x33   : > { %v543_v34 = vadd.f32 %v1847_v11, %v504_v25  ;;  %v544_v35 = vadd.f32 %v1847_v11, %v505_v26  ;;  %v559_v36 = vadd.f32 %v1847_v11, %v520_v27  ;;  %v599_v38 = vpack.c.bf16 %v574_v28, %v573_v24 }
  0x34   : > { %v560_v37 = vadd.f32 %v1847_v11, %v521_v31  ;;  %v607_v39 = vpack.c.bf16 %v590_v30, %v589_v29 }
  0x35   : > { %v575_v40 = vmax.f32 %v543_v34, 0.0  ;;  %v576_v41 = vmax.f32 %v544_v35, 0.0  ;;  %v591_v42 = vmax.f32 %v559_v36, 0.0 }
  0x36   : > { %v592_v43 = vmax.f32 %v560_v37, 0.0 }
  0x37   : > { %1665 = vmatmul.mubr.bf16.gmra.mrb[8].mxu0 %v598_v32  ;;  %v600_v5 = vpack.c.bf16 %v576_v41, %v575_v40 }
  0x38   : > { %1681 = vmatmul.mubr.bf16.gmra.mrb[8].mxu1 %v606_v33  ;;  %1668 = vmatprep.mubr.bf16.mxu0 %v599_v38  ;;  %v608_v44 = vpack.c.bf16 %v592_v43, %v591_v42 }
  0x39   : > { %1684 = vmatprep.mubr.bf16.mxu1 %v607_v39 }
  0x3f   : > { %1669 = vmatmul.mubr.bf16.gmra.mrb[12].mxu0 %v600_v5 }
  0x40   : > { %1685 = vmatmul.mubr.bf16.gmra.mrb[12].mxu1 %v608_v44 }
  0xfa   : > { %v1658_v11 = vpop.f32.mrb[0].mxu0 }
  0xfb   : > { %v1674_v46 = vpop.f32.mrb[0].mxu1  ;;  %v974_v47 = vmul.f32 %v1658_v11, %v1940_v45  ;;  %v739_v49 = vpop.f32.mrb[1].mxu0 }
  0xfc   : > { %v990_v48 = vmul.f32 %v1674_v46, %v1940_v45  ;;  %v803_v50 = vpop.f32.mrb[1].mxu1  ;;  %v972_v52 = vmul.f32 %v1940_v45, %v739_v49  ;;  %v1659_v54 = vpop.f32.mrb[2].mxu0 }
  0xfd   : > { %v988_v53 = vmul.f32 %v1940_v45, %v803_v50  ;;  %v1675_v55 = vpop.f32.mrb[2].mxu1  ;;  %v975_v56 = vmul.f32 %v1659_v54, %v1940_v45  ;;  %v742_v58 = vpop.f32.mrb[3].mxu0  ;;  %v1013_v62 = vadd.f32 %v1947_v51, %v974_v47 }
  0xfe   : > { %v991_v57 = vmul.f32 %v1675_v55, %v1940_v45  ;;  %v806_v59 = vpop.f32.mrb[3].mxu1  ;;  %v973_v60 = vmul.f32 %v1940_v45, %v742_v58  ;;  %v1029_v63 = vadd.f32 %v1947_v51, %v990_v48  ;;  %v1011_v2 = vadd.f32 %v1947_v51, %v972_v52 }
  0xff   : > { %v989_v61 = vmul.f32 %v1940_v45, %v806_v59  ;;  %v1014_v0 = vadd.f32 %v1947_v51, %v975_v56  ;;  %v1027_v3 = vadd.f32 %v1947_v51, %v988_v53 }
 0x100   : > { %v1030_v1 = vadd.f32 %v1947_v51, %v991_v57  ;;  %v1012_v4 = vadd.f32 %v1947_v51, %v973_v60 }
 0x101   : > { %v1028_v6 = vadd.f32 %v1947_v51, %v989_v61  ;;  %v1514_v7 = vpack.c.bf16 %v1014_v0, %v1013_v62 }
 0x102   : > { %v1554_v8 = vpack.c.bf16 %v1030_v1, %v1029_v63  ;;  %v1509_v9 = vpack.c.bf16 %v1012_v4, %v1011_v2  ;;  %v1662_v12 = vpop.f32.mrb[4].mxu0 }
 0x103   : > { %v1549_v10 = vpack.c.bf16 %v1028_v6, %v1027_v3  ;;  %v1678_v13 = vpop.f32.mrb[4].mxu1  ;;  %1601 = vst [vmem:[%s1966_s13 + $0x8] sm:$0xff] %v1514_v7   ;;  %v978_v14 = vmul.f32 %v1662_v12, %v1940_v45  ;;  %v755_v16 = vpop.f32.mrb[5].mxu0 }
 0x104   : > { %1609 = vst [vmem:[%s1966_s13 + $0x48] sm:$0xff] %v1554_v8   ;;  %v994_v15 = vmul.f32 %v1678_v13, %v1940_v45  ;;  %v819_v17 = vpop.f32.mrb[5].mxu1  ;;  %1510 = vst [vmem:[%s1966_s13] sm:$0xff] %v1509_v9   ;;  %v976_v18 = vmul.f32 %v1940_v45, %v755_v16  ;;  %v1663_v20 = vpop.f32.mrb[6].mxu0 }
 0x105   : > { %1608 = vst [vmem:[%s1966_s13 + $0x40] sm:$0xff] %v1549_v10   ;;  %v992_v19 = vmul.f32 %v1940_v45, %v819_v17  ;;  %v1679_v21 = vpop.f32.mrb[6].mxu1  ;;  %v979_v22 = vmul.f32 %v1663_v20, %v1940_v45  ;;  %v758_v24 = vpop.f32.mrb[7].mxu0  ;;  %v1017_v28 = vadd.f32 %v1947_v51, %v978_v14 }
 0x106   : > { %v995_v23 = vmul.f32 %v1679_v21, %v1940_v45  ;;  %v822_v25 = vpop.f32.mrb[7].mxu1  ;;  %v977_v26 = vmul.f32 %v1940_v45, %v758_v24  ;;  %v1033_v29 = vadd.f32 %v1947_v51, %v994_v15  ;;  %v1015_v32 = vadd.f32 %v1947_v51, %v976_v18 }
 0x107   : > { %v993_v27 = vmul.f32 %v1940_v45, %v822_v25  ;;  %v1018_v30 = vadd.f32 %v1947_v51, %v979_v22  ;;  %v1031_v33 = vadd.f32 %v1947_v51, %v992_v19 }
 0x108   : > { %v1034_v31 = vadd.f32 %v1947_v51, %v995_v23  ;;  %v1016_v34 = vadd.f32 %v1947_v51, %v977_v26 }
 0x109   : > { %v1032_v35 = vadd.f32 %v1947_v51, %v993_v27  ;;  %v1524_v36 = vpack.c.bf16 %v1018_v30, %v1017_v28 }
 0x10a   : > { %v1564_v37 = vpack.c.bf16 %v1034_v31, %v1033_v29  ;;  %v1519_v38 = vpack.c.bf16 %v1016_v34, %v1015_v32  ;;  %v1666_v40 = vpop.f32.mrb[8].mxu0 }
 0x10b   : > { %v1559_v39 = vpack.c.bf16 %v1032_v35, %v1031_v33  ;;  %v1682_v41 = vpop.f32.mrb[8].mxu1  ;;  %1603 = vst [vmem:[%s1966_s13 + $0x18] sm:$0xff] %v1524_v36   ;;  %v982_v42 = vmul.f32 %v1666_v40, %v1940_v45  ;;  %v771_v5 = vpop.f32.mrb[9].mxu0 }
 0x10c   : > { %1611 = vst [vmem:[%s1966_s13 + $0x58] sm:$0xff] %v1564_v37   ;;  %v998_v43 = vmul.f32 %v1682_v41, %v1940_v45  ;;  %v835_v44 = vpop.f32.mrb[9].mxu1  ;;  %1602 = vst [vmem:[%s1966_s13 + $0x10] sm:$0xff] %v1519_v38   ;;  %v980_v11 = vmul.f32 %v1940_v45, %v771_v5  ;;  %v1667_v47 = vpop.f32.mrb[10].mxu0 }
 0x10d   : > { %1610 = vst [vmem:[%s1966_s13 + $0x50] sm:$0xff] %v1559_v39   ;;  %v996_v46 = vmul.f32 %v1940_v45, %v835_v44  ;;  %v1683_v48 = vpop.f32.mrb[10].mxu1  ;;  %v983_v49 = vmul.f32 %v1667_v47, %v1940_v45  ;;  %v774_v52 = vpop.f32.mrb[11].mxu0  ;;  %v1021_v56 = vadd.f32 %v1947_v51, %v982_v42 }
 0x10e   : > { %v999_v50 = vmul.f32 %v1683_v48, %v1940_v45  ;;  %v838_v53 = vpop.f32.mrb[11].mxu1  ;;  %v981_v54 = vmul.f32 %v1940_v45, %v774_v52  ;;  %v1037_v57 = vadd.f32 %v1947_v51, %v998_v43  ;;  %v1019_v60 = vadd.f32 %v1947_v51, %v980_v11 }
 0x10f   : > { %v997_v55 = vmul.f32 %v1940_v45, %v838_v53  ;;  %v1022_v58 = vadd.f32 %v1947_v51, %v983_v49  ;;  %v1035_v61 = vadd.f32 %v1947_v51, %v996_v46 }
 0x110   : > { %v1038_v59 = vadd.f32 %v1947_v51, %v999_v50  ;;  %v1020_v62 = vadd.f32 %v1947_v51, %v981_v54 }
 0x111   : > { %v1036_v63 = vadd.f32 %v1947_v51, %v997_v55  ;;  %v1534_v0 = vpack.c.bf16 %v1022_v58, %v1021_v56 }
 0x112   : > { %v1574_v1 = vpack.c.bf16 %v1038_v59, %v1037_v57  ;;  %v1529_v2 = vpack.c.bf16 %v1020_v62, %v1019_v60  ;;  %v1670_v4 = vpop.f32.mrb[12].mxu0 }
 0x113   : > { %v1569_v3 = vpack.c.bf16 %v1036_v63, %v1035_v61  ;;  %v1686_v6 = vpop.f32.mrb[12].mxu1  ;;  %1605 = vst [vmem:[%s1966_s13 + $0x28] sm:$0xff] %v1534_v0   ;;  %v986_v7 = vmul.f32 %v1670_v4, %v1940_v45  ;;  %v787_v9 = vpop.f32.mrb[13].mxu0 }
 0x114   : > { %1613 = vst [vmem:[%s1966_s13 + $0x68] sm:$0xff] %v1574_v1   ;;  %v1002_v8 = vmul.f32 %v1686_v6, %v1940_v45  ;;  %v851_v10 = vpop.f32.mrb[13].mxu1  ;;  %1604 = vst [vmem:[%s1966_s13 + $0x20] sm:$0xff] %v1529_v2   ;;  %v984_v12 = vmul.f32 %v1940_v45, %v787_v9  ;;  %v1671_v14 = vpop.f32.mrb[14].mxu0 }
 0x115   : > { %1612 = vst [vmem:[%s1966_s13 + $0x60] sm:$0xff] %v1569_v3   ;;  %v1000_v13 = vmul.f32 %v1940_v45, %v851_v10  ;;  %v1687_v15 = vpop.f32.mrb[14].mxu1  ;;  %v987_v16 = vmul.f32 %v1671_v14, %v1940_v45  ;;  %v790_v18 = vpop.f32.mrb[15].mxu0  ;;  %v1025_v22 = vadd.f32 %v1947_v51, %v986_v7 }
 0x116   : > { %v1003_v17 = vmul.f32 %v1687_v15, %v1940_v45  ;;  %v854_v19 = vpop.f32.mrb[15].mxu1  ;;  %v985_v20 = vmul.f32 %v1940_v45, %v790_v18  ;;  %v1041_v23 = vadd.f32 %v1947_v51, %v1002_v8  ;;  %v1023_v26 = vadd.f32 %v1947_v51, %v984_v12 }
 0x117   : > { %v1001_v21 = vmul.f32 %v1940_v45, %v854_v19  ;;  %v1026_v24 = vadd.f32 %v1947_v51, %v987_v16  ;;  %v1039_v27 = vadd.f32 %v1947_v51, %v1000_v13 }
 0x118   : > { %v1042_v25 = vadd.f32 %v1947_v51, %v1003_v17  ;;  %v1024_v28 = vadd.f32 %v1947_v51, %v985_v20 }
 0x119   : > { %v1040_v29 = vadd.f32 %v1947_v51, %v1001_v21  ;;  %v1544_v30 = vpack.c.bf16 %v1026_v24, %v1025_v22 }
 0x11a   : > { %v1584_v31 = vpack.c.bf16 %v1042_v25, %v1041_v23  ;;  %v1539_v45 = vpack.c.bf16 %v1024_v28, %v1023_v26 }
 0x11b   : > { %v1579_v32 = vpack.c.bf16 %v1040_v29, %v1039_v27  ;;  %1607 = vst [vmem:[%s1966_s13 + $0x38] sm:$0xff] %v1544_v30  }
 0x11c   : > { %1615 = vst [vmem:[%s1966_s13 + $0x78] sm:$0xff] %v1584_v31   ;;  %1606 = vst [vmem:[%s1966_s13 + $0x30] sm:$0xff] %v1539_v45  }
 0x11d   : > { %1614 = vst [vmem:[%s1966_s13 + $0x70] sm:$0xff] %v1579_v32  }
 0x11e PF: > { %s16_s23 = sadd.s32 1, %s1758_s23   ;;  %s2050_s21 = smov %s1754_s22 }
 0x11f   : > { %p13_p5 = scmp.ge.s32.totalorder %s16_s23, 4   ;;  %s2051_s22 = smov %s2053_s24 }
 0x121   :  { %15 = sbr.rel (!%p13_p5) target bundleno = 2 (0x2), region = 97 }

// kernel: forward.26
= control target key start
LH: loop header
LB: loop body
LE: loop exit
PB: predicated region body
PF: predicated region fallthrough
CT: control target
= control target key end

     0   :  { %s731_s1 = inlined_call_operand.vmem [shape: bf16[128,128], index: 1, kind: input, shape index: {}]   ;;  %s732_s0 = inlined_call_operand.vmem [shape: bf16[96,128], index: 0, kind: input, shape index: {}]   ;;  %s733_s2 = inlined_call_operand.vmem [shape: f32[1,128], index: 2, kind: input, shape index: {}]   ;;  %s734_s3 = inlined_call_operand.vmem [shape: f32[1,128], index: 3, kind: input, shape index: {}]   ;;  %s735_s4 = inlined_call_operand.vmem [shape: f32[1,128], index: 4, kind: input, shape index: {}]   ;;  %s736_s5 = inlined_call_operand.vmem [shape: f32[1,128], index: 5, kind: input, shape index: {}]   ;;  %s737_s6 = inlined_call_operand.vmem [shape: bf16[96,128], index: 6, kind: output, shape index: {}]  }
   0x1   :  { %v588_v0 = vld [vmem:[%s731_s1] sm:$0xff]   ;;  %v589_v1 = vld [vmem:[%s731_s1 + $0x8] sm:$0xff]   ;;  %v590_v2 = vld [vmem:[%s731_s1 + $0x10] sm:$0xff]  }
   0x2   :  { %572 = vmatprep.subr.bf16.mxu1 %v588_v0  ;;  %544 = vmatprep.subr.bf16.mxu0 %v588_v0  ;;  %v591_v3 = vld [vmem:[%s731_s1 + $0x18] sm:$0xff]   ;;  %v521_v4 = vld [vmem:[%s732_s0 + $0x10] sm:$0xff]   ;;  %v649_v5 = vld [vmem:[%s733_s2] ss:$0 sm:$0xff] }
   0x3   :  { %580 = vmatpush3.bf16.msra.mxu1 %v588_v0  ;;  %545 = vmatpush3.bf16.msra.mxu0 %v588_v0  ;;  %v476_v6 = vunpack.c.l.bf16 %v521_v4  ;;  %v477_v7 = vunpack.c.h.bf16 %v521_v4  ;;  %v522_v8 = vld [vmem:[%s732_s0 + $0x18] sm:$0xff]   ;;  %v467_v9 = vld [vmem:[%s732_s0] sm:$0xff]   ;;  %v520_v15 = vld [vmem:[%s732_s0 + $0x8] sm:$0xff]  }
   0x4   :  { %573 = vmatprep.subr.bf16.mxu1 %v589_v1  ;;  %546 = vmatprep.subr.bf16.mxu0 %v589_v1  ;;  %v660_v10 = vld [vmem:[%s734_s3] ss:$0 sm:$0xff]  ;;  %v468_v11 = vunpack.c.l.bf16 %v467_v9  ;;  %v469_v12 = vunpack.c.h.bf16 %v467_v9  ;;  %v480_v17 = vunpack.c.l.bf16 %v522_v8  ;;  %v481_v22 = vunpack.c.h.bf16 %v522_v8  ;;  %v593_v31 = vld [vmem:[%s731_s1 + $0x28] sm:$0xff]   ;;  %v594_v44 = vld [vmem:[%s731_s1 + $0x30] sm:$0xff]  }
   0x5   :  { %v75_v13 = vmul.f32 %v476_v6, %v649_v5  ;;  %v76_v14 = vmul.f32 %v477_v7, %v649_v5  ;;  %v592_v16 = vld [vmem:[%s731_s1 + $0x20] sm:$0xff]   ;;  %v472_v25 = vunpack.c.l.bf16 %v520_v15  ;;  %v473_v26 = vunpack.c.h.bf16 %v520_v15  ;;  %v524_v43 = vld [vmem:[%s732_s0 + $0x28] sm:$0xff]   ;;  %v595_v53 = vld [vmem:[%s731_s1 + $0x38] sm:$0xff]  }
   0x6   :  { %v71_v18 = vmul.f32 %v468_v11, %v649_v5  ;;  %v523_v19 = vld [vmem:[%s732_s0 + $0x20] sm:$0xff]   ;;  %v72_v23 = vmul.f32 %v469_v12, %v649_v5  ;;  %v77_v32 = vmul.f32 %v480_v17, %v649_v5  ;;  %v78_v35 = vmul.f32 %v481_v22, %v649_v5 }
   0x7   :  { %581 = vmatpush3.bf16.msra.mxu1 %v589_v1  ;;  %547 = vmatpush3.bf16.msra.mxu0 %v589_v1  ;;  %v94_v20 = vadd.f32 %v660_v10, %v75_v13  ;;  %v95_v21 = vadd.f32 %v660_v10, %v76_v14  ;;  %v484_v30 = vunpack.c.l.bf16 %v523_v19  ;;  %v485_v37 = vunpack.c.h.bf16 %v523_v19  ;;  %v440_v6 = vld [vmem:[%s735_s4] ss:$0 sm:$0xff] }
   0x8   :  { %574 = vmatprep.subr.bf16.mxu1 %v590_v2  ;;  %548 = vmatprep.subr.bf16.mxu0 %v590_v2  ;;  %v90_v24 = vadd.f32 %v660_v10, %v71_v18  ;;  %v91_v29 = vadd.f32 %v660_v10, %v72_v23  ;;  %v73_v38 = vmul.f32 %v472_v25, %v649_v5  ;;  %v488_v49 = vunpack.c.l.bf16 %v524_v43  ;;  %v441_v8 = vld [vmem:[%s736_s5] ss:$0 sm:$0xff] }
   0x9   :  { %v106_v27 = vmax.f32 %v94_v20, 0.0  ;;  %v107_v28 = vmax.f32 %v95_v21, 0.0  ;;  %v74_v39 = vmul.f32 %v473_v26, %v649_v5  ;;  %v79_v41 = vmul.f32 %v484_v30, %v649_v5 }
   0xa   :  { %v102_v33 = vmax.f32 %v90_v24, 0.0  ;;  %v103_v36 = vmax.f32 %v91_v29, 0.0  ;;  %v80_v42 = vmul.f32 %v485_v37, %v649_v5  ;;  %v96_v45 = vadd.f32 %v660_v10, %v77_v32 }
   0xb   :  { %582 = vmatpush3.bf16.msra.mxu1 %v590_v2  ;;  %549 = vmatpush3.bf16.msra.mxu0 %v590_v2  ;;  %v116_v34 = vpack.c.bf16 %v107_v28, %v106_v27  ;;  %v97_v46 = vadd.f32 %v660_v10, %v78_v35  ;;  %v92_v47 = vadd.f32 %v660_v10, %v73_v38  ;;  %v489_v50 = vunpack.c.h.bf16 %v524_v43 }
   0xc   :  { %575 = vmatprep.subr.bf16.mxu1 %v591_v3  ;;  %550 = vmatprep.subr.bf16.mxu0 %v591_v3  ;;  %v114_v40 = vpack.c.bf16 %v103_v36, %v102_v33  ;;  %v93_v48 = vadd.f32 %v660_v10, %v74_v39  ;;  %v98_v51 = vadd.f32 %v660_v10, %v79_v41  ;;  %v108_v54 = vmax.f32 %v96_v45, 0.0 }
   0xd   :  { %564 = vmatprep.mubr.bf16.mxu1 %v116_v34  ;;  %v99_v52 = vadd.f32 %v660_v10, %v80_v42  ;;  %v109_v55 = vmax.f32 %v97_v46, 0.0  ;;  %v104_v56 = vmax.f32 %v92_v47, 0.0  ;;  %v81_v58 = vmul.f32 %v488_v49, %v649_v5 }
   0xe   :  { %560 = vmatprep.mubr.bf16.mxu0 %v114_v40  ;;  %v105_v57 = vmax.f32 %v93_v48, 0.0  ;;  %v82_v59 = vmul.f32 %v489_v50, %v649_v5  ;;  %v110_v60 = vmax.f32 %v98_v51, 0.0 }
   0xf   :  { %583 = vmatpush3.bf16.msra.mxu1 %v591_v3  ;;  %551 = vmatpush3.bf16.msra.mxu0 %v591_v3  ;;  %v111_v61 = vmax.f32 %v99_v52, 0.0  ;;  %v117_v62 = vpack.c.bf16 %v109_v55, %v108_v54  ;;  %v100_v0 = vadd.f32 %v660_v10, %v81_v58 }
  0x10   :  { %576 = vmatprep.subr.bf16.mxu1 %v592_v16  ;;  %552 = vmatprep.subr.bf16.mxu0 %v592_v16  ;;  %v115_v63 = vpack.c.bf16 %v105_v57, %v104_v56  ;;  %v101_v1 = vadd.f32 %v660_v10, %v82_v59 }
  0x11   :  { %v118_v2 = vpack.c.bf16 %v111_v61, %v110_v60  ;;  %v112_v3 = vmax.f32 %v100_v0, 0.0 }
  0x12   :  { %v113_v4 = vmax.f32 %v101_v1, 0.0 }
  0x13   :  { %584 = vmatpush3.bf16.msra.mxu1 %v592_v16  ;;  %553 = vmatpush3.bf16.msra.mxu0 %v592_v16 }
  0x14   :  { %577 = vmatprep.subr.bf16.mxu1 %v593_v31  ;;  %554 = vmatprep.subr.bf16.mxu0 %v593_v31  ;;  %v119_v5 = vpack.c.bf16 %v113_v4, %v112_v3 }
  0x17   :  { %585 = vmatpush3.bf16.msra.mxu1 %v593_v31  ;;  %555 = vmatpush3.bf16.msra.mxu0 %v593_v31 }
  0x18   :  { %578 = vmatprep.subr.bf16.mxu1 %v594_v44  ;;  %556 = vmatprep.subr.bf16.mxu0 %v594_v44 }
  0x1b   :  { %586 = vmatpush3.bf16.msra.mxu1 %v594_v44  ;;  %557 = vmatpush3.bf16.msra.mxu0 %v594_v44 }
  0x1c   :  { %579 = vmatprep.subr.bf16.mxu1 %v595_v53  ;;  %558 = vmatprep.subr.bf16.mxu0 %v595_v53 }
  0x1f   :  { %587 = vmatpush3.bf16.msra.mxu1 %v595_v53  ;;  %559 = vmatpush3.bf16.msra.mxu0 %v595_v53 }
  0x22   :  { %565 = vmatmul.mubr.bf16.vlgmr.msra.gmra.mrb[0].mxu1 %v117_v62  ;;  %561 = vmatmul.mubr.bf16.vlgmr.msra.gmra.mrb[0].mxu0 %v115_v63 }
  0x23   :  { %568 = vmatprep.mubr.bf16.mxu1 %v118_v2 }
  0x2a   :  { %569 = vmatmul.mubr.bf16.gmra.mrb[4].mxu1 %v119_v5 }
  0xf5   :  { %v566_v7 = vpop.f32.mrb[0].mxu1  ;;  %v562_v9 = vpop.f32.mrb[0].mxu0 }
  0xf6   :  { %v329_v10 = vmul.f32 %v566_v7, %v440_v6  ;;  %v246_v11 = vpop.f32.mrb[1].mxu1  ;;  %v325_v12 = vmul.f32 %v562_v9, %v440_v6  ;;  %v230_v13 = vpop.f32.mrb[1].mxu0 }
  0xf7   :  { %v327_v14 = vmul.f32 %v440_v6, %v246_v11  ;;  %v567_v15 = vpop.f32.mrb[2].mxu1  ;;  %v323_v16 = vmul.f32 %v440_v6, %v230_v13  ;;  %v563_v17 = vpop.f32.mrb[2].mxu0 }
  0xf8   :  { %v348_v18 = vadd.f32 %v441_v8, %v329_v10  ;;  %v330_v19 = vmul.f32 %v567_v15, %v440_v6  ;;  %v249_v20 = vpop.f32.mrb[3].mxu1  ;;  %v344_v21 = vadd.f32 %v441_v8, %v325_v12  ;;  %v326_v22 = vmul.f32 %v563_v17, %v440_v6  ;;  %v233_v23 = vpop.f32.mrb[3].mxu0 }
  0xf9   :  { %v346_v24 = vadd.f32 %v441_v8, %v327_v14  ;;  %v328_v25 = vmul.f32 %v440_v6, %v249_v20  ;;  %v342_v26 = vadd.f32 %v441_v8, %v323_v16  ;;  %v324_v27 = vmul.f32 %v440_v6, %v233_v23 }
  0xfa   :  { %v349_v28 = vadd.f32 %v441_v8, %v330_v19  ;;  %v356_v29 = vmax.f32 %v344_v21, 0.0  ;;  %v345_v30 = vadd.f32 %v441_v8, %v326_v22  ;;  %v360_v34 = vmax.f32 %v348_v18, 0.0 }
  0xfb   :  { %v347_v31 = vadd.f32 %v441_v8, %v328_v25  ;;  %v354_v32 = vmax.f32 %v342_v26, 0.0  ;;  %v343_v33 = vadd.f32 %v441_v8, %v324_v27  ;;  %v358_v37 = vmax.f32 %v346_v24, 0.0 }
  0xfc   :  { %v361_v35 = vmax.f32 %v349_v28, 0.0  ;;  %v357_v36 = vmax.f32 %v345_v30, 0.0 }
  0xfd   :  { %v359_v38 = vmax.f32 %v347_v31, 0.0  ;;  %v355_v39 = vmax.f32 %v343_v33, 0.0  ;;  %v570_v40 = vpop.f32.mrb[4].mxu1 }
  0xfe   :  { %v508_v41 = vpack.c.bf16 %v361_v35, %v360_v34  ;;  %v498_v42 = vpack.c.bf16 %v357_v36, %v356_v29  ;;  %v333_v43 = vmul.f32 %v570_v40, %v440_v6  ;;  %v262_v44 = vpop.f32.mrb[5].mxu1 }
  0xff   :  { %v503_v45 = vpack.c.bf16 %v359_v38, %v358_v37  ;;  %v493_v46 = vpack.c.bf16 %v355_v39, %v354_v32  ;;  %v331_v47 = vmul.f32 %v440_v6, %v262_v44  ;;  %v571_v48 = vpop.f32.mrb[6].mxu1 }
 0x100   :  { %527 = vst [vmem:[%s737_s6 + $0x18] sm:$0xff] %v508_v41   ;;  %525 = vst [vmem:[%s737_s6 + $0x8] sm:$0xff] %v498_v42   ;;  %v352_v49 = vadd.f32 %v441_v8, %v333_v43  ;;  %v334_v50 = vmul.f32 %v571_v48, %v440_v6  ;;  %v265_v51 = vpop.f32.mrb[7].mxu1 }
 0x101   :  { %526 = vst [vmem:[%s737_s6 + $0x10] sm:$0xff] %v503_v45   ;;  %494 = vst [vmem:[%s737_s6] sm:$0xff] %v493_v46   ;;  %v350_v52 = vadd.f32 %v441_v8, %v331_v47  ;;  %v332_v53 = vmul.f32 %v440_v6, %v265_v51 }
 0x102   :  { %v353_v54 = vadd.f32 %v441_v8, %v334_v50  ;;  %v364_v56 = vmax.f32 %v352_v49, 0.0 }
 0x103   :  { %v351_v55 = vadd.f32 %v441_v8, %v332_v53  ;;  %v362_v58 = vmax.f32 %v350_v52, 0.0 }
 0x104   :  { %v365_v57 = vmax.f32 %v353_v54, 0.0 }
 0x105   :  { %v363_v59 = vmax.f32 %v351_v55, 0.0 }
 0x106   :  { %v518_v60 = vpack.c.bf16 %v365_v57, %v364_v56 }
 0x107   :  { %v513_v61 = vpack.c.bf16 %v363_v59, %v362_v58 }
 0x108   :  { %529 = vst [vmem:[%s737_s6 + $0x28] sm:$0xff] %v518_v60  }
 0x109   :  { %528 = vst [vmem:[%s737_s6 + $0x20] sm:$0xff] %v513_v61  }

// kernel: forward.27
= control target key start
LH: loop header
LB: loop body
LE: loop exit
PB: predicated region body
PF: predicated region fallthrough
CT: control target
= control target key end

     0   :  { %s1705_s15 = smov 0   ;;  %s1875_s0 = inlined_call_operand.vmem [shape: bf16[6,6,6,16], index: 0, kind: input, shape index: {}]   ;;  %s1876_s1 = inlined_call_operand.vmem [shape: bf16[9,16,8], index: 1, kind: input, shape index: {}]   ;;  %s1877_s2 = inlined_call_operand.vmem [shape: f32[1,8], index: 2, kind: input, shape index: {}]   ;;  %s1878_s3 = inlined_call_operand.vmem [shape: f32[1,8], index: 3, kind: input, shape index: {}]   ;;  %s1879_s4 = inlined_call_operand.vmem [shape: bf16[6,16,8], index: 4, kind: output, shape index: {}]  }
   0x1 LB: > { %s1423_s16 = sadd.s32 4294967295, %s1675_s15   ;;  %p1427_p0 = scmp.ge.s32.totalorder %s1675_s15, 1  ;;  %s1675_s15 = sphi %s1705_s15, %s14_s15  }
   0x2   : > { %p162_p1 = scmp.lt.s32.totalorder %s1675_s15, 7 }
   0x4   : > { %p163_p2 = pnand %p1427_p0, %p162_p1 }
   0x5   : > { %v1648_v0 = vld [vmem:[%s1876_s1 + $0x20] sm:$0xff] (!%p163_p2)   ;;  %v1677_v1 = vmov (!%p163_p2), 0.0   ;;  %v1649_v2 = vld [vmem:[%s1876_s1 + $0x8] sm:$0xff] (!%p163_p2)   ;;  %vm1678_vm0 = vmmov (!%p163_p2), 0   ;;  %p188_p3 = scmp.lt.s32.totalorder (!%p163_p2), %s1423_s16, 5  ;;  %v316_v3 = vlaneseq (!%p163_p2)  ;;  %vm490_vm6 = vcmask (!%p163_p2), 1040384  }
   0x6   : > { %166 = sbr.rel (%p163_p2) target bundleno = 314 (0x13a), region = 36  ;;  %1576 = vmatprep.subr.bf16.mxu0 (!%p163_p2), %v1677_v1  ;;  %1552 = vmatprep.subr.bf16.mxu1 (!%p163_p2), %v1677_v1  ;;  %vm245_vm1 = vsmask.f32 (!%p163_p2), 1280  ;;  %vm246_vm2 = vsmask.f32 (!%p163_p2), 3336  ;;  %vm491_vm9 = vcmask (!%p163_p2), 1042434  }
   0x7   : > { %1577 = vmatpush3.bf16.msra.mxu0 (!%p163_p2), %v1648_v0  ;;  %1554 = vmatprep.mubr.msk.bf16.mxu1 (!%p163_p2), %vm1678_vm0, %v1677_v1  ;;  %v317_v4 = vshrl.u32 (!%p163_p2), %v316_v3, 7  ;;  %vm248_vm3 = vsmask.f32 (!%p163_p2), 5392  ;;  %vm250_vm4 = vsmask.f32 (!%p163_p2), 7448  ;;  %vm247_vm5 = vmor (!%p163_p2), %vm245_vm1, %vm246_vm2  ;;  %vm334_vm10 = vcmask (!%p163_p2), 130048  }
   0x8   : > { %1553 = vmatpush3.bf16.msra.mxu1 (!%p163_p2), %v1649_v2  ;;  %1578 = vmatprep.mubr.msk.bf16.mxu0 (!%p163_p2), %vm1678_vm0, %v1677_v1  ;;  %v1679_v5 = vmov (!%p163_p2), 1983009808   ;;  %vm249_vm7 = vmor (!%p163_p2), %vm247_vm5, %vm248_vm3  ;;  %vm493_vm12 = vcmask (!%p163_p2), 1044484   ;;  %vm495_vm14 = vcmask (!%p163_p2), 1046534  }
   0x9   : > { %1582 = vmatprep.subr.bf16.mxu0 (!%p163_p2), %v1677_v1  ;;  %1558 = vmatprep.subr.bf16.mxu1 (!%p163_p2), %v1677_v1  ;;  %v314_v6 = vunpack.c.l.s4 (!%p163_p2), %v1679_v5  ;;  %vm1741_vm8 = vmor (!%p163_p2), %vm249_vm7, %vm250_vm4 }
   0xa   : > { %vm492_vm11 = vmor (!%p163_p2), %vm490_vm6, %vm491_vm9 }
   0xb   : > { %v315_v20 = vunpack.c.0.s8 (!%p163_p2), %v314_v6  ;;  %vm494_vm13 = vmor (!%p163_p2), %vm492_vm11, %vm493_vm12 }
   0xc   : > { %vm1773_vm15 = vmor (!%p163_p2), %vm494_vm13, %vm495_vm14 }
   0xd   : > { %s1885_s16 = smov (!%p188_p3, %s1423_s16), 5  ;;  %v1751_v53 = vsub.s32 %v315_v20, %v317_v4 }
   0xe   : > { %s1636_s21 = smul.u32 24, %s1885_s16  ;;  %s1531_s19 = sshll.u32 %s1885_s16, 3 }
   0xf   : > { %s197_s22 = scalar_lea.vmem %s1879_s4, %s1531_s19 }
  0x10   : > { %s1733_s24 = scalar_lea.vmem %s1875_s0, %s1636_s21 }
  0x11   : > { %v1431_v7 = vld.sshfl [vmem:[%s1733_s24] sm:$0x13 pattern:$0x76325410] }
  0x12   : > { %v1432_v8 = vld.sshfl [vmem:[%s1733_s24 + $0x4] sm:$0x13 pattern:$0x76325410]  ;;  %v220_v9 = vcombine.high %v1431_v7, %v1431_v7  ;;  %v253_v10 = vshrl.u32 %v1431_v7, 16  ;;  %v256_v11 = vshll.u32 %v1431_v7, 16 }
  0x13   : > { %v1433_v12 = vld.sshfl [vmem:[%s1733_s24 + $0x8] sm:$0x13 pattern:$0x76325410]  ;;  %v228_v13 = vcombine.high %v1432_v8, %v1432_v8  ;;  %v267_v14 = vshrl.u32 %v1432_v8, 16  ;;  %v270_v15 = vshll.u32 %v1432_v8, 16 }
  0x14   : > { %v1434_v16 = vld.sshfl [vmem:[%s1733_s24 + $0xc] sm:$0x13 pattern:$0x76325410]  ;;  %v236_v17 = vcombine.high %v1433_v12, %v1433_v12  ;;  %v255_v18 = vrot.slane %v253_v10, 6  ;;  %v258_v19 = vrot.slane %v256_v11, 7 }
  0x15   : > { %v244_v21 = vcombine.high %v1434_v16, %v1434_v16  ;;  %v262_v22 = vshll.u32 %v220_v9, 16  ;;  %v269_v23 = vrot.slane %v267_v14, 6  ;;  %v272_v24 = vrot.slane %v270_v15, 7 }
  0x16   : > { %v259_v25 = vor.u32 %v258_v19, %v255_v18  ;;  %v276_v26 = vshll.u32 %v228_v13, 16  ;;  %v281_v27 = vshrl.u32 %v1433_v12, 16  ;;  %v284_v28 = vshll.u32 %v1433_v12, 16 }
  0x17   : > { %v264_v30 = vrot.slane %v262_v22, 7  ;;  %v273_v31 = vor.u32 %v272_v24, %v269_v23  ;;  %v290_v32 = vshll.u32 %v236_v17, 16  ;;  %v295_v33 = vshrl.u32 %v1434_v16, 16 }
  0x18   : > { %v260_v34 = vrot.slane %v259_v25, 2  ;;  %v278_v35 = vrot.slane %v276_v26, 7  ;;  %v283_v36 = vrot.slane %v281_v27, 6  ;;  %v286_v37 = vrot.slane %v284_v28, 7 }
  0x19   : > { %v274_v38 = vrot.slane %v273_v31, 2  ;;  %v297_v39 = vrot.slane %v295_v33, 6  ;;  %v298_v40 = vshll.u32 %v1434_v16, 16  ;;  %v292_v43 = vrot.slane %v290_v32, 7  ;;  %v1650_v31 = vld [vmem:[%s1876_s1 + $0x28] sm:$0xff]  }
  0x1a   : > { %v265_v41 = vsel %vm1741_vm8, %v260_v34, %v264_v30  ;;  %v287_v42 = vor.u32 %v286_v37, %v283_v36  ;;  %v304_v44 = vshll.u32 %v244_v21, 16  ;;  %v1468_v45 = vld.sshfl [vmem:[%s1733_s24 + $0x10] sm:$0x13 pattern:$0x76325410]  ;;  %v1651_v21 = vld [vmem:[%s1876_s1] sm:$0xff]  }
  0x1b   : > { %v279_v46 = vsel %vm1741_vm8, %v274_v38, %v278_v35  ;;  %v300_v47 = vrot.slane %v298_v40, 7  ;;  %v705_v48 = vcombine.high %v1468_v45, %v1468_v45  ;;  %v749_v49 = vshrl.u32 %v1468_v45, 16  ;;  %v1477_v50 = vld.sshfl [vmem:[%s1733_s24 + $0x4] sm:$0x12 pattern:$0x76325410] }
  0x1c   : > { %v288_v51 = vrot.slane %v287_v42, 2  ;;  %v306_v52 = vrot.slane %v304_v44, 7  ;;  %v752_v54 = vshll.u32 %v1468_v45, 16  ;;  %v311_v56 = vcombine.low %v265_v41, %v279_v46 }
  0x1d   : > { %v301_v55 = vor.u32 %v300_v47, %v297_v39  ;;  %v751_v57 = vrot.slane %v749_v49, 6  ;;  %v758_v58 = vshll.u32 %v705_v48, 16  ;;  %v1478_v59 = vld.sshfl [vmem:[%s1733_s24 + $0x8] sm:$0x12 pattern:$0x76325410]  ;;  %v849_v63 = vcombine.high %v1477_v50, %v1477_v50 }
  0x1e   : > { %v293_v60 = vsel %vm1741_vm8, %v288_v51, %v292_v43  ;;  %v754_v61 = vrot.slane %v752_v54, 7  ;;  %v1479_v62 = vld.sshfl [vmem:[%s1733_s24 + $0xc] sm:$0x12 pattern:$0x76325410]  ;;  %v857_v5 = vcombine.high %v1478_v59, %v1478_v59  ;;  %v319_v9 = vrot.slane %v311_v56, %v1751_v53 }
  0x1f   : > { %v302_v0 = vrot.slane %v301_v55, 2  ;;  %v760_v2 = vrot.slane %v758_v58, 7  ;;  %v1480_v3 = vld.sshfl [vmem:[%s1733_s24 + $0x10] sm:$0x12 pattern:$0x76325410]  ;;  %v865_v6 = vcombine.high %v1479_v62, %v1479_v62  ;;  %v765_v10 = vcombine.low %v279_v46, %v293_v60 }
  0x20   : > { %v755_v4 = vor.u32 %v754_v61, %v751_v57  ;;  %v873_v7 = vcombine.high %v1480_v3, %v1480_v3  ;;  %v1481_v13 = vrot.slane %v1477_v50, 9  ;;  %v876_v14 = vrot.slane %v849_v63, 7  ;;  %v1441_v25 = vld.sshfl [vmem:[%s1733_s24] sm:$0x12 pattern:$0x76325410] }
  0x21   : > { %v307_v8 = vsel %vm1741_vm8, %v302_v0, %v306_v52  ;;  %v1482_v15 = vrot.slane %v1478_v59, 9  ;;  %v880_v16 = vrot.slane %v857_v5, 7  ;;  %v1483_v17 = vrot.slane %v1479_v62, 9  ;;  %v1655_v50 = vld [vmem:[%s1876_s1 + $0x10] sm:$0xff]  }
  0x22   : > { %v312_v11 = vcombine.low %v293_v60, %v307_v8  ;;  %v756_v12 = vrot.slane %v755_v4, 2  ;;  %v884_v18 = vrot.slane %v865_v6, 7  ;;  %v1484_v23 = vrot.slane %v1480_v3, 9  ;;  %v1654_v55 = vld [vmem:[%s1876_s1 + $0x30] sm:$0xff]   ;;  %v1659_v6 = vld [vmem:[%s1876_s1 + $0x18] sm:$0xff]  }
  0x23   : > { %v888_v24 = vrot.slane %v873_v7, 7  ;;  %v773_v27 = vrot.slane %v765_v10, %v1751_v53  ;;  %v1663_v32 = vld.sshfl [vmem:[%s1733_s24] sm:$0xf pattern:$0x76325410]  ;;  %v877_v34 = vsel %vm1773_vm15, %v1481_v13, %v876_v14  ;;  %v881_v35 = vsel %vm1773_vm15, %v1482_v15, %v880_v16 }
  0x24   : > { %v1764_v19 = vrot.slane %v312_v11, %v1751_v53  ;;  %v1768_v20 = vsel %vm1741_vm8, %v756_v12, %v760_v2  ;;  %v1664_v33 = vld.sshfl [vmem:[%s1733_s24 + $0x8] sm:$0xf pattern:$0x76325410]  ;;  %v885_v36 = vsel %vm1773_vm15, %v1483_v17, %v884_v18  ;;  %v465_v39 = vcombine.high %v1441_v25, %v1441_v25 }
  0x25   : > { %v766_v26 = vcombine.low %v307_v8, %v1768_v20  ;;  %v1796_v37 = vsel %vm1773_vm15, %v1484_v23, %v888_v24  ;;  %v893_v40 = vcombine.low %v877_v34, %v881_v35  ;;  %v1445_v42 = vrot.slane %v1441_v25, 9  ;;  %v1504_v44 = vld.sshfl [vmem:[%s1733_s24 + $0x14] sm:$0x13 pattern:$0x76325410]  ;;  %v1658_v8 = vld [vmem:[%s1876_s1 + $0x38] sm:$0xff]  }
  0x26   : > { %v327_v28 = vcombine.low %v319_v9, %v1764_v19  ;;  %v894_v41 = vcombine.low %v885_v36, %v1796_v37  ;;  %v499_v43 = vrot.slane %v465_v39, 7  ;;  %v399_v47 = vcombine.low %v1663_v32, %v1664_v33  ;;  %v1665_v60 = vld.sshfl [vmem:[%s1733_s24 + $0x8] sm:$0xf pattern:$0x76325410] }
  0x27   : > { %v780_v30 = vrot.slane %v766_v26, %v1751_v53  ;;  %v901_v45 = vrot.slane %v893_v40, %v1751_v53  ;;  %v1126_v48 = vshrl.u32 %v1504_v44, 16  ;;  %v1129_v49 = vshll.u32 %v1504_v44, 16  ;;  %v1666_v61 = vld.sshfl [vmem:[%s1733_s24 + $0x10] sm:$0xf pattern:$0x76325410] }
  0x28   : > { %1555 = vmatmul.mubr.msk.bf16.vlgmr.msra.gmra.mrb[0].mxu1 %vm334_vm10, %v327_v28  ;;  %v908_v46 = vrot.slane %v894_v41, %v1751_v53  ;;  %v500_v51 = vsel %vm1773_vm15, %v1445_v42, %v499_v43  ;;  %v517_v54 = vcombine.low %v881_v35, %v885_v36  ;;  %v1082_v57 = vcombine.high %v1504_v44, %v1504_v44  ;;  %v1667_v9 = vld.sshfl [vmem:[%s1733_s24 + $0x4] sm:$0xf pattern:$0x76325410] }
  0x29   : > { %v781_v38 = vcombine.low %v773_v27, %v780_v30  ;;  %1559 = vmatpush3.bf16.msra.mxu1 %v1651_v21  ;;  %1560 = vmatprep.mubr.msk.bf16.mxu1 %vm1678_vm0, %v1677_v1  ;;  %v516_v56 = vcombine.low %v500_v51, %v877_v34  ;;  %v1128_v58 = vrot.slane %v1126_v48, 6  ;;  %v1131_v59 = vrot.slane %v1129_v49, 7  ;;  %v1668_v10 = vld.sshfl [vmem:[%s1733_s24 + $0xc] sm:$0xf pattern:$0x76325410] }
  0x2a   : > { %1564 = vmatprep.subr.bf16.mxu1 %v1677_v1  ;;  %v909_v52 = vcombine.low %v901_v45, %v908_v46  ;;  %v531_v63 = vrot.slane %v517_v54, %v1751_v53  ;;  %v1135_v2 = vshll.u32 %v1082_v57, 16  ;;  %v990_v7 = vcombine.low %v1665_v60, %v1666_v61  ;;  %v1516_v12 = vld.sshfl [vmem:[%s1733_s24 + $0x14] sm:$0x12 pattern:$0x76325410] }
  0x2b   : > { %1579 = vmatmul.mubr.msk.bf16.vlgmr.msra.gmra.mrb[0].mxu0 %vm334_vm10, %v781_v38  ;;  %v524_v62 = vrot.slane %v516_v56, %v1751_v53  ;;  %v1132_v0 = vor.u32 %v1131_v59, %v1128_v58  ;;  %v1250_v14 = vcombine.high %v1516_v12, %v1516_v12  ;;  %v613_v29 = vcombine.low %v1667_v9, %v1668_v10  ;;  %v1525_v30 = vld [vmem:[%s1877_s2] ss:$0 sm:$0xff] }
  0x2c   : > { %1583 = vmatpush3.bf16.msra.mxu0 %v1650_v31  ;;  %1584 = vmatprep.mubr.msk.bf16.mxu0 %vm1678_vm0, %v1677_v1  ;;  %v1137_v5 = vrot.slane %v1135_v2, 7  ;;  %v1520_v16 = vrot.slane %v1516_v12, 9 }
  0x2d   : > { %1588 = vmatprep.subr.bf16.mxu0 %v1677_v1  ;;  %v532_v3 = vcombine.low %v524_v62, %v531_v63  ;;  %v1133_v4 = vrot.slane %v1132_v0, 2  ;;  %v1265_v17 = vrot.slane %v1250_v14, 7 }
  0x2f   : > { %v1138_v11 = vsel %vm1741_vm8, %v1133_v4, %v1137_v5  ;;  %v1266_v21 = vsel %vm1773_vm15, %v1520_v16, %v1265_v17 }
  0x30   : > { %v1143_v13 = vcombine.low %v1768_v20, %v1138_v11  ;;  %v1662_v20 = vld [vmem:[%s1876_s1 + $0x40] sm:$0xff]   ;;  %v1271_v23 = vcombine.low %v1796_v37, %v1266_v21 }
  0x32   : > { %v1157_v15 = vrot.slane %v1143_v13, %v1751_v53 }
  0x34   : > { %1561 = vmatmul.mubr.msk.bf16.vlgmr.msra.gmra.mrb[0].mxu1 %vm334_vm10, %v399_v47  ;;  %v1158_v18 = vcombine.low %v1764_v19, %v1157_v15  ;;  %v1285_v19 = vrot.slane %v1271_v23, %v1751_v53 }
  0x35   : > { %1565 = vmatpush3.bf16.msra.mxu1 %v1655_v50  ;;  %1566 = vmatprep.mubr.msk.bf16.mxu1 %vm1678_vm0, %v1677_v1 }
  0x36   : > { %1570 = vmatprep.subr.bf16.mxu1 %v1677_v1  ;;  %v1286_v24 = vcombine.low %v531_v63, %v1285_v19 }
  0x37   : > { %1585 = vmatmul.mubr.msk.bf16.vlgmr.msra.gmra.mrb[0].mxu0 %vm334_vm10, %v909_v52 }
  0x38   : > { %1589 = vmatpush3.bf16.msra.mxu0 %v1654_v55  ;;  %1590 = vmatprep.mubr.msk.bf16.mxu0 %vm1678_vm0, %v1677_v1 }
  0x39   : > { %1594 = vmatprep.subr.bf16.mxu0 %v1677_v1 }
  0x40   : > { %1567 = vmatmul.mubr.msk.bf16.vlgmr.msra.gmra.mrb[0].mxu1 %vm334_vm10, %v532_v3 }
  0x41   : > { %1571 = vmatpush3.bf16.msra.mxu1 %v1659_v6  ;;  %1572 = vmatprep.mubr.msk.bf16.mxu1 %vm1678_vm0, %v1677_v1 }
  0x43   : > { %1591 = vmatmul.mubr.msk.bf16.vlgmr.msra.gmra.mrb[0].mxu0 %vm334_vm10, %v990_v7 }
  0x44   : > { %1595 = vmatpush3.bf16.msra.mxu0 %v1658_v8  ;;  %1596 = vmatprep.mubr.msk.bf16.mxu0 %vm1678_vm0, %v1677_v1 }
  0x45   : > { %1600 = vmatprep.subr.bf16.mxu0 %v1677_v1 }
  0x4c   : > { %1573 = vmatmul.mubr.msk.bf16.vlgmr.msra.gmra.mrb[0].mxu1 %vm334_vm10, %v613_v29 }
  0x4f   : > { %1597 = vmatmul.mubr.msk.bf16.vlgmr.msra.gmra.mrb[0].mxu0 %vm334_vm10, %v1158_v18 }
  0x50   : > { %1601 = vmatpush3.bf16.msra.mxu0 %v1662_v20  ;;  %1602 = vmatprep.mubr.msk.bf16.mxu0 %vm1678_vm0, %v1677_v1  ;;  %v1526_v1 = vld [vmem:[%s1878_s3] ss:$0 sm:$0xff]  ;;  %vm1365_vm0 = vcmask 60416  }
  0x5b   : > { %1603 = vmatmul.mubr.msk.bf16.vlgmr.msra.gmra.mrb[0].mxu0 %vm334_vm10, %v1286_v24 }
 0x11f   : > { %v657_v25 = vpop.f32.mrb[0].mxu1 }
 0x120   : > { %v1574_v26 = vpop.f32.mrb[1].mxu1 }
 0x121   : > { %v660_v27 = vpop.f32.mrb[2].mxu1 }
 0x122   : > { %v1575_v28 = vpop.f32.mrb[3].mxu1 }
 0x12e   : > { %v1330_v22 = vpop.f32.mrb[0].mxu0 }
 0x12f   : > { %v1606_v31 = vadd.f32 %v1330_v22, %v657_v25  ;;  %v1604_v32 = vpop.f32.mrb[1].mxu0 }
 0x130   : > { %v1333_v33 = vpop.f32.mrb[2].mxu0 }
 0x131   : > { %v1346_v53 = vmul.f32 %v1606_v31, %v1525_v30  ;;  %v1607_v34 = vadd.f32 %v1333_v33, %v660_v27  ;;  %v1605_v35 = vpop.f32.mrb[3].mxu0 }
 0x133   : > { %v1355_v36 = vadd.f32 %v1526_v1, %v1346_v53  ;;  %v1347_v37 = vmul.f32 %v1607_v34, %v1525_v30 }
 0x135   : > { %v1532_v38 = vpack.c.bf16 %v1355_v36, %v1355_v36  ;;  %v1356_v39 = vadd.f32 %v1526_v1, %v1347_v37 }
 0x137   : > { %1366 = vst.msk [vmem:[%s197_s22] sm:$0xf] %vm1365_vm0, %v1532_v38  ;;  %v1533_v40 = vpack.c.bf16 %v1356_v39, %v1356_v39 }
 0x139   : > { %1367 = vst.msk [vmem:[%s197_s22 + $0x4] sm:$0xf] %vm1365_vm0, %v1533_v40 }
 0x13a PF: > { %s14_s15 = sadd.s32 1, %s1675_s15  }
 0x13b   : > { %p11_p4 = scmp.ge.s32.totalorder %s14_s15, 8  }
 0x13d   :  { %13 = sbr.rel (!%p11_p4) target bundleno = 1 (0x1), region = 76 }

// kernel: forward.30
= control target key start
LH: loop header
LB: loop body
LE: loop exit
PB: predicated region body
PF: predicated region fallthrough
CT: control target
= control target key end

     0   :  { %s304_s12 = smov 0   ;;  %s327_s0 = inlined_call_operand.vmem [shape: bf16[6,16,32], index: 0, kind: input, shape index: {}]   ;;  %s328_s1 = inlined_call_operand.vmem [shape: f32[1,32], index: 1, kind: input, shape index: {}]   ;;  %s329_s2 = inlined_call_operand.vmem [shape: f32[1,32], index: 2, kind: input, shape index: {}]   ;;  %s330_s3 = inlined_call_operand.vmem [shape: f32[6,1,32], index: 3, kind: output, shape index: {}]  }
   0x1 LB: > { %s252_s13 = sadd.s32 4294967295, %s282_s12   ;;  %p256_p0 = scmp.ge.s32.totalorder %s282_s12, 1  ;;  %s282_s12 = sphi %s304_s12, %s13_s12  }
   0x2   : > { %p137_p1 = scmp.lt.s32.totalorder %s282_s12, 7 }
   0x4   : > { %p138_p2 = pnand %p256_p0, %p137_p1 }
   0x5   : > { %p159_p3 = scmp.lt.s32.totalorder (!%p138_p2), %s252_s13, 5  ;;  %v259_v1 = vld [vmem:[%s328_s1] ss:$0 sm:$0xff] (!%p138_p2)  ;;  %vm191_vm0 = vcmask (!%p138_p2), 261120   ;;  %vm203_vm1 = vcmask (!%p138_p2), 253952  }
   0x6   : > { %141 = sbr.rel (%p138_p2) target bundleno = 43 (0x2b), region = 32  ;;  %v260_v4 = vld [vmem:[%s329_s2] ss:$0 sm:$0xff] (!%p138_p2) }
   0xd   : > { %s332_s13 = smov (!%p159_p3, %s252_s13), 5 }
   0xe   : > { %s263_s14 = sshll.u32 %s332_s13, 3  ;;  %s166_s24 = scalar_lea.vmem %s330_s3, %s332_s13 }
   0xf   : > { %s163_s17 = scalar_lea.vmem %s327_s0, %s263_s14 }
  0x10   : > { %v265_v0 = vld [vmem:[%s163_s17] sm:$0xff]  }
  0x11   : > { %v266_v2 = vunpack.c.l.bf16 %v265_v0  ;;  %v267_v3 = vunpack.c.h.bf16 %v265_v0 }
  0x13   : > { %v178_v5 = vmul.f32 %v266_v2, %v259_v1  ;;  %v179_v6 = vmul.f32 %v267_v3, %v259_v1 }
  0x15   : > { %v187_v7 = vadd.f32 %v260_v4, %v178_v5  ;;  %v188_v8 = vadd.f32 %v260_v4, %v179_v6 }
  0x17   : > { %v189_v9 = vmax.f32 %v187_v7, 0.0  ;;  %v190_v10 = vmax.f32 %v188_v8, 0.0 }
  0x19   : > { %v192_v11 = vsel %vm191_vm0, %v189_v9, 0.0  ;;  %v193_v12 = vsel %vm191_vm0, %v190_v10, 0.0 }
  0x1a   : > { %v194_v13 = vadd.f32 %v193_v12, %v192_v11 }
  0x1c   : > { %v195_v14 = vrot.slane %v194_v13, 4 }
  0x1e   : > { %v196_v15 = vadd.f32 %v195_v14, %v194_v13 }
  0x20   : > { %v197_v16 = vrot.slane %v196_v15, 2 }
  0x22   : > { %v198_v17 = vadd.f32 %v197_v16, %v196_v15 }
  0x24   : > { %v199_v18 = vrot.slane %v198_v17, 1 }
  0x26   : > { %v200_v19 = vadd.f32 %v199_v18, %v198_v17 }
  0x28   : > { %v202_v20 = vmul.f32 0.0625, %v200_v19 }
  0x2a   : > { %204 = vst.msk [vmem:[%s166_s24] sm:$0x1] %vm203_vm1, %v202_v20 }
  0x2b PF: > { %s13_s12 = sadd.s32 1, %s282_s12  }
  0x2c   : > { %p10_p4 = scmp.ge.s32.totalorder %s13_s12, 8  }
  0x2e   :  { %12 = sbr.rel (!%p10_p4) target bundleno = 1 (0x1), region = 62 }

// kernel: forward.31
= control target key start
LH: loop header
LB: loop body
LE: loop exit
PB: predicated region body
PF: predicated region fallthrough
CT: control target
= control target key end

     0   :  { %v211_v0 = vmov 0.0   ;;  %vm212_vm0 = vmmov 0   ;;  %s284_s2 = inlined_call_operand.vmem [shape: f32[1,128], index: 2, kind: input, shape index: {}]   ;;  %s285_s3 = inlined_call_operand.vmem [shape: f32[1,128], index: 3, kind: input, shape index: {}]   ;;  %s286_s1 = inlined_call_operand.vmem [shape: bf16[128,128], index: 1, kind: input, shape index: {}]   ;;  %s287_s0 = inlined_call_operand.vmem [shape: bf16[8,128], index: 0, kind: input, shape index: {}]   ;;  %s288_s4 = inlined_call_operand.vmem [shape: f32[1,128], index: 4, kind: input, shape index: {}]   ;;  %s289_s5 = inlined_call_operand.vmem [shape: f32[1,128], index: 5, kind: input, shape index: {}]   ;;  %s290_s6 = inlined_call_operand.vmem [shape: f32[8,128], index: 6, kind: output, shape index: {}]  }
   0x1   :  { %181 = vmatprep.subr.bf16.mxu0 %v211_v0  ;;  %v203_v1 = vld [vmem:[%s286_s1] sm:$0xff]   ;;  %197 = vmatprep.mubr.msk.bf16.mxu0 %vm212_vm0, %v211_v0  ;;  %v204_v2 = vld [vmem:[%s286_s1 + $0x8] sm:$0xff]   ;;  %v205_v3 = vld [vmem:[%s286_s1 + $0x10] sm:$0xff]  }
   0x2   :  { %182 = vmatpush3.bf16.msra.mxu0 %v203_v1  ;;  %v206_v4 = vld [vmem:[%s286_s1 + $0x18] sm:$0xff]   ;;  %v207_v5 = vld [vmem:[%s286_s1 + $0x20] sm:$0xff]   ;;  %v208_v6 = vld [vmem:[%s286_s1 + $0x28] sm:$0xff]  }
   0x3   :  { %183 = vmatprep.subr.bf16.mxu0 %v211_v0  ;;  %v209_v7 = vld [vmem:[%s286_s1 + $0x30] sm:$0xff]   ;;  %v210_v8 = vld [vmem:[%s286_s1 + $0x38] sm:$0xff]   ;;  %v29_v9 = vld [vmem:[%s287_s0] sm:$0xf] }
   0x4   :  { %v170_v10 = vld [vmem:[%s288_s4] ss:$0 sm:$0xff] }
   0x5   :  { %v171_v12 = vld [vmem:[%s289_s5] ss:$0 sm:$0xff] }
   0x6   :  { %184 = vmatpush3.bf16.msra.mxu0 %v204_v2 }
   0x7   :  { %185 = vmatprep.subr.bf16.mxu0 %v211_v0 }
   0xa   :  { %186 = vmatpush3.bf16.msra.mxu0 %v205_v3 }
   0xb   :  { %187 = vmatprep.subr.bf16.mxu0 %v211_v0 }
   0xe   :  { %188 = vmatpush3.bf16.msra.mxu0 %v206_v4 }
   0xf   :  { %189 = vmatprep.subr.bf16.mxu0 %v211_v0 }
  0x12   :  { %190 = vmatpush3.bf16.msra.mxu0 %v207_v5 }
  0x13   :  { %191 = vmatprep.subr.bf16.mxu0 %v211_v0 }
  0x16   :  { %192 = vmatpush3.bf16.msra.mxu0 %v208_v6 }
  0x17   :  { %193 = vmatprep.subr.bf16.mxu0 %v211_v0 }
  0x1a   :  { %194 = vmatpush3.bf16.msra.mxu0 %v209_v7 }
  0x1b   :  { %195 = vmatprep.subr.bf16.mxu0 %v211_v0 }
  0x1e   :  { %196 = vmatpush3.bf16.msra.mxu0 %v210_v8 }
  0x21   :  { %198 = vmatmul.mubr.bf16.vlgmr.msra.gmra.mrb[0].mxu0 %v29_v9 }
  0xf4   :  { %v129_v11 = vpop.f32.mrb[0].mxu0 }
  0xf5   :  { %v148_v13 = vmul.f32 %v170_v10, %v129_v11  ;;  %v199_v14 = vpop.f32.mrb[1].mxu0 }
  0xf6   :  { %v132_v15 = vpop.f32.mrb[2].mxu0 }
  0xf7   :  { %v156_v16 = vadd.f32 %v171_v12, %v148_v13  ;;  %v200_v17 = vpop.f32.mrb[3].mxu0 }
  0xf9   :  { %157 = vst [vmem:[%s290_s6] sm:$0xff] %v156_v16 }

// kernel: forward.35
= control target key start
LH: loop header
LB: loop body
LE: loop exit
PB: predicated region body
PF: predicated region fallthrough
CT: control target
= control target key end

     0   :  { %v247_v1 = vmov 0.0   ;;  %vm248_vm0 = vmmov 0   ;;  %s330_s0 = inlined_call_operand.vmem [shape: bf16[8,128], index: 0, kind: input, shape index: {}]   ;;  %s331_s1 = inlined_call_operand.vmem [shape: bf16[128,128], index: 1, kind: input, shape index: {}]   ;;  %s332_s2 = inlined_call_operand.vmem [shape: f32[1,128], index: 2, kind: input, shape index: {}]   ;;  %s333_s3 = inlined_call_operand.vmem [shape: f32[1,128], index: 3, kind: input, shape index: {}]   ;;  %s334_s4 = inlined_call_operand.vmem [shape: f32[1,128], index: 4, kind: input, shape index: {}]   ;;  %s335_s5 = inlined_call_operand.vmem [shape: f32[1,128], index: 5, kind: input, shape index: {}]   ;;  %s336_s6 = inlined_call_operand.hbm [shape: f32[8,128], index: 6, kind: output, shape index: {}]  }
   0x1   :  { %v215_v0 = vld [vmem:[%s331_s1] sm:$0xff]   ;;  %192 = vmatprep.subr.bf16.mxu0 %v247_v1  ;;  %v216_v2 = vld [vmem:[%s331_s1 + $0x8] sm:$0xff]   ;;  %208 = vmatprep.mubr.msk.bf16.mxu0 %vm248_vm0, %v247_v1  ;;  %v217_v3 = vld [vmem:[%s331_s1 + $0x10] sm:$0xff]  }
   0x2   :  { %193 = vmatpush3.bf16.msra.mxu0 %v215_v0 }
   0x3   :  { %194 = vmatprep.subr.bf16.mxu0 %v247_v1 }
   0x6   :  { %195 = vmatpush3.bf16.msra.mxu0 %v216_v2 }
   0x7   :  { %196 = vmatprep.subr.bf16.mxu0 %v247_v1 }
   0x8   :  { %11 = vsyncpa [#allocation4], 0  ;;  %v218_v4 = vld [vmem:[%s331_s1 + $0x18] sm:$0xff]   ;;  %v219_v5 = vld [vmem:[%s331_s1 + $0x20] sm:$0xff]   ;;  %s249_s17 = smov [#allocation3]  }
   0x9   :  { %v220_v6 = vld [vmem:[%s331_s1 + $0x28] sm:$0xff]   ;;  %v221_v7 = vld [vmem:[%s331_s1 + $0x30] sm:$0xff]   ;;  %v222_v8 = vld [vmem:[%s331_s1 + $0x38] sm:$0xff]   ;;  %s165_s18 = sshll.u32 %s249_s17, 4  ;;  %s166_s18 = int_to_ptr.vmem [resolvable:$true] %s165_s18 }
   0xa   :  { %197 = vmatpush3.bf16.msra.mxu0 %v217_v3  ;;  %v30_v9 = vld [vmem:[%s330_s0] sm:$0xf]  ;;  %s223_s0 = scalar_lea.vmem %s166_s18, 128  ;;  %p228_p1 = scmp.lt.s32.totalorder %s166_s18, %s166_s18 }
   0xb   :  { %198 = vmatprep.subr.bf16.mxu0 %v247_v1  ;;  %v181_v10 = vld [vmem:[%s334_s4] ss:$0 sm:$0xff]  ;;  %p224_p0 = scmp.ne.s32.totalorder %s166_s18, %s223_s0  ;;  %p229_p2 = scmp.lt.s32.totalorder %s223_s0, %s223_s0 }
   0xc   :  { %v182_v12 = vld [vmem:[%s335_s5] ss:$0 sm:$0xff] }
   0xd   :  { %p230_p3 = por %p229_p2, %p228_p1 }
   0xe   :  { %199 = vmatpush3.bf16.msra.mxu0 %v218_v4 }
   0xf   :  { %200 = vmatprep.subr.bf16.mxu0 %v247_v1  ;;  %p231_p4 = pnand %p230_p3, %p224_p0 }
  0x12   :  { %201 = vmatpush3.bf16.msra.mxu0 %v219_v5 }
  0x13   :  { %202 = vmatprep.subr.bf16.mxu0 %v247_v1 }
  0x16   :  { %203 = vmatpush3.bf16.msra.mxu0 %v220_v6 }
  0x17   :  { %204 = vmatprep.subr.bf16.mxu0 %v247_v1 }
  0x1a   :  { %205 = vmatpush3.bf16.msra.mxu0 %v221_v7 }
  0x1b   :  { %206 = vmatprep.subr.bf16.mxu0 %v247_v1 }
  0x1e   :  { %207 = vmatpush3.bf16.msra.mxu0 %v222_v8 }
  0x21   :  { %209 = vmatmul.mubr.bf16.vlgmr.msra.gmra.mrb[0].mxu0 %v30_v9 }
  0xf4   :  { %v130_v11 = vpop.f32.mrb[0].mxu0 }
  0xf5   :  { %v149_v13 = vmul.f32 %v181_v10, %v130_v11  ;;  %v210_v14 = vpop.f32.mrb[1].mxu0 }
  0xf6   :  { %v133_v15 = vpop.f32.mrb[2].mxu0 }
  0xf7   :  { %v211_v16 = vpop.f32.mrb[3].mxu0  ;;  %v157_v17 = vadd.f32 %v182_v12, %v149_v13 }
  0xf9   :  { %158 = vst [vmem:[#allocation3] sm:$0xff] %v157_v17 }
  0xfa   :  { %234 = shalt.err (!%p231_p4)
}
  0xfb   :  { %s235_s5 = scalar_lea.hbm %s336_s6, 128 }
  0xfc   :  { %p236_p5 = scmp.ne.s32.totalorder %s336_s6, %s235_s5  ;;  %p239_p6 = scmp.lt.u32.totalorder %s235_s5, %s336_s6 }
  0xfe   :  { %p241_p7 = pnand %p239_p6, %p236_p5 }
 0x100   :  { %244 = shalt.err (!%p241_p7)
}
 0x101   :  { %168 = dma.vmem_to_hbm [thread:$0]  %s166_s18, 128, %s336_s6, [#allocation4]  }
 0x102   :  { %245 = dma.done.wait [#allocation4], 128  }
 0x103   :  { %246 = vsyncadd [#allocation4], 4294967168 }
 0x104   :  { %172 = vsyncpa [#allocation4], 1 }

// kernel: forward.32
= control target key start
LH: loop header
LB: loop body
LE: loop exit
PB: predicated region body
PF: predicated region fallthrough
CT: control target
= control target key end

     0   :  { %vm18_vm0 = vcmask 261120   ;;  %v1359_v0 = vmov 0.0|0.0   ;;  %vm1360_vm1 = vmmov 0   ;;  %v1361_v4 = vmov 0.0   ;;  %s1362_s21 = smov 96   ;;  %s1364_s24 = smov 48   ;;  %s1603_s1 = inlined_call_operand.vmem [shape: f32[32,96], index: 1, kind: input, shape index: {}]   ;;  %s1604_s2 = inlined_call_operand.vmem [shape: f32[1,96], index: 2, kind: input, shape index: {}]   ;;  %s1605_s0 = inlined_call_operand.vmem [shape: f32[8,8,96], index: 0, kind: input, shape index: {}]   ;;  %s1606_s3 = inlined_call_operand.vmem [shape: f32[8,8,32], index: 3, kind: output, shape index: {}]  }
   0x1   :  { %1254 = vmatprep.subr.bf16.mxu0 %v1359_v0  ;;  %v22_v1 = vld [vmem:[%s1603_s1] sm:$0xff]  ;;  %v23_v2 = vld [vmem:[%s1603_s1 + $0x8] sm:$0xff]  ;;  %v24_v3 = vld [vmem:[%s1603_s1 + $0x10] sm:$0xff]  ;;  %1174 = vmatprep.mubr.msk.f32.mxu0 %vm1360_vm1, %v1361_v4  ;;  %19 = vst.msk [vmem:[#allocation2] sm:$0xff] %vm18_vm0, %v1361_v4  ;;  %s1365_s25 = smov 112   ;;  %s1366_s26 = smov 16  }
   0x2   :  { %v1402_v5 = vpack.c.bf16 %v23_v2, %v22_v1  ;;  %v25_v6 = vld [vmem:[%s1603_s1 + $0x18] sm:$0xff]  ;;  %1260 = vmatprep.subr.bf16.mxu1 %v1359_v0  ;;  %1185 = vmatprep.mubr.msk.f32.mxu1 %vm1360_vm1, %v1361_v4  ;;  %v1430_v9 = vld [vmem:[%s1604_s2] ss:$0 sm:$0xff]  ;;  %s1363_s2 = smov 32   ;;  %s1367_s27 = smov 80   ;;  %vm149_vm2 = vcmask 130048  }
   0x3   :  { %v1411_v7 = vpack.c.bf16 %v25_v6, %v24_v3  ;;  %v21_v13 = vld [vmem:[%s1605_s0] sm:$0xff]  ;;  %v1091_v40 = vld [vmem:[%s1605_s0 + $0x8] sm:$0xff]  ;;  %v1096_v6 = vld [vmem:[%s1605_s0 + $0x10] sm:$0xff] }
   0x4   :  { %1256 = vmatpush3.bf16.msra.mxu0 %v1402_v5  ;;  %1262 = vmatpush3.bf16.msra.mxu1 %v1402_v5 }
   0x5   :  { %1257 = vmatprep.subr.bf16.mxu0 %v1359_v0  ;;  %1263 = vmatprep.subr.bf16.mxu1 %v1359_v0 }
   0x8   :  { %1259 = vmatpush3.bf16.msra.mxu0 %v1411_v7  ;;  %v20_v8 = vld [vmem:[#allocation2] sm:$0xff]  ;;  %1265 = vmatpush3.bf16.msra.mxu1 %v1411_v7 }
   0x9   :  { %1266 = vmatprep.subr.bf16.mxu0 %v1359_v0  ;;  %1272 = vmatprep.subr.bf16.mxu1 %v1359_v0 }
   0xb   :  { %1175 = vmatmul.mubr.msk.f32.vlgmr.msra.gmra.mrb[0].mxu0 %vm18_vm0, %v20_v8 }
   0xc   :  { %1268 = vmatpush3.bf16.msra.mxu0 %v1402_v5  ;;  %1196 = vmatprep.mubr.msk.f32.mxu0 %vm1360_vm1, %v1361_v4 }
   0xd   :  { %1269 = vmatprep.subr.bf16.mxu0 %v1359_v0 }
  0x10   :  { %1271 = vmatpush3.bf16.msra.mxu0 %v1411_v7 }
  0x11   :  { %1278 = vmatprep.subr.bf16.mxu0 %v1359_v0 }
  0xde   :  { %v103_v10 = vpop.f32.mrb[0].mxu0 }
  0xdf   :  { %v104_v11 = vadd.f32 %v1430_v9, %v103_v10  ;;  %v1176_v12 = vpop.f32.mrb[1].mxu0 }
  0xe1   :  { %115 = vrot.lane.b32.xlu0 %v104_v11, %s1362_s21  ;;  %v107_v14 = vadd.f32 %v104_v11, %v21_v13 }
  0xe3   :  { %v1090_v15 = vmul.f32 -1.442695, %v107_v14 }
  0xe5   :  { %1311 = vpow2.f32 %v1090_v15 }
  0xef   :  { %v1312_v16 = vpop.eup %1311 }
  0xf0   :  { %v111_v17 = vadd.f32 1.0, %v1312_v16 }
  0xf2   :  { %1313 = vrcp.f32 %v111_v17 }
  0xfc   :  { %v1314_v18 = vpop.eup %1313 }
  0xfd   :  { %v125_v25 = vsub.f32 1.0, %v1314_v18 }
 0x153   :  { %v116_v19 = vpop.permute.xlu0 %115 }
 0x154   :  { %v118_v20 = vmul.f32 %v1314_v18, %v116_v19 }
 0x156   :  { %120 = vrot.lane.b32.xlu0 %v118_v20, %s1363_s2 }
 0x15a   :  { %136 = vrot.lane.b32.xlu0 %v20_v8, %s1364_s24 }
 0x1c8   :  { %v121_v21 = vpop.permute.xlu0 %120 }
 0x1c9   :  { %v123_v22 = vadd.f32 %v121_v21, %v21_v13 }
 0x1cb   :  { %1315 = vtanh.f32 %v123_v22 }
 0x1cc   :  { %v137_v24 = vpop.permute.xlu0 %136 }
 0x1cd   :  { %v139_v27 = vmul.f32 %v1314_v18, %v137_v24 }
 0x1d5   :  { %v1316_v23 = vpop.eup %1315 }
 0x1d6   :  { %127 = vrot.lane.b32.xlu1 %v1316_v23, %s1365_s25 }
 0x1da   :  { %131 = vrot.lane.b32.xlu1 %v20_v8, %s1366_s26 }
 0x248   :  { %v128_v26 = vpop.permute.xlu1 %127 }
 0x249   :  { %v130_v28 = vmul.f32 %v128_v26, %v125_v25 }
 0x24b   :  { %v140_v29 = vadd.f32 %v139_v27, %v130_v28 }
 0x24c   :  { %v132_v30 = vpop.permute.xlu1 %131 }
 0x24d   :  { %v134_v31 = vmul.f32 %v1314_v18, %v132_v30  ;;  %146 = vrot.lane.b32.xlu0 %v140_v29, %s1367_s27 }
 0x24f   :  { %v135_v32 = vadd.f32 %v134_v31, %v130_v28 }
 0x251   :  { %142 = vrot.lane.b32.xlu1 %v135_v32, %s1365_s25 }
 0x2bf   :  { %v147_v33 = vpop.permute.xlu0 %146 }
 0x2c3   :  { %v143_v34 = vpop.permute.xlu1 %142 }
 0x2c4   :  { %v150_v35 = vsel %vm149_vm2, %v143_v34, %v147_v33 }
 0x2c5   :  { %151 = vst.msk [vmem:[#allocation2] sm:$0xff] %vm18_vm0, %v150_v35  ;;  %152 = vst.msk [vmem:[%s1606_s3] sm:$0xff] %vm18_vm0, %v150_v35  ;;  %v1101_v35 = vld [vmem:[%s1605_s0 + $0x18] sm:$0xff] }
 0x2cc   :  { %v153_v36 = vld [vmem:[#allocation2] sm:$0xff] }
 0x2cd   :  { %1186 = vmatmul.mubr.msk.f32.vlgmr.msra.gmra.mrb[0].mxu1 %vm18_vm0, %v153_v36 }
 0x2ce   :  { %1274 = vmatpush3.bf16.msra.mxu1 %v1402_v5  ;;  %1207 = vmatprep.mubr.msk.f32.mxu1 %vm1360_vm1, %v1361_v4 }
 0x2cf   :  { %1275 = vmatprep.subr.bf16.mxu1 %v1359_v0 }
 0x2d2   :  { %1277 = vmatpush3.bf16.msra.mxu1 %v1411_v7 }
 0x2d3   :  { %1284 = vmatprep.subr.bf16.mxu1 %v1359_v0 }
 0x3a0   :  { %v236_v37 = vpop.f32.mrb[0].mxu1 }
 0x3a1   :  { %v237_v38 = vadd.f32 %v1430_v9, %v236_v37  ;;  %v1187_v39 = vpop.f32.mrb[1].mxu1 }
 0x3a3   :  { %248 = vrot.lane.b32.xlu1 %v237_v38, %s1362_s21  ;;  %v240_v41 = vadd.f32 %v1091_v40, %v237_v38 }
 0x3a5   :  { %v1094_v42 = vmul.f32 -1.442695, %v240_v41 }
 0x3a7   :  { %1317 = vpow2.f32 %v1094_v42 }
 0x3b1   :  { %v1318_v43 = vpop.eup %1317 }
 0x3b2   :  { %v244_v44 = vadd.f32 1.0, %v1318_v43 }
 0x3b4   :  { %1319 = vrcp.f32 %v244_v44 }
 0x3be   :  { %v1320_v45 = vpop.eup %1319 }
 0x3bf   :  { %v258_v52 = vsub.f32 1.0, %v1320_v45 }
 0x415   :  { %v249_v46 = vpop.permute.xlu1 %248 }
 0x416   :  { %v251_v47 = vmul.f32 %v1320_v45, %v249_v46 }
 0x418   :  { %253 = vrot.lane.b32.xlu0 %v251_v47, %s1363_s2 }
 0x41c   :  { %264 = vrot.lane.b32.xlu0 %v153_v36, %s1366_s26 }
 0x48a   :  { %v254_v48 = vpop.permute.xlu0 %253 }
 0x48b   :  { %v256_v49 = vadd.f32 %v1091_v40, %v254_v48 }
 0x48d   :  { %1321 = vtanh.f32 %v256_v49 }
 0x48e   :  { %v265_v51 = vpop.permute.xlu0 %264 }
 0x48f   :  { %v267_v54 = vmul.f32 %v1320_v45, %v265_v51 }
 0x497   :  { %v1322_v50 = vpop.eup %1321 }
 0x498   :  { %260 = vrot.lane.b32.xlu1 %v1322_v50, %s1365_s25 }
 0x49c   :  { %269 = vrot.lane.b32.xlu1 %v153_v36, %s1364_s24 }
 0x50a   :  { %v261_v53 = vpop.permute.xlu1 %260 }
 0x50b   :  { %v263_v55 = vmul.f32 %v261_v53, %v258_v52 }
 0x50d   :  { %v268_v56 = vadd.f32 %v267_v54, %v263_v55 }
 0x50e   :  { %v270_v57 = vpop.permute.xlu1 %269 }
 0x50f   :  { %v272_v58 = vmul.f32 %v1320_v45, %v270_v57  ;;  %275 = vrot.lane.b32.xlu0 %v268_v56, %s1365_s25 }
 0x511   :  { %v273_v59 = vadd.f32 %v272_v58, %v263_v55 }
 0x513   :  { %279 = vrot.lane.b32.xlu1 %v273_v59, %s1367_s27 }
 0x581   :  { %v276_v60 = vpop.permute.xlu0 %275 }
 0x585   :  { %v280_v61 = vpop.permute.xlu1 %279 }
 0x586   :  { %v282_v62 = vsel %vm149_vm2, %v276_v60, %v280_v61 }
 0x587   :  { %283 = vst.msk [vmem:[#allocation2] sm:$0xff] %vm18_vm0, %v282_v62  ;;  %1095 = vst.msk [vmem:[%s1606_s3 + $0x8] sm:$0xff] %vm18_vm0, %v282_v62  ;;  %v1106_v62 = vld [vmem:[%s1605_s0 + $0x20] sm:$0xff] }
 0x58e   :  { %v286_v63 = vld [vmem:[#allocation2] sm:$0xff] }
 0x58f   :  { %1197 = vmatmul.mubr.msk.f32.vlgmr.msra.gmra.mrb[2].mxu0 %vm18_vm0, %v286_v63 }
 0x590   :  { %1280 = vmatpush3.bf16.msra.mxu0 %v1402_v5  ;;  %1218 = vmatprep.mubr.msk.f32.mxu0 %vm1360_vm1, %v1361_v4 }
 0x591   :  { %1281 = vmatprep.subr.bf16.mxu0 %v1359_v0 }
 0x594   :  { %1283 = vmatpush3.bf16.msra.mxu0 %v1411_v7 }
 0x595   :  { %1290 = vmatprep.subr.bf16.mxu0 %v1359_v0 }
 0x662   :  { %v369_v1 = vpop.f32.mrb[2].mxu0 }
 0x663   :  { %v370_v2 = vadd.f32 %v1430_v9, %v369_v1  ;;  %v1198_v3 = vpop.f32.mrb[3].mxu0 }
 0x665   :  { %381 = vrot.lane.b32.xlu0 %v370_v2, %s1362_s21  ;;  %v373_v8 = vadd.f32 %v1096_v6, %v370_v2 }
 0x667   :  { %v1099_v10 = vmul.f32 -1.442695, %v373_v8 }
 0x669   :  { %1323 = vpow2.f32 %v1099_v10 }
 0x673   :  { %v1324_v11 = vpop.eup %1323 }
 0x674   :  { %v377_v12 = vadd.f32 1.0, %v1324_v11 }
 0x676   :  { %1325 = vrcp.f32 %v377_v12 }
 0x680   :  { %v1326_v13 = vpop.eup %1325 }
 0x681   :  { %v391_v20 = vsub.f32 1.0, %v1326_v13 }
 0x6d7   :  { %v382_v14 = vpop.permute.xlu0 %381 }
 0x6d8   :  { %v384_v15 = vmul.f32 %v1326_v13, %v382_v14 }
 0x6da   :  { %386 = vrot.lane.b32.xlu1 %v384_v15, %s1363_s2 }
 0x6de   :  { %397 = vrot.lane.b32.xlu1 %v286_v63, %s1366_s26 }
 0x74c   :  { %v387_v16 = vpop.permute.xlu1 %386 }
 0x74d   :  { %v389_v17 = vadd.f32 %v1096_v6, %v387_v16 }
 0x74f   :  { %1327 = vtanh.f32 %v389_v17 }
 0x750   :  { %v398_v19 = vpop.permute.xlu1 %397 }
 0x751   :  { %v400_v22 = vmul.f32 %v1326_v13, %v398_v19 }
 0x759   :  { %v1328_v18 = vpop.eup %1327 }
 0x75a   :  { %393 = vrot.lane.b32.xlu0 %v1328_v18, %s1365_s25 }
 0x75e   :  { %402 = vrot.lane.b32.xlu0 %v286_v63, %s1364_s24 }
 0x7cc   :  { %v394_v21 = vpop.permute.xlu0 %393 }
 0x7cd   :  { %v396_v23 = vmul.f32 %v394_v21, %v391_v20 }
 0x7cf   :  { %v401_v24 = vadd.f32 %v400_v22, %v396_v23 }
 0x7d0   :  { %v403_v25 = vpop.permute.xlu0 %402 }
 0x7d1   :  { %v405_v26 = vmul.f32 %v1326_v13, %v403_v25  ;;  %408 = vrot.lane.b32.xlu1 %v401_v24, %s1365_s25 }
 0x7d3   :  { %v406_v27 = vadd.f32 %v405_v26, %v396_v23 }
 0x7d5   :  { %412 = vrot.lane.b32.xlu0 %v406_v27, %s1367_s27 }
 0x843   :  { %v409_v28 = vpop.permute.xlu1 %408 }
 0x847   :  { %v413_v29 = vpop.permute.xlu0 %412 }
 0x848   :  { %v415_v30 = vsel %vm149_vm2, %v409_v28, %v413_v29 }
 0x849   :  { %416 = vst.msk [vmem:[#allocation2] sm:$0xff] %vm18_vm0, %v415_v30  ;;  %1100 = vst.msk [vmem:[%s1606_s3 + $0x10] sm:$0xff] %vm18_vm0, %v415_v30  ;;  %v1111_v30 = vld [vmem:[%s1605_s0 + $0x28] sm:$0xff] }
 0x850   :  { %v419_v31 = vld [vmem:[#allocation2] sm:$0xff] }
 0x851   :  { %1208 = vmatmul.mubr.msk.f32.vlgmr.msra.gmra.mrb[2].mxu1 %vm18_vm0, %v419_v31 }
 0x852   :  { %1286 = vmatpush3.bf16.msra.mxu1 %v1402_v5  ;;  %1229 = vmatprep.mubr.msk.f32.mxu1 %vm1360_vm1, %v1361_v4 }
 0x853   :  { %1287 = vmatprep.subr.bf16.mxu1 %v1359_v0 }
 0x856   :  { %1289 = vmatpush3.bf16.msra.mxu1 %v1411_v7 }
 0x857   :  { %1296 = vmatprep.subr.bf16.mxu1 %v1359_v0 }
 0x924   :  { %v502_v32 = vpop.f32.mrb[2].mxu1 }
 0x925   :  { %v503_v33 = vadd.f32 %v1430_v9, %v502_v32  ;;  %v1209_v34 = vpop.f32.mrb[3].mxu1 }
 0x927   :  { %514 = vrot.lane.b32.xlu1 %v503_v33, %s1362_s21  ;;  %v506_v36 = vadd.f32 %v1101_v35, %v503_v33 }
 0x929   :  { %v1104_v37 = vmul.f32 -1.442695, %v506_v36 }
 0x92b   :  { %1329 = vpow2.f32 %v1104_v37 }
 0x935   :  { %v1330_v38 = vpop.eup %1329 }
 0x936   :  { %v510_v39 = vadd.f32 1.0, %v1330_v38 }
 0x938   :  { %1331 = vrcp.f32 %v510_v39 }
 0x942   :  { %v1332_v40 = vpop.eup %1331 }
 0x943   :  { %v524_v47 = vsub.f32 1.0, %v1332_v40 }
 0x999   :  { %v515_v41 = vpop.permute.xlu1 %514 }
 0x99a   :  { %v517_v42 = vmul.f32 %v1332_v40, %v515_v41 }
 0x99c   :  { %519 = vrot.lane.b32.xlu0 %v517_v42, %s1363_s2 }
 0x9a0   :  { %530 = vrot.lane.b32.xlu0 %v419_v31, %s1366_s26 }
 0xa0e   :  { %v520_v43 = vpop.permute.xlu0 %519 }
 0xa0f   :  { %v522_v44 = vadd.f32 %v1101_v35, %v520_v43 }
 0xa11   :  { %1333 = vtanh.f32 %v522_v44 }
 0xa12   :  { %v531_v46 = vpop.permute.xlu0 %530 }
 0xa13   :  { %v533_v49 = vmul.f32 %v1332_v40, %v531_v46 }
 0xa1b   :  { %v1334_v45 = vpop.eup %1333 }
 0xa1c   :  { %526 = vrot.lane.b32.xlu1 %v1334_v45, %s1365_s25 }
 0xa20   :  { %535 = vrot.lane.b32.xlu1 %v419_v31, %s1364_s24 }
 0xa8e   :  { %v527_v48 = vpop.permute.xlu1 %526 }
 0xa8f   :  { %v529_v50 = vmul.f32 %v527_v48, %v524_v47 }
 0xa91   :  { %v534_v51 = vadd.f32 %v533_v49, %v529_v50 }
 0xa92   :  { %v536_v52 = vpop.permute.xlu1 %535 }
 0xa93   :  { %v538_v53 = vmul.f32 %v1332_v40, %v536_v52  ;;  %541 = vrot.lane.b32.xlu0 %v534_v51, %s1365_s25 }
 0xa95   :  { %v539_v54 = vadd.f32 %v538_v53, %v529_v50  ;;  %v1116_v53 = vld [vmem:[%s1605_s0 + $0x30] sm:$0xff] }
 0xa97   :  { %545 = vrot.lane.b32.xlu1 %v539_v54, %s1367_s27 }
 0xb05   :  { %v542_v55 = vpop.permute.xlu0 %541 }
 0xb09   :  { %v546_v56 = vpop.permute.xlu1 %545 }
 0xb0a   :  { %v548_v57 = vsel %vm149_vm2, %v542_v55, %v546_v56 }
 0xb0b   :  { %549 = vst.msk [vmem:[#allocation2] sm:$0xff] %vm18_vm0, %v548_v57  ;;  %1105 = vst.msk [vmem:[%s1606_s3 + $0x18] sm:$0xff] %vm18_vm0, %v548_v57 }
 0xb12   :  { %v552_v58 = vld [vmem:[#allocation2] sm:$0xff] }
 0xb13   :  { %1219 = vmatmul.mubr.msk.f32.vlgmr.msra.gmra.mrb[4].mxu0 %vm18_vm0, %v552_v58 }
 0xb14   :  { %1292 = vmatpush3.bf16.msra.mxu0 %v1402_v5  ;;  %1240 = vmatprep.mubr.msk.f32.mxu0 %vm1360_vm1, %v1361_v4 }
 0xb15   :  { %1293 = vmatprep.subr.bf16.mxu0 %v1359_v0 }
 0xb18   :  { %1295 = vmatpush3.bf16.msra.mxu0 %v1411_v7 }
 0xbe6   :  { %v635_v59 = vpop.f32.mrb[4].mxu0 }
 0xbe7   :  { %v636_v60 = vadd.f32 %v1430_v9, %v635_v59  ;;  %v1220_v61 = vpop.f32.mrb[5].mxu0 }
 0xbe9   :  { %647 = vrot.lane.b32.xlu0 %v636_v60, %s1362_s21  ;;  %v639_v63 = vadd.f32 %v1106_v62, %v636_v60 }
 0xbeb   :  { %v1109_v1 = vmul.f32 -1.442695, %v639_v63 }
 0xbed   :  { %1335 = vpow2.f32 %v1109_v1 }
 0xbf7   :  { %v1336_v2 = vpop.eup %1335 }
 0xbf8   :  { %v643_v3 = vadd.f32 1.0, %v1336_v2 }
 0xbfa   :  { %1337 = vrcp.f32 %v643_v3 }
 0xc04   :  { %v1338_v6 = vpop.eup %1337 }
 0xc05   :  { %v657_v15 = vsub.f32 1.0, %v1338_v6 }
 0xc5b   :  { %v648_v8 = vpop.permute.xlu0 %647 }
 0xc5c   :  { %v650_v10 = vmul.f32 %v1338_v6, %v648_v8 }
 0xc5e   :  { %652 = vrot.lane.b32.xlu1 %v650_v10, %s1363_s2 }
 0xc62   :  { %663 = vrot.lane.b32.xlu1 %v552_v58, %s1366_s26 }
 0xcd0   :  { %v653_v11 = vpop.permute.xlu1 %652 }
 0xcd1   :  { %v655_v12 = vadd.f32 %v1106_v62, %v653_v11 }
 0xcd3   :  { %1339 = vtanh.f32 %v655_v12 }
 0xcd4   :  { %v664_v14 = vpop.permute.xlu1 %663 }
 0xcd5   :  { %v666_v17 = vmul.f32 %v1338_v6, %v664_v14 }
 0xcdd   :  { %v1340_v13 = vpop.eup %1339 }
 0xcde   :  { %659 = vrot.lane.b32.xlu0 %v1340_v13, %s1365_s25 }
 0xce2   :  { %668 = vrot.lane.b32.xlu0 %v552_v58, %s1364_s24 }
 0xd50   :  { %v660_v16 = vpop.permute.xlu0 %659 }
 0xd51   :  { %v662_v18 = vmul.f32 %v660_v16, %v657_v15 }
 0xd53   :  { %v667_v19 = vadd.f32 %v666_v17, %v662_v18 }
 0xd54   :  { %v669_v20 = vpop.permute.xlu0 %668 }
 0xd55   :  { %v671_v21 = vmul.f32 %v1338_v6, %v669_v20  ;;  %674 = vrot.lane.b32.xlu1 %v667_v19, %s1365_s25 }
 0xd57   :  { %v672_v22 = vadd.f32 %v671_v21, %v662_v18  ;;  %v1121_v21 = vld [vmem:[%s1605_s0 + $0x38] sm:$0xff] }
 0xd59   :  { %678 = vrot.lane.b32.xlu0 %v672_v22, %s1367_s27 }
 0xdc7   :  { %v675_v23 = vpop.permute.xlu1 %674 }
 0xdcb   :  { %v679_v24 = vpop.permute.xlu0 %678 }
 0xdcc   :  { %v681_v25 = vsel %vm149_vm2, %v675_v23, %v679_v24 }
 0xdcd   :  { %682 = vst.msk [vmem:[#allocation2] sm:$0xff] %vm18_vm0, %v681_v25  ;;  %1110 = vst.msk [vmem:[%s1606_s3 + $0x20] sm:$0xff] %vm18_vm0, %v681_v25 }
 0xdd4   :  { %v685_v26 = vld [vmem:[#allocation2] sm:$0xff] }
 0xdd5   :  { %1230 = vmatmul.mubr.msk.f32.vlgmr.msra.gmra.mrb[4].mxu1 %vm18_vm0, %v685_v26 }
 0xdd6   :  { %1298 = vmatpush3.bf16.msra.mxu1 %v1402_v5  ;;  %1251 = vmatprep.mubr.msk.f32.mxu1 %vm1360_vm1, %v1361_v4 }
 0xdd7   :  { %1299 = vmatprep.subr.bf16.mxu1 %v1359_v0 }
 0xdda   :  { %1301 = vmatpush3.bf16.msra.mxu1 %v1411_v7 }
 0xea8   :  { %v768_v27 = vpop.f32.mrb[4].mxu1 }
 0xea9   :  { %v769_v28 = vadd.f32 %v1430_v9, %v768_v27  ;;  %v1231_v29 = vpop.f32.mrb[5].mxu1 }
 0xeab   :  { %780 = vrot.lane.b32.xlu1 %v769_v28, %s1362_s21  ;;  %v772_v31 = vadd.f32 %v1111_v30, %v769_v28 }
 0xead   :  { %v1114_v32 = vmul.f32 -1.442695, %v772_v31 }
 0xeaf   :  { %1341 = vpow2.f32 %v1114_v32 }
 0xeb9   :  { %v1342_v5 = vpop.eup %1341 }
 0xeba   :  { %v776_v33 = vadd.f32 1.0, %v1342_v5 }
 0xebc   :  { %1343 = vrcp.f32 %v776_v33 }
 0xec6   :  { %v1344_v4 = vpop.eup %1343 }
 0xec7   :  { %v790_v38 = vsub.f32 1.0, %v1344_v4 }
 0xf1d   :  { %v781_v0 = vpop.permute.xlu1 %780 }
 0xf1e   :  { %v783_v34 = vmul.f32 %v1344_v4, %v781_v0 }
 0xf20   :  { %785 = vrot.lane.b32.xlu0 %v783_v34, %s1363_s2 }
 0xf24   :  { %796 = vrot.lane.b32.xlu0 %v685_v26, %s1366_s26 }
 0xf92   :  { %v786_v7 = vpop.permute.xlu0 %785 }
 0xf93   :  { %v788_v35 = vadd.f32 %v1111_v30, %v786_v7 }
 0xf95   :  { %1345 = vtanh.f32 %v788_v35 }
 0xf96   :  { %v797_v37 = vpop.permute.xlu0 %796 }
 0xf97   :  { %v799_v40 = vmul.f32 %v1344_v4, %v797_v37 }
 0xf9f   :  { %v1346_v36 = vpop.eup %1345 }
 0xfa0   :  { %792 = vrot.lane.b32.xlu1 %v1346_v36, %s1365_s25 }
 0xfa4   :  { %801 = vrot.lane.b32.xlu1 %v685_v26, %s1364_s24 }
0x1012   :  { %v793_v39 = vpop.permute.xlu1 %792 }
0x1013   :  { %v795_v41 = vmul.f32 %v793_v39, %v790_v38 }
0x1015   :  { %v800_v42 = vadd.f32 %v799_v40, %v795_v41 }
0x1016   :  { %v802_v43 = vpop.permute.xlu1 %801 }
0x1017   :  { %v804_v44 = vmul.f32 %v1344_v4, %v802_v43  ;;  %807 = vrot.lane.b32.xlu0 %v800_v42, %s1365_s25 }
0x1019   :  { %v805_v45 = vadd.f32 %v804_v44, %v795_v41 }
0x101b   :  { %811 = vrot.lane.b32.xlu1 %v805_v45, %s1367_s27 }
0x1089   :  { %v808_v46 = vpop.permute.xlu0 %807 }
0x108d   :  { %v812_v47 = vpop.permute.xlu1 %811 }
0x108e   :  { %v814_v48 = vsel %vm149_vm2, %v808_v46, %v812_v47 }
0x108f   :  { %815 = vst.msk [vmem:[#allocation2] sm:$0xff] %vm18_vm0, %v814_v48  ;;  %1115 = vst.msk [vmem:[%s1606_s3 + $0x28] sm:$0xff] %vm18_vm0, %v814_v48 }
0x1096   :  { %v818_v49 = vld [vmem:[#allocation2] sm:$0xff] }
0x1097   :  { %1241 = vmatmul.mubr.msk.f32.vlgmr.msra.gmra.mrb[6].mxu0 %vm18_vm0, %v818_v49 }
0x116a   :  { %v901_v50 = vpop.f32.mrb[6].mxu0 }
0x116b   :  { %v902_v51 = vadd.f32 %v1430_v9, %v901_v50  ;;  %v1242_v52 = vpop.f32.mrb[7].mxu0 }
0x116d   :  { %913 = vrot.lane.b32.xlu0 %v902_v51, %s1362_s21  ;;  %v905_v54 = vadd.f32 %v1116_v53, %v902_v51 }
0x116f   :  { %v1119_v55 = vmul.f32 -1.442695, %v905_v54 }
0x1171   :  { %1347 = vpow2.f32 %v1119_v55 }
0x117b   :  { %v1348_v56 = vpop.eup %1347 }
0x117c   :  { %v909_v57 = vadd.f32 1.0, %v1348_v56 }
0x117e   :  { %1349 = vrcp.f32 %v909_v57 }
0x1188   :  { %v1350_v58 = vpop.eup %1349 }
0x1189   :  { %v923_v2 = vsub.f32 1.0, %v1350_v58 }
0x11df   :  { %v914_v59 = vpop.permute.xlu0 %913 }
0x11e0   :  { %v916_v60 = vmul.f32 %v1350_v58, %v914_v59 }
0x11e2   :  { %918 = vrot.lane.b32.xlu1 %v916_v60, %s1363_s2 }
0x11e6   :  { %929 = vrot.lane.b32.xlu1 %v818_v49, %s1366_s26 }
0x1254   :  { %v919_v61 = vpop.permute.xlu1 %918 }
0x1255   :  { %v921_v62 = vadd.f32 %v1116_v53, %v919_v61 }
0x1257   :  { %1351 = vtanh.f32 %v921_v62 }
0x1258   :  { %v930_v1 = vpop.permute.xlu1 %929 }
0x1259   :  { %v932_v6 = vmul.f32 %v1350_v58, %v930_v1 }
0x1261   :  { %v1352_v63 = vpop.eup %1351 }
0x1262   :  { %925 = vrot.lane.b32.xlu0 %v1352_v63, %s1365_s25 }
0x1266   :  { %934 = vrot.lane.b32.xlu0 %v818_v49, %s1364_s24 }
0x12d4   :  { %v926_v3 = vpop.permute.xlu0 %925 }
0x12d5   :  { %v928_v8 = vmul.f32 %v926_v3, %v923_v2 }
0x12d7   :  { %v933_v10 = vadd.f32 %v932_v6, %v928_v8 }
0x12d8   :  { %v935_v11 = vpop.permute.xlu0 %934 }
0x12d9   :  { %v937_v12 = vmul.f32 %v1350_v58, %v935_v11  ;;  %940 = vrot.lane.b32.xlu1 %v933_v10, %s1365_s25 }
0x12db   :  { %v938_v13 = vadd.f32 %v937_v12, %v928_v8 }
0x12dd   :  { %944 = vrot.lane.b32.xlu0 %v938_v13, %s1367_s27 }
0x134b   :  { %v941_v14 = vpop.permute.xlu1 %940 }
0x134f   :  { %v945_v15 = vpop.permute.xlu0 %944 }
0x1350   :  { %v947_v16 = vsel %vm149_vm2, %v941_v14, %v945_v15 }
0x1351   :  { %948 = vst.msk [vmem:[#allocation2] sm:$0xff] %vm18_vm0, %v947_v16  ;;  %1120 = vst.msk [vmem:[%s1606_s3 + $0x30] sm:$0xff] %vm18_vm0, %v947_v16 }
0x1358   :  { %v951_v17 = vld [vmem:[#allocation2] sm:$0xff] }
0x1359   :  { %1252 = vmatmul.mubr.msk.f32.vlgmr.msra.gmra.mrb[6].mxu1 %vm18_vm0, %v951_v17 }
0x142c   :  { %v1034_v18 = vpop.f32.mrb[6].mxu1 }
0x142d   :  { %v1035_v19 = vadd.f32 %v1430_v9, %v1034_v18  ;;  %v1253_v20 = vpop.f32.mrb[7].mxu1 }
0x142f   :  { %1046 = vrot.lane.b32.xlu1 %v1035_v19, %s1362_s21  ;;  %v1038_v22 = vadd.f32 %v1121_v21, %v1035_v19 }
0x1431   :  { %v1124_v23 = vmul.f32 -1.442695, %v1038_v22 }
0x1433   :  { %1353 = vpow2.f32 %v1124_v23 }
0x143d   :  { %v1354_v24 = vpop.eup %1353 }
0x143e   :  { %v1042_v25 = vadd.f32 1.0, %v1354_v24 }
0x1440   :  { %1355 = vrcp.f32 %v1042_v25 }
0x144a   :  { %v1356_v26 = vpop.eup %1355 }
0x144b   :  { %v1056_v32 = vsub.f32 1.0, %v1356_v26 }
0x14a1   :  { %v1047_v27 = vpop.permute.xlu1 %1046 }
0x14a2   :  { %v1049_v28 = vmul.f32 %v1356_v26, %v1047_v27 }
0x14a4   :  { %1051 = vrot.lane.b32.xlu0 %v1049_v28, %s1363_s2 }
0x14a8   :  { %1062 = vrot.lane.b32.xlu0 %v951_v17, %s1366_s26 }
0x1516   :  { %v1052_v9 = vpop.permute.xlu0 %1051 }
0x1517   :  { %v1054_v29 = vadd.f32 %v1121_v21, %v1052_v9 }
0x1519   :  { %1357 = vtanh.f32 %v1054_v29 }
0x151a   :  { %v1063_v31 = vpop.permute.xlu0 %1062 }
0x151b   :  { %v1065_v33 = vmul.f32 %v1356_v26, %v1063_v31 }
0x1523   :  { %v1358_v30 = vpop.eup %1357 }
0x1524   :  { %1058 = vrot.lane.b32.xlu1 %v1358_v30, %s1365_s25 }
0x1528   :  { %1067 = vrot.lane.b32.xlu1 %v951_v17, %s1364_s24 }
0x1596   :  { %v1059_v5 = vpop.permute.xlu1 %1058 }
0x1597   :  { %v1061_v4 = vmul.f32 %v1059_v5, %v1056_v32 }
0x1599   :  { %v1066_v0 = vadd.f32 %v1065_v33, %v1061_v4 }
0x159a   :  { %v1068_v34 = vpop.permute.xlu1 %1067 }
0x159b   :  { %v1070_v7 = vmul.f32 %v1356_v26, %v1068_v34  ;;  %1073 = vrot.lane.b32.xlu0 %v1066_v0, %s1365_s25 }
0x159d   :  { %v1071_v35 = vadd.f32 %v1070_v7, %v1061_v4 }
0x159f   :  { %1077 = vrot.lane.b32.xlu1 %v1071_v35, %s1367_s27 }
0x160d   :  { %v1074_v36 = vpop.permute.xlu0 %1073 }
0x1611   :  { %v1078_v37 = vpop.permute.xlu1 %1077 }
0x1612   :  { %v1080_v38 = vsel %vm149_vm2, %v1074_v36, %v1078_v37 }
0x1613   :  { %1081 = vst.msk [vmem:[#allocation2] sm:$0xff] %vm18_vm0, %v1080_v38  ;;  %1125 = vst.msk [vmem:[%s1606_s3 + $0x38] sm:$0xff] %vm18_vm0, %v1080_v38 }

</bundles_post_ra>
